<compile_context>
chip_gen: v7x
topology: tpu7x:2x2x1
jax: 0.10.0
libtpu: 0.0.40
codegen_flags: <defaults>
</compile_context>

<pallas_src>
import functools

import jax
import jax.numpy as jnp
from jax import lax
from jax.experimental import pallas as pl
from jax.experimental.pallas import tpu as pltpu

LEAKY_SLOPE = 0.01   # F.leaky_relu default negative_slope
BN_EPS = 1e-5        # nn.BatchNorm2d default eps


# ---------------------------------------------------------------------------
# In-kernel helpers
# ---------------------------------------------------------------------------
def _leaky(y):
    return jnp.where(y > 0, y, LEAKY_SLOPE * y)


def _zero_halo_all(ref):
    """Zero only the 1-pixel border ring of each image's padded plane.

    The interior is fully overwritten every grid step; only the ring needs
    zeroing.  Re-zeroed every step (not under pl.when) so the kernel stays
    correct when the 'parallel' batch axis is sharded across TensorCores.
    """
    G, Hp, Wp, C = ref.shape
    zrow = jnp.zeros((1, Wp, C), ref.dtype)
    zcol = jnp.zeros((Hp, 1, C), ref.dtype)
    for g in range(G):
        ref[g, 0:1, :, :] = zrow
        ref[g, Hp - 1:Hp, :, :] = zrow
        ref[g, :, 0:1, :] = zcol
        ref[g, :, Wp - 1:Wp, :] = zcol


def _im2col_3x3(xp_ref, pmat_ref, G, Ho, Wo, C, stride):
    """Scatter the 9 shifted patches into the bf16 im2col scratch.

    pmat layout is (G, Ho, Wo, 9*C): each patch is written directly at its lane
    offset (no per-patch reshape -> no relayout copies), with the f32->bf16
    cast folded into the store.  The (G*Ho*Wo, 9*C) view fed to the MXU dot is
    one contiguous collapse of the whole scratch.
    """
    for g in range(G):
        src = None if stride == 1 else xp_ref[g]
        for kh in range(3):
            for kw in range(3):
                if stride == 1:
                    patch = xp_ref[g, kh:kh + Ho, kw:kw + Wo, :]
                else:
                    # TODO(synk): for stride > 1, select the needed rows/cols at
                    # DMA time (space-to-depth in the wrapper + index_map)
                    # instead of a strided in-VMEM slice that loads 4x the rows.
                    patch = lax.slice(
                        src, (kh, kw, 0),
                        (kh + stride * (Ho - 1) + 1,
                         kw + stride * (Wo - 1) + 1, C),
                        (stride, stride, 1))
                k0 = (kh * 3 + kw) * C
                pmat_ref[g, :, :, k0:k0 + C] = patch.astype(pmat_ref.dtype)
    return pmat_ref[...].reshape(G * Ho * Wo, 9 * C)


# ---------------------------------------------------------------------------
# Pass 1: conv1 (+ optional downsample conv fused in the same matmul)
#         + per-step partial BN statistics
# ---------------------------------------------------------------------------
def _conv_input_kernel(x_ref, w_ref, *rest, G, H, W, Cin, Cout, stride,
                       has_downsample):
    if has_downsample:
        y1_ref, yd_ref, stats_ref, xp_ref, pmat_ref = rest
    else:
        y1_ref, stats_ref, xp_ref, pmat_ref = rest
        yd_ref = None

    Ho = (H - 1) // stride + 1
    Wo = (W - 1) // stride + 1

    # zero-pad (padding=1) inside VMEM: only the halo ring; interior is written
    # directly from the input block (no wrapper-side padded HBM copy).
    _zero_halo_all(xp_ref)
    for g in range(G):
        xp_ref[g, 1:1 + H, 1:1 + W, :] = x_ref[g]

    pmat = _im2col_3x3(xp_ref, pmat_ref, G, Ho, Wo, Cin, stride)     # bf16
    y = jnp.dot(pmat, w_ref[...], preferred_element_type=jnp.float32)

    # pass 1 of two-pass training-mode BatchNorm: partial sums (f32).
    # TODO(synk): E[x^2]-E[x]^2 can cancel for large-mean activations; a
    # shifted accumulation would be more robust (matches the reference here).
    stats_ref[0, 0:1, :] = jnp.sum(y, axis=0, keepdims=True)
    stats_ref[0, 1:2, :] = jnp.sum(y * y, axis=0, keepdims=True)

    if has_downsample:
        # For real ResNet-34 downsample blocks Cout is a multiple of 128, so
        # this lane split is vreg-aligned.  TODO(synk): for non-aligned Cout,
        # emit a single fused (Ho, Wo, 2*Cout) output instead of splitting.
        y1_ref[...] = y[:, :Cout].astype(y1_ref.dtype).reshape(G, Ho, Wo, Cout)
        yd_ref[...] = y[:, Cout:].astype(yd_ref.dtype).reshape(G, Ho, Wo, Cout)
    else:
        y1_ref[...] = y.astype(y1_ref.dtype).reshape(G, Ho, Wo, Cout)


# ---------------------------------------------------------------------------
# Pass 2: bn1 (global scale/shift) + leaky_relu + conv2 + bn2 partial stats
# ---------------------------------------------------------------------------
def _bn_relu_conv2_kernel(y1_ref, scale1_ref, shift1_ref, w2_ref,
                          y2_ref, stats_ref, a1p_ref, pmat_ref,
                          *, G, Ho, Wo, C):
    _zero_halo_all(a1p_ref)

    # bn1 + leaky_relu in f32 (inputs stored bf16), written straight into the
    # conv2 pad-scratch interior; the bf16 cast for the MXU happens at the
    # im2col patch stores.
    a1 = _leaky(y1_ref[...].astype(jnp.float32) * scale1_ref[...]
                + shift1_ref[...])
    for g in range(G):
        a1p_ref[g, 1:1 + Ho, 1:1 + Wo, :] = a1[g]

    pmat = _im2col_3x3(a1p_ref, pmat_ref, G, Ho, Wo, C, 1)
    y2 = jnp.dot(pmat, w2_ref[...], preferred_element_type=jnp.float32)

    stats_ref[0, 0:1, :] = jnp.sum(y2, axis=0, keepdims=True)
    stats_ref[0, 1:2, :] = jnp.sum(y2 * y2, axis=0, keepdims=True)
    y2_ref[...] = y2.astype(y2_ref.dtype).reshape(G, Ho, Wo, C)


# ---------------------------------------------------------------------------
# Pass 3: bn2 + (downsample-BN | identity) residual add + leaky_relu.
# Row-tiled elementwise kernel over the flattened (N*Ho, Wo*Cout) view.
# ---------------------------------------------------------------------------
def _bn_residual_kernel(y2_ref, res_ref, scale2_ref, shift2_ref,
                        scaled_ref, shiftd_ref, o_ref):
    a2 = y2_ref[...].astype(jnp.float32) * scale2_ref[...] + shift2_ref[...]
    r = res_ref[...].astype(jnp.float32) * scaled_ref[...] + shiftd_ref[...]
    o_ref[...] = _leaky(a2 + r)


# ---------------------------------------------------------------------------
# Wrapper helpers
# ---------------------------------------------------------------------------
def _vmem_capacity_bytes(default=64 * 1024 * 1024):
    try:
        cap = getattr(pltpu.get_tpu_info(), "vmem_capacity_bytes", None)
        return int(cap) if cap else default
    except Exception:
        return default


def _pick_images_per_step(N, H, W, Cin, Ho, Wo, Cout, Ct, has_downsample,
                          budget):
    """Largest divisor G<=4 of N whose pass-1/2 VMEM footprint fits `budget`."""
    def fits(G):
        p1 = (G * (H + 2) * (W + 2) * Cin * 4           # pad scratch (f32)
              + G * Ho * Wo * 9 * Cin * 2               # im2col scratch (bf16)
              + 2 * (G * H * W * Cin * 4                # x blocks (dbl buf)
                     + 9 * Cin * Ct * 2                 # weights (dbl buf)
                     + (2 if has_downsample else 1) * G * Ho * Wo * Cout * 2))
        p2 = (G * (Ho + 2) * (Wo + 2) * Cout * 4
              + G * Ho * Wo * 9 * Cout * 2
              + 2 * (2 * G * Ho * Wo * Cout * 2 + 9 * Cout * Cout * 2))
        return max(p1, p2) <= budget
    for G in (4, 3, 2):
        if N % G == 0 and fits(G):
            return G
    return 1


def _row_tile(rows, target=512):
    """Largest row tile <= target that divides `rows` (multiple of 8)."""
    if rows <= target:
        return rows
    for t in range(target, 7, -1):
        if rows % t == 0 and t % 8 == 0:
            return t
    return rows


# ---------------------------------------------------------------------------
# NHWC core (use this end-to-end in a full NHWC network)
# ---------------------------------------------------------------------------
def basic_block_forward_nhwc(x_nhwc, params, stride=1):
    N, H, W, Cin = x_nhwc.shape
    Cout = params["w1"].shape[-1]
    Ho = (H - 1) // stride + 1
    Wo = (W - 1) // stride + 1
    has_downsample = (stride != 1) or (Cin != Cout)
    f32, bf16 = jnp.float32, jnp.bfloat16

    x_nhwc = x_nhwc.astype(f32)

    # HWIO conv weights -> im2col layout (9*Cin, Cout); bf16 for the MXU.
    w1 = params["w1"].reshape(9 * Cin, Cout).astype(bf16)
    w2 = params["w2"].reshape(9 * Cout, Cout).astype(bf16)
    if has_downsample:
        wd = params["wd"].reshape(9 * Cin, Cout).astype(bf16)
        w_in = jnp.concatenate([w1, wd], axis=1)       # fused conv1 + convD
        Ct = 2 * Cout
    else:
        w_in = w1
        Ct = Cout

    vmem_limit = int(0.75 * _vmem_capacity_bytes())    # 48 MiB v7x / 96 MiB v5e,v6e
    G = _pick_images_per_step(N, H, W, Cin, Ho, Wo, Cout, Ct, has_downsample,
                              budget=vmem_limit // 2)
    n_steps = N // G
    count = float(N * Ho * Wo)                         # BN population / channel

    cparams = pltpu.CompilerParams(
        dimension_semantics=("parallel",),             # megacore-shard (v7x)
        vmem_limit_bytes=vmem_limit)

    x_spec = pl.BlockSpec((G, H, W, Cin), lambda i: (i, 0, 0, 0))
    img_spec = pl.BlockSpec((G, Ho, Wo, Cout), lambda i: (i, 0, 0, 0))
    chan_spec = pl.BlockSpec((1, Cout), lambda i: (0, 0))
    # TODO(synk): pipeline_mode=pl.Buffered(1) on the constant-index weight and
    # scale/shift specs (their index_map never changes) to drop the redundant
    # second VMEM buffer once single-buffering is supported on this JAX version.

    # -------------------- pass 1: conv1 (+ downsample conv) ------------------
    out_shape1 = [jax.ShapeDtypeStruct((N, Ho, Wo, Cout), bf16)]
    out_specs1 = [img_spec]
    if has_downsample:
        out_shape1.append(jax.ShapeDtypeStruct((N, Ho, Wo, Cout), bf16))
        out_specs1.append(img_spec)
    out_shape1.append(jax.ShapeDtypeStruct((n_steps, 2, Ct), f32))
    out_specs1.append(pl.BlockSpec((1, 2, Ct), lambda i: (i, 0, 0)))

    flops1 = 2 * N * Ho * Wo * 9 * Cin * Ct
    bytes1 = (4 * N * H * W * Cin + 2 * 9 * Cin * Ct
              + 2 * N * Ho * Wo * Ct + 8 * n_steps * Ct)

    res1 = pl.pallas_call(
        functools.partial(_conv_input_kernel, G=G, H=H, W=W, Cin=Cin,
                          Cout=Cout, stride=stride,
                          has_downsample=has_downsample),
        grid=(n_steps,),
        in_specs=[x_spec, pl.BlockSpec((9 * Cin, Ct), lambda i: (0, 0))],
        out_specs=tuple(out_specs1),
        out_shape=tuple(out_shape1),
        scratch_shapes=[pltpu.VMEM((G, H + 2, W + 2, Cin), f32),
                        pltpu.VMEM((G, Ho, Wo, 9 * Cin), bf16)],
        compiler_params=cparams,
        cost_estimate=pl.CostEstimate(flops=flops1, transcendentals=0,
                                      bytes_accessed=bytes1),
    )(x_nhwc, w_in)

    if has_downsample:
        y1_raw, yd_raw, stats_in = res1
        stats1, statsd = stats_in[:, :, :Cout], stats_in[:, :, Cout:]
    else:
        y1_raw, stats1 = res1
        yd_raw, statsd = None, None

    # Tiny per-channel BN finalize between passes (negligible cost).
    def _bn_scale_shift(stats, gamma, beta):
        s = jnp.sum(stats[:, 0, :], axis=0)
        ss = jnp.sum(stats[:, 1, :], axis=0)
        mean = s / count
        var = ss / count - mean * mean          # biased variance (training mode)
        scale = gamma.reshape(-1) * lax.rsqrt(var + BN_EPS)
        shift = beta.reshape(-1) - mean * scale
        return scale.reshape(1, Cout), shift.reshape(1, Cout)

    scale1, shift1 = _bn_scale_shift(stats1, params["g1"], params["b1"])

    # -------------------- pass 2: bn1 + leaky_relu + conv2 -------------------
    flops2 = 2 * N * Ho * Wo * 9 * Cout * Cout
    bytes2 = 4 * N * Ho * Wo * Cout + 2 * 9 * Cout * Cout + 8 * n_steps * Cout

    y2_raw, stats2 = pl.pallas_call(
        functools.partial(_bn_relu_conv2_kernel, G=G, Ho=Ho, Wo=Wo, C=Cout),
        grid=(n_steps,),
        in_specs=[img_spec, chan_spec, chan_spec,
                  pl.BlockSpec((9 * Cout, Cout), lambda i: (0, 0))],
        out_specs=(img_spec, pl.BlockSpec((1, 2, Cout), lambda i: (i, 0, 0))),
        out_shape=(jax.ShapeDtypeStruct((N, Ho, Wo, Cout), bf16),
                   jax.ShapeDtypeStruct((n_steps, 2, Cout), f32)),
        scratch_shapes=[pltpu.VMEM((G, Ho + 2, Wo + 2, Cout), f32),
                        pltpu.VMEM((G, Ho, Wo, 9 * Cout), bf16)],
        compiler_params=cparams,
        cost_estimate=pl.CostEstimate(flops=flops2, transcendentals=0,
                                      bytes_accessed=bytes2),
    )(y1_raw, scale1, shift1, w2)

    scale2, shift2 = _bn_scale_shift(stats2, params["g2"], params["b2"])
    rows, lanes = N * Ho, Wo * Cout
    if has_downsample:
        scaled, shiftd = _bn_scale_shift(statsd, params["gd"], params["bd"])
        res_flat = yd_raw.reshape(rows, lanes)              # bf16, free view
    else:
        # identity residual (Cin == Cout, stride == 1): unit scale, zero shift;
        # the residual stays the exact f32 input.
        scaled = jnp.ones((1, Cout), f32)
        shiftd = jnp.zeros((1, Cout), f32)
        res_flat = x_nhwc.reshape(rows, lanes)               # f32, free view

    # replicate per-channel scale/shift across the flattened (W, C) lane axis
    def _tile_lane(v):
        return jnp.tile(v, (1, Wo))                          # (1,C) -> (1,W*C)

    # -------------------- pass 3: bn2 + residual + leaky_relu ----------------
    tr = _row_tile(rows)
    row_spec = pl.BlockSpec((tr, lanes), lambda r: (r, 0))
    vec_spec = pl.BlockSpec((1, lanes), lambda r: (0, 0))

    flops3 = 6 * rows * lanes
    bytes3 = (2 + res_flat.dtype.itemsize + 4) * rows * lanes

    out_flat = pl.pallas_call(
        _bn_residual_kernel,
        grid=(rows // tr,),
        in_specs=[row_spec, row_spec, vec_spec, vec_spec, vec_spec, vec_spec],
        out_specs=row_spec,
        out_shape=jax.ShapeDtypeStruct((rows, lanes), f32),
        compiler_params=cparams,
        cost_estimate=pl.CostEstimate(flops=flops3, transcendentals=0,
                                      bytes_accessed=bytes3),
    )(y2_raw.reshape(rows, lanes), res_flat,
      _tile_lane(scale2), _tile_lane(shift2),
      _tile_lane(scaled), _tile_lane(shiftd))

    return out_flat.reshape(N, Ho, Wo, Cout)


# ---------------------------------------------------------------------------
# NCHW wrapper (PyTorch interface).  The two transposes exist only to preserve
# the module's NCHW in/out contract for a single block; a full NHWC network
# should call basic_block_forward_nhwc directly and drop them.
# ---------------------------------------------------------------------------
def basic_block_forward(x_nchw, params, stride=1):
    x_nhwc = jnp.transpose(x_nchw, (0, 2, 3, 1)).astype(jnp.float32)
    out_nhwc = basic_block_forward_nhwc(x_nhwc, params, stride=stride)
    return jnp.transpose(out_nhwc, (0, 3, 1, 2))


# ---------------------------------------------------------------------------
# Pure-JAX reference (self-check).  Mirrors the kernel's numerical scheme:
# bf16 MXU operands and bf16 storage of inter-stage activations, with f32
# accumulation / BN statistics / activation math.
# ---------------------------------------------------------------------------
def _ref_conv3x3(x, w, stride):
    return lax.conv_general_dilated(
        x.astype(jnp.bfloat16), w.astype(jnp.bfloat16),
        window_strides=(stride, stride), padding=((1, 1), (1, 1)),
        dimension_numbers=("NHWC", "HWIO", "NHWC"),
        preferred_element_type=jnp.float32)


def _round_bf16(y):
    return y.astype(jnp.bfloat16).astype(jnp.float32)


def _ref_bn(y, gamma, beta):
    mean = jnp.mean(y, axis=(0, 1, 2), keepdims=True)
    var = jnp.mean(y * y, axis=(0, 1, 2), keepdims=True) - mean * mean
    return ((y - mean) * lax.rsqrt(var + BN_EPS) * gamma.reshape(1, 1, 1, -1)
            + beta.reshape(1, 1, 1, -1))


def basic_block_reference(x_nchw, params, stride=1):
    Cin = x_nchw.shape[1]
    Cout = params["w1"].shape[-1]
    x = jnp.transpose(x_nchw, (0, 2, 3, 1)).astype(jnp.float32)
    y = _round_bf16(_ref_conv3x3(x, params["w1"], stride))
    y = _ref_bn(y, params["g1"], params["b1"])
    y = jnp.where(y > 0, y, LEAKY_SLOPE * y)
    y = _round_bf16(_ref_conv3x3(y, params["w2"], 1))
    y = _ref_bn(y, params["g2"], params["b2"])
    if stride != 1 or Cin != Cout:
        r = _round_bf16(_ref_conv3x3(x, params["wd"], stride))
        r = _ref_bn(r, params["gd"], params["bd"])
    else:
        r = x
    z = y + r
    z = jnp.where(z > 0, z, LEAKY_SLOPE * z)
    return jnp.transpose(z, (0, 3, 1, 2))


# ---------------------------------------------------------------------------
# TODO(synk): training-mode BN buffer side effects (running_mean/running_var
# momentum updates) are not produced; only the forward output of the module.
# ---------------------------------------------------------------------------
def _make_params(key, Cin, Cout):
    k1, k2, kd = jax.random.split(key, 3)
    return {
        "w1": 0.1 * jax.random.normal(k1, (3, 3, Cin, Cout), jnp.float32),
        "w2": 0.1 * jax.random.normal(k2, (3, 3, Cout, Cout), jnp.float32),
        "wd": 0.1 * jax.random.normal(kd, (3, 3, Cin, Cout), jnp.float32),
        "g1": jnp.ones((Cout,), jnp.float32), "b1": jnp.zeros((Cout,), jnp.float32),
        "g2": jnp.ones((Cout,), jnp.float32), "b2": jnp.zeros((Cout,), jnp.float32),
        "gd": jnp.ones((Cout,), jnp.float32), "bd": jnp.zeros((Cout,), jnp.float32),
    }


def _run_case(key, N, Cin, Cout, H, W, stride):
    kx, kp = jax.random.split(key)
    x = jax.random.normal(kx, (N, Cin, H, W), dtype=jnp.float32)
    params = _make_params(kp, Cin, Cout)
    fwd = jax.jit(functools.partial(basic_block_forward, stride=stride))
    out = jax.block_until_ready(fwd(x, params))
    ref = jax.block_until_ready(basic_block_reference(x, params, stride=stride))
    Ho = (H - 1) // stride + 1
    Wo = (W - 1) // stride + 1
    assert out.shape == (N, Cout, Ho, Wo), out.shape
    assert bool(jnp.all(jnp.isfinite(out)))
    max_err = float(jnp.max(jnp.abs(out - ref)))
    assert bool(jnp.allclose(out, ref, rtol=1e-2, atol=1e-2)), max_err


if __name__ == "__main__":
    key = jax.random.PRNGKey(0)
    k_a, k_b = jax.random.split(key)
    # Case A: downsample branch (in_channel != out_channel), stride=1.
    _run_case(k_a, N=2, Cin=4, Cout=8, H=16, W=16, stride=1)
    # Case B: identity residual (in_channel == out_channel), stride=1.
    _run_case(k_b, N=2, Cin=8, Cout=8, H=16, W=16, stride=1)
    print("KERNEL_OK")
</pallas_src>

<mosaic_0001>
module attributes {stable_mosaic.version = 11 : i64} {
  func.func @_bn_residual_kernel(%arg0: i32, %arg1: memref<32x128xbf16, #tpu.memory_space<vmem>>, %arg2: memref<32x128xbf16, #tpu.memory_space<vmem>>, %arg3: memref<1x128xf32, #tpu.memory_space<vmem>>, %arg4: memref<1x128xf32, #tpu.memory_space<vmem>>, %arg5: memref<1x128xf32, #tpu.memory_space<vmem>>, %arg6: memref<1x128xf32, #tpu.memory_space<vmem>>, %arg7: memref<32x128xf32, #tpu.memory_space<vmem>>) attributes {dimension_semantics = [#tpu.dimension_semantics<parallel>], iteration_bounds = array<i64: 1>, scalar_prefetch = 0 : i64, scratch_operands = 0 : i64, tpu.core_type = #tpu.core_type<tc>, window_params = [{transform_indices = @transform_0, window_bounds = array<i64: 32, 128>}, {transform_indices = @transform_1, window_bounds = array<i64: 32, 128>}, {pipeline_mode = #tpu.pipeline_mode<synchronous>, transform_indices = @transform_2, window_bounds = array<i64: 1, 128>}, {pipeline_mode = #tpu.pipeline_mode<synchronous>, transform_indices = @transform_3, window_bounds = array<i64: 1, 128>}, {pipeline_mode = #tpu.pipeline_mode<synchronous>, transform_indices = @transform_4, window_bounds = array<i64: 1, 128>}, {pipeline_mode = #tpu.pipeline_mode<synchronous>, transform_indices = @transform_5, window_bounds = array<i64: 1, 128>}, {transform_indices = @transform_6, window_bounds = array<i64: 32, 128>}]} {
    %c0 = arith.constant 0 : index
    %c0_0 = arith.constant 0 : index
    %0 = vector.load %arg1[%c0, %c0_0] : memref<32x128xbf16, #tpu.memory_space<vmem>>, vector<32x128xbf16>
    %1 = arith.extf %0 : vector<32x128xbf16> to vector<32x128xf32>
    %c0_1 = arith.constant 0 : index
    %c0_2 = arith.constant 0 : index
    %2 = vector.load %arg3[%c0_1, %c0_2] : memref<1x128xf32, #tpu.memory_space<vmem>>, vector<1x128xf32>
    %3 = vector.broadcast %2 : vector<1x128xf32> to vector<32x128xf32>
    %4 = arith.mulf %1, %3 : vector<32x128xf32>
    %c0_3 = arith.constant 0 : index
    %c0_4 = arith.constant 0 : index
    %5 = vector.load %arg4[%c0_3, %c0_4] : memref<1x128xf32, #tpu.memory_space<vmem>>, vector<1x128xf32>
    %6 = vector.broadcast %5 : vector<1x128xf32> to vector<32x128xf32>
    %7 = arith.addf %4, %6 : vector<32x128xf32>
    %c0_5 = arith.constant 0 : index
    %c0_6 = arith.constant 0 : index
    %8 = vector.load %arg2[%c0_5, %c0_6] : memref<32x128xbf16, #tpu.memory_space<vmem>>, vector<32x128xbf16>
    %9 = arith.extf %8 : vector<32x128xbf16> to vector<32x128xf32>
    %c0_7 = arith.constant 0 : index
    %c0_8 = arith.constant 0 : index
    %10 = vector.load %arg5[%c0_7, %c0_8] : memref<1x128xf32, #tpu.memory_space<vmem>>, vector<1x128xf32>
    %11 = vector.broadcast %10 : vector<1x128xf32> to vector<32x128xf32>
    %12 = arith.mulf %9, %11 : vector<32x128xf32>
    %c0_9 = arith.constant 0 : index
    %c0_10 = arith.constant 0 : index
    %13 = vector.load %arg6[%c0_9, %c0_10] : memref<1x128xf32, #tpu.memory_space<vmem>>, vector<1x128xf32>
    %14 = vector.broadcast %13 : vector<1x128xf32> to vector<32x128xf32>
    %15 = arith.addf %12, %14 : vector<32x128xf32>
    %16 = arith.addf %7, %15 : vector<32x128xf32>
    %cst = arith.constant 0.000000e+00 : f32
    %17 = vector.broadcast %cst : f32 to vector<32x128xf32>
    %18 = arith.cmpf ogt, %16, %17 : vector<32x128xf32>
    %cst_11 = arith.constant 0.00999999977 : f32
    %19 = vector.broadcast %cst_11 : f32 to vector<32x128xf32>
    %20 = arith.mulf %19, %16 : vector<32x128xf32>
    %21 = arith.select %18, %16, %20 : vector<32x128xi1>, vector<32x128xf32>
    %c0_12 = arith.constant 0 : index
    %c0_13 = arith.constant 0 : index
    %22 = vector.load %arg7[%c0_12, %c0_13] : memref<32x128xf32, #tpu.memory_space<vmem>>, vector<32x128xf32>
    tpu.vector_store %arg7[%c0_12, %c0_13], %21 {strides = array<i32>} : memref<32x128xf32, #tpu.memory_space<vmem>>, vector<32x128xf32>,
    return
  }
  func.func @transform_0(%arg0: i32) -> (i32, i32) {
    %c0_i32 = arith.constant 0 : i32
    %c0_i32_0 = arith.constant 0 : i32
    return %arg0, %c0_i32 : i32, i32
  }
  func.func @transform_1(%arg0: i32) -> (i32, i32) {
    %c0_i32 = arith.constant 0 : i32
    %c0_i32_0 = arith.constant 0 : i32
    return %arg0, %c0_i32 : i32, i32
  }
  func.func @transform_2(%arg0: i32) -> (i32, i32) {
    %c0_i32 = arith.constant 0 : i32
    %c0_i32_0 = arith.constant 0 : i32
    %c0_i32_1 = arith.constant 0 : i32
    return %c0_i32, %c0_i32_0 : i32, i32
  }
  func.func @transform_3(%arg0: i32) -> (i32, i32) {
    %c0_i32 = arith.constant 0 : i32
    %c0_i32_0 = arith.constant 0 : i32
    %c0_i32_1 = arith.constant 0 : i32
    return %c0_i32, %c0_i32_0 : i32, i32
  }
  func.func @transform_4(%arg0: i32) -> (i32, i32) {
    %c0_i32 = arith.constant 0 : i32
    %c0_i32_0 = arith.constant 0 : i32
    %c0_i32_1 = arith.constant 0 : i32
    return %c0_i32, %c0_i32_0 : i32, i32
  }
  func.func @transform_5(%arg0: i32) -> (i32, i32) {
    %c0_i32 = arith.constant 0 : i32
    %c0_i32_0 = arith.constant 0 : i32
    %c0_i32_1 = arith.constant 0 : i32
    return %c0_i32, %c0_i32_0 : i32, i32
  }
  func.func @transform_6(%arg0: i32) -> (i32, i32) {
    %c0_i32 = arith.constant 0 : i32
    %c0_i32_0 = arith.constant 0 : i32
    return %arg0, %c0_i32 : i32, i32
  }
}

module attributes {stable_mosaic.version = 11 : i64} {
  func.func @_bn_relu_conv2_kernel(%arg0: i32, %arg1: memref<2x16x16x8xbf16, #tpu.memory_space<vmem>>, %arg2: memref<1x8xf32, #tpu.memory_space<vmem>>, %arg3: memref<1x8xf32, #tpu.memory_space<vmem>>, %arg4: memref<72x8xbf16, #tpu.memory_space<vmem>>, %arg5: memref<2x16x16x8xbf16, #tpu.memory_space<vmem>>, %arg6: memref<1x2x8xf32, #tpu.memory_space<vmem>>, %arg7: memref<2x18x18x8xf32, #tpu.memory_space<vmem>>, %arg8: memref<2x16x16x72xbf16, #tpu.memory_space<vmem>>) attributes {dimension_semantics = [#tpu.dimension_semantics<parallel>], iteration_bounds = array<i64: 1>, scalar_prefetch = 0 : i64, scratch_operands = 2 : i64, tpu.core_type = #tpu.core_type<tc>, window_params = [{transform_indices = @transform_0, window_bounds = array<i64: 2, 16, 16, 8>}, {pipeline_mode = #tpu.pipeline_mode<synchronous>, transform_indices = @transform_1, window_bounds = array<i64: 1, 8>}, {pipeline_mode = #tpu.pipeline_mode<synchronous>, transform_indices = @transform_2, window_bounds = array<i64: 1, 8>}, {pipeline_mode = #tpu.pipeline_mode<synchronous>, transform_indices = @transform_3, window_bounds = array<i64: 72, 8>}, {transform_indices = @transform_4, window_bounds = array<i64: 2, 16, 16, 8>}, {transform_indices = @transform_5, window_bounds = array<i64: 1, 2, 8>}]} {
    %cst = arith.constant 0.000000e+00 : f32
    %0 = vector.broadcast %cst : f32 to vector<1x18x8xf32>
    %cst_0 = arith.constant 0.000000e+00 : f32
    %1 = vector.broadcast %cst_0 : f32 to vector<18x1x8xf32>
    %c0 = arith.constant 0 : index
    %c0_1 = arith.constant 0 : index
    %c0_2 = arith.constant 0 : index
    %c0_3 = arith.constant 0 : index
    %2 = vector.load %arg7[%c0, %c0_1, %c0_2, %c0_3] : memref<2x18x18x8xf32, #tpu.memory_space<vmem>>, vector<1x1x18x8xf32>
    %3 = vector.shape_cast %2 : vector<1x1x18x8xf32> to vector<1x18x8xf32>
    %4 = vector.shape_cast %0 : vector<1x18x8xf32> to vector<1x1x18x8xf32>
    tpu.vector_store %arg7[%c0, %c0_1, %c0_2, %c0_3], %4 {strides = array<i32>} : memref<2x18x18x8xf32, #tpu.memory_space<vmem>>, vector<1x1x18x8xf32>,
    %c0_4 = arith.constant 0 : index
    %c17 = arith.constant 17 : index
    %c0_5 = arith.constant 0 : index
    %c0_6 = arith.constant 0 : index
    %5 = vector.load %arg7[%c0_4, %c17, %c0_5, %c0_6] : memref<2x18x18x8xf32, #tpu.memory_space<vmem>>, vector<1x1x18x8xf32>
    %6 = vector.shape_cast %5 : vector<1x1x18x8xf32> to vector<1x18x8xf32>
    %7 = vector.shape_cast %0 : vector<1x18x8xf32> to vector<1x1x18x8xf32>
    tpu.vector_store %arg7[%c0_4, %c17, %c0_5, %c0_6], %7 {strides = array<i32>} : memref<2x18x18x8xf32, #tpu.memory_space<vmem>>, vector<1x1x18x8xf32>,
    %c0_7 = arith.constant 0 : index
    %c0_8 = arith.constant 0 : index
    %c0_9 = arith.constant 0 : index
    %c0_10 = arith.constant 0 : index
    %8 = vector.load %arg7[%c0_7, %c0_8, %c0_9, %c0_10] : memref<2x18x18x8xf32, #tpu.memory_space<vmem>>, vector<1x18x1x8xf32>
    %9 = vector.shape_cast %8 : vector<1x18x1x8xf32> to vector<18x1x8xf32>
    %10 = vector.shape_cast %1 : vector<18x1x8xf32> to vector<1x18x1x8xf32>
    tpu.vector_store %arg7[%c0_7, %c0_8, %c0_9, %c0_10], %10 {strides = array<i32>} : memref<2x18x18x8xf32, #tpu.memory_space<vmem>>, vector<1x18x1x8xf32>,
    %c0_11 = arith.constant 0 : index
    %c0_12 = arith.constant 0 : index
    %c17_13 = arith.constant 17 : index
    %c0_14 = arith.constant 0 : index
    %11 = vector.load %arg7[%c0_11, %c0_12, %c17_13, %c0_14] : memref<2x18x18x8xf32, #tpu.memory_space<vmem>>, vector<1x18x1x8xf32>
    %12 = vector.shape_cast %11 : vector<1x18x1x8xf32> to vector<18x1x8xf32>
    %13 = vector.shape_cast %1 : vector<18x1x8xf32> to vector<1x18x1x8xf32>
    tpu.vector_store %arg7[%c0_11, %c0_12, %c17_13, %c0_14], %13 {strides = array<i32>} : memref<2x18x18x8xf32, #tpu.memory_space<vmem>>, vector<1x18x1x8xf32>,
    %c1 = arith.constant 1 : index
    %c0_15 = arith.constant 0 : index
    %c0_16 = arith.constant 0 : index
    %c0_17 = arith.constant 0 : index
    %14 = vector.load %arg7[%c1, %c0_15, %c0_16, %c0_17] : memref<2x18x18x8xf32, #tpu.memory_space<vmem>>, vector<1x1x18x8xf32>
    %15 = vector.shape_cast %14 : vector<1x1x18x8xf32> to vector<1x18x8xf32>
    %16 = vector.shape_cast %0 : vector<1x18x8xf32> to vector<1x1x18x8xf32>
    tpu.vector_store %arg7[%c1, %c0_15, %c0_16, %c0_17], %16 {strides = array<i32>} : memref<2x18x18x8xf32, #tpu.memory_space<vmem>>, vector<1x1x18x8xf32>,
    %c1_18 = arith.constant 1 : index
    %c17_19 = arith.constant 17 : index
    %c0_20 = arith.constant 0 : index
    %c0_21 = arith.constant 0 : index
    %17 = vector.load %arg7[%c1_18, %c17_19, %c0_20, %c0_21] : memref<2x18x18x8xf32, #tpu.memory_space<vmem>>, vector<1x1x18x8xf32>
    %18 = vector.shape_cast %17 : vector<1x1x18x8xf32> to vector<1x18x8xf32>
    %19 = vector.shape_cast %0 : vector<1x18x8xf32> to vector<1x1x18x8xf32>
    tpu.vector_store %arg7[%c1_18, %c17_19, %c0_20, %c0_21], %19 {strides = array<i32>} : memref<2x18x18x8xf32, #tpu.memory_space<vmem>>, vector<1x1x18x8xf32>,
    %c1_22 = arith.constant 1 : index
    %c0_23 = arith.constant 0 : index
    %c0_24 = arith.constant 0 : index
    %c0_25 = arith.constant 0 : index
    %20 = vector.load %arg7[%c1_22, %c0_23, %c0_24, %c0_25] : memref<2x18x18x8xf32, #tpu.memory_space<vmem>>, vector<1x18x1x8xf32>
    %21 = vector.shape_cast %20 : vector<1x18x1x8xf32> to vector<18x1x8xf32>
    %22 = vector.shape_cast %1 : vector<18x1x8xf32> to vector<1x18x1x8xf32>
    tpu.vector_store %arg7[%c1_22, %c0_23, %c0_24, %c0_25], %22 {strides = array<i32>} : memref<2x18x18x8xf32, #tpu.memory_space<vmem>>, vector<1x18x1x8xf32>,
    %c1_26 = arith.constant 1 : index
    %c0_27 = arith.constant 0 : index
    %c17_28 = arith.constant 17 : index
    %c0_29 = arith.constant 0 : index
    %23 = vector.load %arg7[%c1_26, %c0_27, %c17_28, %c0_29] : memref<2x18x18x8xf32, #tpu.memory_space<vmem>>, vector<1x18x1x8xf32>
    %24 = vector.shape_cast %23 : vector<1x18x1x8xf32> to vector<18x1x8xf32>
    %25 = vector.shape_cast %1 : vector<18x1x8xf32> to vector<1x18x1x8xf32>
    tpu.vector_store %arg7[%c1_26, %c0_27, %c17_28, %c0_29], %25 {strides = array<i32>} : memref<2x18x18x8xf32, #tpu.memory_space<vmem>>, vector<1x18x1x8xf32>,
    %c0_30 = arith.constant 0 : index
    %c0_31 = arith.constant 0 : index
    %c0_32 = arith.constant 0 : index
    %c0_33 = arith.constant 0 : index
    %26 = vector.load %arg1[%c0_30, %c0_31, %c0_32, %c0_33] : memref<2x16x16x8xbf16, #tpu.memory_space<vmem>>, vector<2x16x16x8xbf16>
    %27 = arith.extf %26 : vector<2x16x16x8xbf16> to vector<2x16x16x8xf32>
    %c0_34 = arith.constant 0 : index
    %c0_35 = arith.constant 0 : index
    %28 = vector.load %arg2[%c0_34, %c0_35] : memref<1x8xf32, #tpu.memory_space<vmem>>, vector<1x8xf32>
    %29 = vector.shape_cast %28 : vector<1x8xf32> to vector<1x1x1x8xf32>
    %30 = vector.broadcast %29 : vector<1x1x1x8xf32> to vector<2x16x16x8xf32>
    %31 = arith.mulf %27, %30 : vector<2x16x16x8xf32>
    %c0_36 = arith.constant 0 : index
    %c0_37 = arith.constant 0 : index
    %32 = vector.load %arg3[%c0_36, %c0_37] : memref<1x8xf32, #tpu.memory_space<vmem>>, vector<1x8xf32>
    %33 = vector.shape_cast %32 : vector<1x8xf32> to vector<1x1x1x8xf32>
    %34 = vector.broadcast %33 : vector<1x1x1x8xf32> to vector<2x16x16x8xf32>
    %35 = arith.addf %31, %34 : vector<2x16x16x8xf32>
    %cst_38 = arith.constant 0.000000e+00 : f32
    %36 = vector.broadcast %cst_38 : f32 to vector<2x16x16x8xf32>
    %37 = arith.cmpf ogt, %35, %36 : vector<2x16x16x8xf32>
    %cst_39 = arith.constant 0.00999999977 : f32
    %38 = vector.broadcast %cst_39 : f32 to vector<2x16x16x8xf32>
    %39 = arith.mulf %38, %35 : vector<2x16x16x8xf32>
    %40 = arith.select %37, %35, %39 : vector<2x16x16x8xi1>, vector<2x16x16x8xf32>
    %41 = vector.extract_strided_slice %40 {offsets = [0, 0, 0, 0], sizes = [1, 16, 16, 8], strides = [1, 1, 1, 1]} : vector<2x16x16x8xf32> to vector<1x16x16x8xf32>
    %42 = vector.shape_cast %41 : vector<1x16x16x8xf32> to vector<16x16x8xf32>
    %c0_40 = arith.constant 0 : index
    %c1_41 = arith.constant 1 : index
    %c1_42 = arith.constant 1 : index
    %c0_43 = arith.constant 0 : index
    %43 = vector.load %arg7[%c0_40, %c1_41, %c1_42, %c0_43] : memref<2x18x18x8xf32, #tpu.memory_space<vmem>>, vector<1x16x16x8xf32>
    %44 = vector.shape_cast %43 : vector<1x16x16x8xf32> to vector<16x16x8xf32>
    %45 = vector.shape_cast %42 : vector<16x16x8xf32> to vector<1x16x16x8xf32>
    tpu.vector_store %arg7[%c0_40, %c1_41, %c1_42, %c0_43], %45 {strides = array<i32>} : memref<2x18x18x8xf32, #tpu.memory_space<vmem>>, vector<1x16x16x8xf32>,
    %46 = vector.extract_strided_slice %40 {offsets = [1, 0, 0, 0], sizes = [1, 16, 16, 8], strides = [1, 1, 1, 1]} : vector<2x16x16x8xf32> to vector<1x16x16x8xf32>
    %47 = vector.shape_cast %46 : vector<1x16x16x8xf32> to vector<16x16x8xf32>
    %c1_44 = arith.constant 1 : index
    %c1_45 = arith.constant 1 : index
    %c1_46 = arith.constant 1 : index
    %c0_47 = arith.constant 0 : index
    %48 = vector.load %arg7[%c1_44, %c1_45, %c1_46, %c0_47] : memref<2x18x18x8xf32, #tpu.memory_space<vmem>>, vector<1x16x16x8xf32>
    %49 = vector.shape_cast %48 : vector<1x16x16x8xf32> to vector<16x16x8xf32>
    %50 = vector.shape_cast %47 : vector<16x16x8xf32> to vector<1x16x16x8xf32>
    tpu.vector_store %arg7[%c1_44, %c1_45, %c1_46, %c0_47], %50 {strides = array<i32>} : memref<2x18x18x8xf32, #tpu.memory_space<vmem>>, vector<1x16x16x8xf32>,
    %c0_48 = arith.constant 0 : index
    %c0_49 = arith.constant 0 : index
    %c0_50 = arith.constant 0 : index
    %c0_51 = arith.constant 0 : index
    %51 = vector.load %arg7[%c0_48, %c0_49, %c0_50, %c0_51] : memref<2x18x18x8xf32, #tpu.memory_space<vmem>>, vector<1x16x16x8xf32>
    %52 = vector.shape_cast %51 : vector<1x16x16x8xf32> to vector<16x16x8xf32>
    %53 = arith.truncf %52 : vector<16x16x8xf32> to vector<16x16x8xbf16>
    %c0_52 = arith.constant 0 : index
    %c0_53 = arith.constant 0 : index
    %c0_54 = arith.constant 0 : index
    %c0_55 = arith.constant 0 : index
    %54 = vector.load %arg8[%c0_52, %c0_53, %c0_54, %c0_55] : memref<2x16x16x72xbf16, #tpu.memory_space<vmem>>, vector<1x16x16x8xbf16>
    %55 = vector.shape_cast %54 : vector<1x16x16x8xbf16> to vector<16x16x8xbf16>
    %56 = vector.shape_cast %53 : vector<16x16x8xbf16> to vector<1x16x16x8xbf16>
    tpu.vector_store %arg8[%c0_52, %c0_53, %c0_54, %c0_55], %56 {strides = array<i32>} : memref<2x16x16x72xbf16, #tpu.memory_space<vmem>>, vector<1x16x16x8xbf16>,
    %c0_56 = arith.constant 0 : index
    %c0_57 = arith.constant 0 : index
    %c1_58 = arith.constant 1 : index
    %c0_59 = arith.constant 0 : index
    %57 = vector.load %arg7[%c0_56, %c0_57, %c1_58, %c0_59] : memref<2x18x18x8xf32, #tpu.memory_space<vmem>>, vector<1x16x16x8xf32>
    %58 = vector.shape_cast %57 : vector<1x16x16x8xf32> to vector<16x16x8xf32>
    %59 = arith.truncf %58 : vector<16x16x8xf32> to vector<16x16x8xbf16>
    %c0_60 = arith.constant 0 : index
    %c0_61 = arith.constant 0 : index
    %c0_62 = arith.constant 0 : index
    %c8 = arith.constant 8 : index
    %60 = vector.load %arg8[%c0_60, %c0_61, %c0_62, %c8] : memref<2x16x16x72xbf16, #tpu.memory_space<vmem>>, vector<1x16x16x8xbf16>
    %61 = vector.shape_cast %60 : vector<1x16x16x8xbf16> to vector<16x16x8xbf16>
    %62 = vector.shape_cast %59 : vector<16x16x8xbf16> to vector<1x16x16x8xbf16>
    tpu.vector_store %arg8[%c0_60, %c0_61, %c0_62, %c8], %62 {strides = array<i32>} : memref<2x16x16x72xbf16, #tpu.memory_space<vmem>>, vector<1x16x16x8xbf16>,
    %c0_63 = arith.constant 0 : index
    %c0_64 = arith.constant 0 : index
    %c2 = arith.constant 2 : index
    %c0_65 = arith.constant 0 : index
    %63 = vector.load %arg7[%c0_63, %c0_64, %c2, %c0_65] : memref<2x18x18x8xf32, #tpu.memory_space<vmem>>, vector<1x16x16x8xf32>
    %64 = vector.shape_cast %63 : vector<1x16x16x8xf32> to vector<16x16x8xf32>
    %65 = arith.truncf %64 : vector<16x16x8xf32> to vector<16x16x8xbf16>
    %c0_66 = arith.constant 0 : index
    %c0_67 = arith.constant 0 : index
    %c0_68 = arith.constant 0 : index
    %c16 = arith.constant 16 : index
    %66 = vector.load %arg8[%c0_66, %c0_67, %c0_68, %c16] : memref<2x16x16x72xbf16, #tpu.memory_space<vmem>>, vector<1x16x16x8xbf16>
    %67 = vector.shape_cast %66 : vector<1x16x16x8xbf16> to vector<16x16x8xbf16>
    %68 = vector.shape_cast %65 : vector<16x16x8xbf16> to vector<1x16x16x8xbf16>
    tpu.vector_store %arg8[%c0_66, %c0_67, %c0_68, %c16], %68 {strides = array<i32>} : memref<2x16x16x72xbf16, #tpu.memory_space<vmem>>, vector<1x16x16x8xbf16>,
    %c0_69 = arith.constant 0 : index
    %c1_70 = arith.constant 1 : index
    %c0_71 = arith.constant 0 : index
    %c0_72 = arith.constant 0 : index
    %69 = vector.load %arg7[%c0_69, %c1_70, %c0_71, %c0_72] : memref<2x18x18x8xf32, #tpu.memory_space<vmem>>, vector<1x16x16x8xf32>
    %70 = vector.shape_cast %69 : vector<1x16x16x8xf32> to vector<16x16x8xf32>
    %71 = arith.truncf %70 : vector<16x16x8xf32> to vector<16x16x8xbf16>
    %c0_73 = arith.constant 0 : index
    %c0_74 = arith.constant 0 : index
    %c0_75 = arith.constant 0 : index
    %c24 = arith.constant 24 : index
    %72 = vector.load %arg8[%c0_73, %c0_74, %c0_75, %c24] : memref<2x16x16x72xbf16, #tpu.memory_space<vmem>>, vector<1x16x16x8xbf16>
    %73 = vector.shape_cast %72 : vector<1x16x16x8xbf16> to vector<16x16x8xbf16>
    %74 = vector.shape_cast %71 : vector<16x16x8xbf16> to vector<1x16x16x8xbf16>
    tpu.vector_store %arg8[%c0_73, %c0_74, %c0_75, %c24], %74 {strides = array<i32>} : memref<2x16x16x72xbf16, #tpu.memory_space<vmem>>, vector<1x16x16x8xbf16>,
    %c0_76 = arith.constant 0 : index
    %c1_77 = arith.constant 1 : index
    %c1_78 = arith.constant 1 : index
    %c0_79 = arith.constant 0 : index
    %75 = vector.load %arg7[%c0_76, %c1_77, %c1_78, %c0_79] : memref<2x18x18x8xf32, #tpu.memory_space<vmem>>, vector<1x16x16x8xf32>
    %76 = vector.shape_cast %75 : vector<1x16x16x8xf32> to vector<16x16x8xf32>
    %77 = arith.truncf %76 : vector<16x16x8xf32> to vector<16x16x8xbf16>
    %c0_80 = arith.constant 0 : index
    %c0_81 = arith.constant 0 : index
    %c0_82 = arith.constant 0 : index
    %c32 = arith.constant 32 : index
    %78 = vector.load %arg8[%c0_80, %c0_81, %c0_82, %c32] : memref<2x16x16x72xbf16, #tpu.memory_space<vmem>>, vector<1x16x16x8xbf16>
    %79 = vector.shape_cast %78 : vector<1x16x16x8xbf16> to vector<16x16x8xbf16>
    %80 = vector.shape_cast %77 : vector<16x16x8xbf16> to vector<1x16x16x8xbf16>
    tpu.vector_store %arg8[%c0_80, %c0_81, %c0_82, %c32], %80 {strides = array<i32>} : memref<2x16x16x72xbf16, #tpu.memory_space<vmem>>, vector<1x16x16x8xbf16>,
    %c0_83 = arith.constant 0 : index
    %c1_84 = arith.constant 1 : index
    %c2_85 = arith.constant 2 : index
    %c0_86 = arith.constant 0 : index
    %81 = vector.load %arg7[%c0_83, %c1_84, %c2_85, %c0_86] : memref<2x18x18x8xf32, #tpu.memory_space<vmem>>, vector<1x16x16x8xf32>
    %82 = vector.shape_cast %81 : vector<1x16x16x8xf32> to vector<16x16x8xf32>
    %83 = arith.truncf %82 : vector<16x16x8xf32> to vector<16x16x8xbf16>
    %c0_87 = arith.constant 0 : index
    %c0_88 = arith.constant 0 : index
    %c0_89 = arith.constant 0 : index
    %c40 = arith.constant 40 : index
    %84 = vector.load %arg8[%c0_87, %c0_88, %c0_89, %c40] : memref<2x16x16x72xbf16, #tpu.memory_space<vmem>>, vector<1x16x16x8xbf16>
    %85 = vector.shape_cast %84 : vector<1x16x16x8xbf16> to vector<16x16x8xbf16>
    %86 = vector.shape_cast %83 : vector<16x16x8xbf16> to vector<1x16x16x8xbf16>
    tpu.vector_store %arg8[%c0_87, %c0_88, %c0_89, %c40], %86 {strides = array<i32>} : memref<2x16x16x72xbf16, #tpu.memory_space<vmem>>, vector<1x16x16x8xbf16>,
    %c0_90 = arith.constant 0 : index
    %c2_91 = arith.constant 2 : index
    %c0_92 = arith.constant 0 : index
    %c0_93 = arith.constant 0 : index
    %87 = vector.load %arg7[%c0_90, %c2_91, %c0_92, %c0_93] : memref<2x18x18x8xf32, #tpu.memory_space<vmem>>, vector<1x16x16x8xf32>
    %88 = vector.shape_cast %87 : vector<1x16x16x8xf32> to vector<16x16x8xf32>
    %89 = arith.truncf %88 : vector<16x16x8xf32> to vector<16x16x8xbf16>
    %c0_94 = arith.constant 0 : index
    %c0_95 = arith.constant 0 : index
    %c0_96 = arith.constant 0 : index
    %c48 = arith.constant 48 : index
    %90 = vector.load %arg8[%c0_94, %c0_95, %c0_96, %c48] : memref<2x16x16x72xbf16, #tpu.memory_space<vmem>>, vector<1x16x16x8xbf16>
    %91 = vector.shape_cast %90 : vector<1x16x16x8xbf16> to vector<16x16x8xbf16>
    %92 = vector.shape_cast %89 : vector<16x16x8xbf16> to vector<1x16x16x8xbf16>
    tpu.vector_store %arg8[%c0_94, %c0_95, %c0_96, %c48], %92 {strides = array<i32>} : memref<2x16x16x72xbf16, #tpu.memory_space<vmem>>, vector<1x16x16x8xbf16>,
    %c0_97 = arith.constant 0 : index
    %c2_98 = arith.constant 2 : index
    %c1_99 = arith.constant 1 : index
    %c0_100 = arith.constant 0 : index
    %93 = vector.load %arg7[%c0_97, %c2_98, %c1_99, %c0_100] : memref<2x18x18x8xf32, #tpu.memory_space<vmem>>, vector<1x16x16x8xf32>
    %94 = vector.shape_cast %93 : vector<1x16x16x8xf32> to vector<16x16x8xf32>
    %95 = arith.truncf %94 : vector<16x16x8xf32> to vector<16x16x8xbf16>
    %c0_101 = arith.constant 0 : index
    %c0_102 = arith.constant 0 : index
    %c0_103 = arith.constant 0 : index
    %c56 = arith.constant 56 : index
    %96 = vector.load %arg8[%c0_101, %c0_102, %c0_103, %c56] : memref<2x16x16x72xbf16, #tpu.memory_space<vmem>>, vector<1x16x16x8xbf16>
    %97 = vector.shape_cast %96 : vector<1x16x16x8xbf16> to vector<16x16x8xbf16>
    %98 = vector.shape_cast %95 : vector<16x16x8xbf16> to vector<1x16x16x8xbf16>
    tpu.vector_store %arg8[%c0_101, %c0_102, %c0_103, %c56], %98 {strides = array<i32>} : memref<2x16x16x72xbf16, #tpu.memory_space<vmem>>, vector<1x16x16x8xbf16>,
    %c0_104 = arith.constant 0 : index
    %c2_105 = arith.constant 2 : index
    %c2_106 = arith.constant 2 : index
    %c0_107 = arith.constant 0 : index
    %99 = vector.load %arg7[%c0_104, %c2_105, %c2_106, %c0_107] : memref<2x18x18x8xf32, #tpu.memory_space<vmem>>, vector<1x16x16x8xf32>
    %100 = vector.shape_cast %99 : vector<1x16x16x8xf32> to vector<16x16x8xf32>
    %101 = arith.truncf %100 : vector<16x16x8xf32> to vector<16x16x8xbf16>
    %c0_108 = arith.constant 0 : index
    %c0_109 = arith.constant 0 : index
    %c0_110 = arith.constant 0 : index
    %c64 = arith.constant 64 : index
    %102 = vector.load %arg8[%c0_108, %c0_109, %c0_110, %c64] : memref<2x16x16x72xbf16, #tpu.memory_space<vmem>>, vector<1x16x16x8xbf16>
    %103 = vector.shape_cast %102 : vector<1x16x16x8xbf16> to vector<16x16x8xbf16>
    %104 = vector.shape_cast %101 : vector<16x16x8xbf16> to vector<1x16x16x8xbf16>
    tpu.vector_store %arg8[%c0_108, %c0_109, %c0_110, %c64], %104 {strides = array<i32>} : memref<2x16x16x72xbf16, #tpu.memory_space<vmem>>, vector<1x16x16x8xbf16>,
    %c1_111 = arith.constant 1 : index
    %c0_112 = arith.constant 0 : index
    %c0_113 = arith.constant 0 : index
    %c0_114 = arith.constant 0 : index
    %105 = vector.load %arg7[%c1_111, %c0_112, %c0_113, %c0_114] : memref<2x18x18x8xf32, #tpu.memory_space<vmem>>, vector<1x16x16x8xf32>
    %106 = vector.shape_cast %105 : vector<1x16x16x8xf32> to vector<16x16x8xf32>
    %107 = arith.truncf %106 : vector<16x16x8xf32> to vector<16x16x8xbf16>
    %c1_115 = arith.constant 1 : index
    %c0_116 = arith.constant 0 : index
    %c0_117 = arith.constant 0 : index
    %c0_118 = arith.constant 0 : index
    %108 = vector.load %arg8[%c1_115, %c0_116, %c0_117, %c0_118] : memref<2x16x16x72xbf16, #tpu.memory_space<vmem>>, vector<1x16x16x8xbf16>
    %109 = vector.shape_cast %108 : vector<1x16x16x8xbf16> to vector<16x16x8xbf16>
    %110 = vector.shape_cast %107 : vector<16x16x8xbf16> to vector<1x16x16x8xbf16>
    tpu.vector_store %arg8[%c1_115, %c0_116, %c0_117, %c0_118], %110 {strides = array<i32>} : memref<2x16x16x72xbf16, #tpu.memory_space<vmem>>, vector<1x16x16x8xbf16>,
    %c1_119 = arith.constant 1 : index
    %c0_120 = arith.constant 0 : index
    %c1_121 = arith.constant 1 : index
    %c0_122 = arith.constant 0 : index
    %111 = vector.load %arg7[%c1_119, %c0_120, %c1_121, %c0_122] : memref<2x18x18x8xf32, #tpu.memory_space<vmem>>, vector<1x16x16x8xf32>
    %112 = vector.shape_cast %111 : vector<1x16x16x8xf32> to vector<16x16x8xf32>
    %113 = arith.truncf %112 : vector<16x16x8xf32> to vector<16x16x8xbf16>
    %c1_123 = arith.constant 1 : index
    %c0_124 = arith.constant 0 : index
    %c0_125 = arith.constant 0 : index
    %c8_126 = arith.constant 8 : index
    %114 = vector.load %arg8[%c1_123, %c0_124, %c0_125, %c8_126] : memref<2x16x16x72xbf16, #tpu.memory_space<vmem>>, vector<1x16x16x8xbf16>
    %115 = vector.shape_cast %114 : vector<1x16x16x8xbf16> to vector<16x16x8xbf16>
    %116 = vector.shape_cast %113 : vector<16x16x8xbf16> to vector<1x16x16x8xbf16>
    tpu.vector_store %arg8[%c1_123, %c0_124, %c0_125, %c8_126], %116 {strides = array<i32>} : memref<2x16x16x72xbf16, #tpu.memory_space<vmem>>, vector<1x16x16x8xbf16>,
    %c1_127 = arith.constant 1 : index
    %c0_128 = arith.constant 0 : index
    %c2_129 = arith.constant 2 : index
    %c0_130 = arith.constant 0 : index
    %117 = vector.load %arg7[%c1_127, %c0_128, %c2_129, %c0_130] : memref<2x18x18x8xf32, #tpu.memory_space<vmem>>, vector<1x16x16x8xf32>
    %118 = vector.shape_cast %117 : vector<1x16x16x8xf32> to vector<16x16x8xf32>
    %119 = arith.truncf %118 : vector<16x16x8xf32> to vector<16x16x8xbf16>
    %c1_131 = arith.constant 1 : index
    %c0_132 = arith.constant 0 : index
    %c0_133 = arith.constant 0 : index
    %c16_134 = arith.constant 16 : index
    %120 = vector.load %arg8[%c1_131, %c0_132, %c0_133, %c16_134] : memref<2x16x16x72xbf16, #tpu.memory_space<vmem>>, vector<1x16x16x8xbf16>
    %121 = vector.shape_cast %120 : vector<1x16x16x8xbf16> to vector<16x16x8xbf16>
    %122 = vector.shape_cast %119 : vector<16x16x8xbf16> to vector<1x16x16x8xbf16>
    tpu.vector_store %arg8[%c1_131, %c0_132, %c0_133, %c16_134], %122 {strides = array<i32>} : memref<2x16x16x72xbf16, #tpu.memory_space<vmem>>, vector<1x16x16x8xbf16>,
    %c1_135 = arith.constant 1 : index
    %c1_136 = arith.constant 1 : index
    %c0_137 = arith.constant 0 : index
    %c0_138 = arith.constant 0 : index
    %123 = vector.load %arg7[%c1_135, %c1_136, %c0_137, %c0_138] : memref<2x18x18x8xf32, #tpu.memory_space<vmem>>, vector<1x16x16x8xf32>
    %124 = vector.shape_cast %123 : vector<1x16x16x8xf32> to vector<16x16x8xf32>
    %125 = arith.truncf %124 : vector<16x16x8xf32> to vector<16x16x8xbf16>
    %c1_139 = arith.constant 1 : index
    %c0_140 = arith.constant 0 : index
    %c0_141 = arith.constant 0 : index
    %c24_142 = arith.constant 24 : index
    %126 = vector.load %arg8[%c1_139, %c0_140, %c0_141, %c24_142] : memref<2x16x16x72xbf16, #tpu.memory_space<vmem>>, vector<1x16x16x8xbf16>
    %127 = vector.shape_cast %126 : vector<1x16x16x8xbf16> to vector<16x16x8xbf16>
    %128 = vector.shape_cast %125 : vector<16x16x8xbf16> to vector<1x16x16x8xbf16>
    tpu.vector_store %arg8[%c1_139, %c0_140, %c0_141, %c24_142], %128 {strides = array<i32>} : memref<2x16x16x72xbf16, #tpu.memory_space<vmem>>, vector<1x16x16x8xbf16>,
    %c1_143 = arith.constant 1 : index
    %c1_144 = arith.constant 1 : index
    %c1_145 = arith.constant 1 : index
    %c0_146 = arith.constant 0 : index
    %129 = vector.load %arg7[%c1_143, %c1_144, %c1_145, %c0_146] : memref<2x18x18x8xf32, #tpu.memory_space<vmem>>, vector<1x16x16x8xf32>
    %130 = vector.shape_cast %129 : vector<1x16x16x8xf32> to vector<16x16x8xf32>
    %131 = arith.truncf %130 : vector<16x16x8xf32> to vector<16x16x8xbf16>
    %c1_147 = arith.constant 1 : index
    %c0_148 = arith.constant 0 : index
    %c0_149 = arith.constant 0 : index
    %c32_150 = arith.constant 32 : index
    %132 = vector.load %arg8[%c1_147, %c0_148, %c0_149, %c32_150] : memref<2x16x16x72xbf16, #tpu.memory_space<vmem>>, vector<1x16x16x8xbf16>
    %133 = vector.shape_cast %132 : vector<1x16x16x8xbf16> to vector<16x16x8xbf16>
    %134 = vector.shape_cast %131 : vector<16x16x8xbf16> to vector<1x16x16x8xbf16>
    tpu.vector_store %arg8[%c1_147, %c0_148, %c0_149, %c32_150], %134 {strides = array<i32>} : memref<2x16x16x72xbf16, #tpu.memory_space<vmem>>, vector<1x16x16x8xbf16>,
    %c1_151 = arith.constant 1 : index
    %c1_152 = arith.constant 1 : index
    %c2_153 = arith.constant 2 : index
    %c0_154 = arith.constant 0 : index
    %135 = vector.load %arg7[%c1_151, %c1_152, %c2_153, %c0_154] : memref<2x18x18x8xf32, #tpu.memory_space<vmem>>, vector<1x16x16x8xf32>
    %136 = vector.shape_cast %135 : vector<1x16x16x8xf32> to vector<16x16x8xf32>
    %137 = arith.truncf %136 : vector<16x16x8xf32> to vector<16x16x8xbf16>
    %c1_155 = arith.constant 1 : index
    %c0_156 = arith.constant 0 : index
    %c0_157 = arith.constant 0 : index
    %c40_158 = arith.constant 40 : index
    %138 = vector.load %arg8[%c1_155, %c0_156, %c0_157, %c40_158] : memref<2x16x16x72xbf16, #tpu.memory_space<vmem>>, vector<1x16x16x8xbf16>
    %139 = vector.shape_cast %138 : vector<1x16x16x8xbf16> to vector<16x16x8xbf16>
    %140 = vector.shape_cast %137 : vector<16x16x8xbf16> to vector<1x16x16x8xbf16>
    tpu.vector_store %arg8[%c1_155, %c0_156, %c0_157, %c40_158], %140 {strides = array<i32>} : memref<2x16x16x72xbf16, #tpu.memory_space<vmem>>, vector<1x16x16x8xbf16>,
    %c1_159 = arith.constant 1 : index
    %c2_160 = arith.constant 2 : index
    %c0_161 = arith.constant 0 : index
    %c0_162 = arith.constant 0 : index
    %141 = vector.load %arg7[%c1_159, %c2_160, %c0_161, %c0_162] : memref<2x18x18x8xf32, #tpu.memory_space<vmem>>, vector<1x16x16x8xf32>
    %142 = vector.shape_cast %141 : vector<1x16x16x8xf32> to vector<16x16x8xf32>
    %143 = arith.truncf %142 : vector<16x16x8xf32> to vector<16x16x8xbf16>
    %c1_163 = arith.constant 1 : index
    %c0_164 = arith.constant 0 : index
    %c0_165 = arith.constant 0 : index
    %c48_166 = arith.constant 48 : index
    %144 = vector.load %arg8[%c1_163, %c0_164, %c0_165, %c48_166] : memref<2x16x16x72xbf16, #tpu.memory_space<vmem>>, vector<1x16x16x8xbf16>
    %145 = vector.shape_cast %144 : vector<1x16x16x8xbf16> to vector<16x16x8xbf16>
    %146 = vector.shape_cast %143 : vector<16x16x8xbf16> to vector<1x16x16x8xbf16>
    tpu.vector_store %arg8[%c1_163, %c0_164, %c0_165, %c48_166], %146 {strides = array<i32>} : memref<2x16x16x72xbf16, #tpu.memory_space<vmem>>, vector<1x16x16x8xbf16>,
    %c1_167 = arith.constant 1 : index
    %c2_168 = arith.constant 2 : index
    %c1_169 = arith.constant 1 : index
    %c0_170 = arith.constant 0 : index
    %147 = vector.load %arg7[%c1_167, %c2_168, %c1_169, %c0_170] : memref<2x18x18x8xf32, #tpu.memory_space<vmem>>, vector<1x16x16x8xf32>
    %148 = vector.shape_cast %147 : vector<1x16x16x8xf32> to vector<16x16x8xf32>
    %149 = arith.truncf %148 : vector<16x16x8xf32> to vector<16x16x8xbf16>
    %c1_171 = arith.constant 1 : index
    %c0_172 = arith.constant 0 : index
    %c0_173 = arith.constant 0 : index
    %c56_174 = arith.constant 56 : index
    %150 = vector.load %arg8[%c1_171, %c0_172, %c0_173, %c56_174] : memref<2x16x16x72xbf16, #tpu.memory_space<vmem>>, vector<1x16x16x8xbf16>
    %151 = vector.shape_cast %150 : vector<1x16x16x8xbf16> to vector<16x16x8xbf16>
    %152 = vector.shape_cast %149 : vector<16x16x8xbf16> to vector<1x16x16x8xbf16>
    tpu.vector_store %arg8[%c1_171, %c0_172, %c0_173, %c56_174], %152 {strides = array<i32>} : memref<2x16x16x72xbf16, #tpu.memory_space<vmem>>, vector<1x16x16x8xbf16>,
    %c1_175 = arith.constant 1 : index
    %c2_176 = arith.constant 2 : index
    %c2_177 = arith.constant 2 : index
    %c0_178 = arith.constant 0 : index
    %153 = vector.load %arg7[%c1_175, %c2_176, %c2_177, %c0_178] : memref<2x18x18x8xf32, #tpu.memory_space<vmem>>, vector<1x16x16x8xf32>
    %154 = vector.shape_cast %153 : vector<1x16x16x8xf32> to vector<16x16x8xf32>
    %155 = arith.truncf %154 : vector<16x16x8xf32> to vector<16x16x8xbf16>
    %c1_179 = arith.constant 1 : index
    %c0_180 = arith.constant 0 : index
    %c0_181 = arith.constant 0 : index
    %c64_182 = arith.constant 64 : index
    %156 = vector.load %arg8[%c1_179, %c0_180, %c0_181, %c64_182] : memref<2x16x16x72xbf16, #tpu.memory_space<vmem>>, vector<1x16x16x8xbf16>
    %157 = vector.shape_cast %156 : vector<1x16x16x8xbf16> to vector<16x16x8xbf16>
    %158 = vector.shape_cast %155 : vector<16x16x8xbf16> to vector<1x16x16x8xbf16>
    tpu.vector_store %arg8[%c1_179, %c0_180, %c0_181, %c64_182], %158 {strides = array<i32>} : memref<2x16x16x72xbf16, #tpu.memory_space<vmem>>, vector<1x16x16x8xbf16>,
    %c0_183 = arith.constant 0 : index
    %c0_184 = arith.constant 0 : index
    %c0_185 = arith.constant 0 : index
    %c0_186 = arith.constant 0 : index
    %159 = vector.load %arg8[%c0_183, %c0_184, %c0_185, %c0_186] : memref<2x16x16x72xbf16, #tpu.memory_space<vmem>>, vector<2x16x16x72xbf16>
    %160 = vector.shape_cast %159 : vector<2x16x16x72xbf16> to vector<512x72xbf16>
    %c0_187 = arith.constant 0 : index
    %c0_188 = arith.constant 0 : index
    %161 = vector.load %arg4[%c0_187, %c0_188] : memref<72x8xbf16, #tpu.memory_space<vmem>>, vector<72x8xbf16>
    %cst_189 = arith.constant dense<0.000000e+00> : vector<512x8xf32>
    %162 = tpu.matmul %160, %161, %cst_189 {dimension_numbers = #tpu.dot_dimension_numbers<[1], [0], [0], [1], [0, 0, 1, 1], [], []>} : vector<512x72xbf16>, vector<72x8xbf16>, vector<512x8xf32> -> vector<512x8xf32>
    %cst_190 = arith.constant dense<0.000000e+00> : vector<8xf32>
    %163 = vector.multi_reduction <add>, %162, %cst_190 [0] : vector<512x8xf32> to vector<8xf32>
    %164 = vector.shape_cast %163 : vector<8xf32> to vector<1x8xf32>
    %c0_191 = arith.constant 0 : index
    %c0_192 = arith.constant 0 : index
    %c0_193 = arith.constant 0 : index
    %165 = vector.load %arg6[%c0_191, %c0_192, %c0_193] : memref<1x2x8xf32, #tpu.memory_space<vmem>>, vector<1x1x8xf32>
    %166 = vector.shape_cast %165 : vector<1x1x8xf32> to vector<1x8xf32>
    %167 = vector.shape_cast %164 : vector<1x8xf32> to vector<1x1x8xf32>
    tpu.vector_store %arg6[%c0_191, %c0_192, %c0_193], %167 {strides = array<i32>} : memref<1x2x8xf32, #tpu.memory_space<vmem>>, vector<1x1x8xf32>,
    %168 = arith.mulf %162, %162 : vector<512x8xf32>
    %cst_194 = arith.constant dense<0.000000e+00> : vector<8xf32>
    %169 = vector.multi_reduction <add>, %168, %cst_194 [0] : vector<512x8xf32> to vector<8xf32>
    %170 = vector.shape_cast %169 : vector<8xf32> to vector<1x8xf32>
    %c0_195 = arith.constant 0 : index
    %c1_196 = arith.constant 1 : index
    %c0_197 = arith.constant 0 : index
    %171 = vector.load %arg6[%c0_195, %c1_196, %c0_197] : memref<1x2x8xf32, #tpu.memory_space<vmem>>, vector<1x1x8xf32>
    %172 = vector.shape_cast %171 : vector<1x1x8xf32> to vector<1x8xf32>
    %173 = vector.shape_cast %170 : vector<1x8xf32> to vector<1x1x8xf32>
    tpu.vector_store %arg6[%c0_195, %c1_196, %c0_197], %173 {strides = array<i32>} : memref<1x2x8xf32, #tpu.memory_space<vmem>>, vector<1x1x8xf32>,
    %174 = arith.truncf %162 : vector<512x8xf32> to vector<512x8xbf16>
    %175 = vector.shape_cast %174 : vector<512x8xbf16> to vector<2x16x16x8xbf16>
    %c0_198 = arith.constant 0 : index
    %c0_199 = arith.constant 0 : index
    %c0_200 = arith.constant 0 : index
    %c0_201 = arith.constant 0 : index
    %176 = vector.load %arg5[%c0_198, %c0_199, %c0_200, %c0_201] : memref<2x16x16x8xbf16, #tpu.memory_space<vmem>>, vector<2x16x16x8xbf16>
    tpu.vector_store %arg5[%c0_198, %c0_199, %c0_200, %c0_201], %175 {strides = array<i32>} : memref<2x16x16x8xbf16, #tpu.memory_space<vmem>>, vector<2x16x16x8xbf16>,
    return
  }
  func.func @transform_0(%arg0: i32) -> (i32, i32, i32, i32) {
    %c0_i32 = arith.constant 0 : i32
    %c0_i32_0 = arith.constant 0 : i32
    %c0_i32_1 = arith.constant 0 : i32
    %c0_i32_2 = arith.constant 0 : i32
    return %arg0, %c0_i32, %c0_i32_0, %c0_i32_1 : i32, i32, i32, i32
  }
  func.func @transform_1(%arg0: i32) -> (i32, i32) {
    %c0_i32 = arith.constant 0 : i32
    %c0_i32_0 = arith.constant 0 : i32
    %c0_i32_1 = arith.constant 0 : i32
    return %c0_i32, %c0_i32_0 : i32, i32
  }
  func.func @transform_2(%arg0: i32) -> (i32, i32) {
    %c0_i32 = arith.constant 0 : i32
    %c0_i32_0 = arith.constant 0 : i32
    %c0_i32_1 = arith.constant 0 : i32
    return %c0_i32, %c0_i32_0 : i32, i32
  }
  func.func @transform_3(%arg0: i32) -> (i32, i32) {
    %c0_i32 = arith.constant 0 : i32
    %c0_i32_0 = arith.constant 0 : i32
    %c0_i32_1 = arith.constant 0 : i32
    return %c0_i32, %c0_i32_0 : i32, i32
  }
  func.func @transform_4(%arg0: i32) -> (i32, i32, i32, i32) {
    %c0_i32 = arith.constant 0 : i32
    %c0_i32_0 = arith.constant 0 : i32
    %c0_i32_1 = arith.constant 0 : i32
    %c0_i32_2 = arith.constant 0 : i32
    return %arg0, %c0_i32, %c0_i32_0, %c0_i32_1 : i32, i32, i32, i32
  }
  func.func @transform_5(%arg0: i32) -> (i32, i32, i32) {
    %c0_i32 = arith.constant 0 : i32
    %c0_i32_0 = arith.constant 0 : i32
    %c0_i32_1 = arith.constant 0 : i32
    return %arg0, %c0_i32, %c0_i32_0 : i32, i32, i32
  }
}

module attributes {stable_mosaic.version = 11 : i64} {
  func.func @_conv_input_kernel(%arg0: i32, %arg1: memref<2x16x16x4xf32, #tpu.memory_space<vmem>>, %arg2: memref<36x16xbf16, #tpu.memory_space<vmem>>, %arg3: memref<2x16x16x8xbf16, #tpu.memory_space<vmem>>, %arg4: memref<2x16x16x8xbf16, #tpu.memory_space<vmem>>, %arg5: memref<1x2x16xf32, #tpu.memory_space<vmem>>, %arg6: memref<2x18x18x4xf32, #tpu.memory_space<vmem>>, %arg7: memref<2x16x16x36xbf16, #tpu.memory_space<vmem>>) attributes {dimension_semantics = [#tpu.dimension_semantics<parallel>], iteration_bounds = array<i64: 1>, scalar_prefetch = 0 : i64, scratch_operands = 2 : i64, tpu.core_type = #tpu.core_type<tc>, window_params = [{transform_indices = @transform_0, window_bounds = array<i64: 2, 16, 16, 4>}, {pipeline_mode = #tpu.pipeline_mode<synchronous>, transform_indices = @transform_1, window_bounds = array<i64: 36, 16>}, {transform_indices = @transform_2, window_bounds = array<i64: 2, 16, 16, 8>}, {transform_indices = @transform_3, window_bounds = array<i64: 2, 16, 16, 8>}, {transform_indices = @transform_4, window_bounds = array<i64: 1, 2, 16>}]} {
    %cst = arith.constant 0.000000e+00 : f32
    %0 = vector.broadcast %cst : f32 to vector<1x18x4xf32>
    %cst_0 = arith.constant 0.000000e+00 : f32
    %1 = vector.broadcast %cst_0 : f32 to vector<18x1x4xf32>
    %c0 = arith.constant 0 : index
    %c0_1 = arith.constant 0 : index
    %c0_2 = arith.constant 0 : index
    %c0_3 = arith.constant 0 : index
    %2 = vector.load %arg6[%c0, %c0_1, %c0_2, %c0_3] : memref<2x18x18x4xf32, #tpu.memory_space<vmem>>, vector<1x1x18x4xf32>
    %3 = vector.shape_cast %2 : vector<1x1x18x4xf32> to vector<1x18x4xf32>
    %4 = vector.shape_cast %0 : vector<1x18x4xf32> to vector<1x1x18x4xf32>
    tpu.vector_store %arg6[%c0, %c0_1, %c0_2, %c0_3], %4 {strides = array<i32>} : memref<2x18x18x4xf32, #tpu.memory_space<vmem>>, vector<1x1x18x4xf32>,
    %c0_4 = arith.constant 0 : index
    %c17 = arith.constant 17 : index
    %c0_5 = arith.constant 0 : index
    %c0_6 = arith.constant 0 : index
    %5 = vector.load %arg6[%c0_4, %c17, %c0_5, %c0_6] : memref<2x18x18x4xf32, #tpu.memory_space<vmem>>, vector<1x1x18x4xf32>
    %6 = vector.shape_cast %5 : vector<1x1x18x4xf32> to vector<1x18x4xf32>
    %7 = vector.shape_cast %0 : vector<1x18x4xf32> to vector<1x1x18x4xf32>
    tpu.vector_store %arg6[%c0_4, %c17, %c0_5, %c0_6], %7 {strides = array<i32>} : memref<2x18x18x4xf32, #tpu.memory_space<vmem>>, vector<1x1x18x4xf32>,
    %c0_7 = arith.constant 0 : index
    %c0_8 = arith.constant 0 : index
    %c0_9 = arith.constant 0 : index
    %c0_10 = arith.constant 0 : index
    %8 = vector.load %arg6[%c0_7, %c0_8, %c0_9, %c0_10] : memref<2x18x18x4xf32, #tpu.memory_space<vmem>>, vector<1x18x1x4xf32>
    %9 = vector.shape_cast %8 : vector<1x18x1x4xf32> to vector<18x1x4xf32>
    %10 = vector.shape_cast %1 : vector<18x1x4xf32> to vector<1x18x1x4xf32>
    tpu.vector_store %arg6[%c0_7, %c0_8, %c0_9, %c0_10], %10 {strides = array<i32>} : memref<2x18x18x4xf32, #tpu.memory_space<vmem>>, vector<1x18x1x4xf32>,
    %c0_11 = arith.constant 0 : index
    %c0_12 = arith.constant 0 : index
    %c17_13 = arith.constant 17 : index
    %c0_14 = arith.constant 0 : index
    %11 = vector.load %arg6[%c0_11, %c0_12, %c17_13, %c0_14] : memref<2x18x18x4xf32, #tpu.memory_space<vmem>>, vector<1x18x1x4xf32>
    %12 = vector.shape_cast %11 : vector<1x18x1x4xf32> to vector<18x1x4xf32>
    %13 = vector.shape_cast %1 : vector<18x1x4xf32> to vector<1x18x1x4xf32>
    tpu.vector_store %arg6[%c0_11, %c0_12, %c17_13, %c0_14], %13 {strides = array<i32>} : memref<2x18x18x4xf32, #tpu.memory_space<vmem>>, vector<1x18x1x4xf32>,
    %c1 = arith.constant 1 : index
    %c0_15 = arith.constant 0 : index
    %c0_16 = arith.constant 0 : index
    %c0_17 = arith.constant 0 : index
    %14 = vector.load %arg6[%c1, %c0_15, %c0_16, %c0_17] : memref<2x18x18x4xf32, #tpu.memory_space<vmem>>, vector<1x1x18x4xf32>
    %15 = vector.shape_cast %14 : vector<1x1x18x4xf32> to vector<1x18x4xf32>
    %16 = vector.shape_cast %0 : vector<1x18x4xf32> to vector<1x1x18x4xf32>
    tpu.vector_store %arg6[%c1, %c0_15, %c0_16, %c0_17], %16 {strides = array<i32>} : memref<2x18x18x4xf32, #tpu.memory_space<vmem>>, vector<1x1x18x4xf32>,
    %c1_18 = arith.constant 1 : index
    %c17_19 = arith.constant 17 : index
    %c0_20 = arith.constant 0 : index
    %c0_21 = arith.constant 0 : index
    %17 = vector.load %arg6[%c1_18, %c17_19, %c0_20, %c0_21] : memref<2x18x18x4xf32, #tpu.memory_space<vmem>>, vector<1x1x18x4xf32>
    %18 = vector.shape_cast %17 : vector<1x1x18x4xf32> to vector<1x18x4xf32>
    %19 = vector.shape_cast %0 : vector<1x18x4xf32> to vector<1x1x18x4xf32>
    tpu.vector_store %arg6[%c1_18, %c17_19, %c0_20, %c0_21], %19 {strides = array<i32>} : memref<2x18x18x4xf32, #tpu.memory_space<vmem>>, vector<1x1x18x4xf32>,
    %c1_22 = arith.constant 1 : index
    %c0_23 = arith.constant 0 : index
    %c0_24 = arith.constant 0 : index
    %c0_25 = arith.constant 0 : index
    %20 = vector.load %arg6[%c1_22, %c0_23, %c0_24, %c0_25] : memref<2x18x18x4xf32, #tpu.memory_space<vmem>>, vector<1x18x1x4xf32>
    %21 = vector.shape_cast %20 : vector<1x18x1x4xf32> to vector<18x1x4xf32>
    %22 = vector.shape_cast %1 : vector<18x1x4xf32> to vector<1x18x1x4xf32>
    tpu.vector_store %arg6[%c1_22, %c0_23, %c0_24, %c0_25], %22 {strides = array<i32>} : memref<2x18x18x4xf32, #tpu.memory_space<vmem>>, vector<1x18x1x4xf32>,
    %c1_26 = arith.constant 1 : index
    %c0_27 = arith.constant 0 : index
    %c17_28 = arith.constant 17 : index
    %c0_29 = arith.constant 0 : index
    %23 = vector.load %arg6[%c1_26, %c0_27, %c17_28, %c0_29] : memref<2x18x18x4xf32, #tpu.memory_space<vmem>>, vector<1x18x1x4xf32>
    %24 = vector.shape_cast %23 : vector<1x18x1x4xf32> to vector<18x1x4xf32>
    %25 = vector.shape_cast %1 : vector<18x1x4xf32> to vector<1x18x1x4xf32>
    tpu.vector_store %arg6[%c1_26, %c0_27, %c17_28, %c0_29], %25 {strides = array<i32>} : memref<2x18x18x4xf32, #tpu.memory_space<vmem>>, vector<1x18x1x4xf32>,
    %c0_30 = arith.constant 0 : index
    %c0_31 = arith.constant 0 : index
    %c0_32 = arith.constant 0 : index
    %c0_33 = arith.constant 0 : index
    %26 = vector.load %arg1[%c0_30, %c0_31, %c0_32, %c0_33] : memref<2x16x16x4xf32, #tpu.memory_space<vmem>>, vector<1x16x16x4xf32>
    %27 = vector.shape_cast %26 : vector<1x16x16x4xf32> to vector<16x16x4xf32>
    %c0_34 = arith.constant 0 : index
    %c1_35 = arith.constant 1 : index
    %c1_36 = arith.constant 1 : index
    %c0_37 = arith.constant 0 : index
    %28 = vector.load %arg6[%c0_34, %c1_35, %c1_36, %c0_37] : memref<2x18x18x4xf32, #tpu.memory_space<vmem>>, vector<1x16x16x4xf32>
    %29 = vector.shape_cast %28 : vector<1x16x16x4xf32> to vector<16x16x4xf32>
    %30 = vector.shape_cast %27 : vector<16x16x4xf32> to vector<1x16x16x4xf32>
    tpu.vector_store %arg6[%c0_34, %c1_35, %c1_36, %c0_37], %30 {strides = array<i32>} : memref<2x18x18x4xf32, #tpu.memory_space<vmem>>, vector<1x16x16x4xf32>,
    %c1_38 = arith.constant 1 : index
    %c0_39 = arith.constant 0 : index
    %c0_40 = arith.constant 0 : index
    %c0_41 = arith.constant 0 : index
    %31 = vector.load %arg1[%c1_38, %c0_39, %c0_40, %c0_41] : memref<2x16x16x4xf32, #tpu.memory_space<vmem>>, vector<1x16x16x4xf32>
    %32 = vector.shape_cast %31 : vector<1x16x16x4xf32> to vector<16x16x4xf32>
    %c1_42 = arith.constant 1 : index
    %c1_43 = arith.constant 1 : index
    %c1_44 = arith.constant 1 : index
    %c0_45 = arith.constant 0 : index
    %33 = vector.load %arg6[%c1_42, %c1_43, %c1_44, %c0_45] : memref<2x18x18x4xf32, #tpu.memory_space<vmem>>, vector<1x16x16x4xf32>
    %34 = vector.shape_cast %33 : vector<1x16x16x4xf32> to vector<16x16x4xf32>
    %35 = vector.shape_cast %32 : vector<16x16x4xf32> to vector<1x16x16x4xf32>
    tpu.vector_store %arg6[%c1_42, %c1_43, %c1_44, %c0_45], %35 {strides = array<i32>} : memref<2x18x18x4xf32, #tpu.memory_space<vmem>>, vector<1x16x16x4xf32>,
    %c0_46 = arith.constant 0 : index
    %c0_47 = arith.constant 0 : index
    %c0_48 = arith.constant 0 : index
    %c0_49 = arith.constant 0 : index
    %36 = vector.load %arg6[%c0_46, %c0_47, %c0_48, %c0_49] : memref<2x18x18x4xf32, #tpu.memory_space<vmem>>, vector<1x16x16x4xf32>
    %37 = vector.shape_cast %36 : vector<1x16x16x4xf32> to vector<16x16x4xf32>
    %38 = arith.truncf %37 : vector<16x16x4xf32> to vector<16x16x4xbf16>
    %c0_50 = arith.constant 0 : index
    %c0_51 = arith.constant 0 : index
    %c0_52 = arith.constant 0 : index
    %c0_53 = arith.constant 0 : index
    %39 = vector.load %arg7[%c0_50, %c0_51, %c0_52, %c0_53] : memref<2x16x16x36xbf16, #tpu.memory_space<vmem>>, vector<1x16x16x4xbf16>
    %40 = vector.shape_cast %39 : vector<1x16x16x4xbf16> to vector<16x16x4xbf16>
    %41 = vector.shape_cast %38 : vector<16x16x4xbf16> to vector<1x16x16x4xbf16>
    tpu.vector_store %arg7[%c0_50, %c0_51, %c0_52, %c0_53], %41 {strides = array<i32>} : memref<2x16x16x36xbf16, #tpu.memory_space<vmem>>, vector<1x16x16x4xbf16>,
    %c0_54 = arith.constant 0 : index
    %c0_55 = arith.constant 0 : index
    %c1_56 = arith.constant 1 : index
    %c0_57 = arith.constant 0 : index
    %42 = vector.load %arg6[%c0_54, %c0_55, %c1_56, %c0_57] : memref<2x18x18x4xf32, #tpu.memory_space<vmem>>, vector<1x16x16x4xf32>
    %43 = vector.shape_cast %42 : vector<1x16x16x4xf32> to vector<16x16x4xf32>
    %44 = arith.truncf %43 : vector<16x16x4xf32> to vector<16x16x4xbf16>
    %c0_58 = arith.constant 0 : index
    %c0_59 = arith.constant 0 : index
    %c0_60 = arith.constant 0 : index
    %c4 = arith.constant 4 : index
    %45 = vector.load %arg7[%c0_58, %c0_59, %c0_60, %c4] : memref<2x16x16x36xbf16, #tpu.memory_space<vmem>>, vector<1x16x16x4xbf16>
    %46 = vector.shape_cast %45 : vector<1x16x16x4xbf16> to vector<16x16x4xbf16>
    %47 = vector.shape_cast %44 : vector<16x16x4xbf16> to vector<1x16x16x4xbf16>
    tpu.vector_store %arg7[%c0_58, %c0_59, %c0_60, %c4], %47 {strides = array<i32>} : memref<2x16x16x36xbf16, #tpu.memory_space<vmem>>, vector<1x16x16x4xbf16>,
    %c0_61 = arith.constant 0 : index
    %c0_62 = arith.constant 0 : index
    %c2 = arith.constant 2 : index
    %c0_63 = arith.constant 0 : index
    %48 = vector.load %arg6[%c0_61, %c0_62, %c2, %c0_63] : memref<2x18x18x4xf32, #tpu.memory_space<vmem>>, vector<1x16x16x4xf32>
    %49 = vector.shape_cast %48 : vector<1x16x16x4xf32> to vector<16x16x4xf32>
    %50 = arith.truncf %49 : vector<16x16x4xf32> to vector<16x16x4xbf16>
    %c0_64 = arith.constant 0 : index
    %c0_65 = arith.constant 0 : index
    %c0_66 = arith.constant 0 : index
    %c8 = arith.constant 8 : index
    %51 = vector.load %arg7[%c0_64, %c0_65, %c0_66, %c8] : memref<2x16x16x36xbf16, #tpu.memory_space<vmem>>, vector<1x16x16x4xbf16>
    %52 = vector.shape_cast %51 : vector<1x16x16x4xbf16> to vector<16x16x4xbf16>
    %53 = vector.shape_cast %50 : vector<16x16x4xbf16> to vector<1x16x16x4xbf16>
    tpu.vector_store %arg7[%c0_64, %c0_65, %c0_66, %c8], %53 {strides = array<i32>} : memref<2x16x16x36xbf16, #tpu.memory_space<vmem>>, vector<1x16x16x4xbf16>,
    %c0_67 = arith.constant 0 : index
    %c1_68 = arith.constant 1 : index
    %c0_69 = arith.constant 0 : index
    %c0_70 = arith.constant 0 : index
    %54 = vector.load %arg6[%c0_67, %c1_68, %c0_69, %c0_70] : memref<2x18x18x4xf32, #tpu.memory_space<vmem>>, vector<1x16x16x4xf32>
    %55 = vector.shape_cast %54 : vector<1x16x16x4xf32> to vector<16x16x4xf32>
    %56 = arith.truncf %55 : vector<16x16x4xf32> to vector<16x16x4xbf16>
    %c0_71 = arith.constant 0 : index
    %c0_72 = arith.constant 0 : index
    %c0_73 = arith.constant 0 : index
    %c12 = arith.constant 12 : index
    %57 = vector.load %arg7[%c0_71, %c0_72, %c0_73, %c12] : memref<2x16x16x36xbf16, #tpu.memory_space<vmem>>, vector<1x16x16x4xbf16>
    %58 = vector.shape_cast %57 : vector<1x16x16x4xbf16> to vector<16x16x4xbf16>
    %59 = vector.shape_cast %56 : vector<16x16x4xbf16> to vector<1x16x16x4xbf16>
    tpu.vector_store %arg7[%c0_71, %c0_72, %c0_73, %c12], %59 {strides = array<i32>} : memref<2x16x16x36xbf16, #tpu.memory_space<vmem>>, vector<1x16x16x4xbf16>,
    %c0_74 = arith.constant 0 : index
    %c1_75 = arith.constant 1 : index
    %c1_76 = arith.constant 1 : index
    %c0_77 = arith.constant 0 : index
    %60 = vector.load %arg6[%c0_74, %c1_75, %c1_76, %c0_77] : memref<2x18x18x4xf32, #tpu.memory_space<vmem>>, vector<1x16x16x4xf32>
    %61 = vector.shape_cast %60 : vector<1x16x16x4xf32> to vector<16x16x4xf32>
    %62 = arith.truncf %61 : vector<16x16x4xf32> to vector<16x16x4xbf16>
    %c0_78 = arith.constant 0 : index
    %c0_79 = arith.constant 0 : index
    %c0_80 = arith.constant 0 : index
    %c16 = arith.constant 16 : index
    %63 = vector.load %arg7[%c0_78, %c0_79, %c0_80, %c16] : memref<2x16x16x36xbf16, #tpu.memory_space<vmem>>, vector<1x16x16x4xbf16>
    %64 = vector.shape_cast %63 : vector<1x16x16x4xbf16> to vector<16x16x4xbf16>
    %65 = vector.shape_cast %62 : vector<16x16x4xbf16> to vector<1x16x16x4xbf16>
    tpu.vector_store %arg7[%c0_78, %c0_79, %c0_80, %c16], %65 {strides = array<i32>} : memref<2x16x16x36xbf16, #tpu.memory_space<vmem>>, vector<1x16x16x4xbf16>,
    %c0_81 = arith.constant 0 : index
    %c1_82 = arith.constant 1 : index
    %c2_83 = arith.constant 2 : index
    %c0_84 = arith.constant 0 : index
    %66 = vector.load %arg6[%c0_81, %c1_82, %c2_83, %c0_84] : memref<2x18x18x4xf32, #tpu.memory_space<vmem>>, vector<1x16x16x4xf32>
    %67 = vector.shape_cast %66 : vector<1x16x16x4xf32> to vector<16x16x4xf32>
    %68 = arith.truncf %67 : vector<16x16x4xf32> to vector<16x16x4xbf16>
    %c0_85 = arith.constant 0 : index
    %c0_86 = arith.constant 0 : index
    %c0_87 = arith.constant 0 : index
    %c20 = arith.constant 20 : index
    %69 = vector.load %arg7[%c0_85, %c0_86, %c0_87, %c20] : memref<2x16x16x36xbf16, #tpu.memory_space<vmem>>, vector<1x16x16x4xbf16>
    %70 = vector.shape_cast %69 : vector<1x16x16x4xbf16> to vector<16x16x4xbf16>
    %71 = vector.shape_cast %68 : vector<16x16x4xbf16> to vector<1x16x16x4xbf16>
    tpu.vector_store %arg7[%c0_85, %c0_86, %c0_87, %c20], %71 {strides = array<i32>} : memref<2x16x16x36xbf16, #tpu.memory_space<vmem>>, vector<1x16x16x4xbf16>,
    %c0_88 = arith.constant 0 : index
    %c2_89 = arith.constant 2 : index
    %c0_90 = arith.constant 0 : index
    %c0_91 = arith.constant 0 : index
    %72 = vector.load %arg6[%c0_88, %c2_89, %c0_90, %c0_91] : memref<2x18x18x4xf32, #tpu.memory_space<vmem>>, vector<1x16x16x4xf32>
    %73 = vector.shape_cast %72 : vector<1x16x16x4xf32> to vector<16x16x4xf32>
    %74 = arith.truncf %73 : vector<16x16x4xf32> to vector<16x16x4xbf16>
    %c0_92 = arith.constant 0 : index
    %c0_93 = arith.constant 0 : index
    %c0_94 = arith.constant 0 : index
    %c24 = arith.constant 24 : index
    %75 = vector.load %arg7[%c0_92, %c0_93, %c0_94, %c24] : memref<2x16x16x36xbf16, #tpu.memory_space<vmem>>, vector<1x16x16x4xbf16>
    %76 = vector.shape_cast %75 : vector<1x16x16x4xbf16> to vector<16x16x4xbf16>
    %77 = vector.shape_cast %74 : vector<16x16x4xbf16> to vector<1x16x16x4xbf16>
    tpu.vector_store %arg7[%c0_92, %c0_93, %c0_94, %c24], %77 {strides = array<i32>} : memref<2x16x16x36xbf16, #tpu.memory_space<vmem>>, vector<1x16x16x4xbf16>,
    %c0_95 = arith.constant 0 : index
    %c2_96 = arith.constant 2 : index
    %c1_97 = arith.constant 1 : index
    %c0_98 = arith.constant 0 : index
    %78 = vector.load %arg6[%c0_95, %c2_96, %c1_97, %c0_98] : memref<2x18x18x4xf32, #tpu.memory_space<vmem>>, vector<1x16x16x4xf32>
    %79 = vector.shape_cast %78 : vector<1x16x16x4xf32> to vector<16x16x4xf32>
    %80 = arith.truncf %79 : vector<16x16x4xf32> to vector<16x16x4xbf16>
    %c0_99 = arith.constant 0 : index
    %c0_100 = arith.constant 0 : index
    %c0_101 = arith.constant 0 : index
    %c28 = arith.constant 28 : index
    %81 = vector.load %arg7[%c0_99, %c0_100, %c0_101, %c28] : memref<2x16x16x36xbf16, #tpu.memory_space<vmem>>, vector<1x16x16x4xbf16>
    %82 = vector.shape_cast %81 : vector<1x16x16x4xbf16> to vector<16x16x4xbf16>
    %83 = vector.shape_cast %80 : vector<16x16x4xbf16> to vector<1x16x16x4xbf16>
    tpu.vector_store %arg7[%c0_99, %c0_100, %c0_101, %c28], %83 {strides = array<i32>} : memref<2x16x16x36xbf16, #tpu.memory_space<vmem>>, vector<1x16x16x4xbf16>,
    %c0_102 = arith.constant 0 : index
    %c2_103 = arith.constant 2 : index
    %c2_104 = arith.constant 2 : index
    %c0_105 = arith.constant 0 : index
    %84 = vector.load %arg6[%c0_102, %c2_103, %c2_104, %c0_105] : memref<2x18x18x4xf32, #tpu.memory_space<vmem>>, vector<1x16x16x4xf32>
    %85 = vector.shape_cast %84 : vector<1x16x16x4xf32> to vector<16x16x4xf32>
    %86 = arith.truncf %85 : vector<16x16x4xf32> to vector<16x16x4xbf16>
    %c0_106 = arith.constant 0 : index
    %c0_107 = arith.constant 0 : index
    %c0_108 = arith.constant 0 : index
    %c32 = arith.constant 32 : index
    %87 = vector.load %arg7[%c0_106, %c0_107, %c0_108, %c32] : memref<2x16x16x36xbf16, #tpu.memory_space<vmem>>, vector<1x16x16x4xbf16>
    %88 = vector.shape_cast %87 : vector<1x16x16x4xbf16> to vector<16x16x4xbf16>
    %89 = vector.shape_cast %86 : vector<16x16x4xbf16> to vector<1x16x16x4xbf16>
    tpu.vector_store %arg7[%c0_106, %c0_107, %c0_108, %c32], %89 {strides = array<i32>} : memref<2x16x16x36xbf16, #tpu.memory_space<vmem>>, vector<1x16x16x4xbf16>,
    %c1_109 = arith.constant 1 : index
    %c0_110 = arith.constant 0 : index
    %c0_111 = arith.constant 0 : index
    %c0_112 = arith.constant 0 : index
    %90 = vector.load %arg6[%c1_109, %c0_110, %c0_111, %c0_112] : memref<2x18x18x4xf32, #tpu.memory_space<vmem>>, vector<1x16x16x4xf32>
    %91 = vector.shape_cast %90 : vector<1x16x16x4xf32> to vector<16x16x4xf32>
    %92 = arith.truncf %91 : vector<16x16x4xf32> to vector<16x16x4xbf16>
    %c1_113 = arith.constant 1 : index
    %c0_114 = arith.constant 0 : index
    %c0_115 = arith.constant 0 : index
    %c0_116 = arith.constant 0 : index
    %93 = vector.load %arg7[%c1_113, %c0_114, %c0_115, %c0_116] : memref<2x16x16x36xbf16, #tpu.memory_space<vmem>>, vector<1x16x16x4xbf16>
    %94 = vector.shape_cast %93 : vector<1x16x16x4xbf16> to vector<16x16x4xbf16>
    %95 = vector.shape_cast %92 : vector<16x16x4xbf16> to vector<1x16x16x4xbf16>
    tpu.vector_store %arg7[%c1_113, %c0_114, %c0_115, %c0_116], %95 {strides = array<i32>} : memref<2x16x16x36xbf16, #tpu.memory_space<vmem>>, vector<1x16x16x4xbf16>,
    %c1_117 = arith.constant 1 : index
    %c0_118 = arith.constant 0 : index
    %c1_119 = arith.constant 1 : index
    %c0_120 = arith.constant 0 : index
    %96 = vector.load %arg6[%c1_117, %c0_118, %c1_119, %c0_120] : memref<2x18x18x4xf32, #tpu.memory_space<vmem>>, vector<1x16x16x4xf32>
    %97 = vector.shape_cast %96 : vector<1x16x16x4xf32> to vector<16x16x4xf32>
    %98 = arith.truncf %97 : vector<16x16x4xf32> to vector<16x16x4xbf16>
    %c1_121 = arith.constant 1 : index
    %c0_122 = arith.constant 0 : index
    %c0_123 = arith.constant 0 : index
    %c4_124 = arith.constant 4 : index
    %99 = vector.load %arg7[%c1_121, %c0_122, %c0_123, %c4_124] : memref<2x16x16x36xbf16, #tpu.memory_space<vmem>>, vector<1x16x16x4xbf16>
    %100 = vector.shape_cast %99 : vector<1x16x16x4xbf16> to vector<16x16x4xbf16>
    %101 = vector.shape_cast %98 : vector<16x16x4xbf16> to vector<1x16x16x4xbf16>
    tpu.vector_store %arg7[%c1_121, %c0_122, %c0_123, %c4_124], %101 {strides = array<i32>} : memref<2x16x16x36xbf16, #tpu.memory_space<vmem>>, vector<1x16x16x4xbf16>,
    %c1_125 = arith.constant 1 : index
    %c0_126 = arith.constant 0 : index
    %c2_127 = arith.constant 2 : index
    %c0_128 = arith.constant 0 : index
    %102 = vector.load %arg6[%c1_125, %c0_126, %c2_127, %c0_128] : memref<2x18x18x4xf32, #tpu.memory_space<vmem>>, vector<1x16x16x4xf32>
    %103 = vector.shape_cast %102 : vector<1x16x16x4xf32> to vector<16x16x4xf32>
    %104 = arith.truncf %103 : vector<16x16x4xf32> to vector<16x16x4xbf16>
    %c1_129 = arith.constant 1 : index
    %c0_130 = arith.constant 0 : index
    %c0_131 = arith.constant 0 : index
    %c8_132 = arith.constant 8 : index
    %105 = vector.load %arg7[%c1_129, %c0_130, %c0_131, %c8_132] : memref<2x16x16x36xbf16, #tpu.memory_space<vmem>>, vector<1x16x16x4xbf16>
    %106 = vector.shape_cast %105 : vector<1x16x16x4xbf16> to vector<16x16x4xbf16>
    %107 = vector.shape_cast %104 : vector<16x16x4xbf16> to vector<1x16x16x4xbf16>
    tpu.vector_store %arg7[%c1_129, %c0_130, %c0_131, %c8_132], %107 {strides = array<i32>} : memref<2x16x16x36xbf16, #tpu.memory_space<vmem>>, vector<1x16x16x4xbf16>,
    %c1_133 = arith.constant 1 : index
    %c1_134 = arith.constant 1 : index
    %c0_135 = arith.constant 0 : index
    %c0_136 = arith.constant 0 : index
    %108 = vector.load %arg6[%c1_133, %c1_134, %c0_135, %c0_136] : memref<2x18x18x4xf32, #tpu.memory_space<vmem>>, vector<1x16x16x4xf32>
    %109 = vector.shape_cast %108 : vector<1x16x16x4xf32> to vector<16x16x4xf32>
    %110 = arith.truncf %109 : vector<16x16x4xf32> to vector<16x16x4xbf16>
    %c1_137 = arith.constant 1 : index
    %c0_138 = arith.constant 0 : index
    %c0_139 = arith.constant 0 : index
    %c12_140 = arith.constant 12 : index
    %111 = vector.load %arg7[%c1_137, %c0_138, %c0_139, %c12_140] : memref<2x16x16x36xbf16, #tpu.memory_space<vmem>>, vector<1x16x16x4xbf16>
    %112 = vector.shape_cast %111 : vector<1x16x16x4xbf16> to vector<16x16x4xbf16>
    %113 = vector.shape_cast %110 : vector<16x16x4xbf16> to vector<1x16x16x4xbf16>
    tpu.vector_store %arg7[%c1_137, %c0_138, %c0_139, %c12_140], %113 {strides = array<i32>} : memref<2x16x16x36xbf16, #tpu.memory_space<vmem>>, vector<1x16x16x4xbf16>,
    %c1_141 = arith.constant 1 : index
    %c1_142 = arith.constant 1 : index
    %c1_143 = arith.constant 1 : index
    %c0_144 = arith.constant 0 : index
    %114 = vector.load %arg6[%c1_141, %c1_142, %c1_143, %c0_144] : memref<2x18x18x4xf32, #tpu.memory_space<vmem>>, vector<1x16x16x4xf32>
    %115 = vector.shape_cast %114 : vector<1x16x16x4xf32> to vector<16x16x4xf32>
    %116 = arith.truncf %115 : vector<16x16x4xf32> to vector<16x16x4xbf16>
    %c1_145 = arith.constant 1 : index
    %c0_146 = arith.constant 0 : index
    %c0_147 = arith.constant 0 : index
    %c16_148 = arith.constant 16 : index
    %117 = vector.load %arg7[%c1_145, %c0_146, %c0_147, %c16_148] : memref<2x16x16x36xbf16, #tpu.memory_space<vmem>>, vector<1x16x16x4xbf16>
    %118 = vector.shape_cast %117 : vector<1x16x16x4xbf16> to vector<16x16x4xbf16>
    %119 = vector.shape_cast %116 : vector<16x16x4xbf16> to vector<1x16x16x4xbf16>
    tpu.vector_store %arg7[%c1_145, %c0_146, %c0_147, %c16_148], %119 {strides = array<i32>} : memref<2x16x16x36xbf16, #tpu.memory_space<vmem>>, vector<1x16x16x4xbf16>,
    %c1_149 = arith.constant 1 : index
    %c1_150 = arith.constant 1 : index
    %c2_151 = arith.constant 2 : index
    %c0_152 = arith.constant 0 : index
    %120 = vector.load %arg6[%c1_149, %c1_150, %c2_151, %c0_152] : memref<2x18x18x4xf32, #tpu.memory_space<vmem>>, vector<1x16x16x4xf32>
    %121 = vector.shape_cast %120 : vector<1x16x16x4xf32> to vector<16x16x4xf32>
    %122 = arith.truncf %121 : vector<16x16x4xf32> to vector<16x16x4xbf16>
    %c1_153 = arith.constant 1 : index
    %c0_154 = arith.constant 0 : index
    %c0_155 = arith.constant 0 : index
    %c20_156 = arith.constant 20 : index
    %123 = vector.load %arg7[%c1_153, %c0_154, %c0_155, %c20_156] : memref<2x16x16x36xbf16, #tpu.memory_space<vmem>>, vector<1x16x16x4xbf16>
    %124 = vector.shape_cast %123 : vector<1x16x16x4xbf16> to vector<16x16x4xbf16>
    %125 = vector.shape_cast %122 : vector<16x16x4xbf16> to vector<1x16x16x4xbf16>
    tpu.vector_store %arg7[%c1_153, %c0_154, %c0_155, %c20_156], %125 {strides = array<i32>} : memref<2x16x16x36xbf16, #tpu.memory_space<vmem>>, vector<1x16x16x4xbf16>,
    %c1_157 = arith.constant 1 : index
    %c2_158 = arith.constant 2 : index
    %c0_159 = arith.constant 0 : index
    %c0_160 = arith.constant 0 : index
    %126 = vector.load %arg6[%c1_157, %c2_158, %c0_159, %c0_160] : memref<2x18x18x4xf32, #tpu.memory_space<vmem>>, vector<1x16x16x4xf32>
    %127 = vector.shape_cast %126 : vector<1x16x16x4xf32> to vector<16x16x4xf32>
    %128 = arith.truncf %127 : vector<16x16x4xf32> to vector<16x16x4xbf16>
    %c1_161 = arith.constant 1 : index
    %c0_162 = arith.constant 0 : index
    %c0_163 = arith.constant 0 : index
    %c24_164 = arith.constant 24 : index
    %129 = vector.load %arg7[%c1_161, %c0_162, %c0_163, %c24_164] : memref<2x16x16x36xbf16, #tpu.memory_space<vmem>>, vector<1x16x16x4xbf16>
    %130 = vector.shape_cast %129 : vector<1x16x16x4xbf16> to vector<16x16x4xbf16>
    %131 = vector.shape_cast %128 : vector<16x16x4xbf16> to vector<1x16x16x4xbf16>
    tpu.vector_store %arg7[%c1_161, %c0_162, %c0_163, %c24_164], %131 {strides = array<i32>} : memref<2x16x16x36xbf16, #tpu.memory_space<vmem>>, vector<1x16x16x4xbf16>,
    %c1_165 = arith.constant 1 : index
    %c2_166 = arith.constant 2 : index
    %c1_167 = arith.constant 1 : index
    %c0_168 = arith.constant 0 : index
    %132 = vector.load %arg6[%c1_165, %c2_166, %c1_167, %c0_168] : memref<2x18x18x4xf32, #tpu.memory_space<vmem>>, vector<1x16x16x4xf32>
    %133 = vector.shape_cast %132 : vector<1x16x16x4xf32> to vector<16x16x4xf32>
    %134 = arith.truncf %133 : vector<16x16x4xf32> to vector<16x16x4xbf16>
    %c1_169 = arith.constant 1 : index
    %c0_170 = arith.constant 0 : index
    %c0_171 = arith.constant 0 : index
    %c28_172 = arith.constant 28 : index
    %135 = vector.load %arg7[%c1_169, %c0_170, %c0_171, %c28_172] : memref<2x16x16x36xbf16, #tpu.memory_space<vmem>>, vector<1x16x16x4xbf16>
    %136 = vector.shape_cast %135 : vector<1x16x16x4xbf16> to vector<16x16x4xbf16>
    %137 = vector.shape_cast %134 : vector<16x16x4xbf16> to vector<1x16x16x4xbf16>
    tpu.vector_store %arg7[%c1_169, %c0_170, %c0_171, %c28_172], %137 {strides = array<i32>} : memref<2x16x16x36xbf16, #tpu.memory_space<vmem>>, vector<1x16x16x4xbf16>,
    %c1_173 = arith.constant 1 : index
    %c2_174 = arith.constant 2 : index
    %c2_175 = arith.constant 2 : index
    %c0_176 = arith.constant 0 : index
    %138 = vector.load %arg6[%c1_173, %c2_174, %c2_175, %c0_176] : memref<2x18x18x4xf32, #tpu.memory_space<vmem>>, vector<1x16x16x4xf32>
    %139 = vector.shape_cast %138 : vector<1x16x16x4xf32> to vector<16x16x4xf32>
    %140 = arith.truncf %139 : vector<16x16x4xf32> to vector<16x16x4xbf16>
    %c1_177 = arith.constant 1 : index
    %c0_178 = arith.constant 0 : index
    %c0_179 = arith.constant 0 : index
    %c32_180 = arith.constant 32 : index
    %141 = vector.load %arg7[%c1_177, %c0_178, %c0_179, %c32_180] : memref<2x16x16x36xbf16, #tpu.memory_space<vmem>>, vector<1x16x16x4xbf16>
    %142 = vector.shape_cast %141 : vector<1x16x16x4xbf16> to vector<16x16x4xbf16>
    %143 = vector.shape_cast %140 : vector<16x16x4xbf16> to vector<1x16x16x4xbf16>
    tpu.vector_store %arg7[%c1_177, %c0_178, %c0_179, %c32_180], %143 {strides = array<i32>} : memref<2x16x16x36xbf16, #tpu.memory_space<vmem>>, vector<1x16x16x4xbf16>,
    %c0_181 = arith.constant 0 : index
    %c0_182 = arith.constant 0 : index
    %c0_183 = arith.constant 0 : index
    %c0_184 = arith.constant 0 : index
    %144 = vector.load %arg7[%c0_181, %c0_182, %c0_183, %c0_184] : memref<2x16x16x36xbf16, #tpu.memory_space<vmem>>, vector<2x16x16x36xbf16>
    %145 = vector.shape_cast %144 : vector<2x16x16x36xbf16> to vector<512x36xbf16>
    %c0_185 = arith.constant 0 : index
    %c0_186 = arith.constant 0 : index
    %146 = vector.load %arg2[%c0_185, %c0_186] : memref<36x16xbf16, #tpu.memory_space<vmem>>, vector<36x16xbf16>
    %cst_187 = arith.constant dense<0.000000e+00> : vector<512x16xf32>
    %147 = tpu.matmul %145, %146, %cst_187 {dimension_numbers = #tpu.dot_dimension_numbers<[1], [0], [0], [1], [0, 0, 1, 1], [], []>} : vector<512x36xbf16>, vector<36x16xbf16>, vector<512x16xf32> -> vector<512x16xf32>
    %cst_188 = arith.constant dense<0.000000e+00> : vector<16xf32>
    %148 = vector.multi_reduction <add>, %147, %cst_188 [0] : vector<512x16xf32> to vector<16xf32>
    %149 = vector.shape_cast %148 : vector<16xf32> to vector<1x16xf32>
    %c0_189 = arith.constant 0 : index
    %c0_190 = arith.constant 0 : index
    %c0_191 = arith.constant 0 : index
    %150 = vector.load %arg5[%c0_189, %c0_190, %c0_191] : memref<1x2x16xf32, #tpu.memory_space<vmem>>, vector<1x1x16xf32>
    %151 = vector.shape_cast %150 : vector<1x1x16xf32> to vector<1x16xf32>
    %152 = vector.shape_cast %149 : vector<1x16xf32> to vector<1x1x16xf32>
    tpu.vector_store %arg5[%c0_189, %c0_190, %c0_191], %152 {strides = array<i32>} : memref<1x2x16xf32, #tpu.memory_space<vmem>>, vector<1x1x16xf32>,
    %153 = arith.mulf %147, %147 : vector<512x16xf32>
    %cst_192 = arith.constant dense<0.000000e+00> : vector<16xf32>
    %154 = vector.multi_reduction <add>, %153, %cst_192 [0] : vector<512x16xf32> to vector<16xf32>
    %155 = vector.shape_cast %154 : vector<16xf32> to vector<1x16xf32>
    %c0_193 = arith.constant 0 : index
    %c1_194 = arith.constant 1 : index
    %c0_195 = arith.constant 0 : index
    %156 = vector.load %arg5[%c0_193, %c1_194, %c0_195] : memref<1x2x16xf32, #tpu.memory_space<vmem>>, vector<1x1x16xf32>
    %157 = vector.shape_cast %156 : vector<1x1x16xf32> to vector<1x16xf32>
    %158 = vector.shape_cast %155 : vector<1x16xf32> to vector<1x1x16xf32>
    tpu.vector_store %arg5[%c0_193, %c1_194, %c0_195], %158 {strides = array<i32>} : memref<1x2x16xf32, #tpu.memory_space<vmem>>, vector<1x1x16xf32>,
    %159 = vector.extract_strided_slice %147 {offsets = [0, 0], sizes = [512, 8], strides = [1, 1]} : vector<512x16xf32> to vector<512x8xf32>
    %160 = arith.truncf %159 : vector<512x8xf32> to vector<512x8xbf16>
    %161 = vector.shape_cast %160 : vector<512x8xbf16> to vector<2x16x16x8xbf16>
    %c0_196 = arith.constant 0 : index
    %c0_197 = arith.constant 0 : index
    %c0_198 = arith.constant 0 : index
    %c0_199 = arith.constant 0 : index
    %162 = vector.load %arg3[%c0_196, %c0_197, %c0_198, %c0_199] : memref<2x16x16x8xbf16, #tpu.memory_space<vmem>>, vector<2x16x16x8xbf16>
    tpu.vector_store %arg3[%c0_196, %c0_197, %c0_198, %c0_199], %161 {strides = array<i32>} : memref<2x16x16x8xbf16, #tpu.memory_space<vmem>>, vector<2x16x16x8xbf16>,
    %163 = vector.extract_strided_slice %147 {offsets = [0, 8], sizes = [512, 8], strides = [1, 1]} : vector<512x16xf32> to vector<512x8xf32>
    %164 = arith.truncf %163 : vector<512x8xf32> to vector<512x8xbf16>
    %165 = vector.shape_cast %164 : vector<512x8xbf16> to vector<2x16x16x8xbf16>
    %c0_200 = arith.constant 0 : index
    %c0_201 = arith.constant 0 : index
    %c0_202 = arith.constant 0 : index
    %c0_203 = arith.constant 0 : index
    %166 = vector.load %arg4[%c0_200, %c0_201, %c0_202, %c0_203] : memref<2x16x16x8xbf16, #tpu.memory_space<vmem>>, vector<2x16x16x8xbf16>
    tpu.vector_store %arg4[%c0_200, %c0_201, %c0_202, %c0_203], %165 {strides = array<i32>} : memref<2x16x16x8xbf16, #tpu.memory_space<vmem>>, vector<2x16x16x8xbf16>,
    return
  }
  func.func @transform_0(%arg0: i32) -> (i32, i32, i32, i32) {
    %c0_i32 = arith.constant 0 : i32
    %c0_i32_0 = arith.constant 0 : i32
    %c0_i32_1 = arith.constant 0 : i32
    %c0_i32_2 = arith.constant 0 : i32
    return %arg0, %c0_i32, %c0_i32_0, %c0_i32_1 : i32, i32, i32, i32
  }
  func.func @transform_1(%arg0: i32) -> (i32, i32) {
    %c0_i32 = arith.constant 0 : i32
    %c0_i32_0 = arith.constant 0 : i32
    %c0_i32_1 = arith.constant 0 : i32
    return %c0_i32, %c0_i32_0 : i32, i32
  }
  func.func @transform_2(%arg0: i32) -> (i32, i32, i32, i32) {
    %c0_i32 = arith.constant 0 : i32
    %c0_i32_0 = arith.constant 0 : i32
    %c0_i32_1 = arith.constant 0 : i32
    %c0_i32_2 = arith.constant 0 : i32
    return %arg0, %c0_i32, %c0_i32_0, %c0_i32_1 : i32, i32, i32, i32
  }
  func.func @transform_3(%arg0: i32) -> (i32, i32, i32, i32) {
    %c0_i32 = arith.constant 0 : i32
    %c0_i32_0 = arith.constant 0 : i32
    %c0_i32_1 = arith.constant 0 : i32
    %c0_i32_2 = arith.constant 0 : i32
    return %arg0, %c0_i32, %c0_i32_0, %c0_i32_1 : i32, i32, i32, i32
  }
  func.func @transform_4(%arg0: i32) -> (i32, i32, i32) {
    %c0_i32 = arith.constant 0 : i32
    %c0_i32_0 = arith.constant 0 : i32
    %c0_i32_1 = arith.constant 0 : i32
    return %arg0, %c0_i32, %c0_i32_0 : i32, i32, i32
  }
}

</mosaic_0001>

<bundles_post_ra>
// kernel: basic_block_forward.5
= control target key start
LH: loop header
LB: loop body
LE: loop exit
PB: predicated region body
PF: predicated region fallthrough
CT: control target
= control target key end

     0   :  { %s200_s0 = inlined_call_operand.vmem [shape: bf16[32,128], index: 0, kind: input, shape index: {}]   ;;  %s201_s1 = inlined_call_operand.vmem [shape: bf16[32,128], index: 1, kind: input, shape index: {}]   ;;  %s202_s2 = inlined_call_operand.vmem [shape: f32[1,128], index: 2, kind: input, shape index: {}]   ;;  %s203_s3 = inlined_call_operand.vmem [shape: f32[1,128], index: 3, kind: input, shape index: {}]   ;;  %s204_s4 = inlined_call_operand.vmem [shape: f32[1,128], index: 4, kind: input, shape index: {}]   ;;  %s205_s5 = inlined_call_operand.vmem [shape: f32[1,128], index: 5, kind: input, shape index: {}]   ;;  %s206_s6 = inlined_call_operand.vmem [shape: f32[32,128], index: 6, kind: output, shape index: {}]  }
   0x1   :  { %v112_v0 = vld [vmem:[%s200_s0] sm:$0xff]   ;;  %v127_v9 = vld [vmem:[%s200_s0 + $0x8] sm:$0xff]  }
   0x2   :  { %v107_v1 = vld [vmem:[%s202_s2] ss:$0 sm:$0xff]  ;;  %v113_v2 = vunpack.c.l.bf16 %v112_v0  ;;  %v114_v5 = vunpack.c.h.bf16 %v112_v0  ;;  %v128_v10 = vld [vmem:[%s201_s1 + $0x8] sm:$0xff]   ;;  %v117_v14 = vunpack.c.l.bf16 %v127_v9  ;;  %v118_v18 = vunpack.c.h.bf16 %v127_v9 }
   0x3   :  { %v120_v3 = vld [vmem:[%s201_s1] sm:$0xff]   ;;  %v125_v15 = vunpack.c.l.bf16 %v128_v10  ;;  %v126_v19 = vunpack.c.h.bf16 %v128_v10 }
   0x4   :  { %v109_v4 = vld [vmem:[%s204_s4] ss:$0 sm:$0xff]  ;;  %v121_v7 = vunpack.c.l.bf16 %v120_v3  ;;  %v122_v8 = vunpack.c.h.bf16 %v120_v3  ;;  %v38_v11 = vmul.f32 %v113_v2, %v107_v1  ;;  %v39_v13 = vmul.f32 %v114_v5, %v107_v1 }
   0x5   :  { %v108_v6 = vld [vmem:[%s203_s3] ss:$0 sm:$0xff]  ;;  %v40_v22 = vmul.f32 %v117_v14, %v107_v1  ;;  %v70_v23 = vmul.f32 %v125_v15, %v109_v4  ;;  %v41_v26 = vmul.f32 %v118_v18, %v107_v1  ;;  %v71_v27 = vmul.f32 %v126_v19, %v109_v4 }
   0x6   :  { %v110_v12 = vld [vmem:[%s205_s5] ss:$0 sm:$0xff]  ;;  %v68_v16 = vmul.f32 %v121_v7, %v109_v4  ;;  %v69_v17 = vmul.f32 %v122_v8, %v109_v4  ;;  %v49_v20 = vadd.f32 %v108_v6, %v38_v11  ;;  %v50_v21 = vadd.f32 %v108_v6, %v39_v13 }
   0x7   :  { %v51_v28 = vadd.f32 %v108_v6, %v40_v22  ;;  %v81_v29 = vadd.f32 %v110_v12, %v70_v23  ;;  %v52_v32 = vadd.f32 %v108_v6, %v41_v26  ;;  %v82_v33 = vadd.f32 %v110_v12, %v71_v27 }
   0x8   :  { %v79_v24 = vadd.f32 %v110_v12, %v68_v16  ;;  %v80_v25 = vadd.f32 %v110_v12, %v69_v17 }
   0x9   :  { %v85_v34 = vadd.f32 %v81_v29, %v51_v28  ;;  %v86_v38 = vadd.f32 %v82_v33, %v52_v32 }
   0xa   :  { %v83_v30 = vadd.f32 %v79_v24, %v49_v20  ;;  %v84_v31 = vadd.f32 %v80_v25, %v50_v21 }
   0xb   :  { %vm89_vm2 = vcmp.gt.f32.partialorder %v85_v34, 0.0  ;;  %v93_v37 = vmul.f32 0.01, %v85_v34  ;;  %vm90_vm3 = vcmp.gt.f32.partialorder %v86_v38, 0.0  ;;  %v94_v42 = vmul.f32 0.01, %v86_v38 }
   0xc   :  { %vm87_vm0 = vcmp.gt.f32.partialorder %v83_v30, 0.0  ;;  %v91_v35 = vmul.f32 0.01, %v83_v30  ;;  %vm88_vm1 = vcmp.gt.f32.partialorder %v84_v31, 0.0  ;;  %v92_v36 = vmul.f32 0.01, %v84_v31 }
   0xd   :  { %v97_v41 = vsel %vm89_vm2, %v85_v34, %v93_v37  ;;  %v98_v43 = vsel %vm90_vm3, %v86_v38, %v94_v42 }
   0xe   :  { %v95_v39 = vsel %vm87_vm0, %v83_v30, %v91_v35  ;;  %v96_v40 = vsel %vm88_vm1, %v84_v31, %v92_v36  ;;  %101 = vst [vmem:[%s206_s6 + $0x10] sm:$0xff] %v97_v41  ;;  %102 = vst [vmem:[%s206_s6 + $0x18] sm:$0xff] %v98_v43 }
   0xf   :  { %99 = vst [vmem:[%s206_s6] sm:$0xff] %v95_v39  ;;  %100 = vst [vmem:[%s206_s6 + $0x8] sm:$0xff] %v96_v40 }

// kernel: basic_block_forward.4
= control target key start
LH: loop header
LB: loop body
LE: loop exit
PB: predicated region body
PF: predicated region fallthrough
CT: control target
= control target key end

     0   :  { %vm20_vm0 = vcmask 64512   ;;  %vm23_vm1 = vcmask 58368   ;;  %vm29_vm2 = vcmask 57344   ;;  %v4411_v0 = vmov 0.0   ;;  %s4412_s7 = smov 8   ;;  %s4413_s28 = smov 16   ;;  %s6173_s0 = inlined_call_operand.vmem [shape: bf16[2,16,16,8], index: 0, kind: input, shape index: {}]   ;;  %s6174_s1 = inlined_call_operand.vmem [shape: f32[1,8], index: 1, kind: input, shape index: {}]   ;;  %s6175_s2 = inlined_call_operand.vmem [shape: f32[1,8], index: 2, kind: input, shape index: {}]   ;;  %s6176_s3 = inlined_call_operand.vmem [shape: bf16[72,8], index: 3, kind: input, shape index: {}]   ;;  %s6177_s4 = inlined_call_operand.vmem [shape: bf16[2,16,16,8], index: 4, kind: output, shape index: {0}]   ;;  %s6178_s5 = inlined_call_operand.vmem [shape: f32[1,2,8], index: 5, kind: output, shape index: {1}]  }
   0x1   :  { %21 = vst.msk [vmem:[#allocation2] sm:$0xff] %vm20_vm0, %v4411_v0  ;;  %22 = vst.msk [vmem:[#allocation2 + $0x8] sm:$0xff] %vm20_vm0, %v4411_v0  ;;  %v4239_v1 = vld [vmem:[%s6173_s0 + $0x8] sm:$0xff]   ;;  %v4608_v2 = vld [vmem:[%s6174_s1] ss:$0 sm:$0xff]  ;;  %s4414_s29 = smov 24  }
   0x2   :  { %24 = vst.msk [vmem:[#allocation2 + $0x10] sm:$0x3] %vm23_vm1, %v4411_v0  ;;  %28 = vst.msk [vmem:[#allocation2 + $0x1a8] sm:$0x3] %vm23_vm1, %v4411_v0  ;;  %v4117_v3 = vunpack.c.l.bf16 %v4239_v1  ;;  %v4118_v4 = vunpack.c.h.bf16 %v4239_v1  ;;  %v4112_v5 = vld [vmem:[%s6173_s0] sm:$0xff]   ;;  %v4240_v6 = vld [vmem:[%s6173_s0 + $0x10] sm:$0xff]  }
   0x3   :  { %26 = vst.msk [vmem:[#allocation2 + $0x198] sm:$0xff] %vm20_vm0, %v4411_v0  ;;  %27 = vst.msk [vmem:[#allocation2 + $0x1a0] sm:$0xff] %vm20_vm0, %v4411_v0  ;;  %v4241_v7 = vld [vmem:[%s6173_s0 + $0x18] sm:$0xff]   ;;  %v4638_v8 = vld [vmem:[%s6175_s2] ss:$0 sm:$0xff]  ;;  %v4113_v9 = vunpack.c.l.bf16 %v4112_v5  ;;  %v4114_v10 = vunpack.c.h.bf16 %v4112_v5  ;;  %v4121_v11 = vunpack.c.l.bf16 %v4240_v6  ;;  %v4122_v12 = vunpack.c.h.bf16 %v4240_v6  ;;  %s4415_s10 = smov 32  }
   0x4   :  { %31 = vst.msk [vmem:[#allocation2 + $0x18] sm:$0x1] %vm29_vm2, %v4411_v0  ;;  %32 = vst.msk [vmem:[#allocation2 + $0x30] sm:$0x1] %vm29_vm2, %v4411_v0  ;;  %v247_v13 = vmul.f32 %v4117_v3, %v4608_v2  ;;  %v248_v14 = vmul.f32 %v4118_v4, %v4608_v2  ;;  %v4125_v15 = vunpack.c.l.bf16 %v4241_v7  ;;  %v4126_v16 = vunpack.c.h.bf16 %v4241_v7  ;;  %v4242_v38 = vld [vmem:[%s6173_s0 + $0x20] sm:$0xff]   ;;  %v4243_v42 = vld [vmem:[%s6173_s0 + $0x28] sm:$0xff]  }
   0x5   :  { %33 = vst.msk [vmem:[#allocation2 + $0x48] sm:$0x1] %vm29_vm2, %v4411_v0  ;;  %34 = vst.msk [vmem:[#allocation2 + $0x60] sm:$0x1] %vm29_vm2, %v4411_v0  ;;  %v245_v17 = vmul.f32 %v4113_v9, %v4608_v2  ;;  %v246_v18 = vmul.f32 %v4114_v10, %v4608_v2  ;;  %v249_v19 = vmul.f32 %v4121_v11, %v4608_v2  ;;  %v4244_v46 = vld [vmem:[%s6173_s0 + $0x30] sm:$0xff]   ;;  %v4129_v50 = vunpack.c.l.bf16 %v4242_v38  ;;  %v4245_v54 = vld [vmem:[%s6173_s0 + $0x38] sm:$0xff]  }
   0x6   :  { %35 = vst.msk [vmem:[#allocation2 + $0x78] sm:$0x1] %vm29_vm2, %v4411_v0  ;;  %36 = vst.msk [vmem:[#allocation2 + $0x90] sm:$0x1] %vm29_vm2, %v4411_v0  ;;  %v250_v20 = vmul.f32 %v4122_v12, %v4608_v2  ;;  %v318_v21 = vadd.f32 %v4638_v8, %v247_v13  ;;  %v319_v22 = vadd.f32 %v4638_v8, %v248_v14  ;;  %v4130_v52 = vunpack.c.h.bf16 %v4242_v38  ;;  %s4416_s15 = smov 40   ;;  %s4417_s18 = smov 48  }
   0x7   :  { %37 = vst.msk [vmem:[#allocation2 + $0xa8] sm:$0x1] %vm29_vm2, %v4411_v0  ;;  %38 = vst.msk [vmem:[#allocation2 + $0xc0] sm:$0x1] %vm29_vm2, %v4411_v0  ;;  %v251_v23 = vmul.f32 %v4125_v15, %v4608_v2  ;;  %v252_v24 = vmul.f32 %v4126_v16, %v4608_v2  ;;  %v316_v25 = vadd.f32 %v4638_v8, %v245_v17  ;;  %v4133_v53 = vunpack.c.l.bf16 %v4243_v42  ;;  %s4418_s21 = smov 56  }
   0x8   :  { %39 = vst.msk [vmem:[#allocation2 + $0xd8] sm:$0x1] %vm29_vm2, %v4411_v0  ;;  %40 = vst.msk [vmem:[#allocation2 + $0xf0] sm:$0x1] %vm29_vm2, %v4411_v0  ;;  %v317_v26 = vadd.f32 %v4638_v8, %v246_v18  ;;  %v320_v27 = vadd.f32 %v4638_v8, %v249_v19  ;;  %v321_v28 = vadd.f32 %v4638_v8, %v250_v20  ;;  %v702_v29 = vld [vmem:[#allocation2 + $0x1] sm:$0xff]  ;;  %vm382_vm3 = vcmp.gt.f32.partialorder %v318_v21, 0.0 }
   0x9   :  { %41 = vst.msk [vmem:[#allocation2 + $0x108] sm:$0x1] %vm29_vm2, %v4411_v0  ;;  %42 = vst.msk [vmem:[#allocation2 + $0x120] sm:$0x1] %vm29_vm2, %v4411_v0  ;;  %v703_v30 = vld [vmem:[#allocation2 + $0x9] sm:$0xff]  ;;  %vm383_vm4 = vcmp.gt.f32.partialorder %v319_v22, 0.0  ;;  %v322_v32 = vadd.f32 %v4638_v8, %v251_v23  ;;  %v323_v45 = vadd.f32 %v4638_v8, %v252_v24  ;;  %v253_v56 = vmul.f32 %v4129_v50, %v4608_v2 }
   0xa   :  { %43 = vst.msk [vmem:[#allocation2 + $0x138] sm:$0x1] %vm29_vm2, %v4411_v0  ;;  %44 = vst.msk [vmem:[#allocation2 + $0x150] sm:$0x1] %vm29_vm2, %v4411_v0  ;;  %v446_v31 = vmul.f32 0.01, %v318_v21  ;;  %v734_v33 = vpack.c.bf16 %v703_v30, %v702_v29  ;;  %v4134_v57 = vunpack.c.h.bf16 %v4243_v42  ;;  %v4137_v58 = vunpack.c.l.bf16 %v4244_v46 }
   0xb   :  { %45 = vst.msk [vmem:[#allocation2 + $0x168] sm:$0x1] %vm29_vm2, %v4411_v0  ;;  %46 = vst.msk [vmem:[#allocation2 + $0x180] sm:$0x1] %vm29_vm2, %v4411_v0  ;;  %v447_v34 = vmul.f32 0.01, %v319_v22  ;;  %v254_v60 = vmul.f32 %v4130_v52, %v4608_v2  ;;  %v255_v61 = vmul.f32 %v4133_v53, %v4608_v2  ;;  %v4138_v62 = vunpack.c.h.bf16 %v4244_v46 }
   0xc   :  { %49 = vst.msk [vmem:[#allocation2 + $0x29] sm:$0x1] %vm29_vm2, %v4411_v0  ;;  %50 = vst.msk [vmem:[#allocation2 + $0x41] sm:$0x1] %vm29_vm2, %v4411_v0  ;;  %vm380_vm5 = vcmp.gt.f32.partialorder %v316_v25, 0.0  ;;  %vm381_vm6 = vcmp.gt.f32.partialorder %v317_v26, 0.0  ;;  %v510_v35 = vsel %vm382_vm3, %v318_v21, %v446_v31  ;;  %766 = vrot.lane.b32.xlu0 %v734_v33, %s4412_s7  ;;  %v324_v63 = vadd.f32 %v4638_v8, %v253_v56 }
   0xd   :  { %51 = vst.msk [vmem:[#allocation2 + $0x59] sm:$0x1] %vm29_vm2, %v4411_v0  ;;  %52 = vst.msk [vmem:[#allocation2 + $0x71] sm:$0x1] %vm29_vm2, %v4411_v0  ;;  %v444_v36 = vmul.f32 0.01, %v316_v25  ;;  %v511_v39 = vsel %vm383_vm4, %v319_v22, %v447_v34  ;;  %v257_v1 = vmul.f32 %v4137_v58, %v4608_v2  ;;  %v4141_v3 = vunpack.c.l.bf16 %v4245_v54 }
   0xe   :  { %53 = vst.msk [vmem:[#allocation2 + $0x89] sm:$0x1] %vm29_vm2, %v4411_v0  ;;  %54 = vst.msk [vmem:[#allocation2 + $0xa1] sm:$0x1] %vm29_vm2, %v4411_v0  ;;  %v445_v37 = vmul.f32 0.01, %v317_v26  ;;  %v325_v5 = vadd.f32 %v4638_v8, %v254_v60  ;;  %v326_v6 = vadd.f32 %v4638_v8, %v255_v61  ;;  %v258_v7 = vmul.f32 %v4138_v62, %v4608_v2 }
   0xf   :  { %55 = vst.msk [vmem:[#allocation2 + $0xb9] sm:$0x1] %vm29_vm2, %v4411_v0  ;;  %56 = vst.msk [vmem:[#allocation2 + $0xd1] sm:$0x1] %vm29_vm2, %v4411_v0  ;;  %vm384_vm7 = vcmp.gt.f32.partialorder %v320_v27, 0.0  ;;  %vm385_vm8 = vcmp.gt.f32.partialorder %v321_v28, 0.0  ;;  %v508_v43 = vsel %vm380_vm5, %v316_v25, %v444_v36  ;;  %v4142_v9 = vunpack.c.h.bf16 %v4245_v54 }
  0x10   :  { %57 = vst.msk [vmem:[#allocation2 + $0xe9] sm:$0x1] %vm29_vm2, %v4411_v0  ;;  %58 = vst.msk [vmem:[#allocation2 + $0x101] sm:$0x1] %vm29_vm2, %v4411_v0  ;;  %v448_v40 = vmul.f32 0.01, %v320_v27  ;;  %v509_v44 = vsel %vm381_vm6, %v317_v26, %v445_v37  ;;  %v328_v13 = vadd.f32 %v4638_v8, %v257_v1  ;;  %v329_v26 = vadd.f32 %v4638_v8, %v258_v7 }
  0x11   :  { %59 = vst.msk [vmem:[#allocation2 + $0x119] sm:$0x1] %vm29_vm2, %v4411_v0  ;;  %60 = vst.msk [vmem:[#allocation2 + $0x131] sm:$0x1] %vm29_vm2, %v4411_v0  ;;  %v449_v41 = vmul.f32 0.01, %v321_v28  ;;  %v259_v31 = vmul.f32 %v4141_v3, %v4608_v2  ;;  %v260_v36 = vmul.f32 %v4142_v9, %v4608_v2 }
  0x12   :  { %61 = vst.msk [vmem:[#allocation2 + $0x149] sm:$0x1] %vm29_vm2, %v4411_v0  ;;  %62 = vst.msk [vmem:[#allocation2 + $0x161] sm:$0x1] %vm29_vm2, %v4411_v0  ;;  %vm386_vm9 = vcmp.gt.f32.partialorder %v322_v32, 0.0  ;;  %v512_v47 = vsel %vm384_vm7, %v320_v27, %v448_v40  ;;  %vm387_vm10 = vcmp.gt.f32.partialorder %v323_v45, 0.0 }
  0x13   :  { %63 = vst.msk [vmem:[#allocation2 + $0x179] sm:$0x1] %vm29_vm2, %v4411_v0  ;;  %64 = vst.msk [vmem:[#allocation2 + $0x191] sm:$0x1] %vm29_vm2, %v4411_v0  ;;  %v513_v48 = vsel %vm385_vm8, %v321_v28, %v449_v41  ;;  %v450_v49 = vmul.f32 0.01, %v322_v32  ;;  %v331_v42 = vadd.f32 %v4638_v8, %v260_v36 }
  0x14   :  { %67 = vst.msk [vmem:[#allocation2 + $0x1b0] sm:$0xff] %vm20_vm0, %v4411_v0  ;;  %68 = vst.msk [vmem:[#allocation2 + $0x1b8] sm:$0xff] %vm20_vm0, %v4411_v0  ;;  %v451_v51 = vmul.f32 0.01, %v323_v45  ;;  %vm388_vm11 = vcmp.gt.f32.partialorder %v324_v63, 0.0  ;;  %vm389_vm12 = vcmp.gt.f32.partialorder %v325_v5, 0.0 }
  0x15   :  { %69 = vst.msk [vmem:[#allocation2 + $0x1c0] sm:$0x3] %vm23_vm1, %v4411_v0  ;;  %73 = vst.msk [vmem:[#allocation2 + $0x358] sm:$0x3] %vm23_vm1, %v4411_v0  ;;  %v514_v55 = vsel %vm386_vm9, %v322_v32, %v450_v49  ;;  %v452_v11 = vmul.f32 0.01, %v324_v63 }
  0x16   :  { %71 = vst.msk [vmem:[#allocation2 + $0x348] sm:$0xff] %vm20_vm0, %v4411_v0  ;;  %72 = vst.msk [vmem:[#allocation2 + $0x350] sm:$0xff] %vm20_vm0, %v4411_v0  ;;  %v515_v59 = vsel %vm387_vm10, %v323_v45, %v451_v51  ;;  %v453_v17 = vmul.f32 0.01, %v325_v5  ;;  %vm390_vm13 = vcmp.gt.f32.partialorder %v326_v6, 0.0  ;;  %v4246_v27 = vld [vmem:[%s6173_s0 + $0x40] sm:$0xff]  }
  0x17   :  { %75 = vst.msk [vmem:[#allocation2 + $0x1c8] sm:$0x1] %vm29_vm2, %v4411_v0  ;;  %76 = vst.msk [vmem:[#allocation2 + $0x1e0] sm:$0x1] %vm29_vm2, %v4411_v0  ;;  %v516_v21 = vsel %vm388_vm11, %v324_v63, %v452_v11  ;;  %v454_v22 = vmul.f32 0.01, %v326_v6  ;;  %v4145_v40 = vunpack.c.l.bf16 %v4246_v27 }
  0x18   :  { %77 = vst.msk [vmem:[#allocation2 + $0x1f8] sm:$0x1] %vm29_vm2, %v4411_v0  ;;  %78 = vst.msk [vmem:[#allocation2 + $0x210] sm:$0x1] %vm29_vm2, %v4411_v0  ;;  %v517_v24 = vsel %vm389_vm12, %v325_v5, %v453_v17  ;;  %vm392_vm15 = vcmp.gt.f32.partialorder %v328_v13, 0.0  ;;  %v4247_v32 = vld [vmem:[%s6173_s0 + $0x48] sm:$0xff]  }
  0x19   :  { %79 = vst.msk [vmem:[#allocation2 + $0x228] sm:$0x1] %vm29_vm2, %v4411_v0  ;;  %80 = vst.msk [vmem:[#allocation2 + $0x240] sm:$0x1] %vm29_vm2, %v4411_v0  ;;  %v518_v29 = vsel %vm390_vm13, %v326_v6, %v454_v22  ;;  %v456_v30 = vmul.f32 0.01, %v328_v13 }
  0x1a   :  { %81 = vst.msk [vmem:[#allocation2 + $0x258] sm:$0x1] %vm29_vm2, %v4411_v0  ;;  %82 = vst.msk [vmem:[#allocation2 + $0x270] sm:$0x1] %vm29_vm2, %v4411_v0  ;;  %vm393_vm1 = vcmp.gt.f32.partialorder %v329_v26, 0.0  ;;  %v4248_v45 = vld [vmem:[%s6173_s0 + $0x50] sm:$0xff]  }
  0x1b   :  { %83 = vst.msk [vmem:[#allocation2 + $0x288] sm:$0x1] %vm29_vm2, %v4411_v0  ;;  %84 = vst.msk [vmem:[#allocation2 + $0x2a0] sm:$0x1] %vm29_vm2, %v4411_v0  ;;  %v520_v38 = vsel %vm392_vm15, %v328_v13, %v456_v30  ;;  %vm395_vm4 = vcmp.gt.f32.partialorder %v331_v42, 0.0  ;;  %v4153_v56 = vunpack.c.l.bf16 %v4248_v45  ;;  %v4154_v61 = vunpack.c.h.bf16 %v4248_v45  ;;  %v4249_v6 = vld [vmem:[%s6173_s0 + $0x58] sm:$0xff]  }
  0x1c   :  { %85 = vst.msk [vmem:[#allocation2 + $0x2b8] sm:$0x1] %vm29_vm2, %v4411_v0  ;;  %86 = vst.msk [vmem:[#allocation2 + $0x2d0] sm:$0x1] %vm29_vm2, %v4411_v0  ;;  %v459_v49 = vmul.f32 0.01, %v331_v42  ;;  %v4157_v22 = vunpack.c.l.bf16 %v4249_v6 }
  0x1d   :  { %87 = vst.msk [vmem:[#allocation2 + $0x2e8] sm:$0x1] %vm29_vm2, %v4411_v0  ;;  %88 = vst.msk [vmem:[#allocation2 + $0x300] sm:$0x1] %vm29_vm2, %v4411_v0  ;;  %v265_v5 = vmul.f32 %v4153_v56, %v4608_v2 }
  0x1e   :  { %89 = vst.msk [vmem:[#allocation2 + $0x318] sm:$0x1] %vm29_vm2, %v4411_v0  ;;  %90 = vst.msk [vmem:[#allocation2 + $0x330] sm:$0x1] %vm29_vm2, %v4411_v0  ;;  %v523_v58 = vsel %vm395_vm4, %v331_v42, %v459_v49  ;;  %v267_v30 = vmul.f32 %v4157_v22, %v4608_v2 }
  0x1f   :  { %93 = vst.msk [vmem:[#allocation2 + $0x1d9] sm:$0x1] %vm29_vm2, %v4411_v0  ;;  %94 = vst.msk [vmem:[#allocation2 + $0x1f1] sm:$0x1] %vm29_vm2, %v4411_v0  ;;  %v336_v17 = vadd.f32 %v4638_v8, %v265_v5 }
  0x20   :  { %95 = vst.msk [vmem:[#allocation2 + $0x209] sm:$0x1] %vm29_vm2, %v4411_v0  ;;  %96 = vst.msk [vmem:[#allocation2 + $0x221] sm:$0x1] %vm29_vm2, %v4411_v0 }
  0x21   :  { %97 = vst.msk [vmem:[#allocation2 + $0x239] sm:$0x1] %vm29_vm2, %v4411_v0  ;;  %98 = vst.msk [vmem:[#allocation2 + $0x251] sm:$0x1] %vm29_vm2, %v4411_v0  ;;  %vm400_vm9 = vcmp.gt.f32.partialorder %v336_v17, 0.0 }
  0x22   :  { %99 = vst.msk [vmem:[#allocation2 + $0x269] sm:$0x1] %vm29_vm2, %v4411_v0  ;;  %100 = vst.msk [vmem:[#allocation2 + $0x281] sm:$0x1] %vm29_vm2, %v4411_v0 }
  0x23   :  { %101 = vst.msk [vmem:[#allocation2 + $0x299] sm:$0x1] %vm29_vm2, %v4411_v0  ;;  %102 = vst.msk [vmem:[#allocation2 + $0x2b1] sm:$0x1] %vm29_vm2, %v4411_v0 }
  0x24   :  { %103 = vst.msk [vmem:[#allocation2 + $0x2c9] sm:$0x1] %vm29_vm2, %v4411_v0  ;;  %104 = vst.msk [vmem:[#allocation2 + $0x2e1] sm:$0x1] %vm29_vm2, %v4411_v0 }
  0x25   :  { %105 = vst.msk [vmem:[#allocation2 + $0x2f9] sm:$0x1] %vm29_vm2, %v4411_v0  ;;  %106 = vst.msk [vmem:[#allocation2 + $0x311] sm:$0x1] %vm29_vm2, %v4411_v0 }
  0x26   :  { %107 = vst.msk [vmem:[#allocation2 + $0x329] sm:$0x1] %vm29_vm2, %v4411_v0  ;;  %108 = vst.msk [vmem:[#allocation2 + $0x341] sm:$0x1] %vm29_vm2, %v4411_v0 }
  0x27   :  { %48 = vst.msk [vmem:[#allocation2 + $0x11] sm:$0x1] %vm29_vm2, %v4411_v0  ;;  %30 = vst.msk [vmem:[#allocation2] sm:$0x1] %vm29_vm2, %v4411_v0 }
  0x28   :  { %47 = vst.msk [vmem:[#allocation2 + $0x198] sm:$0x1] %vm29_vm2, %v4411_v0  ;;  %65 = vst.msk [vmem:[#allocation2 + $0x1a9] sm:$0x1] %vm29_vm2, %v4411_v0 }
  0x29   :  { %74 = vst.msk [vmem:[#allocation2 + $0x1b0] sm:$0x1] %vm29_vm2, %v4411_v0  ;;  %91 = vst.msk [vmem:[#allocation2 + $0x348] sm:$0x1] %vm29_vm2, %v4411_v0 }
  0x2a   :  { %92 = vst.msk [vmem:[#allocation2 + $0x1c1] sm:$0x1] %vm29_vm2, %v4411_v0  ;;  %109 = vst.msk [vmem:[#allocation2 + $0x359] sm:$0x1] %vm29_vm2, %v4411_v0  ;;  %v256_v0 = vmul.f32 %v4134_v57, %v4608_v2 }
  0x2b   :  { %575 = vst.msk [vmem:[#allocation2 + $0x31] sm:$0xff] %vm20_vm0, %v510_v35  ;;  %576 = vst.msk [vmem:[#allocation2 + $0x39] sm:$0xff] %vm20_vm0, %v511_v39  ;;  %v457_v35 = vmul.f32 0.01, %v329_v26  ;;  %v330_v39 = vadd.f32 %v4638_v8, %v259_v31 }
  0x2c   :  { %573 = vst.msk [vmem:[#allocation2 + $0x19] sm:$0xff] %vm20_vm0, %v508_v43  ;;  %574 = vst.msk [vmem:[#allocation2 + $0x21] sm:$0xff] %vm20_vm0, %v509_v44  ;;  %v327_v12 = vadd.f32 %v4638_v8, %v256_v0  ;;  %v4146_v43 = vunpack.c.h.bf16 %v4246_v27  ;;  %v4149_v44 = vunpack.c.l.bf16 %v4247_v32 }
  0x2d   :  { %577 = vst.msk [vmem:[#allocation2 + $0x49] sm:$0xff] %vm20_vm0, %v512_v47  ;;  %578 = vst.msk [vmem:[#allocation2 + $0x51] sm:$0xff] %vm20_vm0, %v513_v48  ;;  %v521_v41 = vsel %vm393_vm1, %v329_v26, %v457_v35  ;;  %vm394_vm3 = vcmp.gt.f32.partialorder %v330_v39, 0.0  ;;  %v458_v46 = vmul.f32 0.01, %v330_v39  ;;  %v261_v47 = vmul.f32 %v4145_v40, %v4608_v2 }
  0x2e   :  { %579 = vst.msk [vmem:[#allocation2 + $0x61] sm:$0xff] %vm20_vm0, %v514_v55  ;;  %580 = vst.msk [vmem:[#allocation2 + $0x69] sm:$0xff] %vm20_vm0, %v515_v59  ;;  %vm391_vm14 = vcmp.gt.f32.partialorder %v327_v12, 0.0  ;;  %v455_v25 = vmul.f32 0.01, %v327_v12  ;;  %v4150_v48 = vunpack.c.h.bf16 %v4247_v32  ;;  %v262_v50 = vmul.f32 %v4146_v43, %v4608_v2 }
  0x2f   :  { %581 = vst.msk [vmem:[#allocation2 + $0x79] sm:$0xff] %vm20_vm0, %v516_v21  ;;  %582 = vst.msk [vmem:[#allocation2 + $0x81] sm:$0xff] %vm20_vm0, %v517_v24  ;;  %v263_v51 = vmul.f32 %v4149_v44, %v4608_v2  ;;  %v522_v53 = vsel %vm394_vm3, %v330_v39, %v458_v46  ;;  %v332_v54 = vadd.f32 %v4638_v8, %v261_v47  ;;  %v4158_v24 = vunpack.c.h.bf16 %v4249_v6 }
  0x30   :  { %v519_v34 = vsel %vm391_vm14, %v327_v12, %v455_v25  ;;  %583 = vst.msk [vmem:[#allocation2 + $0x91] sm:$0xff] %vm20_vm0, %v518_v29  ;;  %585 = vst.msk [vmem:[#allocation2 + $0xa9] sm:$0xff] %vm20_vm0, %v520_v38  ;;  %v264_v55 = vmul.f32 %v4150_v48, %v4608_v2  ;;  %v333_v59 = vadd.f32 %v4638_v8, %v262_v50  ;;  %v4251_v25 = vld [vmem:[%s6173_s0 + $0x68] sm:$0xff]  }
  0x31   :  { %584 = vst.msk [vmem:[#allocation2 + $0x99] sm:$0xff] %vm20_vm0, %v519_v34  ;;  %586 = vst.msk [vmem:[#allocation2 + $0xb1] sm:$0xff] %vm20_vm0, %v521_v41  ;;  %v334_v60 = vadd.f32 %v4638_v8, %v263_v51  ;;  %vm396_vm5 = vcmp.gt.f32.partialorder %v332_v54, 0.0  ;;  %v460_v0 = vmul.f32 0.01, %v332_v54  ;;  %v268_v31 = vmul.f32 %v4158_v24, %v4608_v2 }
  0x32   :  { %v706_v4 = vld [vmem:[#allocation2 + $0x31] sm:$0xff]  ;;  %v707_v10 = vld [vmem:[#allocation2 + $0x39] sm:$0xff]  ;;  %587 = vst.msk [vmem:[#allocation2 + $0xc1] sm:$0xff] %vm20_vm0, %v522_v53  ;;  %588 = vst.msk [vmem:[#allocation2 + $0xc9] sm:$0xff] %vm20_vm0, %v523_v58  ;;  %v335_v1 = vadd.f32 %v4638_v8, %v264_v55  ;;  %vm397_vm6 = vcmp.gt.f32.partialorder %v333_v59, 0.0  ;;  %v4165_v38 = vunpack.c.l.bf16 %v4251_v25  ;;  %v338_v40 = vadd.f32 %v4638_v8, %v267_v30 }
  0x33   :  { %v4691_v14 = vpack.c.bf16 %v707_v10, %v706_v4  ;;  %v704_v15 = vld [vmem:[#allocation2 + $0x19] sm:$0xff]  ;;  %v705_v16 = vld [vmem:[#allocation2 + $0x21] sm:$0xff]  ;;  %v461_v4 = vmul.f32 0.01, %v333_v59  ;;  %vm398_vm7 = vcmp.gt.f32.partialorder %v334_v60, 0.0  ;;  %v524_v10 = vsel %vm396_vm5, %v332_v54, %v460_v0 }
  0x34   :  { %v4693_v18 = vpack.c.bf16 %v705_v16, %v704_v15  ;;  %v708_v19 = vld [vmem:[#allocation2 + $0x49] sm:$0xff]  ;;  %v709_v20 = vld [vmem:[#allocation2 + $0x51] sm:$0xff]  ;;  %vm399_vm8 = vcmp.gt.f32.partialorder %v335_v1, 0.0  ;;  %v462_v11 = vmul.f32 0.01, %v334_v60  ;;  %589 = vst.msk [vmem:[#allocation2 + $0xd9] sm:$0xff] %vm20_vm0, %v524_v10  ;;  %v266_v16 = vmul.f32 %v4154_v61, %v4608_v2 }
  0x35   :  { %770 = vrot.lane.b32.xlu1 %v4691_v14, %s4412_s7  ;;  %v4697_v23 = vpack.c.bf16 %v709_v20, %v708_v19  ;;  %v710_v28 = vld [vmem:[#allocation2 + $0x61] sm:$0xff]  ;;  %v711_v33 = vld [vmem:[#allocation2 + $0x69] sm:$0xff]  ;;  %v525_v13 = vsel %vm397_vm6, %v333_v59, %v461_v4  ;;  %v463_v15 = vmul.f32 0.01, %v335_v1  ;;  %v339_v41 = vadd.f32 %v4638_v8, %v268_v31  ;;  %v963_v22 = vld [vmem:[#allocation2 + $0x38] sm:$0xff] }
  0x36   :  { %768 = vrot.lane.b32.xlu0 %v4693_v18, %s4412_s7  ;;  %v4715_v37 = vpack.c.bf16 %v711_v33, %v710_v28  ;;  %v712_v52 = vld [vmem:[#allocation2 + $0x79] sm:$0xff]  ;;  %v713_v57 = vld [vmem:[#allocation2 + $0x81] sm:$0xff]  ;;  %590 = vst.msk [vmem:[#allocation2 + $0xe1] sm:$0xff] %vm20_vm0, %v525_v13  ;;  %v526_v21 = vsel %vm398_vm7, %v334_v60, %v462_v11  ;;  %v337_v27 = vadd.f32 %v4638_v8, %v266_v16  ;;  %v464_v28 = vmul.f32 0.01, %v336_v17  ;;  %v4252_v59 = vld [vmem:[%s6173_s0 + $0x70] sm:$0xff]  }
  0x37   :  { %v4737_v62 = vpack.c.bf16 %v713_v57, %v712_v52  ;;  %v714_v63 = vld [vmem:[#allocation2 + $0x91] sm:$0xff]  ;;  %v716_v9 = vld [vmem:[#allocation2 + $0xa9] sm:$0xff]  ;;  %v4250_v19 = vld [vmem:[%s6173_s0 + $0x60] sm:$0xff]   ;;  %v527_v26 = vsel %vm399_vm8, %v335_v1, %v463_v15  ;;  %591 = vst.msk [vmem:[#allocation2 + $0xf1] sm:$0xff] %vm20_vm0, %v526_v21  ;;  %v4166_v45 = vunpack.c.h.bf16 %v4251_v25  ;;  %v271_v46 = vmul.f32 %v4165_v38, %v4608_v2 }
  0x38   :  { %v715_v3 = vld [vmem:[#allocation2 + $0x99] sm:$0xff]  ;;  %v717_v12 = vld [vmem:[#allocation2 + $0xb1] sm:$0xff]  ;;  %592 = vst.msk [vmem:[#allocation2 + $0xf9] sm:$0xff] %vm20_vm0, %v527_v26  ;;  %v4161_v32 = vunpack.c.l.bf16 %v4250_v19  ;;  %v4162_v33 = vunpack.c.h.bf16 %v4250_v19  ;;  %vm401_vm10 = vcmp.gt.f32.partialorder %v337_v27, 0.0  ;;  %v465_v35 = vmul.f32 0.01, %v337_v27 }
  0x39   :  { %772 = vrot.lane.b32.xlu1 %v4697_v23, %s4412_s7  ;;  %v4747_v7 = vpack.c.bf16 %v715_v3, %v714_v63  ;;  %v4757_v20 = vpack.c.bf16 %v717_v12, %v716_v9  ;;  %v718_v29 = vld [vmem:[#allocation2 + $0xc1] sm:$0xff]  ;;  %v719_v34 = vld [vmem:[#allocation2 + $0xc9] sm:$0xff]  ;;  %v528_v36 = vsel %vm400_vm9, %v336_v17, %v464_v28  ;;  %vm402_vm11 = vcmp.gt.f32.partialorder %v338_v40, 0.0  ;;  %v960_v13 = vld [vmem:[#allocation2 + $0x18] sm:$0xff] }
  0x3a   :  { %774 = vrot.lane.b32.xlu0 %v4715_v37, %s4412_s7  ;;  %v4772_v39 = vpack.c.bf16 %v719_v34, %v718_v29  ;;  %593 = vst.msk [vmem:[#allocation2 + $0x109] sm:$0xff] %vm20_vm0, %v528_v36  ;;  %v269_v42 = vmul.f32 %v4161_v32, %v4608_v2  ;;  %v529_v43 = vsel %vm401_vm10, %v337_v27, %v465_v35  ;;  %vm403_vm12 = vcmp.gt.f32.partialorder %v339_v41, 0.0  ;;  %v962_v15 = vld [vmem:[#allocation2 + $0x30] sm:$0xff]  ;;  %v961_v21 = vld [vmem:[#allocation2 + $0x20] sm:$0xff]  ;;  %v964_v26 = vld [vmem:[#allocation2 + $0x48] sm:$0xff] }
  0x3b   :  { %v270_v44 = vmul.f32 %v4162_v33, %v4608_v2  ;;  %v720_v47 = vld [vmem:[#allocation2 + $0xd9] sm:$0xff]  ;;  %594 = vst.msk [vmem:[#allocation2 + $0x111] sm:$0xff] %vm20_vm0, %v529_v43  ;;  %v466_v48 = vmul.f32 0.01, %v338_v40  ;;  %v467_v51 = vmul.f32 0.01, %v339_v41  ;;  %v272_v53 = vmul.f32 %v4166_v45, %v4608_v2 }
  0x3c   :  { %v340_v49 = vadd.f32 %v4638_v8, %v269_v42  ;;  %v342_v54 = vadd.f32 %v4638_v8, %v271_v46  ;;  %v4169_v10 = vunpack.c.l.bf16 %v4252_v59  ;;  %v4170_v12 = vunpack.c.h.bf16 %v4252_v59  ;;  %v965_v27 = vld [vmem:[#allocation2 + $0x50] sm:$0xff]  ;;  %v966_v28 = vld [vmem:[#allocation2 + $0x60] sm:$0xff]  ;;  %v967_v29 = vld [vmem:[#allocation2 + $0x68] sm:$0xff] }
  0x3d   :  { %776 = vrot.lane.b32.xlu1 %v4737_v62, %s4412_s7  ;;  %v721_v50 = vld [vmem:[#allocation2 + $0xe1] sm:$0xff]  ;;  %v341_v52 = vadd.f32 %v4638_v8, %v270_v44  ;;  %v530_v57 = vsel %vm402_vm11, %v338_v40, %v466_v48  ;;  %v531_v61 = vsel %vm403_vm12, %v339_v41, %v467_v51  ;;  %v343_v0 = vadd.f32 %v4638_v8, %v272_v53  ;;  %v968_v30 = vld [vmem:[#allocation2 + $0x78] sm:$0xff]  ;;  %v970_v33 = vld [vmem:[#allocation2 + $0x90] sm:$0xff] }
  0x3e   :  { %778 = vrot.lane.b32.xlu0 %v4747_v7, %s4412_s7  ;;  %v4787_v55 = vpack.c.bf16 %v721_v50, %v720_v47  ;;  %v722_v56 = vld [vmem:[#allocation2 + $0xf1] sm:$0xff]  ;;  %vm404_vm13 = vcmp.gt.f32.partialorder %v340_v49, 0.0  ;;  %v468_v58 = vmul.f32 0.01, %v340_v49  ;;  %595 = vst.msk [vmem:[#allocation2 + $0x121] sm:$0xff] %vm20_vm0, %v530_v57  ;;  %596 = vst.msk [vmem:[#allocation2 + $0x129] sm:$0xff] %vm20_vm0, %v531_v61  ;;  %v273_v19 = vmul.f32 %v4169_v10, %v4608_v2 }
  0x3f   :  { %v723_v60 = vld [vmem:[#allocation2 + $0xf9] sm:$0xff]  ;;  %vm405_vm14 = vcmp.gt.f32.partialorder %v341_v52, 0.0  ;;  %v469_v63 = vmul.f32 0.01, %v341_v52  ;;  %vm406_vm15 = vcmp.gt.f32.partialorder %v342_v54, 0.0  ;;  %vm407_vm1 = vcmp.gt.f32.partialorder %v343_v0, 0.0 }
  0x40   :  { %v4796_v1 = vpack.c.bf16 %v723_v60, %v722_v56  ;;  %v532_v3 = vsel %vm404_vm13, %v340_v49, %v468_v58  ;;  %v470_v4 = vmul.f32 0.01, %v342_v54  ;;  %v471_v9 = vmul.f32 0.01, %v343_v0  ;;  %v969_v32 = vld [vmem:[#allocation2 + $0x80] sm:$0xff]  ;;  %v971_v34 = vld [vmem:[#allocation2 + $0x98] sm:$0xff] }
  0x41   :  { %780 = vrot.lane.b32.xlu1 %v4757_v20, %s4412_s7  ;;  %v724_v5 = vld [vmem:[#allocation2 + $0x109] sm:$0xff]  ;;  %v533_v6 = vsel %vm405_vm14, %v341_v52, %v469_v63  ;;  %597 = vst.msk [vmem:[#allocation2 + $0x139] sm:$0xff] %vm20_vm0, %v532_v3  ;;  %v274_v25 = vmul.f32 %v4170_v12, %v4608_v2  ;;  %v344_v31 = vadd.f32 %v4638_v8, %v273_v19  ;;  %v974_v41 = vld [vmem:[#allocation2 + $0xc0] sm:$0xff]  ;;  %v976_v43 = vld [vmem:[#allocation2 + $0xd8] sm:$0xff]  ;;  %vm814_vm5 = vcmask 130112  }
  0x42   :  { %782 = vrot.lane.b32.xlu0 %v4772_v39, %s4412_s7  ;;  %598 = vst.msk [vmem:[#allocation2 + $0x141] sm:$0xff] %vm20_vm0, %v533_v6  ;;  %v534_v11 = vsel %vm406_vm15, %v342_v54, %v470_v4  ;;  %v725_v16 = vld [vmem:[#allocation2 + $0x111] sm:$0xff]  ;;  %v535_v17 = vsel %vm407_vm1, %v343_v0, %v471_v9  ;;  %v972_v38 = vld [vmem:[#allocation2 + $0xa8] sm:$0xff]  ;;  %v977_v44 = vld [vmem:[#allocation2 + $0xe0] sm:$0xff]  ;;  %v4810_v48 = vpack.c.bf16 %v961_v21, %v960_v13  ;;  %vm2990_vm6 = vcmask 1043456  }
  0x43   :  { %599 = vst.msk [vmem:[#allocation2 + $0x151] sm:$0xff] %vm20_vm0, %v534_v11  ;;  %v745_v24 = vpack.c.bf16 %v725_v16, %v724_v5  ;;  %600 = vst.msk [vmem:[#allocation2 + $0x159] sm:$0xff] %vm20_vm0, %v535_v17  ;;  %v345_v36 = vadd.f32 %v4638_v8, %v274_v25  ;;  %v973_v40 = vld [vmem:[#allocation2 + $0xb0] sm:$0xff]  ;;  %v975_v42 = vld [vmem:[#allocation2 + $0xc8] sm:$0xff]  ;;  %vm408_vm3 = vcmp.gt.f32.partialorder %v344_v31, 0.0  ;;  %v4812_v49 = vpack.c.bf16 %v963_v22, %v962_v15 }
  0x44   :  { %v978_v45 = vld [vmem:[#allocation2 + $0xf0] sm:$0xff]  ;;  %v472_v47 = vmul.f32 0.01, %v344_v31  ;;  %v979_v50 = vld [vmem:[#allocation2 + $0xf8] sm:$0xff]  ;;  %v980_v51 = vld [vmem:[#allocation2 + $0x108] sm:$0xff]  ;;  %v4814_v63 = vpack.c.bf16 %v965_v27, %v964_v26  ;;  %v4816_v0 = vpack.c.bf16 %v967_v29, %v966_v28  ;;  %v4818_v3 = vpack.c.bf16 %v969_v32, %v968_v30  ;;  %687 = vst.msk [vmem:[#allocation3 + $0x8] sm:$0xff] %vm20_vm0, %v4810_v48 }
  0x45   :  { %784 = vrot.lane.b32.xlu1 %v4787_v55, %s4412_s7  ;;  %v726_v35 = vld [vmem:[#allocation2 + $0x121] sm:$0xff]  ;;  %v727_v46 = vld [vmem:[#allocation2 + $0x129] sm:$0xff]  ;;  %vm409_vm4 = vcmp.gt.f32.partialorder %v345_v36, 0.0  ;;  %v473_v54 = vmul.f32 0.01, %v345_v36  ;;  %688 = vst.msk [vmem:[#allocation3 + $0x10] sm:$0xff] %vm20_vm0, %v4812_v49  ;;  %v4827_v11 = vpack.c.bf16 %v971_v34, %v970_v33  ;;  %v4830_v19 = vpack.c.bf16 %v973_v40, %v972_v38 }
  0x46   :  { %786 = vrot.lane.b32.xlu0 %v4796_v1, %s4412_s7  ;;  %v746_v52 = vpack.c.bf16 %v727_v46, %v726_v35  ;;  %v981_v56 = vld [vmem:[#allocation2 + $0x110] sm:$0xff]  ;;  %v639_v57 = vld [vmem:[#allocation2 + $0x8] sm:$0xff]  ;;  %v638_v58 = vld [vmem:[#allocation2] sm:$0xff]  ;;  %v536_v61 = vsel %vm408_vm3, %v344_v31, %v472_v47  ;;  %v4832_v21 = vpack.c.bf16 %v975_v42, %v974_v41  ;;  %v4834_v22 = vpack.c.bf16 %v977_v44, %v976_v43 }
  0x47   :  { %v662_v59 = vld [vmem:[#allocation2 + $0x120] sm:$0xff]  ;;  %v663_v4 = vld [vmem:[#allocation2 + $0x128] sm:$0xff]  ;;  %v537_v10 = vsel %vm409_vm4, %v345_v36, %v473_v54  ;;  %601 = vst.msk [vmem:[#allocation2 + $0x169] sm:$0xff] %vm20_vm0, %v536_v61  ;;  %689 = vst.msk [vmem:[#allocation3 + $0x18] sm:$0xff] %vm20_vm0, %v4814_v63  ;;  %v4845_v26 = vpack.c.bf16 %v981_v56, %v980_v51  ;;  %v670_v28 = vpack.c.bf16 %v639_v57, %v638_v58  ;;  %vm943_vm15 = vcmask 195712  }
  0x48   :  { %v728_v53 = vld [vmem:[#allocation2 + $0x139] sm:$0xff]  ;;  %602 = vst.msk [vmem:[#allocation2 + $0x171] sm:$0xff] %vm20_vm0, %v537_v10  ;;  %v831_v16 = vld [vmem:[#allocation2 + $0x2] sm:$0xff]  ;;  %v832_v17 = vld [vmem:[#allocation2 + $0xa] sm:$0xff]  ;;  %v4857_v29 = vpack.c.bf16 %v663_v4, %v662_v59 }
  0x49   :  { %788 = vrot.lane.b32.xlu1 %v745_v24, %s4412_s7  ;;  %v729_v60 = vld [vmem:[#allocation2 + $0x141] sm:$0xff]  ;;  %v664_v5 = vld [vmem:[#allocation2 + $0x138] sm:$0xff]  ;;  %v4836_v24 = vpack.c.bf16 %v979_v50, %v978_v45  ;;  %690 = vst.msk [vmem:[#allocation3 + $0x20] sm:$0xff] %vm20_vm0, %v4816_v0  ;;  %691 = vst.msk [vmem:[#allocation3 + $0x28] sm:$0xff] %vm20_vm0, %v4818_v3  ;;  %v863_v32 = vpack.c.bf16 %v832_v17, %v831_v16 }
  0x4a   :  { %790 = vrot.lane.b32.xlu0 %v746_v52, %s4412_s7  ;;  %v747_v6 = vpack.c.bf16 %v729_v60, %v728_v53  ;;  %v730_v9 = vld [vmem:[#allocation2 + $0x151] sm:$0xff]  ;;  %v665_v12 = vld [vmem:[#allocation2 + $0x140] sm:$0xff]  ;;  %692 = vst.msk [vmem:[#allocation3 + $0x30] sm:$0xff] %vm20_vm0, %v4827_v11  ;;  %693 = vst.msk [vmem:[#allocation3 + $0x38] sm:$0xff] %vm20_vm0, %v4830_v19 }
  0x4b   :  { %v666_v13 = vld [vmem:[#allocation2 + $0x150] sm:$0xff]  ;;  %v731_v15 = vld [vmem:[#allocation2 + $0x159] sm:$0xff]  ;;  %694 = vst.msk [vmem:[#allocation3 + $0x40] sm:$0xff] %vm20_vm0, %v4832_v21  ;;  %695 = vst.msk [vmem:[#allocation3 + $0x48] sm:$0xff] %vm20_vm0, %v4834_v22  ;;  %v4859_v30 = vpack.c.bf16 %v665_v12, %v664_v5 }
  0x4c   :  { %v748_v25 = vpack.c.bf16 %v731_v15, %v730_v9  ;;  %v667_v27 = vld [vmem:[#allocation2 + $0x158] sm:$0xff]  ;;  %696 = vst.msk [vmem:[#allocation3 + $0x50] sm:$0xff] %vm20_vm0, %v4836_v24  ;;  %697 = vst.msk [vmem:[#allocation3 + $0x58] sm:$0xff] %vm20_vm0, %v4845_v26  ;;  %v834_v41 = vld [vmem:[#allocation2 + $0x22] sm:$0xff] }
  0x4d   :  { %792 = vrot.lane.b32.xlu1 %v747_v6, %s4412_s7  ;;  %v4861_v31 = vpack.c.bf16 %v667_v27, %v666_v13  ;;  %v835_v33 = vld [vmem:[#allocation2 + $0x32] sm:$0xff]  ;;  %v836_v34 = vld [vmem:[#allocation2 + $0x3a] sm:$0xff]  ;;  %686 = vst.msk [vmem:[#allocation3] sm:$0xff] %vm20_vm0, %v670_v28  ;;  %698 = vst.msk [vmem:[#allocation3 + $0x60] sm:$0xff] %vm20_vm0, %v4857_v29 }
  0x4e   :  { %794 = vrot.lane.b32.xlu0 %v748_v25, %s4412_s7  ;;  %699 = vst.msk [vmem:[#allocation3 + $0x68] sm:$0xff] %vm20_vm0, %v4859_v30  ;;  %v732_v35 = vld [vmem:[#allocation2 + $0x169] sm:$0xff]  ;;  %v833_v40 = vld [vmem:[#allocation2 + $0x1a] sm:$0xff]  ;;  %v4874_v42 = vpack.c.bf16 %v836_v34, %v835_v33  ;;  %v838_v52 = vld [vmem:[#allocation2 + $0x52] sm:$0xff] }
  0x4f   :  { %700 = vst.msk [vmem:[#allocation3 + $0x70] sm:$0xff] %vm20_vm0, %v4861_v31  ;;  %v668_v36 = vld [vmem:[#allocation2 + $0x168] sm:$0xff]  ;;  %v733_v38 = vld [vmem:[#allocation2 + $0x171] sm:$0xff]  ;;  %v4879_v50 = vpack.c.bf16 %v834_v41, %v833_v40  ;;  %v844_v56 = vld [vmem:[#allocation2 + $0x9a] sm:$0xff] }
  0x50   :  { %v749_v43 = vpack.c.bf16 %v733_v38, %v732_v35  ;;  %v839_v44 = vld [vmem:[#allocation2 + $0x62] sm:$0xff]  ;;  %v840_v45 = vld [vmem:[#allocation2 + $0x6a] sm:$0xff]  ;;  %v843_v54 = vld [vmem:[#allocation2 + $0x92] sm:$0xff] }
  0x51   :  { %v669_v46 = vld [vmem:[#allocation2 + $0x170] sm:$0xff]  ;;  %v4883_v53 = vpack.c.bf16 %v840_v45, %v839_v44  ;;  %v841_v58 = vld [vmem:[#allocation2 + $0x7a] sm:$0xff]  ;;  %v842_v59 = vld [vmem:[#allocation2 + $0x82] sm:$0xff]  ;;  %v4893_v60 = vpack.c.bf16 %v844_v56, %v843_v54 }
  0x52   :  { %895 = vrot.lane.b32.xlu0 %v863_v32, %s4413_s28  ;;  %v4876_v47 = vpack.c.bf16 %v669_v46, %v668_v36  ;;  %796 = vrot.lane.b32.xlu1 %v749_v43, %s4412_s7  ;;  %v837_v51 = vld [vmem:[#allocation2 + $0x4a] sm:$0xff]  ;;  %v847_v61 = vld [vmem:[#allocation2 + $0xc2] sm:$0xff]  ;;  %v4897_v5 = vpack.c.bf16 %v842_v59, %v841_v58  ;;  %v846_v9 = vld [vmem:[#allocation2 + $0xb2] sm:$0xff] }
  0x53   :  { %v4889_v57 = vpack.c.bf16 %v838_v52, %v837_v51  ;;  %v848_v4 = vld [vmem:[#allocation2 + $0xca] sm:$0xff]  ;;  %v851_v12 = vld [vmem:[#allocation2 + $0xf2] sm:$0xff]  ;;  %v852_v13 = vld [vmem:[#allocation2 + $0xfa] sm:$0xff] }
  0x54   :  { %701 = vst.msk [vmem:[#allocation3 + $0x78] sm:$0xff] %vm20_vm0, %v4876_v47  ;;  %v845_v6 = vld [vmem:[#allocation2 + $0xaa] sm:$0xff]  ;;  %v4901_v10 = vpack.c.bf16 %v848_v4, %v847_v61  ;;  %v849_v16 = vld [vmem:[#allocation2 + $0xda] sm:$0xff]  ;;  %v850_v17 = vld [vmem:[#allocation2 + $0xe2] sm:$0xff]  ;;  %v4909_v25 = vpack.c.bf16 %v852_v13, %v851_v12 }
  0x55   :  { %v4905_v15 = vpack.c.bf16 %v846_v9, %v845_v6  ;;  %v855_v27 = vld [vmem:[#allocation2 + $0x122] sm:$0xff]  ;;  %v856_v28 = vld [vmem:[#allocation2 + $0x12a] sm:$0xff]  ;;  %v4913_v32 = vpack.c.bf16 %v850_v17, %v849_v16  ;;  %v854_v34 = vld [vmem:[#allocation2 + $0x112] sm:$0xff] }
  0x56   :  { %899 = vrot.lane.b32.xlu0 %v4874_v42, %s4413_s28  ;;  %897 = vrot.lane.b32.xlu1 %v4879_v50, %s4413_s28  ;;  %v853_v33 = vld [vmem:[#allocation2 + $0x10a] sm:$0xff]  ;;  %v4917_v35 = vpack.c.bf16 %v856_v28, %v855_v27  ;;  %v859_v36 = vld [vmem:[#allocation2 + $0x152] sm:$0xff]  ;;  %v860_v38 = vld [vmem:[#allocation2 + $0x15a] sm:$0xff] }
  0x57   :  { %v4921_v40 = vpack.c.bf16 %v854_v34, %v853_v33  ;;  %v857_v41 = vld [vmem:[#allocation2 + $0x13a] sm:$0xff]  ;;  %v858_v43 = vld [vmem:[#allocation2 + $0x142] sm:$0xff]  ;;  %v877_v44 = vpack.c.bf16 %v860_v38, %v859_v36  ;;  %v861_v46 = vld [vmem:[#allocation2 + $0x16a] sm:$0xff] }
  0x58   :  { %v4927_v45 = vpack.c.bf16 %v858_v43, %v857_v41  ;;  %v862_v51 = vld [vmem:[#allocation2 + $0x172] sm:$0xff]  ;;  %v4403_v54 = vld [vmem:[%s6176_s3 + $0x8] sm:$0xff]   ;;  %v5024_v38 = vld [vmem:[%s6174_s1] ss:$0 sm:$0xff] }
  0x59   :  { %v878_v52 = vpack.c.bf16 %v862_v51, %v861_v46  ;;  %v4404_v56 = vld [vmem:[%s6176_s3 + $0x10] sm:$0xff]   ;;  %v4253_v58 = vld [vmem:[%s6173_s0 + $0x78] sm:$0xff]   ;;  %v5036_v43 = vld [vmem:[%s6175_s2] ss:$0 sm:$0xff] }
  0x5a   :  { %903 = vrot.lane.b32.xlu0 %v4883_v53, %s4413_s28  ;;  %901 = vrot.lane.b32.xlu1 %v4889_v57, %s4413_s28  ;;  %v4173_v59 = vunpack.c.l.bf16 %v4253_v58  ;;  %v4174_v61 = vunpack.c.h.bf16 %v4253_v58  ;;  %v4405_v4 = vld [vmem:[%s6176_s3 + $0x18] sm:$0xff]  }
  0x5c   :  { %v276_v9 = vmul.f32 %v4174_v61, %v4608_v2 }
  0x5e   :  { %907 = vrot.lane.b32.xlu0 %v4893_v60, %s4413_s28  ;;  %905 = vrot.lane.b32.xlu1 %v4897_v5, %s4413_s28  ;;  %v347_v13 = vadd.f32 %v4638_v8, %v276_v9 }
  0x60   :  { %vm411_vm8 = vcmp.gt.f32.partialorder %v347_v13, 0.0 }
  0x62   :  { %911 = vrot.lane.b32.xlu0 %v4901_v10, %s4413_s28  ;;  %909 = vrot.lane.b32.xlu1 %v4905_v15, %s4413_s28 }
  0x66   :  { %915 = vrot.lane.b32.xlu0 %v4909_v25, %s4413_s28  ;;  %913 = vrot.lane.b32.xlu1 %v4913_v32, %s4413_s28 }
  0x6a   :  { %919 = vrot.lane.b32.xlu0 %v4917_v35, %s4413_s28  ;;  %917 = vrot.lane.b32.xlu1 %v4921_v40, %s4413_s28 }
  0x6e   :  { %923 = vrot.lane.b32.xlu0 %v877_v44, %s4413_s28  ;;  %921 = vrot.lane.b32.xlu1 %v4927_v45, %s4413_s28 }
  0x72   :  { %1024 = vrot.lane.b32.xlu0 %v4810_v48, %s4414_s29  ;;  %925 = vrot.lane.b32.xlu1 %v878_v52, %s4413_s28  ;;  %v4402_v48 = vld [vmem:[%s6176_s3] sm:$0xff]  }
  0x73   :  { %4307 = vmatprep.subr.bf16.mxu0 %v4402_v48  ;;  %4381 = vmatprep.subr.bf16.mxu1 %v4402_v48 }
  0x74   :  { %4308 = vmatpush3.bf16.msra.mxu0 %v4402_v48  ;;  %4386 = vmatpush3.bf16.msra.mxu1 %v4402_v48 }
  0x75   :  { %4309 = vmatprep.subr.bf16.mxu0 %v4403_v54  ;;  %4382 = vmatprep.subr.bf16.mxu1 %v4403_v54 }
  0x76   :  { %1028 = vrot.lane.b32.xlu0 %v4814_v63, %s4414_s29  ;;  %1026 = vrot.lane.b32.xlu1 %v4812_v49, %s4414_s29 }
  0x78   :  { %4310 = vmatpush3.bf16.msra.mxu0 %v4403_v54  ;;  %4387 = vmatpush3.bf16.msra.mxu1 %v4403_v54 }
  0x79   :  { %4311 = vmatprep.subr.bf16.mxu0 %v4404_v56  ;;  %4383 = vmatprep.subr.bf16.mxu1 %v4404_v56 }
  0x7a   :  { %1032 = vrot.lane.b32.xlu0 %v4818_v3, %s4414_s29  ;;  %1030 = vrot.lane.b32.xlu1 %v4816_v0, %s4414_s29 }
  0x7c   :  { %4312 = vmatpush3.bf16.msra.mxu0 %v4404_v56  ;;  %4388 = vmatpush3.bf16.msra.mxu1 %v4404_v56 }
  0x7d   :  { %4313 = vmatprep.subr.bf16.mxu0 %v4405_v4  ;;  %4384 = vmatprep.subr.bf16.mxu1 %v4405_v4 }
  0x7e   :  { %1036 = vrot.lane.b32.xlu0 %v4830_v19, %s4414_s29  ;;  %1034 = vrot.lane.b32.xlu1 %v4827_v11, %s4414_s29  ;;  %v767_v6 = vpop.permute.xlu0 %766 }
  0x7f   :  { %815 = vst.msk [vmem:[#allocation3] sm:$0xff] %vm814_vm5, %v767_v6 }
  0x80   :  { %4314 = vmatpush3.bf16.msra.mxu0 %v4405_v4  ;;  %4389 = vmatpush3.bf16.msra.mxu1 %v4405_v4 }
  0x82   :  { %1040 = vrot.lane.b32.xlu0 %v4834_v22, %s4414_s29  ;;  %1038 = vrot.lane.b32.xlu1 %v4832_v21, %s4414_s29 }
  0x86   :  { %1044 = vrot.lane.b32.xlu0 %v4845_v26, %s4414_s29  ;;  %1042 = vrot.lane.b32.xlu1 %v4836_v24, %s4414_s29 }
  0x8a   :  { %1155 = vrot.lane.b32.xlu0 %v4691_v14, %s4415_s10  ;;  %1153 = vrot.lane.b32.xlu1 %v4693_v18, %s4415_s10  ;;  %v275_v18 = vmul.f32 %v4173_v59, %v4608_v2  ;;  %v4406_v2 = vld [vmem:[%s6176_s3 + $0x20] ss:$0 sps:$4 sm:$0xff]   ;;  %s4419_s3 = smov 64  }
  0x8b   :  { %4391 = vmatprep.subr.msk.bf16.mxu0 %vm2990_vm6, %v4406_v2  ;;  %4392 = vmatprep.subr.msk.bf16.mxu1 %vm2990_vm6, %v4406_v2 }
  0x8c   :  { %v346_v12 = vadd.f32 %v4638_v8, %v275_v18 }
  0x8e   :  { %1284 = vrot.lane.b32.xlu0 %v4874_v42, %s4416_s15  ;;  %1282 = vrot.lane.b32.xlu1 %v4879_v50, %s4416_s15  ;;  %v474_v16 = vmul.f32 0.01, %v346_v12  ;;  %v475_v50 = vmul.f32 0.01, %v347_v13  ;;  %vm410_vm7 = vcmp.gt.f32.partialorder %v346_v12, 0.0 }
  0x90   :  { %v538_v8 = vsel %vm410_vm7, %v346_v12, %v474_v16  ;;  %v539_v17 = vsel %vm411_vm8, %v347_v13, %v475_v50  ;;  %vm1072_vm7 = vcmask 261312  }
  0x91   :  { %603 = vst.msk [vmem:[#allocation2 + $0x181] sm:$0xff] %vm20_vm0, %v538_v8  ;;  %604 = vst.msk [vmem:[#allocation2 + $0x189] sm:$0xff] %vm20_vm0, %v539_v17 }
  0x92   :  { %1414 = vrot.lane.b32.xlu0 %v4814_v63, %s4417_s18  ;;  %1412 = vrot.lane.b32.xlu1 %v4812_v49, %s4417_s18  ;;  %v2992_v63 = vsel %vm2990_vm6, %v4406_v2, 0 }
  0x93   :  { %4316 = vmatpush3.bf16.msra.mxu0 %v2992_v63  ;;  %4390 = vmatpush3.bf16.msra.mxu1 %v2992_v63 }
  0x96   :  { %1543 = vrot.lane.b32.xlu0 %v4697_v23, %s4418_s21  ;;  %1541 = vrot.lane.b32.xlu1 %v4691_v14, %s4418_s21 }
  0x9a   :  { %1672 = vrot.lane.b32.xlu0 %v4889_v57, %s4419_s3  ;;  %1670 = vrot.lane.b32.xlu1 %v4874_v42, %s4419_s3  ;;  %v4254_v42 = vld [vmem:[%s6173_s0 + $0x80] sm:$0xff]  }
  0x9b   :  { %v4177_v34 = vunpack.c.l.bf16 %v4254_v42  ;;  %v4178_v36 = vunpack.c.h.bf16 %v4254_v42 }
  0x9d   :  { %v278_v41 = vmul.f32 %v5024_v38, %v4178_v36 }
  0x9e   :  { %1159 = vrot.lane.b32.xlu0 %v4715_v37, %s4415_s10  ;;  %1157 = vrot.lane.b32.xlu1 %v4697_v23, %s4415_s10 }
  0x9f   :  { %v349_v46 = vadd.f32 %v5036_v43, %v278_v41 }
  0xa1   :  { %v477_v52 = vmul.f32 0.01, %v349_v46  ;;  %vm413_vm10 = vcmp.gt.f32.partialorder %v349_v46, 0.0 }
  0xa2   :  { %1288 = vrot.lane.b32.xlu0 %v4883_v53, %s4416_s15  ;;  %1286 = vrot.lane.b32.xlu1 %v4889_v57, %s4416_s15  ;;  %v277_v57 = vmul.f32 %v5024_v38, %v4177_v34 }
  0xa3   :  { %v541_v56 = vsel %vm413_vm10, %v349_v46, %v477_v52  ;;  %vm1201_vm10 = vcmask 326912  }
  0xa4   :  { %v348_v44 = vadd.f32 %v5036_v43, %v277_v57  ;;  %607 = vst.msk [vmem:[#allocation2 + $0x1d1] sm:$0xff] %vm20_vm0, %v541_v56 }
  0xa6   :  { %1418 = vrot.lane.b32.xlu0 %v4818_v3, %s4417_s18  ;;  %1416 = vrot.lane.b32.xlu1 %v4816_v0, %s4417_s18  ;;  %v476_v51 = vmul.f32 0.01, %v348_v44  ;;  %vm412_vm9 = vcmp.gt.f32.partialorder %v348_v44, 0.0  ;;  %v4255_v0 = vld [vmem:[%s6173_s0 + $0x88] sm:$0xff]  }
  0xa7   :  { %v771_v49 = vpop.permute.xlu1 %770  ;;  %v4181_v58 = vunpack.c.l.bf16 %v4255_v0  ;;  %v4182_v59 = vunpack.c.h.bf16 %v4255_v0 }
  0xa8   :  { %817 = vst.msk [vmem:[#allocation3 + $0x10] sm:$0xff] %vm814_vm5, %v771_v49  ;;  %v769_v27 = vpop.permute.xlu0 %768  ;;  %v540_v54 = vsel %vm412_vm9, %v348_v44, %v476_v51  ;;  %v4257_v44 = vld [vmem:[%s6173_s0 + $0x98] sm:$0xff]  }
  0xa9   :  { %816 = vst.msk [vmem:[#allocation3 + $0x8] sm:$0xff] %vm814_vm5, %v769_v27  ;;  %v280_v61 = vmul.f32 %v5024_v38, %v4182_v59  ;;  %v4190_v46 = vunpack.c.h.bf16 %v4257_v44 }
  0xaa   :  { %1547 = vrot.lane.b32.xlu0 %v4737_v62, %s4418_s21  ;;  %1545 = vrot.lane.b32.xlu1 %v4715_v37, %s4418_s21  ;;  %606 = vst.msk [vmem:[#allocation2 + $0x1c9] sm:$0xff] %vm20_vm0, %v540_v54  ;;  %v279_v37 = vmul.f32 %v5024_v38, %v4181_v58 }
  0xab   :  { %v773_v28 = vpop.permute.xlu1 %772  ;;  %v351_v18 = vadd.f32 %v5036_v43, %v280_v61 }
  0xac   :  { %818 = vst.msk [vmem:[#allocation3 + $0x18] sm:$0xff] %vm814_vm5, %v773_v28  ;;  %v775_v14 = vpop.permute.xlu0 %774  ;;  %v350_v6 = vadd.f32 %v5036_v43, %v279_v37 }
  0xad   :  { %819 = vst.msk [vmem:[#allocation3 + $0x20] sm:$0xff] %vm814_vm5, %v775_v14  ;;  %v479_v13 = vmul.f32 0.01, %v351_v18  ;;  %vm415_vm12 = vcmp.gt.f32.partialorder %v351_v18, 0.0 }
  0xae   :  { %1676 = vrot.lane.b32.xlu0 %v4897_v5, %s4419_s3  ;;  %1674 = vrot.lane.b32.xlu1 %v4883_v53, %s4419_s3  ;;  %v478_v12 = vmul.f32 0.01, %v350_v6  ;;  %vm414_vm11 = vcmp.gt.f32.partialorder %v350_v6, 0.0 }
  0xaf   :  { %v777_v33 = vpop.permute.xlu1 %776  ;;  %v543_v2 = vsel %vm415_vm12, %v351_v18, %v479_v13  ;;  %v4258_v18 = vld [vmem:[%s6173_s0 + $0xa0] sm:$0xff]  }
  0xb0   :  { %820 = vst.msk [vmem:[#allocation3 + $0x28] sm:$0xff] %vm814_vm5, %v777_v33  ;;  %v779_v23 = vpop.permute.xlu0 %778  ;;  %v542_v53 = vsel %vm414_vm11, %v350_v6, %v478_v12  ;;  %v4194_v12 = vunpack.c.h.bf16 %v4258_v18  ;;  %vm1330_vm11 = vcmask 392512  }
  0xb1   :  { %821 = vst.msk [vmem:[#allocation3 + $0x30] sm:$0xff] %vm814_vm5, %v779_v23  ;;  %v2056_v50 = vld [vmem:[#allocation2 + $0x1c8] sm:$0xff]  ;;  %v2057_v17 = vld [vmem:[#allocation2 + $0x1d0] sm:$0xff] }
  0xb2   :  { %1163 = vrot.lane.b32.xlu0 %v4747_v7, %s4415_s10  ;;  %1161 = vrot.lane.b32.xlu1 %v4737_v62, %s4415_s10  ;;  %608 = vst.msk [vmem:[#allocation2 + $0x1e1] sm:$0xff] %vm20_vm0, %v542_v53  ;;  %609 = vst.msk [vmem:[#allocation2 + $0x1e9] sm:$0xff] %vm20_vm0, %v543_v2  ;;  %v4256_v62 = vld [vmem:[%s6173_s0 + $0x90] sm:$0xff]   ;;  %v5075_v27 = vpack.c.bf16 %v2057_v17, %v2056_v50 }
  0xb3   :  { %v781_v3 = vpop.permute.xlu1 %780  ;;  %v4185_v63 = vunpack.c.l.bf16 %v4256_v62  ;;  %v4186_v8 = vunpack.c.h.bf16 %v4256_v62  ;;  %v1495_v50 = vld [vmem:[#allocation2 + $0x109] sm:$0xff] }
  0xb4   :  { %822 = vst.msk [vmem:[#allocation3 + $0x38] sm:$0xff] %vm814_vm5, %v781_v3  ;;  %v783_v48 = vpop.permute.xlu0 %782 }
  0xb5   :  { %823 = vst.msk [vmem:[#allocation3 + $0x40] sm:$0xff] %vm814_vm5, %v783_v48  ;;  %v281_v28 = vmul.f32 %v5024_v38, %v4185_v63  ;;  %v284_v48 = vmul.f32 %v5024_v38, %v4190_v46  ;;  %v1496_v63 = vld [vmem:[#allocation2 + $0x111] sm:$0xff] }
  0xb6   :  { %1292 = vrot.lane.b32.xlu0 %v4893_v60, %s4416_s15  ;;  %1290 = vrot.lane.b32.xlu1 %v4897_v5, %s4416_s15  ;;  %v282_v5 = vmul.f32 %v5024_v38, %v4186_v8  ;;  %1785 = vst.msk [vmem:[#allocation3 + $0x88] sm:$0xff] %vm20_vm0, %v5075_v27 }
  0xb7   :  { %v785_v4 = vpop.permute.xlu1 %784  ;;  %v352_v14 = vadd.f32 %v5036_v43, %v281_v28  ;;  %v1493_v28 = vld [vmem:[#allocation2 + $0xf1] sm:$0xff] }
  0xb8   :  { %824 = vst.msk [vmem:[#allocation3 + $0x48] sm:$0xff] %vm814_vm5, %v785_v4  ;;  %v787_v9 = vpop.permute.xlu0 %786  ;;  %v353_v42 = vadd.f32 %v5036_v43, %v282_v5  ;;  %v1494_v5 = vld [vmem:[#allocation2 + $0xf9] sm:$0xff] }
  0xb9   :  { %825 = vst.msk [vmem:[#allocation3 + $0x50] sm:$0xff] %vm814_vm5, %v787_v9  ;;  %v480_v34 = vmul.f32 0.01, %v352_v14  ;;  %vm416_vm13 = vcmp.gt.f32.partialorder %v352_v14, 0.0  ;;  %v4193_v9 = vunpack.c.l.bf16 %v4258_v18 }
  0xba   :  { %1422 = vrot.lane.b32.xlu0 %v4830_v19, %s4417_s18  ;;  %1420 = vrot.lane.b32.xlu1 %v4827_v11, %s4417_s18  ;;  %v481_v36 = vmul.f32 0.01, %v353_v42  ;;  %vm417_vm14 = vcmp.gt.f32.partialorder %v353_v42, 0.0 }
  0xbb   :  { %v789_v16 = vpop.permute.xlu1 %788  ;;  %v544_v11 = vsel %vm416_vm13, %v352_v14, %v480_v34  ;;  %v285_v2 = vmul.f32 %v5024_v38, %v4193_v9 }
  0xbc   :  { %826 = vst.msk [vmem:[#allocation3 + $0x58] sm:$0xff] %vm814_vm5, %v789_v16  ;;  %v791_v49 = vpop.permute.xlu0 %790  ;;  %v545_v23 = vsel %vm417_vm14, %v353_v42, %v481_v36  ;;  %vm1460_vm14 = vcmask 458112  }
  0xbd   :  { %827 = vst.msk [vmem:[#allocation3 + $0x60] sm:$0xff] %vm814_vm5, %v791_v49  ;;  %v356_v16 = vadd.f32 %v5036_v43, %v285_v2 }
  0xbe   :  { %1551 = vrot.lane.b32.xlu0 %v4757_v20, %s4418_s21  ;;  %1549 = vrot.lane.b32.xlu1 %v4747_v7, %s4418_s21  ;;  %610 = vst.msk [vmem:[#allocation2 + $0x1f9] sm:$0xff] %vm20_vm0, %v544_v11  ;;  %611 = vst.msk [vmem:[#allocation2 + $0x201] sm:$0xff] %vm20_vm0, %v545_v23  ;;  %v4259_v23 = vld [vmem:[%s6173_s0 + $0xa8] sm:$0xff]  }
  0xbf   :  { %v793_v19 = vpop.permute.xlu1 %792  ;;  %v484_v17 = vmul.f32 0.01, %v356_v16  ;;  %vm420_vm4 = vcmp.gt.f32.partialorder %v356_v16, 0.0 }
  0xc0   :  { %828 = vst.msk [vmem:[#allocation3 + $0x68] sm:$0xff] %vm814_vm5, %v793_v19  ;;  %v795_v33 = vpop.permute.xlu0 %794  ;;  %v1518_v19 = vpack.c.bf16 %v1496_v63, %v1495_v50  ;;  %v1115_v50 = vld [vmem:[#allocation2 + $0x151] sm:$0xff] }
  0xc1   :  { %829 = vst.msk [vmem:[#allocation3 + $0x70] sm:$0xff] %vm814_vm5, %v795_v33  ;;  %v548_v14 = vsel %vm420_vm4, %v356_v16, %v484_v17  ;;  %vm2893_vm4 = vcmask 588800  }
  0xc2   :  { %1680 = vrot.lane.b32.xlu0 %v4905_v15, %s4419_s3  ;;  %1678 = vrot.lane.b32.xlu1 %v4893_v60, %s4419_s3  ;;  %614 = vst.msk [vmem:[#allocation2 + $0x229] sm:$0xff] %vm20_vm0, %v548_v14 }
  0xc4   :  { %v896_v57 = vpop.permute.xlu0 %895  ;;  %v797_v7 = vpop.permute.xlu1 %796 }
  0xc5   :  { %944 = vst.msk [vmem:[#allocation3] sm:$0xff] %vm943_vm15, %v896_v57  ;;  %v1111_v57 = vld [vmem:[#allocation2 + $0x121] sm:$0xff] }
  0xc6   :  { %1167 = vrot.lane.b32.xlu0 %v4772_v39, %s4415_s10  ;;  %830 = vst.msk [vmem:[#allocation3 + $0x78] sm:$0xff] %vm814_vm5, %v797_v7  ;;  %1165 = vrot.lane.b32.xlu1 %v4757_v20, %s4415_s10  ;;  %v4189_v20 = vunpack.c.l.bf16 %v4257_v44  ;;  %v1112_v7 = vld [vmem:[#allocation2 + $0x129] sm:$0xff] }
  0xc7   :  { %v1132_v46 = vpack.c.bf16 %v1112_v7, %v1111_v57 }
  0xc8   :  { %v900_v41 = vpop.permute.xlu0 %899  ;;  %v898_v3 = vpop.permute.xlu1 %897  ;;  %v283_v0 = vmul.f32 %v5024_v38, %v4189_v20 }
  0xc9   :  { %946 = vst.msk [vmem:[#allocation3 + $0x10] sm:$0xff] %vm943_vm15, %v900_v41  ;;  %945 = vst.msk [vmem:[#allocation3 + $0x8] sm:$0xff] %vm943_vm15, %v898_v3  ;;  %v4197_v41 = vunpack.c.l.bf16 %v4259_v23  ;;  %v4198_v3 = vunpack.c.h.bf16 %v4259_v23 }
  0xca   :  { %1296 = vrot.lane.b32.xlu0 %v4901_v10, %s4416_s15  ;;  %1294 = vrot.lane.b32.xlu1 %v4905_v15, %s4416_s15  ;;  %v355_v15 = vadd.f32 %v5036_v43, %v284_v48 }
  0xcb   :  { %v287_v20 = vmul.f32 %v5024_v38, %v4197_v41 }
  0xcc   :  { %v904_v60 = vpop.permute.xlu0 %903  ;;  %v902_v51 = vpop.permute.xlu1 %901  ;;  %v483_v59 = vmul.f32 0.01, %v355_v15  ;;  %vm419_vm3 = vcmp.gt.f32.partialorder %v355_v15, 0.0 }
  0xcd   :  { %948 = vst.msk [vmem:[#allocation3 + $0x20] sm:$0xff] %vm943_vm15, %v904_v60  ;;  %947 = vst.msk [vmem:[#allocation3 + $0x18] sm:$0xff] %vm943_vm15, %v902_v51  ;;  %v358_v51 = vadd.f32 %v5036_v43, %v287_v20  ;;  %v1632_v20 = vld [vmem:[#allocation2 + $0x16a] sm:$0xff] }
  0xce   :  { %1426 = vrot.lane.b32.xlu0 %v4834_v22, %s4417_s18  ;;  %1424 = vrot.lane.b32.xlu1 %v4832_v21, %s4417_s18  ;;  %v354_v22 = vadd.f32 %v5036_v43, %v283_v0  ;;  %v1106_v21 = vld [vmem:[#allocation2 + $0xe1] sm:$0xff]  ;;  %v547_v61 = vsel %vm419_vm3, %v355_v15, %v483_v59  ;;  %v4260_v59 = vld [vmem:[%s6173_s0 + $0xb0] sm:$0xff]   ;;  %vm1718_vm3 = vcmask 589312  }
  0xcf   :  { %613 = vst.msk [vmem:[#allocation2 + $0x219] sm:$0xff] %vm20_vm0, %v547_v61  ;;  %vm422_vm8 = vcmp.gt.f32.partialorder %v358_v51, 0.0 }
  0xd0   :  { %v908_v52 = vpop.permute.xlu0 %907  ;;  %v906_v54 = vpop.permute.xlu1 %905  ;;  %v482_v58 = vmul.f32 0.01, %v354_v22  ;;  %vm418_vm1 = vcmp.gt.f32.partialorder %v354_v22, 0.0 }
  0xd1   :  { %950 = vst.msk [vmem:[#allocation3 + $0x30] sm:$0xff] %vm943_vm15, %v908_v52  ;;  %949 = vst.msk [vmem:[#allocation3 + $0x28] sm:$0xff] %vm943_vm15, %v906_v54 }
  0xd2   :  { %1555 = vrot.lane.b32.xlu0 %v4787_v55, %s4418_s21  ;;  %1553 = vrot.lane.b32.xlu1 %v4772_v39, %s4418_s21  ;;  %v1105_v55 = vld [vmem:[#allocation2 + $0xd9] sm:$0xff]  ;;  %v546_v37 = vsel %vm418_vm1, %v354_v22, %v482_v58  ;;  %v486_v22 = vmul.f32 0.01, %v358_v51  ;;  %vm1589_vm1 = vcmask 523712  }
  0xd3   :  { %612 = vst.msk [vmem:[#allocation2 + $0x211] sm:$0xff] %vm20_vm0, %v546_v37  ;;  %v1129_v39 = vpack.c.bf16 %v1106_v21, %v1105_v55  ;;  %v1500_v55 = vld [vmem:[#allocation2 + $0x141] sm:$0xff]  ;;  %v4201_v21 = vunpack.c.l.bf16 %v4260_v59  ;;  %v4202_v37 = vunpack.c.h.bf16 %v4260_v59 }
  0xd4   :  { %v912_v56 = vpop.permute.xlu0 %911  ;;  %v910_v4 = vpop.permute.xlu1 %909 }
  0xd5   :  { %952 = vst.msk [vmem:[#allocation3 + $0x40] sm:$0xff] %vm943_vm15, %v912_v56  ;;  %951 = vst.msk [vmem:[#allocation3 + $0x38] sm:$0xff] %vm943_vm15, %v910_v4 }
  0xd6   :  { %1684 = vrot.lane.b32.xlu0 %v4913_v32, %s4419_s3  ;;  %1682 = vrot.lane.b32.xlu1 %v4901_v10, %s4419_s3  ;;  %v286_v10 = vmul.f32 %v5024_v38, %v4194_v12 }
  0xd8   :  { %v916_v6 = vpop.permute.xlu0 %915  ;;  %v914_v13 = vpop.permute.xlu1 %913 }
  0xd9   :  { %954 = vst.msk [vmem:[#allocation3 + $0x50] sm:$0xff] %vm943_vm15, %v916_v6  ;;  %953 = vst.msk [vmem:[#allocation3 + $0x48] sm:$0xff] %vm943_vm15, %v914_v13  ;;  %v289_v6 = vmul.f32 %v5024_v38, %v4201_v21 }
  0xda   :  { %1171 = vrot.lane.b32.xlu0 %v4796_v1, %s4415_s10  ;;  %1169 = vrot.lane.b32.xlu1 %v1129_v39, %s4415_s10  ;;  %v357_v1 = vadd.f32 %v5036_v43, %v286_v10  ;;  %v290_v39 = vmul.f32 %v5024_v38, %v4202_v37 }
  0xdb   :  { %v360_v9 = vadd.f32 %v5036_v43, %v289_v6 }
  0xdc   :  { %v920_v53 = vpop.permute.xlu0 %919  ;;  %v918_v62 = vpop.permute.xlu1 %917  ;;  %v485_v49 = vmul.f32 0.01, %v357_v1  ;;  %vm421_vm6 = vcmp.gt.f32.partialorder %v357_v1, 0.0  ;;  %v361_v12 = vadd.f32 %v5036_v43, %v290_v39 }
  0xdd   :  { %956 = vst.msk [vmem:[#allocation3 + $0x60] sm:$0xff] %vm943_vm15, %v920_v53  ;;  %955 = vst.msk [vmem:[#allocation3 + $0x58] sm:$0xff] %vm943_vm15, %v918_v62  ;;  %v488_v2 = vmul.f32 0.01, %v360_v9  ;;  %vm424_vm12 = vcmp.gt.f32.partialorder %v360_v9, 0.0 }
  0xde   :  { %1300 = vrot.lane.b32.xlu0 %v4909_v25, %s4416_s15  ;;  %1298 = vrot.lane.b32.xlu1 %v4913_v32, %s4416_s15  ;;  %v549_v42 = vsel %vm421_vm6, %v357_v1, %v485_v49  ;;  %v489_v10 = vmul.f32 0.01, %v361_v12  ;;  %vm425_vm13 = vcmp.gt.f32.partialorder %v361_v12, 0.0  ;;  %v1244_v49 = vld [vmem:[#allocation2 + $0x152] sm:$0xff] }
  0xdf   :  { %615 = vst.msk [vmem:[#allocation2 + $0x231] sm:$0xff] %vm20_vm0, %v549_v42  ;;  %v4261_v42 = vld [vmem:[%s6173_s0 + $0xb8] sm:$0xff]  }
  0xe0   :  { %v924_v8 = vpop.permute.xlu0 %923  ;;  %v922_v33 = vpop.permute.xlu1 %921  ;;  %v553_v16 = vsel %vm425_vm13, %v361_v12, %v489_v10 }
  0xe1   :  { %958 = vst.msk [vmem:[#allocation3 + $0x70] sm:$0xff] %vm943_vm15, %v924_v8  ;;  %957 = vst.msk [vmem:[#allocation3 + $0x68] sm:$0xff] %vm943_vm15, %v922_v33  ;;  %v4206_v33 = vunpack.c.h.bf16 %v4261_v42 }
  0xe2   :  { %1430 = vrot.lane.b32.xlu0 %v4845_v26, %s4417_s18  ;;  %1428 = vrot.lane.b32.xlu1 %v4836_v24, %s4417_s18  ;;  %v1517_v26 = vpack.c.bf16 %v1494_v5, %v1493_v28  ;;  %619 = vst.msk [vmem:[#allocation2 + $0x261] sm:$0xff] %vm20_vm0, %v553_v16  ;;  %v1245_v28 = vld [vmem:[#allocation2 + $0x15a] sm:$0xff] }
  0xe3   :  { %v1263_v14 = vpack.c.bf16 %v1245_v28, %v1244_v49 }
  0xe4   :  { %v1025_v32 = vpop.permute.xlu0 %1024  ;;  %v926_v34 = vpop.permute.xlu1 %925 }
  0xe5   :  { %1073 = vst.msk [vmem:[#allocation3] sm:$0xff] %vm1072_vm7, %v1025_v32 }
  0xe6   :  { %1559 = vrot.lane.b32.xlu0 %v1518_v19, %s4418_s21  ;;  %959 = vst.msk [vmem:[#allocation3 + $0x78] sm:$0xff] %vm943_vm15, %v926_v34  ;;  %1557 = vrot.lane.b32.xlu1 %v1517_v26, %s4418_s21 }
  0xe8   :  { %v1029_v36 = vpop.permute.xlu0 %1028  ;;  %v1027_v11 = vpop.permute.xlu1 %1026 }
  0xe9   :  { %1075 = vst.msk [vmem:[#allocation3 + $0x10] sm:$0xff] %vm1072_vm7, %v1029_v36  ;;  %1074 = vst.msk [vmem:[#allocation3 + $0x8] sm:$0xff] %vm1072_vm7, %v1027_v11  ;;  %v292_v36 = vmul.f32 %v5024_v38, %v4206_v33  ;;  %v1503_v11 = vld [vmem:[#allocation2 + $0x169] sm:$0xff] }
  0xea   :  { %1688 = vrot.lane.b32.xlu0 %v4921_v40, %s4419_s3  ;;  %1686 = vrot.lane.b32.xlu1 %v4909_v25, %s4419_s3  ;;  %v288_v25 = vmul.f32 %v5024_v38, %v4198_v3 }
  0xeb   :  { %v363_v23 = vadd.f32 %v5036_v43, %v292_v36 }
  0xec   :  { %v1033_v24 = vpop.permute.xlu0 %1032  ;;  %v1031_v60 = vpop.permute.xlu1 %1030  ;;  %v359_v52 = vadd.f32 %v5036_v43, %v288_v25  ;;  %v1633_v25 = vld [vmem:[#allocation2 + $0x172] sm:$0xff] }
  0xed   :  { %1077 = vst.msk [vmem:[#allocation3 + $0x20] sm:$0xff] %vm1072_vm7, %v1033_v24  ;;  %1076 = vst.msk [vmem:[#allocation3 + $0x18] sm:$0xff] %vm1072_vm7, %v1031_v60  ;;  %v1504_v24 = vld [vmem:[#allocation2 + $0x171] sm:$0xff]  ;;  %v491_v3 = vmul.f32 0.01, %v363_v23 }
  0xee   :  { %1173 = vrot.lane.b32.xlu0 %v1518_v19, %s4415_s10  ;;  %1046 = vrot.lane.b32.xlu1 %v4857_v29, %s4414_s29  ;;  %v487_v15 = vmul.f32 0.01, %v359_v52  ;;  %vm423_vm9 = vcmp.gt.f32.partialorder %v359_v52, 0.0  ;;  %v1522_v60 = vpack.c.bf16 %v1504_v24, %v1503_v11  ;;  %v4263_v11 = vld [vmem:[%s6173_s0 + $0xc8] sm:$0xff]   ;;  %v1636_v24 = vld [vmem:[#allocation2 + $0x19a] sm:$0xff] }
  0xf0   :  { %v1037_v44 = vpop.permute.xlu0 %1036  ;;  %v1035_v0 = vpop.permute.xlu1 %1034  ;;  %v551_v54 = vsel %vm423_vm9, %v359_v52, %v487_v15  ;;  %v4262_v15 = vld [vmem:[%s6173_s0 + $0xc0] sm:$0xff]  }
  0xf1   :  { %1079 = vst.msk [vmem:[#allocation3 + $0x30] sm:$0xff] %vm1072_vm7, %v1037_v44  ;;  %1078 = vst.msk [vmem:[#allocation3 + $0x28] sm:$0xff] %vm1072_vm7, %v1035_v0 }
  0xf2   :  { %1302 = vrot.lane.b32.xlu0 %v4921_v40, %s4416_s15  ;;  %1175 = vrot.lane.b32.xlu1 %v1132_v46, %s4415_s10  ;;  %v550_v40 = vsel %vm422_vm8, %v358_v51, %v486_v22  ;;  %617 = vst.msk [vmem:[#allocation2 + $0x249] sm:$0xff] %vm20_vm0, %v551_v54  ;;  %vm427_vm8 = vcmp.gt.f32.partialorder %v363_v23, 0.0  ;;  %v1651_v22 = vpack.c.bf16 %v1633_v25, %v1632_v20  ;;  %v991_v54 = vld [vmem:[#allocation2 + $0x188] sm:$0xff] }
  0xf3   :  { %616 = vst.msk [vmem:[#allocation2 + $0x241] sm:$0xff] %vm20_vm0, %v550_v40  ;;  %v555_v51 = vsel %vm427_vm8, %v363_v23, %v491_v3  ;;  %v990_v40 = vld [vmem:[#allocation2 + $0x180] sm:$0xff]  ;;  %v1928_v3 = vld [vmem:[#allocation2 + $0x1b2] sm:$0xff] }
  0xf4   :  { %v1041_v48 = vpop.permute.xlu0 %1040  ;;  %v1039_v56 = vpop.permute.xlu1 %1038  ;;  %621 = vst.msk [vmem:[#allocation2 + $0x279] sm:$0xff] %vm20_vm0, %v555_v51  ;;  %v1007_v37 = vpack.c.bf16 %v991_v54, %v990_v40  ;;  %v1802_v51 = vld [vmem:[#allocation2 + $0x1c9] sm:$0xff] }
  0xf5   :  { %1081 = vst.msk [vmem:[#allocation3 + $0x40] sm:$0xff] %vm1072_vm7, %v1041_v48  ;;  %1080 = vst.msk [vmem:[#allocation3 + $0x38] sm:$0xff] %vm1072_vm7, %v1039_v56  ;;  %v4209_v56 = vunpack.c.l.bf16 %v4262_v15 }
  0xf6   :  { %1432 = vrot.lane.b32.xlu0 %v4857_v29, %s4417_s18  ;;  %1304 = vrot.lane.b32.xlu1 %v4917_v35, %s4416_s15  ;;  %v1499_v29 = vld [vmem:[#allocation2 + $0x139] sm:$0xff] }
  0xf7   :  { %v1520_v18 = vpack.c.bf16 %v1500_v55, %v1499_v29  ;;  %v293_v55 = vmul.f32 %v5024_v38, %v4209_v56 }
  0xf8   :  { %v1045_v58 = vpop.permute.xlu0 %1044  ;;  %v1043_v61 = vpop.permute.xlu1 %1042 }
  0xf9   :  { %1083 = vst.msk [vmem:[#allocation3 + $0x50] sm:$0xff] %vm1072_vm7, %v1045_v58  ;;  %1082 = vst.msk [vmem:[#allocation3 + $0x48] sm:$0xff] %vm1072_vm7, %v1043_v61  ;;  %v4210_v58 = vunpack.c.h.bf16 %v4262_v15  ;;  %v1120_v61 = vld [vmem:[#allocation2 + $0x189] sm:$0xff] }
  0xfa   :  { %1561 = vrot.lane.b32.xlu0 %v1132_v46, %s4418_s21  ;;  %1434 = vrot.lane.b32.xlu1 %v4859_v30, %s4417_s18 }
  0xfb   :  { %v294_v21 = vmul.f32 %v5024_v38, %v4210_v58 }
  0xfc   :  { %v1156_v4 = vpop.permute.xlu0 %1155  ;;  %v1154_v13 = vpop.permute.xlu1 %1153 }
  0xfd   :  { %1203 = vst.msk [vmem:[#allocation3 + $0x8] sm:$0xff] %vm1201_vm10, %v1156_v4  ;;  %1202 = vst.msk [vmem:[#allocation3] sm:$0xff] %vm1201_vm10, %v1154_v13  ;;  %v364_v4 = vadd.f32 %v5036_v43, %v293_v55  ;;  %v365_v6 = vadd.f32 %v5036_v43, %v294_v21 }
  0xfe   :  { %1690 = vrot.lane.b32.xlu0 %v4917_v35, %s4419_s3  ;;  %1563 = vrot.lane.b32.xlu1 %v1520_v18, %s4418_s21  ;;  %v552_v35 = vsel %vm424_vm12, %v360_v9, %v488_v2  ;;  %v1249_v2 = vld [vmem:[#allocation2 + $0x18a] sm:$0xff] }
  0xff   :  { %618 = vst.msk [vmem:[#allocation2 + $0x259] sm:$0xff] %vm20_vm0, %v552_v35  ;;  %v492_v9 = vmul.f32 0.01, %v364_v4  ;;  %v493_v12 = vmul.f32 0.01, %v365_v6  ;;  %vm428_vm9 = vcmp.gt.f32.partialorder %v364_v4, 0.0 }
 0x100   :  { %v1285_v53 = vpop.permute.xlu0 %1284  ;;  %v1283_v1 = vpop.permute.xlu1 %1282  ;;  %vm429_vm12 = vcmp.gt.f32.partialorder %v365_v6, 0.0 }
 0x101   :  { %1332 = vst.msk [vmem:[#allocation3 + $0x8] sm:$0xff] %vm1330_vm11, %v1285_v53  ;;  %1331 = vst.msk [vmem:[#allocation3] sm:$0xff] %vm1330_vm11, %v1283_v1  ;;  %v1248_v53 = vld [vmem:[#allocation2 + $0x182] sm:$0xff]  ;;  %v556_v10 = vsel %vm428_vm9, %v364_v4, %v492_v9  ;;  %v557_v35 = vsel %vm429_vm12, %v365_v6, %v493_v12  ;;  %v4264_v4 = vld [vmem:[%s6173_s0 + $0xd0] sm:$0xff]  }
 0x102   :  { %1048 = vrot.lane.b32.xlu0 %v4859_v30, %s4414_s29  ;;  %1692 = vrot.lane.b32.xlu1 %v4927_v45, %s4419_s3  ;;  %v1116_v30 = vld [vmem:[#allocation2 + $0x159] sm:$0xff]  ;;  %622 = vst.msk [vmem:[#allocation2 + $0x289] sm:$0xff] %vm20_vm0, %v556_v10  ;;  %623 = vst.msk [vmem:[#allocation2 + $0x291] sm:$0xff] %vm20_vm0, %v557_v35  ;;  %v4218_v9 = vunpack.c.h.bf16 %v4264_v4  ;;  %v2186_v35 = vld [vmem:[#allocation2 + $0x1e1] sm:$0xff] }
 0x103   :  { %v1134_v17 = vpack.c.bf16 %v1116_v30, %v1115_v50  ;;  %v1378_v50 = vld [vmem:[#allocation2 + $0x198] sm:$0xff]  ;;  %v1379_v30 = vld [vmem:[#allocation2 + $0x1a0] sm:$0xff] }
 0x104   :  { %v1415_v62 = vpop.permute.xlu0 %1414  ;;  %v1413_v63 = vpop.permute.xlu1 %1412  ;;  %v2058_v6 = vld [vmem:[#allocation2 + $0x1e0] sm:$0xff] }
 0x105   :  { %1462 = vst.msk [vmem:[#allocation3 + $0x8] sm:$0xff] %vm1460_vm14, %v1415_v62  ;;  %1461 = vst.msk [vmem:[#allocation3] sm:$0xff] %vm1460_vm14, %v1413_v63  ;;  %v1265_v62 = vpack.c.bf16 %v1249_v2, %v1248_v53  ;;  %v298_v2 = vmul.f32 %v5024_v38, %v4218_v9  ;;  %v4266_v9 = vld [vmem:[%s6173_s0 + $0xe0] sm:$0xff]  }
 0x106   :  { %1177 = vrot.lane.b32.xlu0 %v1520_v18, %s4415_s10  ;;  %1050 = vrot.lane.b32.xlu1 %v4861_v31, %s4414_s29 }
 0x108   :  { %v1544_v8 = vpop.permute.xlu0 %1543  ;;  %v1542_v5 = vpop.permute.xlu1 %1541 }
 0x109   :  { %1591 = vst.msk [vmem:[#allocation3 + $0x8] sm:$0xff] %vm1589_vm1, %v1544_v8  ;;  %1590 = vst.msk [vmem:[#allocation3] sm:$0xff] %vm1589_vm1, %v1542_v5  ;;  %v1735_v8 = vld [vmem:[#allocation2 + $0x1b0] sm:$0xff]  ;;  %v1395_v5 = vpack.c.bf16 %v1379_v30, %v1378_v50 }
 0x10a   :  { %1306 = vrot.lane.b32.xlu0 %v4927_v45, %s4416_s15  ;;  %1179 = vrot.lane.b32.xlu1 %v1134_v17, %s4415_s10  ;;  %v4205_v45 = vunpack.c.l.bf16 %v4261_v42  ;;  %v1508_v42 = vld [vmem:[#allocation2 + $0x1a1] sm:$0xff] }
 0x10c   :  { %v1673_v19 = vpop.permute.xlu0 %1672  ;;  %v1671_v32 = vpop.permute.xlu1 %1670  ;;  %v291_v34 = vmul.f32 %v5024_v38, %v4205_v45 }
 0x10d   :  { %1720 = vst.msk [vmem:[#allocation3 + $0x8] sm:$0xff] %vm1718_vm3, %v1673_v19  ;;  %1719 = vst.msk [vmem:[#allocation3] sm:$0xff] %vm1718_vm3, %v1671_v32  ;;  %v1800_v32 = vld [vmem:[#allocation2 + $0x1b1] sm:$0xff] }
 0x10e   :  { %1436 = vrot.lane.b32.xlu0 %v4861_v31, %s4417_s18  ;;  %1308 = vrot.lane.b32.xlu1 %v1263_v14, %s4416_s15  ;;  %v362_v31 = vadd.f32 %v5036_v43, %v291_v34 }
 0x110   :  { %v1160_v26 = vpop.permute.xlu0 %1159  ;;  %v1158_v57 = vpop.permute.xlu1 %1157  ;;  %v490_v41 = vmul.f32 0.01, %v362_v31  ;;  %vm426_vm6 = vcmp.gt.f32.partialorder %v362_v31, 0.0 }
 0x111   :  { %1205 = vst.msk [vmem:[#allocation3 + $0x18] sm:$0xff] %vm1201_vm10, %v1160_v26  ;;  %1204 = vst.msk [vmem:[#allocation3 + $0x10] sm:$0xff] %vm1201_vm10, %v1158_v57  ;;  %v1801_v26 = vld [vmem:[#allocation2 + $0x1b9] sm:$0xff]  ;;  %v4213_v57 = vunpack.c.l.bf16 %v4263_v11 }
 0x112   :  { %1565 = vrot.lane.b32.xlu0 %v1134_v17, %s4418_s21  ;;  %1438 = vrot.lane.b32.xlu1 %v4876_v47, %s4417_s18  ;;  %v554_v46 = vsel %vm426_vm6, %v362_v31, %v490_v41  ;;  %v1736_v17 = vld [vmem:[#allocation2 + $0x1b8] sm:$0xff]  ;;  %v1637_v31 = vld [vmem:[#allocation2 + $0x1a2] sm:$0xff]  ;;  %v1832_v23 = vpack.c.bf16 %v1801_v26, %v1800_v32 }
 0x113   :  { %620 = vst.msk [vmem:[#allocation2 + $0x271] sm:$0xff] %vm20_vm0, %v554_v46  ;;  %v1767_v28 = vpack.c.bf16 %v1736_v17, %v1735_v8  ;;  %v295_v20 = vmul.f32 %v5024_v38, %v4213_v57  ;;  %v1653_v46 = vpack.c.bf16 %v1637_v31, %v1636_v24  ;;  %v2443_v26 = vld [vmem:[#allocation2 + $0x1f8] sm:$0xff]  ;;  %v1742_v31 = vld [vmem:[#allocation2 + $0x200] sm:$0xff] }
 0x114   :  { %v1289_v7 = vpop.permute.xlu0 %1288  ;;  %v2826_v44 = vld [vmem:[#allocation3 + $0x8] sm:$0xff]  ;;  %v1287_v52 = vpop.permute.xlu1 %1286  ;;  %v2825_v0 = vld [vmem:[#allocation3] sm:$0xff]  ;;  %v1741_v24 = vld [vmem:[#allocation2 + $0x1f8] sm:$0xff] }
 0x115   :  { %1334 = vst.msk [vmem:[#allocation3 + $0x18] sm:$0xff] %vm1330_vm11, %v1289_v7  ;;  %1333 = vst.msk [vmem:[#allocation3 + $0x10] sm:$0xff] %vm1330_vm11, %v1287_v52  ;;  %4317 = vmatprep.mubr.msk.bf16.mxu0 %vm2893_vm4, %v2825_v0  ;;  %v4214_v7 = vunpack.c.h.bf16 %v4263_v11  ;;  %v1803_v52 = vld [vmem:[#allocation2 + $0x1d1] sm:$0xff]  ;;  %v1770_v57 = vpack.c.bf16 %v1742_v31, %v1741_v24 }
 0x116   :  { %1694 = vrot.lane.b32.xlu0 %v1263_v14, %s4419_s3  ;;  %1567 = vrot.lane.b32.xlu1 %v1522_v60, %s4418_s21  ;;  %v1507_v14 = vld [vmem:[#allocation2 + $0x199] sm:$0xff]  ;;  %1784 = vst.msk [vmem:[#allocation3 + $0x80] sm:$0xff] %vm20_vm0, %v1767_v28  ;;  %v1833_v58 = vpack.c.bf16 %v1803_v52, %v1802_v51  ;;  %v2448_v24 = vld [vmem:[#allocation2 + $0x230] sm:$0xff] }
 0x117   :  { %4318 = vmatmul.mubr.msk.bf16.vlgmr.msra.gmra.mrb[0].mxu0 %vm2893_vm4, %v2826_v44  ;;  %v1524_v36 = vpack.c.bf16 %v1508_v42, %v1507_v14  ;;  %v296_v25 = vmul.f32 %v5024_v38, %v4214_v7  ;;  %v1739_v42 = vld [vmem:[#allocation2 + $0x1e0] sm:$0xff]  ;;  %1787 = vst.msk [vmem:[#allocation3 + $0x98] sm:$0xff] %vm20_vm0, %v1770_v57 }
 0x118   :  { %v1419_v48 = vpop.permute.xlu0 %1418  ;;  %v1417_v59 = vpop.permute.xlu1 %1416  ;;  %v2571_v7 = vld [vmem:[#allocation2 + $0x1f9] sm:$0xff] }
 0x119   :  { %1464 = vst.msk [vmem:[#allocation3 + $0x18] sm:$0xff] %vm1460_vm14, %v1419_v48  ;;  %1463 = vst.msk [vmem:[#allocation3 + $0x10] sm:$0xff] %vm1460_vm14, %v1417_v59  ;;  %v366_v48 = vadd.f32 %v5036_v43, %v295_v20  ;;  %v1930_v59 = vld [vmem:[#allocation2 + $0x1ca] sm:$0xff] }
 0x11a   :  { %1052 = vrot.lane.b32.xlu0 %v4876_v47, %s4414_s29  ;;  %1696 = vrot.lane.b32.xlu1 %v1651_v22, %s4419_s3  ;;  %v1119_v47 = vld [vmem:[#allocation2 + $0x181] sm:$0xff] }
 0x11b   :  { %v1136_v13 = vpack.c.bf16 %v1120_v61, %v1119_v47  ;;  %v494_v54 = vmul.f32 0.01, %v366_v48  ;;  %vm430_vm13 = vcmp.gt.f32.partialorder %v366_v48, 0.0 }
 0x11c   :  { %v1548_v29 = vpop.permute.xlu0 %1547  ;;  %v1546_v39 = vpop.permute.xlu1 %1545 }
 0x11d   :  { %1593 = vst.msk [vmem:[#allocation3 + $0x18] sm:$0xff] %vm1589_vm1, %v1548_v29  ;;  %1592 = vst.msk [vmem:[#allocation3 + $0x10] sm:$0xff] %vm1589_vm1, %v1546_v39  ;;  %v1931_v29 = vld [vmem:[#allocation2 + $0x1d2] sm:$0xff]  ;;  %v558_v55 = vsel %vm430_vm13, %v366_v48, %v494_v54  ;;  %v2059_v39 = vld [vmem:[#allocation2 + $0x1e8] sm:$0xff] }
 0x11e   :  { %1181 = vrot.lane.b32.xlu0 %v1522_v60, %s4415_s10  ;;  %1054 = vrot.lane.b32.xlu1 %v1007_v37, %s4414_s29  ;;  %v1929_v60 = vld [vmem:[#allocation2 + $0x1ba] sm:$0xff]  ;;  %624 = vst.msk [vmem:[#allocation2 + $0x2a1] sm:$0xff] %vm20_vm0, %v558_v55  ;;  %v1961_v61 = vpack.c.bf16 %v1931_v29, %v1930_v59  ;;  %v2089_v10 = vpack.c.bf16 %v2059_v39, %v2058_v6 }
 0x11f   :  { %v1960_v0 = vpack.c.bf16 %v1929_v60, %v1928_v3  ;;  %v2699_v60 = vld [vmem:[#allocation2 + $0x1fa] sm:$0xff] }
 0x120   :  { %v1677_v18 = vpop.permute.xlu0 %1676  ;;  %v1675_v16 = vpop.permute.xlu1 %1674 }
 0x121   :  { %1722 = vst.msk [vmem:[#allocation3 + $0x18] sm:$0xff] %vm1718_vm3, %v1677_v18  ;;  %1721 = vst.msk [vmem:[#allocation3 + $0x10] sm:$0xff] %vm1718_vm3, %v1675_v16  ;;  %v4217_v18 = vunpack.c.l.bf16 %v4264_v4  ;;  %v2187_v16 = vld [vmem:[#allocation2 + $0x1e9] sm:$0xff] }
 0x122   :  { %1310 = vrot.lane.b32.xlu0 %v1651_v22, %s4416_s15  ;;  %1183 = vrot.lane.b32.xlu1 %v1136_v13, %s4415_s10  ;;  %v367_v22 = vadd.f32 %v5036_v43, %v296_v25  ;;  %v5331_v17 = vpack.c.bf16 %v2187_v16, %v2186_v35 }
 0x123   :  { %v297_v53 = vmul.f32 %v5024_v38, %v4217_v18 }
 0x124   :  { %v1164_v1 = vpop.permute.xlu0 %1163  ;;  %v1162_v63 = vpop.permute.xlu1 %1161  ;;  %v495_v56 = vmul.f32 0.01, %v367_v22  ;;  %vm431_vm6 = vcmp.gt.f32.partialorder %v367_v22, 0.0 }
 0x125   :  { %1207 = vst.msk [vmem:[#allocation3 + $0x28] sm:$0xff] %vm1201_vm10, %v1164_v1  ;;  %1206 = vst.msk [vmem:[#allocation3 + $0x20] sm:$0xff] %vm1201_vm10, %v1162_v63  ;;  %v368_v1 = vadd.f32 %v5036_v43, %v297_v53  ;;  %v4225_v53 = vunpack.c.l.bf16 %v4266_v9 }
 0x126   :  { %1440 = vrot.lane.b32.xlu0 %v1007_v37, %s4417_s18  ;;  %1312 = vrot.lane.b32.xlu1 %v1265_v62, %s4416_s15  ;;  %v559_v21 = vsel %vm431_vm6, %v367_v22, %v495_v56 }
 0x127   :  { %625 = vst.msk [vmem:[#allocation2 + $0x2a9] sm:$0xff] %vm20_vm0, %v559_v21  ;;  %v496_v63 = vmul.f32 0.01, %v368_v1  ;;  %vm432_vm8 = vcmp.gt.f32.partialorder %v368_v1, 0.0 }
 0x128   :  { %v1293_v49 = vpop.permute.xlu0 %1292  ;;  %v2828_v19 = vld [vmem:[#allocation3 + $0x18] sm:$0xff]  ;;  %v1291_v45 = vpop.permute.xlu1 %1290  ;;  %v2827_v33 = vld [vmem:[#allocation3 + $0x10] sm:$0xff] }
 0x129   :  { %1336 = vst.msk [vmem:[#allocation3 + $0x28] sm:$0xff] %vm1330_vm11, %v1293_v49  ;;  %1335 = vst.msk [vmem:[#allocation3 + $0x20] sm:$0xff] %vm1330_vm11, %v1291_v45  ;;  %4321 = vmatprep.mubr.msk.bf16.mxu0 %vm2893_vm4, %v2827_v33  ;;  %v2315_v49 = vld [vmem:[#allocation2 + $0x1ea] sm:$0xff]  ;;  %v560_v28 = vsel %vm432_vm8, %v368_v1, %v496_v63 }
 0x12a   :  { %1569 = vrot.lane.b32.xlu0 %v1136_v13, %s4418_s21  ;;  %1442 = vrot.lane.b32.xlu1 %v1395_v5, %s4417_s18  ;;  %626 = vst.msk [vmem:[#allocation2 + $0x2b9] sm:$0xff] %vm20_vm0, %v560_v28  ;;  %v1740_v45 = vld [vmem:[#allocation2 + $0x1e8] sm:$0xff]  ;;  %v2318_v28 = vld [vmem:[#allocation2 + $0x212] sm:$0xff] }
 0x12b   :  { %4322 = vmatmul.mubr.msk.bf16.gmra.mrb[4].mxu0 %vm2893_vm4, %v2828_v19  ;;  %v1769_v32 = vpack.c.bf16 %v1740_v45, %v1739_v42 }
 0x12c   :  { %v1423_v34 = vpop.permute.xlu0 %1422  ;;  %v1421_v41 = vpop.permute.xlu1 %1420 }
 0x12d   :  { %1466 = vst.msk [vmem:[#allocation3 + $0x28] sm:$0xff] %vm1460_vm14, %v1423_v34  ;;  %1465 = vst.msk [vmem:[#allocation3 + $0x20] sm:$0xff] %vm1460_vm14, %v1421_v41  ;;  %v2444_v34 = vld [vmem:[#allocation2 + $0x200] sm:$0xff] }
 0x12e   :  { %1698 = vrot.lane.b32.xlu0 %v1265_v62, %s4419_s3  ;;  %1571 = vrot.lane.b32.xlu1 %v1524_v36, %s4418_s21  ;;  %v369_v62 = vadd.f32 %v5036_v43, %v298_v2  ;;  %v2314_v43 = vld [vmem:[#allocation2 + $0x1e2] sm:$0xff]  ;;  %1786 = vst.msk [vmem:[#allocation3 + $0x90] sm:$0xff] %vm20_vm0, %v1769_v32  ;;  %v4226_v2 = vunpack.c.h.bf16 %v4266_v9  ;;  %v1744_v32 = vld [vmem:[#allocation2 + $0x218] sm:$0xff] }
 0x12f   :  { %v2345_v33 = vpack.c.bf16 %v2315_v49, %v2314_v43  ;;  %v2572_v41 = vld [vmem:[#allocation2 + $0x201] sm:$0xff] }
 0x130   :  { %v1552_v44 = vpop.permute.xlu0 %1551  ;;  %v1550_v15 = vpop.permute.xlu1 %1549  ;;  %v497_v8 = vmul.f32 0.01, %v369_v62  ;;  %vm433_vm9 = vcmp.gt.f32.partialorder %v369_v62, 0.0  ;;  %v2602_v25 = vpack.c.bf16 %v2572_v41, %v2571_v7  ;;  %v1745_v7 = vld [vmem:[#allocation2 + $0x228] sm:$0xff]  ;;  %v1746_v41 = vld [vmem:[#allocation2 + $0x230] sm:$0xff] }
 0x131   :  { %1595 = vst.msk [vmem:[#allocation3 + $0x28] sm:$0xff] %vm1589_vm1, %v1552_v44  ;;  %1594 = vst.msk [vmem:[#allocation3 + $0x20] sm:$0xff] %vm1589_vm1, %v1550_v15  ;;  %v2700_v44 = vld [vmem:[#allocation2 + $0x202] sm:$0xff]  ;;  %v5361_v15 = vld [vmem:[%s6174_s1] ss:$0 sm:$0xff] }
 0x132   :  { %1864 = vrot.lane.b32.xlu0 %v1832_v23, %s4412_s7  ;;  %1700 = vrot.lane.b32.xlu1 %v1653_v46, %s4419_s3  ;;  %v561_v5 = vsel %vm433_vm9, %v369_v62, %v497_v8  ;;  %v2474_v23 = vpack.c.bf16 %v2444_v34, %v2443_v26  ;;  %v4265_v46 = vld [vmem:[%s6173_s0 + $0xd8] sm:$0xff]   ;;  %v5355_v51 = vpack.c.bf16 %v2700_v44, %v2699_v60  ;;  %v2575_v44 = vld [vmem:[#allocation2 + $0x229] sm:$0xff] }
 0x133   :  { %627 = vst.msk [vmem:[#allocation2 + $0x2c1] sm:$0xff] %vm20_vm0, %v561_v5  ;;  %v4221_v52 = vunpack.c.l.bf16 %v4265_v46  ;;  %v301_v35 = vmul.f32 %v5361_v15, %v4225_v53  ;;  %v302_v16 = vmul.f32 %v5361_v15, %v4226_v2  ;;  %v2190_v62 = vld [vmem:[#allocation2 + $0x211] sm:$0xff]  ;;  %v2319_v5 = vld [vmem:[#allocation2 + $0x21a] sm:$0xff]  ;;  %v1772_v60 = vpack.c.bf16 %v1746_v41, %v1745_v7  ;;  %v2067_v2 = vld [vmem:[#allocation2 + $0x248] sm:$0xff] }
 0x134   :  { %v1681_v40 = vpop.permute.xlu0 %1680  ;;  %v1679_v37 = vpop.permute.xlu1 %1678  ;;  %v2347_v26 = vpack.c.bf16 %v2319_v5, %v2318_v28  ;;  %v2066_v53 = vld [vmem:[#allocation2 + $0x240] sm:$0xff] }
 0x135   :  { %1724 = vst.msk [vmem:[#allocation3 + $0x28] sm:$0xff] %vm1718_vm3, %v1681_v40  ;;  %1723 = vst.msk [vmem:[#allocation3 + $0x20] sm:$0xff] %vm1718_vm3, %v1679_v37  ;;  %v299_v40 = vmul.f32 %v5361_v15, %v4221_v52 }
 0x136   :  { %1992 = vrot.lane.b32.xlu0 %v1960_v0, %s4413_s28  ;;  %1866 = vrot.lane.b32.xlu1 %v1833_v58, %s4412_s7  ;;  %v4222_v0 = vunpack.c.h.bf16 %v4265_v46  ;;  %v2703_v46 = vld [vmem:[#allocation2 + $0x22a] sm:$0xff]  ;;  %1789 = vst.msk [vmem:[#allocation3 + $0xa8] sm:$0xff] %vm20_vm0, %v1772_v60  ;;  %v1749_v60 = vld [vmem:[#allocation2 + $0x258] sm:$0xff] }
 0x138   :  { %v1168_v47 = vpop.permute.xlu0 %1167  ;;  %v1166_v12 = vpop.permute.xlu1 %1165  ;;  %v300_v54 = vmul.f32 %v5361_v15, %v4222_v0 }
 0x139   :  { %1209 = vst.msk [vmem:[#allocation3 + $0x38] sm:$0xff] %vm1201_vm10, %v1168_v47  ;;  %1208 = vst.msk [vmem:[#allocation3 + $0x30] sm:$0xff] %vm1201_vm10, %v1166_v12  ;;  %v2062_v12 = vld [vmem:[#allocation2 + $0x210] sm:$0xff] }
 0x13a   :  { %2120 = vrot.lane.b32.xlu0 %v5075_v27, %s4414_s29  ;;  %1994 = vrot.lane.b32.xlu1 %v1961_v61, %s4413_s28 }
 0x13c   :  { %v1297_v13 = vpop.permute.xlu0 %1296  ;;  %v2830_v27 = vld [vmem:[#allocation3 + $0x28] sm:$0xff]  ;;  %v1295_v50 = vpop.permute.xlu1 %1294  ;;  %v2829_v30 = vld [vmem:[#allocation3 + $0x20] sm:$0xff] }
 0x13d   :  { %1338 = vst.msk [vmem:[#allocation3 + $0x38] sm:$0xff] %vm1330_vm11, %v1297_v13  ;;  %1337 = vst.msk [vmem:[#allocation3 + $0x30] sm:$0xff] %vm1330_vm11, %v1295_v50  ;;  %4325 = vmatprep.mubr.msk.bf16.mxu0 %vm2893_vm4, %v2829_v30  ;;  %v2063_v13 = vld [vmem:[#allocation2 + $0x218] sm:$0xff] }
 0x13e   :  { %2248 = vrot.lane.b32.xlu0 %v1833_v58, %s4415_s10  ;;  %2122 = vrot.lane.b32.xlu1 %v2089_v10, %s4414_s29  ;;  %v5372_v58 = vld [vmem:[%s6175_s2] ss:$0 sm:$0xff]  ;;  %v2091_v1 = vpack.c.bf16 %v2063_v13, %v2062_v12 }
 0x13f   :  { %4326 = vmatmul.mubr.msk.bf16.gmra.mrb[8].mxu0 %vm2893_vm4, %v2830_v27  ;;  %v370_v59 = vadd.f32 %v5372_v58, %v299_v40  ;;  %v371_v29 = vadd.f32 %v5372_v58, %v300_v54  ;;  %v2191_v50 = vld [vmem:[#allocation2 + $0x219] sm:$0xff]  ;;  %v372_v30 = vadd.f32 %v5372_v58, %v301_v35 }
 0x140   :  { %v1427_v38 = vpop.permute.xlu0 %1426  ;;  %v1425_v19 = vpop.permute.xlu1 %1424  ;;  %v5404_v49 = vpack.c.bf16 %v2191_v50, %v2190_v62  ;;  %v2093_v62 = vpack.c.bf16 %v2067_v2, %v2066_v53 }
 0x141   :  { %1468 = vst.msk [vmem:[#allocation3 + $0x38] sm:$0xff] %vm1460_vm14, %v1427_v38  ;;  %1467 = vst.msk [vmem:[#allocation3 + $0x30] sm:$0xff] %vm1460_vm14, %v1425_v19  ;;  %v498_v47 = vmul.f32 0.01, %v370_v59  ;;  %vm434_vm12 = vcmp.gt.f32.partialorder %v370_v59, 0.0  ;;  %vm435_vm13 = vcmp.gt.f32.partialorder %v371_v29, 0.0  ;;  %v373_v38 = vadd.f32 %v5372_v58, %v302_v16 }
 0x142   :  { %2376 = vrot.lane.b32.xlu0 %v1961_v61, %s4416_s15  ;;  %2250 = vrot.lane.b32.xlu1 %v5331_v17, %s4415_s10  ;;  %v499_v61 = vmul.f32 0.01, %v371_v29  ;;  %vm436_vm6 = vcmp.gt.f32.partialorder %v372_v30, 0.0 }
 0x143   :  { %v562_v4 = vsel %vm434_vm12, %v370_v59, %v498_v47  ;;  %v501_v43 = vmul.f32 0.01, %v373_v38  ;;  %vm437_vm8 = vcmp.gt.f32.partialorder %v373_v38, 0.0 }
 0x144   :  { %v1556_v14 = vpop.permute.xlu0 %1555  ;;  %v1554_v36 = vpop.permute.xlu1 %1553  ;;  %v563_v6 = vsel %vm435_vm13, %v371_v29, %v499_v61  ;;  %628 = vst.msk [vmem:[#allocation2 + $0x2d1] sm:$0xff] %vm20_vm0, %v562_v4 }
 0x145   :  { %1597 = vst.msk [vmem:[#allocation3 + $0x38] sm:$0xff] %vm1589_vm1, %v1556_v14  ;;  %1596 = vst.msk [vmem:[#allocation3 + $0x30] sm:$0xff] %vm1589_vm1, %v1554_v36  ;;  %v565_v14 = vsel %vm437_vm8, %v373_v38, %v501_v43  ;;  %v2194_v38 = vld [vmem:[#allocation2 + $0x241] sm:$0xff] }
 0x146   :  { %2505 = vrot.lane.b32.xlu0 %v2089_v10, %s4417_s18  ;;  %2378 = vrot.lane.b32.xlu1 %v2345_v33, %s4416_s15  ;;  %629 = vst.msk [vmem:[#allocation2 + $0x2d9] sm:$0xff] %vm20_vm0, %v563_v6  ;;  %631 = vst.msk [vmem:[#allocation2 + $0x2f1] sm:$0xff] %vm20_vm0, %v565_v14 }
 0x148   :  { %v1685_v11 = vpop.permute.xlu0 %1684  ;;  %v1683_v3 = vpop.permute.xlu1 %1682 }
 0x149   :  { %1726 = vst.msk [vmem:[#allocation3 + $0x38] sm:$0xff] %vm1718_vm3, %v1685_v11  ;;  %1725 = vst.msk [vmem:[#allocation3 + $0x30] sm:$0xff] %vm1718_vm3, %v1683_v3  ;;  %v2447_v11 = vld [vmem:[#allocation2 + $0x228] sm:$0xff] }
 0x14a   :  { %2633 = vrot.lane.b32.xlu0 %v5331_v17, %s4418_s21  ;;  %2507 = vrot.lane.b32.xlu1 %v2474_v23, %s4417_s18  ;;  %v2476_v3 = vpack.c.bf16 %v2448_v24, %v2447_v11  ;;  %v1747_v11 = vld [vmem:[#allocation2 + $0x240] sm:$0xff]  ;;  %v1748_v24 = vld [vmem:[#allocation2 + $0x248] sm:$0xff] }
 0x14c   :  { %v1172_v20 = vpop.permute.xlu0 %1171  ;;  %v1170_v48 = vpop.permute.xlu1 %1169 }
 0x14d   :  { %1211 = vst.msk [vmem:[#allocation3 + $0x48] sm:$0xff] %vm1201_vm10, %v1172_v20  ;;  %1210 = vst.msk [vmem:[#allocation3 + $0x40] sm:$0xff] %vm1201_vm10, %v1170_v48  ;;  %v2576_v20 = vld [vmem:[#allocation2 + $0x231] sm:$0xff]  ;;  %v4267_v48 = vld [vmem:[%s6173_s0 + $0xe8] sm:$0xff]  }
 0x14e   :  { %2761 = vrot.lane.b32.xlu0 %v2345_v33, %s4419_s3  ;;  %2635 = vrot.lane.b32.xlu1 %v2602_v25, %s4418_s21  ;;  %v2604_v0 = vpack.c.bf16 %v2576_v20, %v2575_v44  ;;  %v4229_v40 = vunpack.c.l.bf16 %v4267_v48  ;;  %v4230_v54 = vunpack.c.h.bf16 %v4267_v48  ;;  %v1750_v44 = vld [vmem:[#allocation2 + $0x260] sm:$0xff] }
 0x14f   :  { %v2579_v20 = vld [vmem:[#allocation2 + $0x259] sm:$0xff] }
 0x150   :  { %v1301_v22 = vpop.permute.xlu0 %1300  ;;  %v2832_v56 = vld [vmem:[#allocation3 + $0x38] sm:$0xff]  ;;  %v1299_v55 = vpop.permute.xlu1 %1298  ;;  %v2831_v21 = vld [vmem:[#allocation3 + $0x30] sm:$0xff]  ;;  %v303_v29 = vmul.f32 %v5361_v15, %v4229_v40 }
 0x151   :  { %1340 = vst.msk [vmem:[#allocation3 + $0x48] sm:$0xff] %vm1330_vm11, %v1301_v22  ;;  %1339 = vst.msk [vmem:[#allocation3 + $0x40] sm:$0xff] %vm1330_vm11, %v1299_v55  ;;  %4329 = vmatprep.mubr.msk.bf16.mxu0 %vm2893_vm4, %v2831_v21  ;;  %v304_v55 = vmul.f32 %v5361_v15, %v4230_v54 }
 0x152   :  { %2763 = vrot.lane.b32.xlu0 %v5355_v51, %s4419_s3  ;;  %1868 = vrot.lane.b32.xlu1 %v5331_v17, %s4412_s7  ;;  %v500_v17 = vmul.f32 0.01, %v372_v30  ;;  %v374_v21 = vadd.f32 %v5372_v58, %v303_v29  ;;  %v4269_v29 = vld [vmem:[%s6173_s0 + $0xf8] sm:$0xff]  }
 0x153   :  { %4330 = vmatmul.mubr.msk.bf16.gmra.mrb[12].mxu0 %vm2893_vm4, %v2832_v56 }
 0x154   :  { %v1431_v37 = vpop.permute.xlu0 %1430  ;;  %v1429_v39 = vpop.permute.xlu1 %1428  ;;  %v564_v19 = vsel %vm436_vm6, %v372_v30, %v500_v17  ;;  %v502_v4 = vmul.f32 0.01, %v374_v21  ;;  %vm438_vm9 = vcmp.gt.f32.partialorder %v374_v21, 0.0 }
 0x155   :  { %1470 = vst.msk [vmem:[#allocation3 + $0x48] sm:$0xff] %vm1460_vm14, %v1431_v37  ;;  %1469 = vst.msk [vmem:[#allocation3 + $0x40] sm:$0xff] %vm1460_vm14, %v1429_v39  ;;  %v375_v37 = vadd.f32 %v5372_v58, %v304_v55 }
 0x156   :  { %1996 = vrot.lane.b32.xlu0 %v2345_v33, %s4413_s28  ;;  %1870 = vrot.lane.b32.xlu1 %v2602_v25, %s4412_s7  ;;  %630 = vst.msk [vmem:[#allocation2 + $0x2e9] sm:$0xff] %vm20_vm0, %v564_v19  ;;  %v1743_v33 = vld [vmem:[#allocation2 + $0x210] sm:$0xff]  ;;  %v566_v39 = vsel %vm438_vm9, %v374_v21, %v502_v4  ;;  %v4237_v21 = vunpack.c.l.bf16 %v4269_v29 }
 0x157   :  { %v1771_v34 = vpack.c.bf16 %v1744_v32, %v1743_v33  ;;  %v503_v6 = vmul.f32 0.01, %v375_v37  ;;  %vm439_vm12 = vcmp.gt.f32.partialorder %v375_v37, 0.0  ;;  %632 = vst.msk [vmem:[#allocation2 + $0x301] sm:$0xff] %vm20_vm0, %v566_v39 }
 0x158   :  { %v1560_v18 = vpop.permute.xlu0 %1559  ;;  %v1558_v10 = vpop.permute.xlu1 %1557  ;;  %v307_v4 = vmul.f32 %v5361_v15, %v4237_v21 }
 0x159   :  { %1599 = vst.msk [vmem:[#allocation3 + $0x48] sm:$0xff] %vm1589_vm1, %v1560_v18  ;;  %1598 = vst.msk [vmem:[#allocation3 + $0x40] sm:$0xff] %vm1589_vm1, %v1558_v10  ;;  %v567_v18 = vsel %vm439_vm12, %v375_v37, %v503_v6  ;;  %v4268_v10 = vld [vmem:[%s6173_s0 + $0xf0] sm:$0xff]   ;;  %v4238_v37 = vunpack.c.h.bf16 %v4269_v29  ;;  %vm3871_vm12 = vcmask 60416  }
 0x15a   :  { %2124 = vrot.lane.b32.xlu0 %v2474_v23, %s4414_s29  ;;  %1998 = vrot.lane.b32.xlu1 %v5355_v51, %s4413_s28  ;;  %1788 = vst.msk [vmem:[#allocation3 + $0xa0] sm:$0xff] %vm20_vm0, %v1771_v34  ;;  %633 = vst.msk [vmem:[#allocation2 + $0x309] sm:$0xff] %vm20_vm0, %v567_v18  ;;  %v4233_v35 = vunpack.c.l.bf16 %v4268_v10  ;;  %v4234_v16 = vunpack.c.h.bf16 %v4268_v10  ;;  %v378_v18 = vadd.f32 %v5372_v58, %v307_v4 }
 0x15b   :  { %v308_v6 = vmul.f32 %v5361_v15, %v4238_v37  ;;  %v2202_v37 = vld [vmem:[#allocation2 + $0x2a1] sm:$0xff] }
 0x15c   :  { %v1689_v27 = vpop.permute.xlu0 %1688  ;;  %v1687_v63 = vpop.permute.xlu1 %1686  ;;  %v305_v50 = vmul.f32 %v5361_v15, %v4233_v35  ;;  %v306_v30 = vmul.f32 %v5361_v15, %v4234_v16  ;;  %vm442_vm8 = vcmp.gt.f32.partialorder %v378_v18, 0.0  ;;  %v2070_v35 = vld [vmem:[#allocation2 + $0x270] sm:$0xff]  ;;  %v2071_v16 = vld [vmem:[#allocation2 + $0x278] sm:$0xff] }
 0x15d   :  { %1728 = vst.msk [vmem:[#allocation3 + $0x48] sm:$0xff] %vm1718_vm3, %v1689_v27  ;;  %1727 = vst.msk [vmem:[#allocation3 + $0x40] sm:$0xff] %vm1718_vm3, %v1687_v63  ;;  %v2195_v63 = vld [vmem:[#allocation2 + $0x249] sm:$0xff] }
 0x15e   :  { %2252 = vrot.lane.b32.xlu0 %v2602_v25, %s4415_s10  ;;  %2126 = vrot.lane.b32.xlu1 %v2091_v1, %s4414_s29  ;;  %v376_v43 = vadd.f32 %v5372_v58, %v305_v50  ;;  %v5466_v5 = vpack.c.bf16 %v2195_v63, %v2194_v38  ;;  %v2095_v50 = vpack.c.bf16 %v2071_v16, %v2070_v35  ;;  %v2199_v38 = vld [vmem:[#allocation2 + $0x279] sm:$0xff] }
 0x160   :  { %v1174_v8 = vpop.permute.xlu0 %1173  ;;  %v1047_v42 = vpop.permute.xlu1 %1046  ;;  %v504_v19 = vmul.f32 0.01, %v376_v43  ;;  %vm440_vm13 = vcmp.gt.f32.partialorder %v376_v43, 0.0 }
 0x161   :  { %1212 = vst.msk [vmem:[#allocation3 + $0x50] sm:$0xff] %vm1201_vm10, %v1174_v8 }
 0x162   :  { %2380 = vrot.lane.b32.xlu0 %v5355_v51, %s4416_s15  ;;  %1084 = vst.msk [vmem:[#allocation3 + $0x58] sm:$0xff] %vm1072_vm7, %v1047_v42  ;;  %2254 = vrot.lane.b32.xlu1 %v5404_v49, %s4415_s10  ;;  %v2704_v51 = vld [vmem:[#allocation2 + $0x232] sm:$0xff]  ;;  %v2322_v42 = vld [vmem:[#allocation2 + $0x242] sm:$0xff]  ;;  %v568_v32 = vsel %vm440_vm13, %v376_v43, %v504_v19 }
 0x163   :  { %v2732_v22 = vpack.c.bf16 %v2704_v51, %v2703_v46  ;;  %634 = vst.msk [vmem:[#allocation2 + $0x319] sm:$0xff] %vm20_vm0, %v568_v32  ;;  %v2707_v46 = vld [vmem:[#allocation2 + $0x25a] sm:$0xff]  ;;  %v1774_v51 = vpack.c.bf16 %v1750_v44, %v1749_v60  ;;  %v2326_v43 = vld [vmem:[#allocation2 + $0x272] sm:$0xff] }
 0x164   :  { %v1303_v45 = vpop.permute.xlu0 %1302  ;;  %v2834_v36 = vld [vmem:[#allocation3 + $0x48] sm:$0xff]  ;;  %v1176_v31 = vpop.permute.xlu1 %1175  ;;  %v2833_v23 = vld [vmem:[#allocation3 + $0x40] sm:$0xff]  ;;  %v2712_v60 = vld [vmem:[#allocation2 + $0x292] sm:$0xff] }
 0x165   :  { %1341 = vst.msk [vmem:[#allocation3 + $0x50] sm:$0xff] %vm1330_vm11, %v1303_v45  ;;  %4333 = vmatprep.mubr.msk.bf16.mxu0 %vm2893_vm4, %v2833_v23  ;;  %v2323_v45 = vld [vmem:[#allocation2 + $0x24a] sm:$0xff]  ;;  %v2452_v23 = vld [vmem:[#allocation2 + $0x260] sm:$0xff] }
 0x166   :  { %2509 = vrot.lane.b32.xlu0 %v2091_v1, %s4417_s18  ;;  %1213 = vst.msk [vmem:[#allocation3 + $0x58] sm:$0xff] %vm1201_vm10, %v1176_v31  ;;  %2382 = vrot.lane.b32.xlu1 %v2347_v26, %s4416_s15  ;;  %v2451_v31 = vld [vmem:[#allocation2 + $0x258] sm:$0xff] }
 0x167   :  { %4334 = vmatmul.mubr.msk.bf16.gmra.mrb[16].mxu0 %vm2893_vm4, %v2834_v36  ;;  %v2349_v36 = vpack.c.bf16 %v2323_v45, %v2322_v42  ;;  %1791 = vst.msk [vmem:[#allocation3 + $0xb8] sm:$0xff] %vm20_vm0, %v1774_v51  ;;  %v1752_v42 = vld [vmem:[#allocation2 + $0x278] sm:$0xff]  ;;  %v2455_v45 = vld [vmem:[#allocation2 + $0x288] sm:$0xff] }
 0x168   :  { %v1433_v57 = vpop.permute.xlu0 %1432  ;;  %v1305_v25 = vpop.permute.xlu1 %1304 }
 0x169   :  { %1471 = vst.msk [vmem:[#allocation3 + $0x50] sm:$0xff] %vm1460_vm14, %v1433_v57  ;;  %v1773_v57 = vpack.c.bf16 %v1748_v24, %v1747_v11  ;;  %v1753_v24 = vld [vmem:[#allocation2 + $0x288] sm:$0xff] }
 0x16a   :  { %2637 = vrot.lane.b32.xlu0 %v5404_v49, %s4418_s21  ;;  %1342 = vst.msk [vmem:[#allocation3 + $0x58] sm:$0xff] %vm1330_vm11, %v1305_v25  ;;  %2511 = vrot.lane.b32.xlu1 %v2476_v3, %s4417_s18  ;;  %v2580_v25 = vld [vmem:[#allocation2 + $0x261] sm:$0xff]  ;;  %v2467_v48 = vld [vmem:[#allocation2 + $0x318] sm:$0xff] }
 0x16b   :  { %1790 = vst.msk [vmem:[#allocation3 + $0xb0] sm:$0xff] %vm20_vm0, %v1773_v57  ;;  %v2584_v57 = vld [vmem:[#allocation2 + $0x291] sm:$0xff] }
 0x16c   :  { %v1562_v52 = vpop.permute.xlu0 %1561  ;;  %v1435_v56 = vpop.permute.xlu1 %1434 }
 0x16d   :  { %1600 = vst.msk [vmem:[#allocation3 + $0x50] sm:$0xff] %vm1589_vm1, %v1562_v52 }
 0x16e   :  { %2765 = vrot.lane.b32.xlu0 %v2347_v26, %s4419_s3  ;;  %1472 = vst.msk [vmem:[#allocation3 + $0x58] sm:$0xff] %vm1460_vm14, %v1435_v56  ;;  %2639 = vrot.lane.b32.xlu1 %v2604_v0, %s4418_s21  ;;  %v2606_v56 = vpack.c.bf16 %v2580_v25, %v2579_v20 }
 0x170   :  { %v1691_v59 = vpop.permute.xlu0 %1690  ;;  %v1564_v47 = vpop.permute.xlu1 %1563 }
 0x171   :  { %1729 = vst.msk [vmem:[#allocation3 + $0x50] sm:$0xff] %vm1718_vm3, %v1691_v59 }
 0x172   :  { %2767 = vrot.lane.b32.xlu0 %v2732_v22, %s4419_s3  ;;  %1601 = vst.msk [vmem:[#allocation3 + $0x58] sm:$0xff] %vm1589_vm1, %v1564_v47  ;;  %1872 = vrot.lane.b32.xlu1 %v5404_v49, %s4412_s7  ;;  %v377_v49 = vadd.f32 %v5372_v58, %v306_v30  ;;  %v2198_v30 = vld [vmem:[#allocation2 + $0x271] sm:$0xff] }
 0x174   :  { %v1049_v61 = vpop.permute.xlu0 %1048  ;;  %v1693_v9 = vpop.permute.xlu1 %1692  ;;  %v505_v14 = vmul.f32 0.01, %v377_v49  ;;  %vm441_vm6 = vcmp.gt.f32.partialorder %v377_v49, 0.0 }
 0x175   :  { %1085 = vst.msk [vmem:[#allocation3 + $0x60] sm:$0xff] %vm1072_vm7, %v1049_v61 }
 0x176   :  { %2000 = vrot.lane.b32.xlu0 %v2347_v26, %s4413_s28  ;;  %1730 = vst.msk [vmem:[#allocation3 + $0x58] sm:$0xff] %vm1718_vm3, %v1693_v9  ;;  %1874 = vrot.lane.b32.xlu1 %v2604_v0, %s4412_s7  ;;  %v569_v26 = vsel %vm441_vm6, %v377_v49, %v505_v14  ;;  %v379_v9 = vadd.f32 %v5372_v58, %v308_v6  ;;  %v2327_v49 = vld [vmem:[#allocation2 + $0x27a] sm:$0xff]  ;;  %v1751_v14 = vld [vmem:[#allocation2 + $0x270] sm:$0xff] }
 0x177   :  { %635 = vst.msk [vmem:[#allocation2 + $0x321] sm:$0xff] %vm20_vm0, %v569_v26  ;;  %v2351_v19 = vpack.c.bf16 %v2327_v49, %v2326_v43  ;;  %v1775_v32 = vpack.c.bf16 %v1752_v42, %v1751_v14  ;;  %v2716_v43 = vld [vmem:[#allocation2 + $0x2c2] sm:$0xff] }
 0x178   :  { %v1178_v12 = vpop.permute.xlu0 %1177  ;;  %v2835_v13 = vld [vmem:[#allocation3 + $0x50] sm:$0xff]  ;;  %v1051_v27 = vpop.permute.xlu1 %1050  ;;  %v507_v53 = vmul.f32 0.01, %v379_v9  ;;  %vm443_vm9 = vcmp.gt.f32.partialorder %v379_v9, 0.0 }
 0x179   :  { %1214 = vst.msk [vmem:[#allocation3 + $0x60] sm:$0xff] %vm1201_vm10, %v1178_v12  ;;  %4337 = vmatprep.mubr.msk.bf16.mxu0 %vm2893_vm4, %v2835_v13  ;;  %v506_v13 = vmul.f32 0.01, %v378_v18 }
 0x17a   :  { %2128 = vrot.lane.b32.xlu0 %v2476_v3, %s4414_s29  ;;  %1086 = vst.msk [vmem:[#allocation3 + $0x68] sm:$0xff] %vm1072_vm7, %v1051_v27  ;;  %2002 = vrot.lane.b32.xlu1 %v2732_v22, %s4413_s28  ;;  %v2478_v3 = vpack.c.bf16 %v2452_v23, %v2451_v31  ;;  %v571_v27 = vsel %vm443_vm9, %v379_v9, %v507_v53  ;;  %v1754_v31 = vld [vmem:[#allocation2 + $0x290] sm:$0xff]  ;;  %v1755_v53 = vld [vmem:[#allocation2 + $0x2a0] sm:$0xff] }
 0x17b   :  { %v570_v10 = vsel %vm442_vm8, %v378_v18, %v506_v13  ;;  %637 = vst.msk [vmem:[#allocation2 + $0x339] sm:$0xff] %vm20_vm0, %v571_v27  ;;  %1792 = vst.msk [vmem:[#allocation3 + $0xc0] sm:$0xff] %vm20_vm0, %v1775_v32  ;;  %v2583_v23 = vld [vmem:[#allocation2 + $0x289] sm:$0xff] }
 0x17c   :  { %v1307_v1 = vpop.permute.xlu0 %1306  ;;  %v1180_v8 = vpop.permute.xlu1 %1179  ;;  %636 = vst.msk [vmem:[#allocation2 + $0x331] sm:$0xff] %vm20_vm0, %v570_v10  ;;  %v2608_v20 = vpack.c.bf16 %v2584_v57, %v2583_v23  ;;  %v2331_v18 = vld [vmem:[#allocation2 + $0x2aa] sm:$0xff]  ;;  %v2460_v10 = vld [vmem:[#allocation2 + $0x2c0] sm:$0xff] }
 0x17d   :  { %1343 = vst.msk [vmem:[#allocation3 + $0x60] sm:$0xff] %vm1330_vm11, %v1307_v1  ;;  %v2836_v17 = vld [vmem:[#allocation3 + $0x58] sm:$0xff] }
 0x17e   :  { %2256 = vrot.lane.b32.xlu0 %v2604_v0, %s4415_s10  ;;  %1215 = vst.msk [vmem:[#allocation3 + $0x68] sm:$0xff] %vm1201_vm10, %v1180_v8  ;;  %4338 = vmatmul.mubr.msk.bf16.gmra.mrb[20].mxu0 %vm2893_vm4, %v2836_v17  ;;  %v2708_v0 = vld [vmem:[#allocation2 + $0x262] sm:$0xff]  ;;  %v2223_v17 = vpack.c.bf16 %v2199_v38, %v2198_v30  ;;  %v2587_v38 = vld [vmem:[#allocation2 + $0x2b9] sm:$0xff]  ;;  %v2206_v23 = vld [vmem:[#allocation2 + $0x2d1] sm:$0xff] }
 0x17f   :  { %2130 = vrot.lane.b32.xlu1 %v2093_v62, %s4414_s29  ;;  %v2734_v59 = vpack.c.bf16 %v2708_v0, %v2707_v46  ;;  %v2207_v57 = vld [vmem:[#allocation2 + $0x2d9] sm:$0xff] }
 0x180   :  { %v1437_v28 = vpop.permute.xlu0 %1436  ;;  %v1309_v33 = vpop.permute.xlu1 %1308 }
 0x181   :  { %1473 = vst.msk [vmem:[#allocation3 + $0x60] sm:$0xff] %vm1460_vm14, %v1437_v28 }
 0x182   :  { %2384 = vrot.lane.b32.xlu0 %v2732_v22, %s4416_s15  ;;  %1344 = vst.msk [vmem:[#allocation3 + $0x68] sm:$0xff] %vm1330_vm11, %v1309_v33  ;;  %v2468_v22 = vld [vmem:[#allocation2 + $0x320] sm:$0xff]  ;;  %v2456_v33 = vld [vmem:[#allocation2 + $0x290] sm:$0xff] }
 0x183   :  { %2258 = vrot.lane.b32.xlu1 %v5466_v5, %s4415_s10  ;;  %v5484_v54 = vpack.c.bf16 %v2468_v22, %v2467_v48  ;;  %v2480_v11 = vpack.c.bf16 %v2456_v33, %v2455_v45 }
 0x184   :  { %v1566_v34 = vpop.permute.xlu0 %1565  ;;  %v1439_v7 = vpop.permute.xlu1 %1438 }
 0x185   :  { %1602 = vst.msk [vmem:[#allocation3 + $0x60] sm:$0xff] %vm1589_vm1, %v1566_v34 }
 0x186   :  { %2513 = vrot.lane.b32.xlu0 %v2093_v62, %s4417_s18  ;;  %1474 = vst.msk [vmem:[#allocation3 + $0x68] sm:$0xff] %vm1460_vm14, %v1439_v7  ;;  %v1776_v7 = vpack.c.bf16 %v1754_v31, %v1753_v24 }
 0x187   :  { %2386 = vrot.lane.b32.xlu1 %v2349_v36, %s4416_s15  ;;  %1799 = vst.msk [vmem:[#allocation3 + $0xf8] sm:$0xff] %vm20_vm0, %v5484_v54 }
 0x188   :  { %v1695_v41 = vpop.permute.xlu0 %1694  ;;  %v1568_v52 = vpop.permute.xlu1 %1567  ;;  %1793 = vst.msk [vmem:[#allocation3 + $0xc8] sm:$0xff] %vm20_vm0, %v1776_v7 }
 0x189   :  { %1731 = vst.msk [vmem:[#allocation3 + $0x60] sm:$0xff] %vm1718_vm3, %v1695_v41 }
 0x18a   :  { %2641 = vrot.lane.b32.xlu0 %v5466_v5, %s4418_s21  ;;  %1603 = vst.msk [vmem:[#allocation3 + $0x68] sm:$0xff] %vm1589_vm1, %v1568_v52 }
 0x18b   :  { %2515 = vrot.lane.b32.xlu1 %v2478_v3, %s4417_s18 }
 0x18c   :  { %v1053_v40 = vpop.permute.xlu0 %1052  ;;  %v1697_v55 = vpop.permute.xlu1 %1696 }
 0x18d   :  { %1087 = vst.msk [vmem:[#allocation3 + $0x70] sm:$0xff] %vm1072_vm7, %v1053_v40 }
 0x18e   :  { %2769 = vrot.lane.b32.xlu0 %v2349_v36, %s4419_s3  ;;  %1732 = vst.msk [vmem:[#allocation3 + $0x68] sm:$0xff] %vm1718_vm3, %v1697_v55 }
 0x18f   :  { %2643 = vrot.lane.b32.xlu1 %v2606_v56, %s4418_s21 }
 0x190   :  { %v1182_v47 = vpop.permute.xlu0 %1181  ;;  %v2837_v61 = vld [vmem:[#allocation3 + $0x60] sm:$0xff]  ;;  %v1055_v39 = vpop.permute.xlu1 %1054 }
 0x191   :  { %1216 = vst.msk [vmem:[#allocation3 + $0x70] sm:$0xff] %vm1201_vm10, %v1182_v47  ;;  %4341 = vmatprep.mubr.msk.bf16.mxu0 %vm2893_vm4, %v2837_v61  ;;  %v2203_v47 = vld [vmem:[#allocation2 + $0x2a9] sm:$0xff] }
 0x192   :  { %2771 = vrot.lane.b32.xlu0 %v2734_v59, %s4419_s3  ;;  %1088 = vst.msk [vmem:[#allocation3 + $0x78] sm:$0xff] %vm1072_vm7, %v1055_v39  ;;  %v2225_v6 = vpack.c.bf16 %v2203_v47, %v2202_v37  ;;  %v2330_v39 = vld [vmem:[#allocation2 + $0x2a2] sm:$0xff] }
 0x193   :  { %1876 = vrot.lane.b32.xlu1 %v5466_v5, %s4412_s7  ;;  %v2353_v13 = vpack.c.bf16 %v2331_v18, %v2330_v39  ;;  %v2591_v47 = vld [vmem:[#allocation2 + $0x2e9] sm:$0xff]  ;;  %v2720_v39 = vld [vmem:[#allocation2 + $0x2f2] sm:$0xff] }
 0x194   :  { %v1311_v12 = vpop.permute.xlu0 %1310  ;;  %v1184_v15 = vpop.permute.xlu1 %1183 }
 0x195   :  { %1345 = vst.msk [vmem:[#allocation3 + $0x70] sm:$0xff] %vm1330_vm11, %v1311_v12  ;;  %v2838_v2 = vld [vmem:[#allocation3 + $0x68] sm:$0xff] }
 0x196   :  { %2004 = vrot.lane.b32.xlu0 %v2349_v36, %s4413_s28  ;;  %1217 = vst.msk [vmem:[#allocation3 + $0x78] sm:$0xff] %vm1201_vm10, %v1184_v15  ;;  %4342 = vmatmul.mubr.msk.bf16.gmra.mrb[24].mxu0 %vm2893_vm4, %v2838_v2  ;;  %v1756_v15 = vld [vmem:[#allocation2 + $0x2a8] sm:$0xff]  ;;  %v2459_v2 = vld [vmem:[#allocation2 + $0x2b8] sm:$0xff] }
 0x197   :  { %1878 = vrot.lane.b32.xlu1 %v2606_v56, %s4412_s7  ;;  %v1777_v27 = vpack.c.bf16 %v1756_v15, %v1755_v53 }
 0x198   :  { %v1441_v58 = vpop.permute.xlu0 %1440  ;;  %v1313_v1 = vpop.permute.xlu1 %1312 }
 0x199   :  { %1475 = vst.msk [vmem:[#allocation3 + $0x70] sm:$0xff] %vm1460_vm14, %v1441_v58 }
 0x19a   :  { %2132 = vrot.lane.b32.xlu0 %v2478_v3, %s4414_s29  ;;  %1346 = vst.msk [vmem:[#allocation3 + $0x78] sm:$0xff] %vm1330_vm11, %v1313_v1  ;;  %v2711_v3 = vld [vmem:[#allocation2 + $0x28a] sm:$0xff]  ;;  %v1757_v1 = vld [vmem:[#allocation2 + $0x2b8] sm:$0xff] }
 0x19b   :  { %2006 = vrot.lane.b32.xlu1 %v2734_v59, %s4413_s28  ;;  %v2736_v25 = vpack.c.bf16 %v2712_v60, %v2711_v3  ;;  %1794 = vst.msk [vmem:[#allocation3 + $0xd0] sm:$0xff] %vm20_vm0, %v1777_v27  ;;  %v5594_v3 = vpack.c.bf16 %v2207_v57, %v2206_v23  ;;  %v2334_v60 = vld [vmem:[#allocation2 + $0x2d2] sm:$0xff]  ;;  %v2082_v23 = vld [vmem:[#allocation2 + $0x300] sm:$0xff]  ;;  %v2083_v57 = vld [vmem:[#allocation2 + $0x308] sm:$0xff] }
 0x19c   :  { %v1570_v62 = vpop.permute.xlu0 %1569  ;;  %v1443_v63 = vpop.permute.xlu1 %1442 }
 0x19d   :  { %1604 = vst.msk [vmem:[#allocation3 + $0x70] sm:$0xff] %vm1589_vm1, %v1570_v62  ;;  %v1758_v62 = vld [vmem:[#allocation2 + $0x2c0] sm:$0xff] }
 0x19e   :  { %2260 = vrot.lane.b32.xlu0 %v2606_v56, %s4415_s10  ;;  %1476 = vst.msk [vmem:[#allocation3 + $0x78] sm:$0xff] %vm1460_vm14, %v1443_v63  ;;  %v2074_v56 = vld [vmem:[#allocation2 + $0x2a0] sm:$0xff]  ;;  %v1778_v30 = vpack.c.bf16 %v1758_v62, %v1757_v1 }
 0x19f   :  { %2134 = vrot.lane.b32.xlu1 %v2095_v50, %s4414_s29  ;;  %v2588_v63 = vld [vmem:[#allocation2 + $0x2c1] sm:$0xff] }
 0x1a0   :  { %v1699_v8 = vpop.permute.xlu0 %1698  ;;  %v1572_v28 = vpop.permute.xlu1 %1571  ;;  %1795 = vst.msk [vmem:[#allocation3 + $0xd8] sm:$0xff] %vm20_vm0, %v1778_v30 }
 0x1a1   :  { %1733 = vst.msk [vmem:[#allocation3 + $0x70] sm:$0xff] %vm1718_vm3, %v1699_v8 }
 0x1a2   :  { %2388 = vrot.lane.b32.xlu0 %v2734_v59, %s4416_s15  ;;  %1605 = vst.msk [vmem:[#allocation3 + $0x78] sm:$0xff] %vm1589_vm1, %v1572_v28  ;;  %v2075_v59 = vld [vmem:[#allocation2 + $0x2a8] sm:$0xff] }
 0x1a3   :  { %2262 = vrot.lane.b32.xlu1 %v2223_v17, %s4415_s10  ;;  %v2097_v21 = vpack.c.bf16 %v2075_v59, %v2074_v56 }
 0x1a4   :  { %v1865_v5 = vpop.permute.xlu0 %1864  ;;  %v1701_v26 = vpop.permute.xlu1 %1700 }
 0x1a5   :  { %1912 = vst.msk [vmem:[#allocation3 + $0x80] sm:$0xff] %vm814_vm5, %v1865_v5  ;;  %v2610_v5 = vpack.c.bf16 %v2588_v63, %v2587_v38 }
 0x1a6   :  { %2517 = vrot.lane.b32.xlu0 %v2095_v50, %s4417_s18  ;;  %1734 = vst.msk [vmem:[#allocation3 + $0x78] sm:$0xff] %vm1718_vm3, %v1701_v26  ;;  %v2482_v50 = vpack.c.bf16 %v2460_v10, %v2459_v2 }
 0x1a7   :  { %2390 = vrot.lane.b32.xlu1 %v2351_v19, %s4416_s15 }
 0x1a8   :  { %v1993_v34 = vpop.permute.xlu0 %1992  ;;  %v2839_v36 = vld [vmem:[#allocation3 + $0x70] sm:$0xff]  ;;  %v1867_v41 = vpop.permute.xlu1 %1866 }
 0x1a9   :  { %2040 = vst.msk [vmem:[#allocation3 + $0x80] sm:$0xff] %vm943_vm15, %v1993_v34  ;;  %4345 = vmatprep.mubr.msk.bf16.mxu0 %vm2893_vm4, %v2839_v36  ;;  %v2078_v34 = vld [vmem:[#allocation2 + $0x2d0] sm:$0xff]  ;;  %v2079_v36 = vld [vmem:[#allocation2 + $0x2d8] sm:$0xff] }
 0x1aa   :  { %2645 = vrot.lane.b32.xlu0 %v2223_v17, %s4418_s21  ;;  %1913 = vst.msk [vmem:[#allocation3 + $0x88] sm:$0xff] %vm814_vm5, %v1867_v41  ;;  %v2099_v31 = vpack.c.bf16 %v2079_v36, %v2078_v34 }
 0x1ab   :  { %2519 = vrot.lane.b32.xlu1 %v2480_v11, %s4417_s18 }
 0x1ac   :  { %v2121_v44 = vpop.permute.xlu0 %2120  ;;  %v1995_v46 = vpop.permute.xlu1 %1994 }
 0x1ad   :  { %2168 = vst.msk [vmem:[#allocation3 + $0x80] sm:$0xff] %vm1072_vm7, %v2121_v44  ;;  %v2840_v51 = vld [vmem:[#allocation3 + $0x78] sm:$0xff] }
 0x1ae   :  { %2773 = vrot.lane.b32.xlu0 %v2351_v19, %s4419_s3  ;;  %2041 = vst.msk [vmem:[#allocation3 + $0x88] sm:$0xff] %vm943_vm15, %v1995_v46  ;;  %4346 = vmatmul.mubr.msk.bf16.gmra.mrb[28].mxu0 %vm2893_vm4, %v2840_v51  ;;  %v2335_v44 = vld [vmem:[#allocation2 + $0x2da] sm:$0xff]  ;;  %v1759_v46 = vld [vmem:[#allocation2 + $0x2d0] sm:$0xff] }
 0x1af   :  { %2647 = vrot.lane.b32.xlu1 %v2608_v20, %s4418_s21  ;;  %v1760_v51 = vld [vmem:[#allocation2 + $0x2d8] sm:$0xff] }
 0x1b0   :  { %v2249_v52 = vpop.permute.xlu0 %2248  ;;  %v2123_v0 = vpop.permute.xlu1 %2122 }
 0x1b1   :  { %2296 = vst.msk [vmem:[#allocation3 + $0x80] sm:$0xff] %vm1201_vm10, %v2249_v52  ;;  %v5601_v52 = vpack.c.bf16 %v2335_v44, %v2334_v60  ;;  %v2210_v60 = vld [vmem:[#allocation2 + $0x301] sm:$0xff]  ;;  %v2211_v44 = vld [vmem:[#allocation2 + $0x309] sm:$0xff] }
 0x1b2   :  { %2775 = vrot.lane.b32.xlu0 %v2736_v25, %s4419_s3  ;;  %2169 = vst.msk [vmem:[#allocation3 + $0x88] sm:$0xff] %vm1072_vm7, %v2123_v0  ;;  %v1779_v0 = vpack.c.bf16 %v1760_v51, %v1759_v46 }
 0x1b3   :  { %1880 = vrot.lane.b32.xlu1 %v2223_v17, %s4412_s7  ;;  %v2715_v17 = vld [vmem:[#allocation2 + $0x2ba] sm:$0xff] }
 0x1b4   :  { %v2377_v48 = vpop.permute.xlu0 %2376  ;;  %v2251_v22 = vpop.permute.xlu1 %2250  ;;  %1796 = vst.msk [vmem:[#allocation3 + $0xe0] sm:$0xff] %vm20_vm0, %v1779_v0  ;;  %v5672_v0 = vpack.c.bf16 %v2211_v44, %v2210_v60 }
 0x1b5   :  { %2424 = vst.msk [vmem:[#allocation3 + $0x80] sm:$0xff] %vm1330_vm11, %v2377_v48  ;;  %v2463_v48 = vld [vmem:[#allocation2 + $0x2e8] sm:$0xff] }
 0x1b6   :  { %2008 = vrot.lane.b32.xlu0 %v2351_v19, %s4413_s28  ;;  %2297 = vst.msk [vmem:[#allocation3 + $0x88] sm:$0xff] %vm1201_vm10, %v2251_v22  ;;  %v2738_v19 = vpack.c.bf16 %v2716_v43, %v2715_v17  ;;  %v2464_v22 = vld [vmem:[#allocation2 + $0x2f0] sm:$0xff] }
 0x1b7   :  { %1882 = vrot.lane.b32.xlu1 %v2608_v20, %s4412_s7 }
 0x1b8   :  { %v2506_v40 = vpop.permute.xlu0 %2505  ;;  %v2379_v29 = vpop.permute.xlu1 %2378 }
 0x1b9   :  { %2553 = vst.msk [vmem:[#allocation3 + $0x80] sm:$0xff] %vm1460_vm14, %v2506_v40 }
 0x1ba   :  { %2136 = vrot.lane.b32.xlu0 %v2480_v11, %s4414_s29  ;;  %2425 = vst.msk [vmem:[#allocation3 + $0x88] sm:$0xff] %vm1330_vm11, %v2379_v29  ;;  %v1761_v29 = vld [vmem:[#allocation2 + $0x2e8] sm:$0xff] }
 0x1bb   :  { %2010 = vrot.lane.b32.xlu1 %v2736_v25, %s4413_s28 }
 0x1bc   :  { %v2634_v55 = vpop.permute.xlu0 %2633  ;;  %v2508_v61 = vpop.permute.xlu1 %2507 }
 0x1bd   :  { %2681 = vst.msk [vmem:[#allocation3 + $0x80] sm:$0xff] %vm1589_vm1, %v2634_v55  ;;  %v1762_v55 = vld [vmem:[#allocation2 + $0x2f0] sm:$0xff] }
 0x1be   :  { %2264 = vrot.lane.b32.xlu0 %v2608_v20, %s4415_s10  ;;  %2554 = vst.msk [vmem:[#allocation3 + $0x88] sm:$0xff] %vm1460_vm14, %v2508_v61  ;;  %v1780_v37 = vpack.c.bf16 %v1762_v55, %v1761_v29  ;;  %v2592_v61 = vld [vmem:[#allocation2 + $0x2f1] sm:$0xff] }
 0x1bf   :  { %2138 = vrot.lane.b32.xlu1 %v2097_v21, %s4414_s29  ;;  %v2612_v15 = vpack.c.bf16 %v2592_v61, %v2591_v47  ;;  %v2339_v29 = vld [vmem:[#allocation2 + $0x30a] sm:$0xff] }
 0x1c0   :  { %v2762_v4 = vpop.permute.xlu0 %2761  ;;  %v2636_v9 = vpop.permute.xlu1 %2635  ;;  %1797 = vst.msk [vmem:[#allocation3 + $0xe8] sm:$0xff] %vm20_vm0, %v1780_v37 }
 0x1c1   :  { %2809 = vst.msk [vmem:[#allocation3 + $0x80] sm:$0xff] %vm1718_vm3, %v2762_v4 }
 0x1c2   :  { %2392 = vrot.lane.b32.xlu0 %v2736_v25, %s4416_s15  ;;  %2682 = vst.msk [vmem:[#allocation3 + $0x88] sm:$0xff] %vm1589_vm1, %v2636_v9 }
 0x1c3   :  { %2266 = vrot.lane.b32.xlu1 %v2225_v6, %s4415_s10 }
 0x1c4   :  { %v2764_v12 = vpop.permute.xlu0 %2763  ;;  %v1869_v58 = vpop.permute.xlu1 %1868 }
 0x1c5   :  { %2810 = vst.msk [vmem:[#allocation3 + $0x88] sm:$0xff] %vm1718_vm3, %v2764_v12 }
 0x1c6   :  { %2521 = vrot.lane.b32.xlu0 %v2097_v21, %s4417_s18  ;;  %1914 = vst.msk [vmem:[#allocation3 + $0x90] sm:$0xff] %vm814_vm5, %v1869_v58  ;;  %v5609_v21 = vpack.c.bf16 %v2464_v22, %v2463_v48 }
 0x1c7   :  { %2394 = vrot.lane.b32.xlu1 %v2353_v13, %s4416_s15 }
 0x1c8   :  { %v1997_v35 = vpop.permute.xlu0 %1996  ;;  %v2841_v16 = vld [vmem:[#allocation3 + $0x80] sm:$0xff]  ;;  %v1871_v8 = vpop.permute.xlu1 %1870 }
 0x1c9   :  { %2042 = vst.msk [vmem:[#allocation3 + $0x90] sm:$0xff] %vm943_vm15, %v1997_v35  ;;  %4349 = vmatprep.mubr.msk.bf16.mxu1 %vm2893_vm4, %v2841_v16 }
 0x1ca   :  { %2649 = vrot.lane.b32.xlu0 %v2225_v6, %s4418_s21  ;;  %1915 = vst.msk [vmem:[#allocation3 + $0x98] sm:$0xff] %vm814_vm5, %v1871_v8 }
 0x1cb   :  { %2523 = vrot.lane.b32.xlu1 %v2482_v50, %s4417_s18 }
 0x1cc   :  { %v2125_v49 = vpop.permute.xlu0 %2124  ;;  %v2842_v28 = vld [vmem:[#allocation3 + $0x88] sm:$0xff]  ;;  %v1999_v14 = vpop.permute.xlu1 %1998 }
 0x1cd   :  { %2170 = vst.msk [vmem:[#allocation3 + $0x90] sm:$0xff] %vm1072_vm7, %v2125_v49  ;;  %4350 = vmatmul.mubr.msk.bf16.vlgmr.msra.gmra.mrb[0].mxu1 %vm2893_vm4, %v2842_v28 }
 0x1ce   :  { %2777 = vrot.lane.b32.xlu0 %v2353_v13, %s4419_s3  ;;  %2043 = vst.msk [vmem:[#allocation3 + $0x98] sm:$0xff] %vm943_vm15, %v1999_v14 }
 0x1cf   :  { %2651 = vrot.lane.b32.xlu1 %v2610_v5, %s4418_s21 }
 0x1d0   :  { %v2253_v42 = vpop.permute.xlu0 %2252  ;;  %v2127_v45 = vpop.permute.xlu1 %2126 }
 0x1d1   :  { %2298 = vst.msk [vmem:[#allocation3 + $0x90] sm:$0xff] %vm1201_vm10, %v2253_v42 }
 0x1d2   :  { %2779 = vrot.lane.b32.xlu0 %v2738_v19, %s4419_s3  ;;  %2171 = vst.msk [vmem:[#allocation3 + $0x98] sm:$0xff] %vm1072_vm7, %v2127_v45 }
 0x1d3   :  { %1884 = vrot.lane.b32.xlu1 %v2225_v6, %s4412_s7  ;;  %v2719_v6 = vld [vmem:[#allocation2 + $0x2ea] sm:$0xff] }
 0x1d4   :  { %v2381_v33 = vpop.permute.xlu0 %2380  ;;  %v2255_v32 = vpop.permute.xlu1 %2254  ;;  %v5623_v35 = vpack.c.bf16 %v2720_v39, %v2719_v6 }
 0x1d5   :  { %2426 = vst.msk [vmem:[#allocation3 + $0x90] sm:$0xff] %vm1330_vm11, %v2381_v33 }
 0x1d6   :  { %2012 = vrot.lane.b32.xlu0 %v2353_v13, %s4413_s28  ;;  %2299 = vst.msk [vmem:[#allocation3 + $0x98] sm:$0xff] %vm1201_vm10, %v2255_v32 }
 0x1d7   :  { %1886 = vrot.lane.b32.xlu1 %v2610_v5, %s4412_s7 }
 0x1d8   :  { %v2510_v26 = vpop.permute.xlu0 %2509  ;;  %v2383_v11 = vpop.permute.xlu1 %2382 }
 0x1d9   :  { %2555 = vst.msk [vmem:[#allocation3 + $0x90] sm:$0xff] %vm1460_vm14, %v2510_v26 }
 0x1da   :  { %2140 = vrot.lane.b32.xlu0 %v2482_v50, %s4414_s29  ;;  %2427 = vst.msk [vmem:[#allocation3 + $0x98] sm:$0xff] %vm1330_vm11, %v2383_v11 }
 0x1db   :  { %2014 = vrot.lane.b32.xlu1 %v2738_v19, %s4413_s28 }
 0x1dc   :  { %v2638_v24 = vpop.permute.xlu0 %2637  ;;  %v2512_v7 = vpop.permute.xlu1 %2511 }
 0x1dd   :  { %2683 = vst.msk [vmem:[#allocation3 + $0x90] sm:$0xff] %vm1589_vm1, %v2638_v24 }
 0x1de   :  { %2268 = vrot.lane.b32.xlu0 %v2610_v5, %s4415_s10  ;;  %2556 = vst.msk [vmem:[#allocation3 + $0x98] sm:$0xff] %vm1460_vm14, %v2512_v7 }
 0x1df   :  { %2142 = vrot.lane.b32.xlu1 %v2099_v31, %s4414_s29 }
 0x1e0   :  { %v2766_v41 = vpop.permute.xlu0 %2765  ;;  %v2640_v20 = vpop.permute.xlu1 %2639 }
 0x1e1   :  { %2811 = vst.msk [vmem:[#allocation3 + $0x90] sm:$0xff] %vm1718_vm3, %v2766_v41 }
 0x1e2   :  { %2396 = vrot.lane.b32.xlu0 %v2738_v19, %s4416_s15  ;;  %2684 = vst.msk [vmem:[#allocation3 + $0x98] sm:$0xff] %vm1589_vm1, %v2640_v20 }
 0x1e3   :  { %2270 = vrot.lane.b32.xlu1 %v5594_v3, %s4415_s10 }
 0x1e4   :  { %v2768_v25 = vpop.permute.xlu0 %2767  ;;  %v1873_v40 = vpop.permute.xlu1 %1872 }
 0x1e5   :  { %2812 = vst.msk [vmem:[#allocation3 + $0x98] sm:$0xff] %vm1718_vm3, %v2768_v25 }
 0x1e6   :  { %2525 = vrot.lane.b32.xlu0 %v2099_v31, %s4417_s18  ;;  %1916 = vst.msk [vmem:[#allocation3 + $0xa0] sm:$0xff] %vm814_vm5, %v1873_v40 }
 0x1e7   :  { %2398 = vrot.lane.b32.xlu1 %v5601_v52, %s4416_s15 }
 0x1e8   :  { %v2001_v56 = vpop.permute.xlu0 %2000  ;;  %v2843_v59 = vld [vmem:[#allocation3 + $0x90] sm:$0xff]  ;;  %v1875_v4 = vpop.permute.xlu1 %1874 }
 0x1e9   :  { %2044 = vst.msk [vmem:[#allocation3 + $0xa0] sm:$0xff] %vm943_vm15, %v2001_v56  ;;  %4353 = vmatprep.mubr.msk.bf16.mxu1 %vm2893_vm4, %v2843_v59  ;;  %v2338_v59 = vld [vmem:[#allocation2 + $0x302] sm:$0xff] }
 0x1ea   :  { %2653 = vrot.lane.b32.xlu0 %v5594_v3, %s4418_s21  ;;  %1917 = vst.msk [vmem:[#allocation3 + $0xa8] sm:$0xff] %vm814_vm5, %v1875_v4  ;;  %v4319_v18 = vpop.f32.mrb[0].mxu0 }
 0x1eb   :  { %v4049_v13 = vpack.c.bf16 %v4319_v18, %v4319_v18  ;;  %2527 = vrot.lane.b32.xlu1 %v5609_v21, %s4417_s18  ;;  %v3028_v53 = vpop.f32.mrb[1].mxu0  ;;  %v3419_v16 = vmul.f32 %v4319_v18, %v4319_v18  ;;  %v3286_v49 = vsel %vm20_vm0, %v4319_v18, 0.0 }
 0x1ec   :  { %v2129_v9 = vpop.permute.xlu0 %2128  ;;  %v2844_v12 = vld [vmem:[#allocation3 + $0x98] sm:$0xff]  ;;  %v3283_v2 = vsel %vm20_vm0, %v3028_v53, 0.0  ;;  %v3417_v10 = vmul.f32 %v3028_v53, %v3028_v53  ;;  %v4047_v27 = vpack.c.bf16 %v3028_v53, %v3028_v53  ;;  %v4320_v58 = vpop.f32.mrb[2].mxu0  ;;  %v2357_v53 = vpack.c.bf16 %v2339_v29, %v2338_v59 }
 0x1ed   :  { %2172 = vst.msk [vmem:[#allocation3 + $0xa0] sm:$0xff] %vm1072_vm7, %v2129_v9  ;;  %4354 = vmatmul.mubr.msk.bf16.gmra.mrb[4].mxu1 %vm2893_vm4, %v2844_v12  ;;  %v4050_v1 = vpack.c.bf16 %v4320_v58, %v4320_v58  ;;  %v2003_v62 = vpop.permute.xlu1 %2002  ;;  %v3031_v50 = vpop.f32.mrb[3].mxu0  ;;  %v3420_v28 = vmul.f32 %v4320_v58, %v4320_v58  ;;  %v3484_v45 = vsel %vm20_vm0, %v3419_v16, 0.0  ;;  %v3288_v33 = vsel %vm20_vm0, %v4320_v58, 0.0 }
 0x1ee   :  { %2781 = vrot.lane.b32.xlu0 %v5601_v52, %s4419_s3  ;;  %3874 = vst.msk [vmem:[%s6177_s4 + $0x8] sm:$0xf] %vm3871_vm12, %v4049_v13  ;;  %v3481_v30 = vsel %vm20_vm0, %v3417_v10, 0.0  ;;  %3872 = vst.msk [vmem:[%s6177_s4] sm:$0xf] %vm3871_vm12, %v4047_v27  ;;  %v3284_v38 = vsel %vm20_vm0, %v3031_v50, 0.0  ;;  %v3418_v63 = vmul.f32 %v3031_v50, %v3031_v50  ;;  %v4048_v8 = vpack.c.bf16 %v3031_v50, %v3031_v50 }
 0x1ef   :  { %2045 = vst.msk [vmem:[#allocation3 + $0xa8] sm:$0xff] %vm943_vm15, %v2003_v62  ;;  %v3285_v43 = vadd.f32 %v3284_v38, %v3283_v2  ;;  %2655 = vrot.lane.b32.xlu1 %v2612_v15, %s4418_s21  ;;  %v3486_v36 = vsel %vm20_vm0, %v3420_v28, 0.0  ;;  %v1764_v2 = vld [vmem:[#allocation2 + $0x308] sm:$0xff] }
 0x1f0   :  { %v2257_v17 = vpop.permute.xlu0 %2256  ;;  %3875 = vst.msk [vmem:[%s6177_s4 + $0xc] sm:$0xf] %vm3871_vm12, %v4050_v1  ;;  %v3482_v5 = vsel %vm20_vm0, %v3418_v63, 0.0  ;;  %3873 = vst.msk [vmem:[%s6177_s4 + $0x4] sm:$0xf] %vm3871_vm12, %v4048_v8  ;;  %v2596_v28 = vld [vmem:[#allocation2 + $0x321] sm:$0xff] }
 0x1f1   :  { %2300 = vst.msk [vmem:[#allocation3 + $0xa0] sm:$0xff] %vm1201_vm10, %v2257_v17  ;;  %v3287_v19 = vadd.f32 %v3286_v49, %v3285_v43  ;;  %v3483_v14 = vadd.f32 %v3482_v5, %v3481_v30  ;;  %v2131_v42 = vpop.permute.xlu1 %2130  ;;  %v2595_v49 = vld [vmem:[#allocation2 + $0x319] sm:$0xff] }
 0x1f2   :  { %2783 = vrot.lane.b32.xlu0 %v5623_v35, %s4419_s3  ;;  %2173 = vst.msk [vmem:[#allocation3 + $0xa8] sm:$0xff] %vm1072_vm7, %v2131_v42 }
 0x1f3   :  { %v3485_v26 = vadd.f32 %v3484_v45, %v3483_v14  ;;  %1888 = vrot.lane.b32.xlu1 %v5594_v3, %s4412_s7  ;;  %v3289_v34 = vadd.f32 %v3288_v33, %v3287_v19  ;;  %v2101_v3 = vpack.c.bf16 %v2083_v57, %v2082_v23  ;;  %v2723_v19 = vld [vmem:[#allocation2 + $0x31a] sm:$0xff]  ;;  %v2724_v14 = vld [vmem:[#allocation2 + $0x322] sm:$0xff] }
 0x1f4   :  { %v2385_v32 = vpop.permute.xlu0 %2384 }
 0x1f5   :  { %2428 = vst.msk [vmem:[#allocation3 + $0xa0] sm:$0xff] %vm1330_vm11, %v2385_v32  ;;  %v2259_v11 = vpop.permute.xlu1 %2258  ;;  %v3487_v24 = vadd.f32 %v3486_v36, %v3485_v26  ;;  %v2614_v32 = vpack.c.bf16 %v2596_v28, %v2595_v49  ;;  %v5718_v26 = vpack.c.bf16 %v2724_v14, %v2723_v19  ;;  %v2599_v28 = vld [vmem:[#allocation2 + $0x349] sm:$0xff] }
 0x1f6   :  { %2016 = vrot.lane.b32.xlu0 %v5601_v52, %s4413_s28  ;;  %2301 = vst.msk [vmem:[#allocation3 + $0xa8] sm:$0xff] %vm1201_vm10, %v2259_v11 }
 0x1f7   :  { %1890 = vrot.lane.b32.xlu1 %v2612_v15, %s4412_s7 }
 0x1f8   :  { %v2514_v31 = vpop.permute.xlu0 %2513 }
 0x1f9   :  { %2557 = vst.msk [vmem:[#allocation3 + $0xa0] sm:$0xff] %vm1460_vm14, %v2514_v31  ;;  %v2387_v7 = vpop.permute.xlu1 %2386 }
 0x1fa   :  { %2144 = vrot.lane.b32.xlu0 %v5609_v21, %s4414_s29  ;;  %2429 = vst.msk [vmem:[#allocation3 + $0xa8] sm:$0xff] %vm1330_vm11, %v2387_v7 }
 0x1fb   :  { %2018 = vrot.lane.b32.xlu1 %v5623_v35, %s4413_s28 }
 0x1fc   :  { %v2642_v41 = vpop.permute.xlu0 %2641 }
 0x1fd   :  { %2685 = vst.msk [vmem:[#allocation3 + $0xa0] sm:$0xff] %vm1589_vm1, %v2642_v41  ;;  %v2516_v20 = vpop.permute.xlu1 %2515 }
 0x1fe   :  { %2272 = vrot.lane.b32.xlu0 %v2612_v15, %s4415_s10  ;;  %2558 = vst.msk [vmem:[#allocation3 + $0xa8] sm:$0xff] %vm1460_vm14, %v2516_v20  ;;  %v4323_v25 = vpop.f32.mrb[4].mxu0  ;;  %v1763_v15 = vld [vmem:[#allocation2 + $0x300] sm:$0xff] }
 0x1ff   :  { %v4053_v51 = vpack.c.bf16 %v4323_v25, %v4323_v25  ;;  %2146 = vrot.lane.b32.xlu1 %v2101_v3, %s4414_s29  ;;  %v3044_v52 = vpop.f32.mrb[5].mxu0  ;;  %v3423_v55 = vmul.f32 %v4323_v25, %v4323_v25  ;;  %v3294_v10 = vsel %vm20_vm0, %v4323_v25, 0.0 }
 0x200   :  { %v2770_v46 = vpop.permute.xlu0 %2769  ;;  %v3290_v48 = vsel %vm20_vm0, %v3044_v52, 0.0  ;;  %v3421_v22 = vmul.f32 %v3044_v52, %v3044_v52  ;;  %v4051_v40 = vpack.c.bf16 %v3044_v52, %v3044_v52  ;;  %v4324_v56 = vpop.f32.mrb[6].mxu0 }
 0x201   :  { %2813 = vst.msk [vmem:[#allocation3 + $0xa0] sm:$0xff] %vm1718_vm3, %v2770_v46  ;;  %v3291_v21 = vadd.f32 %v3290_v48, %v3289_v34  ;;  %v2644_v37 = vpop.permute.xlu1 %2643  ;;  %v3047_v47 = vpop.f32.mrb[7].mxu0  ;;  %v4054_v4 = vpack.c.bf16 %v4324_v56, %v4324_v56  ;;  %v3424_v27 = vmul.f32 %v4324_v56, %v4324_v56  ;;  %v3492_v50 = vsel %vm20_vm0, %v3423_v55, 0.0 }
 0x202   :  { %2400 = vrot.lane.b32.xlu0 %v5623_v35, %s4416_s15  ;;  %3878 = vst.msk [vmem:[%s6177_s4 + $0x18] sm:$0xf] %vm3871_vm12, %v4053_v51  ;;  %v3488_v61 = vsel %vm20_vm0, %v3421_v22, 0.0  ;;  %3876 = vst.msk [vmem:[%s6177_s4 + $0x10] sm:$0xf] %vm3871_vm12, %v4051_v40  ;;  %v3292_v6 = vsel %vm20_vm0, %v3047_v47, 0.0  ;;  %v3422_v39 = vmul.f32 %v3047_v47, %v3047_v47  ;;  %v4052_v13 = vpack.c.bf16 %v3047_v47, %v3047_v47 }
 0x203   :  { %2686 = vst.msk [vmem:[#allocation3 + $0xa8] sm:$0xff] %vm1589_vm1, %v2644_v37  ;;  %v3489_v9 = vadd.f32 %v3488_v61, %v3487_v24  ;;  %v3293_v12 = vadd.f32 %v3292_v6, %v3291_v21  ;;  %2274 = vrot.lane.b32.xlu1 %v5672_v0, %s4415_s10  ;;  %v1781_v35 = vpack.c.bf16 %v1764_v2, %v1763_v15  ;;  %v3296_v30 = vsel %vm20_vm0, %v4324_v56, 0.0  ;;  %v2086_v37 = vld [vmem:[#allocation2 + $0x330] sm:$0xff]  ;;  %v2087_v47 = vld [vmem:[#allocation2 + $0x338] sm:$0xff] }
 0x204   :  { %v2772_v18 = vpop.permute.xlu0 %2771  ;;  %3879 = vst.msk [vmem:[%s6177_s4 + $0x1c] sm:$0xf] %vm3871_vm12, %v4054_v4  ;;  %v3490_v58 = vsel %vm20_vm0, %v3422_v39, 0.0  ;;  %3877 = vst.msk [vmem:[%s6177_s4 + $0x14] sm:$0xf] %vm3871_vm12, %v4052_v13  ;;  %v3494_v43 = vsel %vm20_vm0, %v3424_v27, 0.0 }
 0x205   :  { %2814 = vst.msk [vmem:[#allocation3 + $0xa8] sm:$0xff] %vm1718_vm3, %v2772_v18  ;;  %v3295_v16 = vadd.f32 %v3294_v10, %v3293_v12  ;;  %v3491_v1 = vadd.f32 %v3490_v58, %v3489_v9  ;;  %v1877_v62 = vpop.permute.xlu1 %1876  ;;  %v2214_v15 = vld [vmem:[#allocation2 + $0x331] sm:$0xff]  ;;  %v2215_v2 = vld [vmem:[#allocation2 + $0x339] sm:$0xff] }
 0x206   :  { %2529 = vrot.lane.b32.xlu0 %v2101_v3, %s4417_s18  ;;  %1918 = vst.msk [vmem:[#allocation3 + $0xb0] sm:$0xff] %vm814_vm5, %v1877_v62 }
 0x207   :  { %1798 = vst.msk [vmem:[#allocation3 + $0xf0] sm:$0xff] %vm20_vm0, %v1781_v35  ;;  %v3493_v8 = vadd.f32 %v3492_v50, %v3491_v1  ;;  %2402 = vrot.lane.b32.xlu1 %v2357_v53, %s4416_s15  ;;  %v3297_v17 = vadd.f32 %v3296_v30, %v3295_v16  ;;  %v2231_v35 = vpack.c.bf16 %v2215_v2, %v2214_v15  ;;  %v2342_v16 = vld [vmem:[#allocation2 + $0x332] sm:$0xff]  ;;  %v2343_v1 = vld [vmem:[#allocation2 + $0x33a] sm:$0xff] }
 0x208   :  { %v2005_v38 = vpop.permute.xlu0 %2004  ;;  %v2845_v63 = vld [vmem:[#allocation3 + $0xa0] sm:$0xff]  ;;  %v2359_v30 = vpack.c.bf16 %v2343_v1, %v2342_v16 }
 0x209   :  { %2046 = vst.msk [vmem:[#allocation3 + $0xb0] sm:$0xff] %vm943_vm15, %v2005_v38  ;;  %4357 = vmatprep.mubr.msk.bf16.mxu1 %vm2893_vm4, %v2845_v63  ;;  %v1879_v5 = vpop.permute.xlu1 %1878  ;;  %v3495_v42 = vadd.f32 %v3494_v43, %v3493_v8  ;;  %v2471_v38 = vld [vmem:[#allocation2 + $0x348] sm:$0xff]  ;;  %v2472_v63 = vld [vmem:[#allocation2 + $0x350] sm:$0xff] }
 0x20a   :  { %2657 = vrot.lane.b32.xlu0 %v5672_v0, %s4418_s21  ;;  %1919 = vst.msk [vmem:[#allocation3 + $0xb8] sm:$0xff] %vm814_vm5, %v1879_v5  ;;  %v2600_v5 = vld [vmem:[#allocation2 + $0x351] sm:$0xff] }
 0x20b   :  { %2531 = vrot.lane.b32.xlu1 %v5484_v54, %s4417_s18 }
 0x20c   :  { %v2133_v45 = vpop.permute.xlu0 %2132  ;;  %v2846_v33 = vld [vmem:[#allocation3 + $0xa8] sm:$0xff] }
 0x20d   :  { %2174 = vst.msk [vmem:[#allocation3 + $0xb0] sm:$0xff] %vm1072_vm7, %v2133_v45  ;;  %4358 = vmatmul.mubr.msk.bf16.gmra.mrb[8].mxu1 %vm2893_vm4, %v2846_v33  ;;  %v2007_v34 = vpop.permute.xlu1 %2006 }
 0x20e   :  { %2785 = vrot.lane.b32.xlu0 %v2357_v53, %s4419_s3  ;;  %2047 = vst.msk [vmem:[#allocation3 + $0xb8] sm:$0xff] %vm943_vm15, %v2007_v34 }
 0x20f   :  { %2659 = vrot.lane.b32.xlu1 %v2614_v32, %s4418_s21 }
 0x210   :  { %v2261_v36 = vpop.permute.xlu0 %2260 }
 0x211   :  { %2302 = vst.msk [vmem:[#allocation3 + $0xb0] sm:$0xff] %vm1201_vm10, %v2261_v36  ;;  %v2135_v11 = vpop.permute.xlu1 %2134 }
 0x212   :  { %2787 = vrot.lane.b32.xlu0 %v5718_v26, %s4419_s3  ;;  %2175 = vst.msk [vmem:[#allocation3 + $0xb8] sm:$0xff] %vm1072_vm7, %v2135_v11  ;;  %v4327_v24 = vpop.f32.mrb[8].mxu0 }
 0x213   :  { %v4057_v23 = vpack.c.bf16 %v4327_v24, %v4327_v24  ;;  %1892 = vrot.lane.b32.xlu1 %v5672_v0, %s4412_s7  ;;  %v3060_v57 = vpop.f32.mrb[9].mxu0  ;;  %v3427_v44 = vmul.f32 %v4327_v24, %v4327_v24  ;;  %v3302_v29 = vsel %vm20_vm0, %v4327_v24, 0.0 }
 0x214   :  { %v2389_v31 = vpop.permute.xlu0 %2388  ;;  %v3298_v7 = vsel %vm20_vm0, %v3060_v57, 0.0  ;;  %v3425_v41 = vmul.f32 %v3060_v57, %v3060_v57  ;;  %v4055_v3 = vpack.c.bf16 %v3060_v57, %v3060_v57  ;;  %v4328_v60 = vpop.f32.mrb[10].mxu0 }
 0x215   :  { %2430 = vst.msk [vmem:[#allocation3 + $0xb0] sm:$0xff] %vm1330_vm11, %v2389_v31  ;;  %v3299_v20 = vadd.f32 %v3298_v7, %v3297_v17  ;;  %v2263_v25 = vpop.permute.xlu1 %2262  ;;  %v3063_v46 = vpop.f32.mrb[11].mxu0  ;;  %v4058_v52 = vpack.c.bf16 %v4328_v60, %v4328_v60  ;;  %v3428_v55 = vmul.f32 %v4328_v60, %v4328_v60  ;;  %v3500_v39 = vsel %vm20_vm0, %v3427_v44, 0.0 }
 0x216   :  { %2020 = vrot.lane.b32.xlu0 %v2357_v53, %s4413_s28  ;;  %3882 = vst.msk [vmem:[%s6177_s4 + $0x28] sm:$0xf] %vm3871_vm12, %v4057_v23  ;;  %v3496_v51 = vsel %vm20_vm0, %v3425_v41, 0.0  ;;  %3880 = vst.msk [vmem:[%s6177_s4 + $0x20] sm:$0xf] %vm3871_vm12, %v4055_v3  ;;  %v3300_v0 = vsel %vm20_vm0, %v3063_v46, 0.0  ;;  %v3426_v48 = vmul.f32 %v3063_v46, %v3063_v46  ;;  %v4056_v59 = vpack.c.bf16 %v3063_v46, %v3063_v46 }
 0x217   :  { %2303 = vst.msk [vmem:[#allocation3 + $0xb8] sm:$0xff] %vm1201_vm10, %v2263_v25  ;;  %v3497_v40 = vadd.f32 %v3496_v51, %v3495_v42  ;;  %v3301_v56 = vadd.f32 %v3300_v0, %v3299_v20  ;;  %1894 = vrot.lane.b32.xlu1 %v2614_v32, %s4412_s7  ;;  %v3304_v18 = vsel %vm20_vm0, %v4328_v60, 0.0  ;;  %v3502_v53 = vsel %vm20_vm0, %v3428_v55, 0.0  ;;  %v2727_v0 = vld [vmem:[#allocation2 + $0x34a] sm:$0xff] }
 0x218   :  { %v2518_v22 = vpop.permute.xlu0 %2517  ;;  %3883 = vst.msk [vmem:[%s6177_s4 + $0x2c] sm:$0xf] %vm3871_vm12, %v4058_v52  ;;  %v3498_v21 = vsel %vm20_vm0, %v3426_v48, 0.0  ;;  %3881 = vst.msk [vmem:[%s6177_s4 + $0x24] sm:$0xf] %vm3871_vm12, %v4056_v59  ;;  %v2488_v42 = vpack.c.bf16 %v2472_v63, %v2471_v38  ;;  %v2616_v31 = vpack.c.bf16 %v2600_v5, %v2599_v28  ;;  %v2728_v48 = vld [vmem:[#allocation2 + $0x352] sm:$0xff] }
 0x219   :  { %2559 = vst.msk [vmem:[#allocation3 + $0xb0] sm:$0xff] %vm1460_vm14, %v2518_v22  ;;  %v3303_v61 = vadd.f32 %v3302_v29, %v3301_v56  ;;  %v3499_v4 = vadd.f32 %v3498_v21, %v3497_v40  ;;  %v2391_v6 = vpop.permute.xlu1 %2390 }
 0x21a   :  { %2148 = vrot.lane.b32.xlu0 %v5484_v54, %s4414_s29  ;;  %2431 = vst.msk [vmem:[#allocation3 + $0xb8] sm:$0xff] %vm1330_vm11, %v2391_v6  ;;  %v2103_v54 = vpack.c.bf16 %v2087_v47, %v2086_v37  ;;  %v2744_v37 = vpack.c.bf16 %v2728_v48, %v2727_v0 }
 0x21b   :  { %v3501_v12 = vadd.f32 %v3500_v39, %v3499_v4  ;;  %2022 = vrot.lane.b32.xlu1 %v5718_v26, %s4413_s28  ;;  %v3305_v13 = vadd.f32 %v3304_v18, %v3303_v61 }
 0x21c   :  { %v2646_v9 = vpop.permute.xlu0 %2645 }
 0x21d   :  { %2687 = vst.msk [vmem:[#allocation3 + $0xb0] sm:$0xff] %vm1589_vm1, %v2646_v9  ;;  %v2520_v10 = vpop.permute.xlu1 %2519  ;;  %v3503_v27 = vadd.f32 %v3502_v53, %v3501_v12 }
 0x21e   :  { %2276 = vrot.lane.b32.xlu0 %v2614_v32, %s4415_s10  ;;  %2560 = vst.msk [vmem:[#allocation3 + $0xb8] sm:$0xff] %vm1460_vm14, %v2520_v10 }
 0x21f   :  { %2150 = vrot.lane.b32.xlu1 %v2103_v54, %s4414_s29 }
 0x220   :  { %v2774_v58 = vpop.permute.xlu0 %2773 }
 0x221   :  { %2815 = vst.msk [vmem:[#allocation3 + $0xb0] sm:$0xff] %vm1718_vm3, %v2774_v58  ;;  %v2648_v62 = vpop.permute.xlu1 %2647 }
 0x222   :  { %2404 = vrot.lane.b32.xlu0 %v5718_v26, %s4416_s15  ;;  %2688 = vst.msk [vmem:[#allocation3 + $0xb8] sm:$0xff] %vm1589_vm1, %v2648_v62 }
 0x223   :  { %2278 = vrot.lane.b32.xlu1 %v2231_v35, %s4415_s10 }
 0x224   :  { %v2776_v50 = vpop.permute.xlu0 %2775 }
 0x225   :  { %2816 = vst.msk [vmem:[#allocation3 + $0xb8] sm:$0xff] %vm1718_vm3, %v2776_v50  ;;  %v1881_v8 = vpop.permute.xlu1 %1880 }
 0x226   :  { %2533 = vrot.lane.b32.xlu0 %v2103_v54, %s4417_s18  ;;  %1920 = vst.msk [vmem:[#allocation3 + $0xc0] sm:$0xff] %vm814_vm5, %v1881_v8  ;;  %v4331_v17 = vpop.f32.mrb[12].mxu0 }
 0x227   :  { %v4061_v19 = vpack.c.bf16 %v4331_v17, %v4331_v17  ;;  %2406 = vrot.lane.b32.xlu1 %v2359_v30, %s4416_s15  ;;  %v3076_v14 = vpop.f32.mrb[13].mxu0  ;;  %v3431_v34 = vmul.f32 %v4331_v17, %v4331_v17  ;;  %v3310_v46 = vsel %vm20_vm0, %v4331_v17, 0.0 }
 0x228   :  { %v2009_v43 = vpop.permute.xlu0 %2008  ;;  %v2847_v49 = vld [vmem:[#allocation3 + $0xb0] sm:$0xff]  ;;  %v3306_v45 = vsel %vm20_vm0, %v3076_v14, 0.0  ;;  %v3429_v33 = vmul.f32 %v3076_v14, %v3076_v14  ;;  %v4059_v32 = vpack.c.bf16 %v3076_v14, %v3076_v14  ;;  %v4332_v26 = vpop.f32.mrb[14].mxu0 }
 0x229   :  { %2048 = vst.msk [vmem:[#allocation3 + $0xc0] sm:$0xff] %vm943_vm15, %v2009_v43  ;;  %4361 = vmatprep.mubr.msk.bf16.mxu1 %vm2893_vm4, %v2847_v49  ;;  %v3307_v36 = vadd.f32 %v3306_v45, %v3305_v13  ;;  %v1883_v11 = vpop.permute.xlu1 %1882  ;;  %v3079_v24 = vpop.f32.mrb[15].mxu0  ;;  %v4062_v57 = vpack.c.bf16 %v4332_v26, %v4332_v26  ;;  %v3432_v51 = vmul.f32 %v4332_v26, %v4332_v26  ;;  %v3508_v59 = vsel %vm20_vm0, %v3431_v34, 0.0 }
 0x22a   :  { %2661 = vrot.lane.b32.xlu0 %v2231_v35, %s4418_s21  ;;  %3886 = vst.msk [vmem:[%s6177_s4 + $0x38] sm:$0xf] %vm3871_vm12, %v4061_v19  ;;  %v3504_v23 = vsel %vm20_vm0, %v3429_v33, 0.0  ;;  %3884 = vst.msk [vmem:[%s6177_s4 + $0x30] sm:$0xf] %vm3871_vm12, %v4059_v32  ;;  %v3308_v7 = vsel %vm20_vm0, %v3079_v24, 0.0  ;;  %v3430_v41 = vmul.f32 %v3079_v24, %v3079_v24  ;;  %v4060_v25 = vpack.c.bf16 %v3079_v24, %v3079_v24 }
 0x22b   :  { %1921 = vst.msk [vmem:[#allocation3 + $0xc8] sm:$0xff] %vm814_vm5, %v1883_v11  ;;  %v3505_v44 = vadd.f32 %v3504_v23, %v3503_v27  ;;  %v3309_v20 = vadd.f32 %v3308_v7, %v3307_v36  ;;  %2535 = vrot.lane.b32.xlu1 %v2488_v42, %s4417_s18  ;;  %v3312_v29 = vsel %vm20_vm0, %v4332_v26, 0.0  ;;  %v3510_v61 = vsel %vm20_vm0, %v3432_v51, 0.0 }
 0x22c   :  { %v2137_v3 = vpop.permute.xlu0 %2136  ;;  %v2848_v60 = vld [vmem:[#allocation3 + $0xb8] sm:$0xff]  ;;  %3887 = vst.msk [vmem:[%s6177_s4 + $0x3c] sm:$0xf] %vm3871_vm12, %v4062_v57  ;;  %v3506_v52 = vsel %vm20_vm0, %v3430_v41, 0.0  ;;  %3885 = vst.msk [vmem:[%s6177_s4 + $0x34] sm:$0xf] %vm3871_vm12, %v4060_v25 }
 0x22d   :  { %2176 = vst.msk [vmem:[#allocation3 + $0xc0] sm:$0xff] %vm1072_vm7, %v2137_v3  ;;  %4362 = vmatmul.mubr.msk.bf16.gmra.mrb[12].mxu1 %vm2893_vm4, %v2848_v60  ;;  %v3311_v22 = vadd.f32 %v3310_v46, %v3309_v20  ;;  %v3507_v40 = vadd.f32 %v3506_v52, %v3505_v44  ;;  %v2011_v56 = vpop.permute.xlu1 %2010 }
 0x22e   :  { %2789 = vrot.lane.b32.xlu0 %v2359_v30, %s4419_s3  ;;  %2049 = vst.msk [vmem:[#allocation3 + $0xc8] sm:$0xff] %vm943_vm15, %v2011_v56 }
 0x22f   :  { %v3509_v21 = vadd.f32 %v3508_v59, %v3507_v40  ;;  %2663 = vrot.lane.b32.xlu1 %v2616_v31, %s4418_s21  ;;  %v3313_v47 = vadd.f32 %v3312_v29, %v3311_v22 }
 0x230   :  { %v2265_v55 = vpop.permute.xlu0 %2264 }
 0x231   :  { %2304 = vst.msk [vmem:[#allocation3 + $0xc0] sm:$0xff] %vm1201_vm10, %v2265_v55  ;;  %v2139_v4 = vpop.permute.xlu1 %2138  ;;  %v3511_v6 = vadd.f32 %v3510_v61, %v3509_v21 }
 0x232   :  { %2177 = vst.msk [vmem:[#allocation3 + $0xc8] sm:$0xff] %vm1072_vm7, %v2139_v4 }
 0x233   :  { %2791 = vrot.lane.b32.xlu1 %v2744_v37, %s4419_s3 }
 0x234   :  { %v2393_v39 = vpop.permute.xlu0 %2392 }
 0x235   :  { %2432 = vst.msk [vmem:[#allocation3 + $0xc0] sm:$0xff] %vm1330_vm11, %v2393_v39  ;;  %v2267_v18 = vpop.permute.xlu1 %2266 }
 0x236   :  { %2305 = vst.msk [vmem:[#allocation3 + $0xc8] sm:$0xff] %vm1201_vm10, %v2267_v18 }
 0x238   :  { %v2522_v9 = vpop.permute.xlu0 %2521 }
 0x239   :  { %2561 = vst.msk [vmem:[#allocation3 + $0xc0] sm:$0xff] %vm1460_vm14, %v2522_v9  ;;  %v2395_v12 = vpop.permute.xlu1 %2394 }
 0x23a   :  { %2433 = vst.msk [vmem:[#allocation3 + $0xc8] sm:$0xff] %vm1330_vm11, %v2395_v12  ;;  %v4335_v54 = vpop.f32.mrb[16].mxu0 }
 0x23b   :  { %v4065_v53 = vpack.c.bf16 %v4335_v54, %v4335_v54  ;;  %v3092_v15 = vpop.f32.mrb[17].mxu0  ;;  %v3435_v35 = vmul.f32 %v4335_v54, %v4335_v54  ;;  %v3318_v28 = vsel %vm20_vm0, %v4335_v54, 0.0 }
 0x23c   :  { %v2650_v13 = vpop.permute.xlu0 %2649  ;;  %v3314_v2 = vsel %vm20_vm0, %v3092_v15, 0.0  ;;  %v3433_v10 = vmul.f32 %v3092_v15, %v3092_v15  ;;  %v4063_v27 = vpack.c.bf16 %v3092_v15, %v3092_v15  ;;  %v4336_v58 = vpop.f32.mrb[18].mxu0 }
 0x23d   :  { %2689 = vst.msk [vmem:[#allocation3 + $0xc0] sm:$0xff] %vm1589_vm1, %v2650_v13  ;;  %v3315_v16 = vadd.f32 %v3314_v2, %v3313_v47  ;;  %v2524_v1 = vpop.permute.xlu1 %2523  ;;  %v3095_v62 = vpop.f32.mrb[19].mxu0  ;;  %v4066_v30 = vpack.c.bf16 %v4336_v58, %v4336_v58  ;;  %v3436_v5 = vmul.f32 %v4336_v58, %v4336_v58  ;;  %v3516_v33 = vsel %vm20_vm0, %v3435_v35, 0.0 }
 0x23e   :  { %3890 = vst.msk [vmem:[%s6177_s4 + $0x48] sm:$0xf] %vm3871_vm12, %v4065_v53  ;;  %v3512_v50 = vsel %vm20_vm0, %v3433_v10, 0.0  ;;  %3888 = vst.msk [vmem:[%s6177_s4 + $0x40] sm:$0xf] %vm3871_vm12, %v4063_v27  ;;  %v3316_v38 = vsel %vm20_vm0, %v3095_v62, 0.0  ;;  %v3434_v63 = vmul.f32 %v3095_v62, %v3095_v62  ;;  %v4064_v49 = vpack.c.bf16 %v3095_v62, %v3095_v62 }
 0x23f   :  { %2562 = vst.msk [vmem:[#allocation3 + $0xc8] sm:$0xff] %vm1460_vm14, %v2524_v1  ;;  %v3513_v17 = vadd.f32 %v3512_v50, %v3511_v6  ;;  %v3317_v43 = vadd.f32 %v3316_v38, %v3315_v16  ;;  %v3320_v32 = vsel %vm20_vm0, %v4336_v58, 0.0  ;;  %v3518_v11 = vsel %vm20_vm0, %v3436_v5, 0.0 }
 0x240   :  { %v2778_v8 = vpop.permute.xlu0 %2777  ;;  %3891 = vst.msk [vmem:[%s6177_s4 + $0x4c] sm:$0xf] %vm3871_vm12, %v4066_v30  ;;  %v3514_v19 = vsel %vm20_vm0, %v3434_v63, 0.0  ;;  %3889 = vst.msk [vmem:[%s6177_s4 + $0x44] sm:$0xf] %vm3871_vm12, %v4064_v49 }
 0x241   :  { %2817 = vst.msk [vmem:[#allocation3 + $0xc0] sm:$0xff] %vm1718_vm3, %v2778_v8  ;;  %v3319_v14 = vadd.f32 %v3318_v28, %v3317_v43  ;;  %v3515_v42 = vadd.f32 %v3514_v19, %v3513_v17  ;;  %v2652_v45 = vpop.permute.xlu1 %2651 }
 0x242   :  { %2690 = vst.msk [vmem:[#allocation3 + $0xc8] sm:$0xff] %vm1589_vm1, %v2652_v45 }
 0x243   :  { %v3517_v34 = vadd.f32 %v3516_v33, %v3515_v42  ;;  %v3321_v36 = vadd.f32 %v3320_v32, %v3319_v14 }
 0x244   :  { %v2780_v26 = vpop.permute.xlu0 %2779 }
 0x245   :  { %2818 = vst.msk [vmem:[#allocation3 + $0xc8] sm:$0xff] %vm1718_vm3, %v2780_v26  ;;  %v1885_v24 = vpop.permute.xlu1 %1884  ;;  %v3519_v31 = vadd.f32 %v3518_v11, %v3517_v34 }
 0x246   :  { %1922 = vst.msk [vmem:[#allocation3 + $0xd0] sm:$0xff] %vm814_vm5, %v1885_v24 }
 0x248   :  { %v2013_v23 = vpop.permute.xlu0 %2012  ;;  %v2849_v57 = vld [vmem:[#allocation3 + $0xc0] sm:$0xff] }
 0x249   :  { %2050 = vst.msk [vmem:[#allocation3 + $0xd0] sm:$0xff] %vm943_vm15, %v2013_v23  ;;  %4365 = vmatprep.mubr.msk.bf16.mxu1 %vm2893_vm4, %v2849_v57  ;;  %v1887_v7 = vpop.permute.xlu1 %1886 }
 0x24a   :  { %1923 = vst.msk [vmem:[#allocation3 + $0xd8] sm:$0xff] %vm814_vm5, %v1887_v7 }
 0x24c   :  { %v2141_v41 = vpop.permute.xlu0 %2140  ;;  %v2850_v3 = vld [vmem:[#allocation3 + $0xc8] sm:$0xff] }
 0x24d   :  { %2178 = vst.msk [vmem:[#allocation3 + $0xd0] sm:$0xff] %vm1072_vm7, %v2141_v41  ;;  %4366 = vmatmul.mubr.msk.bf16.gmra.mrb[16].mxu1 %vm2893_vm4, %v2850_v3  ;;  %v2015_v60 = vpop.permute.xlu1 %2014 }
 0x24e   :  { %2051 = vst.msk [vmem:[#allocation3 + $0xd8] sm:$0xff] %vm943_vm15, %v2015_v60 }
 0x250   :  { %v2269_v44 = vpop.permute.xlu0 %2268 }
 0x251   :  { %2306 = vst.msk [vmem:[#allocation3 + $0xd0] sm:$0xff] %vm1201_vm10, %v2269_v44  ;;  %v2143_v20 = vpop.permute.xlu1 %2142  ;;  %v4339_v25 = vpop.f32.mrb[20].mxu0 }
 0x252   :  { %2179 = vst.msk [vmem:[#allocation3 + $0xd8] sm:$0xff] %vm1072_vm7, %v2143_v20  ;;  %v4069_v46 = vpack.c.bf16 %v4339_v25, %v4339_v25  ;;  %v3108_v51 = vpop.f32.mrb[21].mxu0  ;;  %v3439_v56 = vmul.f32 %v4339_v25, %v4339_v25  ;;  %v3326_v9 = vsel %vm20_vm0, %v4339_v25, 0.0 }
 0x253   :  { %v3322_v0 = vsel %vm20_vm0, %v3108_v51, 0.0  ;;  %v3437_v48 = vmul.f32 %v3108_v51, %v3108_v51  ;;  %v4067_v22 = vpack.c.bf16 %v3108_v51, %v3108_v51  ;;  %v4340_v40 = vpop.f32.mrb[22].mxu0 }
 0x254   :  { %v2397_v52 = vpop.permute.xlu0 %2396  ;;  %3894 = vst.msk [vmem:[%s6177_s4 + $0x58] sm:$0xf] %vm3871_vm12, %v4069_v46  ;;  %v3323_v59 = vadd.f32 %v3322_v0, %v3321_v36  ;;  %v3111_v29 = vpop.f32.mrb[23].mxu0  ;;  %v4070_v21 = vpack.c.bf16 %v4340_v40, %v4340_v40  ;;  %v3440_v12 = vmul.f32 %v4340_v40, %v4340_v40  ;;  %v3524_v15 = vsel %vm20_vm0, %v3439_v56, 0.0 }
 0x255   :  { %2434 = vst.msk [vmem:[#allocation3 + $0xd0] sm:$0xff] %vm1330_vm11, %v2397_v52  ;;  %v3520_v55 = vsel %vm20_vm0, %v3437_v48, 0.0  ;;  %v3324_v37 = vsel %vm20_vm0, %v3111_v29, 0.0  ;;  %v3438_v47 = vmul.f32 %v3111_v29, %v3111_v29  ;;  %v2271_v61 = vpop.permute.xlu1 %2270  ;;  %v4068_v39 = vpack.c.bf16 %v3111_v29, %v3111_v29 }
 0x256   :  { %3892 = vst.msk [vmem:[%s6177_s4 + $0x50] sm:$0xf] %vm3871_vm12, %v4067_v22  ;;  %v3521_v4 = vadd.f32 %v3520_v55, %v3519_v31  ;;  %v3325_v6 = vadd.f32 %v3324_v37, %v3323_v59  ;;  %3895 = vst.msk [vmem:[%s6177_s4 + $0x5c] sm:$0xf] %vm3871_vm12, %v4070_v21  ;;  %v3328_v2 = vsel %vm20_vm0, %v4340_v40, 0.0  ;;  %v3526_v16 = vsel %vm20_vm0, %v3440_v12, 0.0 }
 0x257   :  { %2307 = vst.msk [vmem:[#allocation3 + $0xd8] sm:$0xff] %vm1201_vm10, %v2271_v61  ;;  %v3522_v54 = vsel %vm20_vm0, %v3438_v47, 0.0 }
 0x258   :  { %v2526_v18 = vpop.permute.xlu0 %2525  ;;  %v3327_v13 = vadd.f32 %v3326_v9, %v3325_v6  ;;  %v3523_v53 = vadd.f32 %v3522_v54, %v3521_v4  ;;  %3893 = vst.msk [vmem:[%s6177_s4 + $0x54] sm:$0xf] %vm3871_vm12, %v4068_v39 }
 0x259   :  { %2563 = vst.msk [vmem:[#allocation3 + $0xd0] sm:$0xff] %vm1460_vm14, %v2526_v18  ;;  %v2399_v10 = vpop.permute.xlu1 %2398 }
 0x25a   :  { %v3525_v27 = vadd.f32 %v3524_v15, %v3523_v53  ;;  %2435 = vst.msk [vmem:[#allocation3 + $0xd8] sm:$0xff] %vm1330_vm11, %v2399_v10  ;;  %v3329_v35 = vadd.f32 %v3328_v2, %v3327_v13 }
 0x25c   :  { %v2654_v58 = vpop.permute.xlu0 %2653  ;;  %v3527_v1 = vadd.f32 %v3526_v16, %v3525_v27 }
 0x25d   :  { %2691 = vst.msk [vmem:[#allocation3 + $0xd0] sm:$0xff] %vm1589_vm1, %v2654_v58  ;;  %v2528_v62 = vpop.permute.xlu1 %2527 }
 0x25e   :  { %2564 = vst.msk [vmem:[#allocation3 + $0xd8] sm:$0xff] %vm1460_vm14, %v2528_v62 }
 0x260   :  { %v2782_v50 = vpop.permute.xlu0 %2781 }
 0x261   :  { %2819 = vst.msk [vmem:[#allocation3 + $0xd0] sm:$0xff] %vm1718_vm3, %v2782_v50  ;;  %v2656_v30 = vpop.permute.xlu1 %2655 }
 0x262   :  { %2692 = vst.msk [vmem:[#allocation3 + $0xd8] sm:$0xff] %vm1589_vm1, %v2656_v30 }
 0x264   :  { %v2784_v38 = vpop.permute.xlu0 %2783 }
 0x265   :  { %2820 = vst.msk [vmem:[#allocation3 + $0xd8] sm:$0xff] %vm1718_vm3, %v2784_v38  ;;  %v1889_v63 = vpop.permute.xlu1 %1888 }
 0x266   :  { %1924 = vst.msk [vmem:[#allocation3 + $0xe0] sm:$0xff] %vm814_vm5, %v1889_v63 }
 0x268   :  { %v2017_v8 = vpop.permute.xlu0 %2016  ;;  %v2851_v17 = vld [vmem:[#allocation3 + $0xd0] sm:$0xff] }
 0x269   :  { %2052 = vst.msk [vmem:[#allocation3 + $0xe0] sm:$0xff] %vm943_vm15, %v2017_v8  ;;  %4369 = vmatprep.mubr.msk.bf16.mxu1 %vm2893_vm4, %v2851_v17  ;;  %v1891_v43 = vpop.permute.xlu1 %1890  ;;  %v4343_v49 = vpop.f32.mrb[24].mxu0 }
 0x26a   :  { %1925 = vst.msk [vmem:[#allocation3 + $0xe8] sm:$0xff] %vm814_vm5, %v1891_v43  ;;  %v4073_v28 = vpack.c.bf16 %v4343_v49, %v4343_v49  ;;  %v3124_v5 = vpop.f32.mrb[25].mxu0  ;;  %v3443_v26 = vmul.f32 %v4343_v49, %v4343_v49  ;;  %v3334_v44 = vsel %vm20_vm0, %v4343_v49, 0.0 }
 0x26b   :  { %v3330_v42 = vsel %vm20_vm0, %v3124_v5, 0.0  ;;  %v3441_v45 = vmul.f32 %v3124_v5, %v3124_v5  ;;  %v4071_v33 = vpack.c.bf16 %v3124_v5, %v3124_v5  ;;  %v4344_v32 = vpop.f32.mrb[26].mxu0 }
 0x26c   :  { %v2145_v19 = vpop.permute.xlu0 %2144  ;;  %v2852_v14 = vld [vmem:[#allocation3 + $0xd8] sm:$0xff]  ;;  %3898 = vst.msk [vmem:[%s6177_s4 + $0x68] sm:$0xf] %vm3871_vm12, %v4073_v28  ;;  %v3331_v34 = vadd.f32 %v3330_v42, %v3329_v35  ;;  %v3127_v36 = vpop.f32.mrb[27].mxu0  ;;  %v4074_v24 = vpack.c.bf16 %v4344_v32, %v4344_v32  ;;  %v3444_v20 = vmul.f32 %v4344_v32, %v4344_v32  ;;  %v3532_v52 = vsel %vm20_vm0, %v3443_v26, 0.0 }
 0x26d   :  { %2180 = vst.msk [vmem:[#allocation3 + $0xe0] sm:$0xff] %vm1072_vm7, %v2145_v19  ;;  %4370 = vmatmul.mubr.msk.bf16.gmra.mrb[20].mxu1 %vm2893_vm4, %v2852_v14  ;;  %v3528_v11 = vsel %vm20_vm0, %v3441_v45, 0.0  ;;  %v3332_v31 = vsel %vm20_vm0, %v3127_v36, 0.0  ;;  %v3442_v23 = vmul.f32 %v3127_v36, %v3127_v36  ;;  %v2019_v57 = vpop.permute.xlu1 %2018  ;;  %v4072_v3 = vpack.c.bf16 %v3127_v36, %v3127_v36 }
 0x26e   :  { %3896 = vst.msk [vmem:[%s6177_s4 + $0x60] sm:$0xf] %vm3871_vm12, %v4071_v33  ;;  %v3529_v7 = vadd.f32 %v3528_v11, %v3527_v1  ;;  %v3333_v41 = vadd.f32 %v3332_v31, %v3331_v34  ;;  %3899 = vst.msk [vmem:[%s6177_s4 + $0x6c] sm:$0xf] %vm3871_vm12, %v4074_v24  ;;  %v3336_v0 = vsel %vm20_vm0, %v4344_v32, 0.0  ;;  %v3534_v59 = vsel %vm20_vm0, %v3444_v20, 0.0 }
 0x26f   :  { %2053 = vst.msk [vmem:[#allocation3 + $0xe8] sm:$0xff] %vm943_vm15, %v2019_v57  ;;  %v3530_v25 = vsel %vm20_vm0, %v3442_v23, 0.0 }
 0x270   :  { %v2273_v60 = vpop.permute.xlu0 %2272  ;;  %v3335_v46 = vadd.f32 %v3334_v44, %v3333_v41  ;;  %v3531_v51 = vadd.f32 %v3530_v25, %v3529_v7  ;;  %3897 = vst.msk [vmem:[%s6177_s4 + $0x64] sm:$0xf] %vm3871_vm12, %v4072_v3 }
 0x271   :  { %2308 = vst.msk [vmem:[#allocation3 + $0xe0] sm:$0xff] %vm1201_vm10, %v2273_v60  ;;  %v2147_v48 = vpop.permute.xlu1 %2146 }
 0x272   :  { %v3533_v22 = vadd.f32 %v3532_v52, %v3531_v51  ;;  %2181 = vst.msk [vmem:[#allocation3 + $0xe8] sm:$0xff] %vm1072_vm7, %v2147_v48  ;;  %v3337_v56 = vadd.f32 %v3336_v0, %v3335_v46 }
 0x274   :  { %v2401_v40 = vpop.permute.xlu0 %2400  ;;  %v3535_v29 = vadd.f32 %v3534_v59, %v3533_v22 }
 0x275   :  { %2436 = vst.msk [vmem:[#allocation3 + $0xe0] sm:$0xff] %vm1330_vm11, %v2401_v40  ;;  %v2275_v55 = vpop.permute.xlu1 %2274 }
 0x276   :  { %2309 = vst.msk [vmem:[#allocation3 + $0xe8] sm:$0xff] %vm1201_vm10, %v2275_v55 }
 0x278   :  { %v2530_v21 = vpop.permute.xlu0 %2529 }
 0x279   :  { %2565 = vst.msk [vmem:[#allocation3 + $0xe0] sm:$0xff] %vm1460_vm14, %v2530_v21  ;;  %v2403_v37 = vpop.permute.xlu1 %2402 }
 0x27a   :  { %2437 = vst.msk [vmem:[#allocation3 + $0xe8] sm:$0xff] %vm1330_vm11, %v2403_v37 }
 0x27c   :  { %v2658_v47 = vpop.permute.xlu0 %2657 }
 0x27d   :  { %2693 = vst.msk [vmem:[#allocation3 + $0xe0] sm:$0xff] %vm1589_vm1, %v2658_v47  ;;  %v2532_v61 = vpop.permute.xlu1 %2531 }
 0x27e   :  { %2566 = vst.msk [vmem:[#allocation3 + $0xe8] sm:$0xff] %vm1460_vm14, %v2532_v61 }
 0x280   :  { %v2786_v4 = vpop.permute.xlu0 %2785 }
 0x281   :  { %2821 = vst.msk [vmem:[#allocation3 + $0xe0] sm:$0xff] %vm1718_vm3, %v2786_v4  ;;  %v2660_v6 = vpop.permute.xlu1 %2659  ;;  %v4347_v39 = vpop.f32.mrb[28].mxu0 }
 0x282   :  { %2694 = vst.msk [vmem:[#allocation3 + $0xe8] sm:$0xff] %vm1589_vm1, %v2660_v6  ;;  %v4077_v18 = vpack.c.bf16 %v4347_v39, %v4347_v39  ;;  %v3140_v9 = vpop.f32.mrb[29].mxu0  ;;  %v3447_v2 = vmul.f32 %v4347_v39, %v4347_v39  ;;  %v3342_v17 = vsel %vm20_vm0, %v4347_v39, 0.0 }
 0x283   :  { %v3338_v54 = vsel %vm20_vm0, %v3140_v9, 0.0  ;;  %v3445_v13 = vmul.f32 %v3140_v9, %v3140_v9  ;;  %v4075_v53 = vpack.c.bf16 %v3140_v9, %v3140_v9  ;;  %v4348_v15 = vpop.f32.mrb[30].mxu0 }
 0x284   :  { %v2788_v12 = vpop.permute.xlu0 %2787  ;;  %3902 = vst.msk [vmem:[%s6177_s4 + $0x78] sm:$0xf] %vm3871_vm12, %v4077_v18  ;;  %v3339_v10 = vadd.f32 %v3338_v54, %v3337_v56  ;;  %v3143_v27 = vpop.f32.mrb[31].mxu0  ;;  %v4078_v35 = vpack.c.bf16 %v4348_v15, %v4348_v15  ;;  %v3448_v43 = vmul.f32 %v4348_v15, %v4348_v15  ;;  %v3540_v19 = vsel %vm20_vm0, %v3447_v2, 0.0 }
 0x285   :  { %2822 = vst.msk [vmem:[#allocation3 + $0xe8] sm:$0xff] %vm1718_vm3, %v2788_v12  ;;  %v3536_v58 = vsel %vm20_vm0, %v3445_v13, 0.0  ;;  %v3340_v16 = vsel %vm20_vm0, %v3143_v27, 0.0  ;;  %v3446_v1 = vmul.f32 %v3143_v27, %v3143_v27  ;;  %v1893_v62 = vpop.permute.xlu1 %1892  ;;  %v4076_v38 = vpack.c.bf16 %v3143_v27, %v3143_v27 }
 0x286   :  { %3900 = vst.msk [vmem:[%s6177_s4 + $0x70] sm:$0xf] %vm3871_vm12, %v4075_v53  ;;  %v3537_v50 = vadd.f32 %v3536_v58, %v3535_v29  ;;  %v3341_v30 = vadd.f32 %v3340_v16, %v3339_v10  ;;  %3903 = vst.msk [vmem:[%s6177_s4 + $0x7c] sm:$0xf] %vm3871_vm12, %v4078_v35  ;;  %v3344_v14 = vsel %vm20_vm0, %v4348_v15, 0.0  ;;  %v3542_v34 = vsel %vm20_vm0, %v3448_v43, 0.0 }
 0x287   :  { %1926 = vst.msk [vmem:[#allocation3 + $0xf0] sm:$0xff] %vm814_vm5, %v1893_v62  ;;  %v3538_v49 = vsel %vm20_vm0, %v3446_v1, 0.0 }
 0x288   :  { %v2021_v63 = vpop.permute.xlu0 %2020  ;;  %v2853_v8 = vld [vmem:[#allocation3 + $0xe0] sm:$0xff]  ;;  %v3343_v28 = vadd.f32 %v3342_v17, %v3341_v30  ;;  %v3539_v5 = vadd.f32 %v3538_v49, %v3537_v50  ;;  %3901 = vst.msk [vmem:[%s6177_s4 + $0x74] sm:$0xf] %vm3871_vm12, %v4076_v38 }
 0x289   :  { %2054 = vst.msk [vmem:[#allocation3 + $0xf0] sm:$0xff] %vm943_vm15, %v2021_v63  ;;  %4373 = vmatprep.mubr.msk.bf16.mxu1 %vm2893_vm4, %v2853_v8  ;;  %v1895_v42 = vpop.permute.xlu1 %1894 }
 0x28a   :  { %v3541_v45 = vadd.f32 %v3540_v19, %v3539_v5  ;;  %1927 = vst.msk [vmem:[#allocation3 + $0xf8] sm:$0xff] %vm814_vm5, %v1895_v42  ;;  %v3345_v26 = vadd.f32 %v3344_v14, %v3343_v28 }
 0x28c   :  { %v2854_v33 = vld [vmem:[#allocation3 + $0xe8] sm:$0xff]  ;;  %v2149_v32 = vpop.permute.xlu0 %2148  ;;  %v3543_v36 = vadd.f32 %v3542_v34, %v3541_v45 }
 0x28d   :  { %4374 = vmatmul.mubr.msk.bf16.gmra.mrb[24].mxu1 %vm2893_vm4, %v2854_v33  ;;  %2182 = vst.msk [vmem:[#allocation3 + $0xf0] sm:$0xff] %vm1072_vm7, %v2149_v32  ;;  %v2023_v11 = vpop.permute.xlu1 %2022 }
 0x28e   :  { %2055 = vst.msk [vmem:[#allocation3 + $0xf8] sm:$0xff] %vm943_vm15, %v2023_v11 }
 0x290   :  { %v2277_v24 = vpop.permute.xlu0 %2276 }
 0x291   :  { %2310 = vst.msk [vmem:[#allocation3 + $0xf0] sm:$0xff] %vm1201_vm10, %v2277_v24  ;;  %v2151_v31 = vpop.permute.xlu1 %2150 }
 0x292   :  { %2183 = vst.msk [vmem:[#allocation3 + $0xf8] sm:$0xff] %vm1072_vm7, %v2151_v31 }
 0x294   :  { %v2405_v23 = vpop.permute.xlu0 %2404 }
 0x295   :  { %2438 = vst.msk [vmem:[#allocation3 + $0xf0] sm:$0xff] %vm1330_vm11, %v2405_v23  ;;  %v2279_v57 = vpop.permute.xlu1 %2278 }
 0x296   :  { %2311 = vst.msk [vmem:[#allocation3 + $0xf8] sm:$0xff] %vm1201_vm10, %v2279_v57 }
 0x298   :  { %v2534_v7 = vpop.permute.xlu0 %2533 }
 0x299   :  { %2567 = vst.msk [vmem:[#allocation3 + $0xf0] sm:$0xff] %vm1460_vm14, %v2534_v7  ;;  %v2407_v41 = vpop.permute.xlu1 %2406 }
 0x29a   :  { %2439 = vst.msk [vmem:[#allocation3 + $0xf8] sm:$0xff] %vm1330_vm11, %v2407_v41 }
 0x29c   :  { %v2662_v3 = vpop.permute.xlu0 %2661 }
 0x29d   :  { %2695 = vst.msk [vmem:[#allocation3 + $0xf0] sm:$0xff] %vm1589_vm1, %v2662_v3  ;;  %v2536_v60 = vpop.permute.xlu1 %2535 }
 0x29e   :  { %2568 = vst.msk [vmem:[#allocation3 + $0xf8] sm:$0xff] %vm1460_vm14, %v2536_v60 }
 0x2a0   :  { %v4351_v44 = vpop.f32.mrb[0].mxu1  ;;  %v2790_v20 = vpop.permute.xlu0 %2789 }
 0x2a1   :  { %v4081_v25 = vpack.c.bf16 %v4351_v44, %v4351_v44  ;;  %v3156_v46 = vpop.f32.mrb[1].mxu1  ;;  %2823 = vst.msk [vmem:[#allocation3 + $0xf0] sm:$0xff] %vm1718_vm3, %v2790_v20  ;;  %v2664_v22 = vpop.permute.xlu1 %2663  ;;  %v3451_v40 = vmul.f32 %v4351_v44, %v4351_v44  ;;  %v3350_v6 = vsel %vm20_vm0, %v4351_v44, 0.0 }
 0x2a2   :  { %v3346_v51 = vsel %vm20_vm0, %v3156_v46, 0.0  ;;  %v3449_v52 = vmul.f32 %v3156_v46, %v3156_v46  ;;  %v4079_v0 = vpack.c.bf16 %v3156_v46, %v3156_v46  ;;  %v4352_v48 = vpop.f32.mrb[2].mxu1  ;;  %2696 = vst.msk [vmem:[#allocation3 + $0xf8] sm:$0xff] %vm1589_vm1, %v2664_v22 }
 0x2a3   :  { %3906 = vst.msk [vmem:[%s6177_s4 + $0x88] sm:$0xf] %vm3871_vm12, %v4081_v25  ;;  %v3347_v56 = vadd.f32 %v3346_v51, %v3345_v26  ;;  %v3159_v59 = vpop.f32.mrb[3].mxu1  ;;  %v4082_v55 = vpack.c.bf16 %v4352_v48, %v4352_v48  ;;  %v3452_v39 = vmul.f32 %v4352_v48, %v4352_v48  ;;  %v3548_v13 = vsel %vm20_vm0, %v3451_v40, 0.0 }
 0x2a4   :  { %v3544_v29 = vsel %vm20_vm0, %v3449_v52, 0.0  ;;  %3904 = vst.msk [vmem:[%s6177_s4 + $0x80] sm:$0xf] %vm3871_vm12, %v4079_v0  ;;  %v3348_v21 = vsel %vm20_vm0, %v3159_v59, 0.0  ;;  %v3450_v37 = vmul.f32 %v3159_v59, %v3159_v59  ;;  %v4080_v4 = vpack.c.bf16 %v3159_v59, %v3159_v59 }
 0x2a5   :  { %v3545_v47 = vadd.f32 %v3544_v29, %v3543_v36  ;;  %v3349_v61 = vadd.f32 %v3348_v21, %v3347_v56  ;;  %3907 = vst.msk [vmem:[%s6177_s4 + $0x8c] sm:$0xf] %vm3871_vm12, %v4082_v55  ;;  %v2792_v54 = vpop.permute.xlu1 %2791  ;;  %v3352_v53 = vsel %vm20_vm0, %v4352_v48, 0.0  ;;  %v3550_v27 = vsel %vm20_vm0, %v3452_v39, 0.0 }
 0x2a6   :  { %v3546_v18 = vsel %vm20_vm0, %v3450_v37, 0.0  ;;  %3905 = vst.msk [vmem:[%s6177_s4 + $0x84] sm:$0xf] %vm3871_vm12, %v4080_v4 }
 0x2a7   :  { %v3351_v9 = vadd.f32 %v3350_v6, %v3349_v61  ;;  %v3547_v12 = vadd.f32 %v3546_v18, %v3545_v47  ;;  %2824 = vst.msk [vmem:[#allocation3 + $0xf8] sm:$0xff] %vm1718_vm3, %v2792_v54 }
 0x2a8   :  { %v2855_v15 = vld [vmem:[#allocation3 + $0xf0] sm:$0xff] }
 0x2a9   :  { %v3549_v2 = vadd.f32 %v3548_v13, %v3547_v12  ;;  %4377 = vmatprep.mubr.msk.bf16.mxu1 %vm2893_vm4, %v2855_v15  ;;  %v3353_v10 = vadd.f32 %v3352_v53, %v3351_v9 }
 0x2ab   :  { %v3551_v58 = vadd.f32 %v3550_v27, %v3549_v2 }
 0x2ae   :  { %v2856_v35 = vld [vmem:[#allocation3 + $0xf8] sm:$0xff] }
 0x2af   :  { %4378 = vmatmul.mubr.msk.bf16.gmra.mrb[28].mxu1 %vm2893_vm4, %v2856_v35 }
 0x2c0   :  { %v4355_v16 = vpop.f32.mrb[4].mxu1 }
 0x2c1   :  { %v4085_v1 = vpack.c.bf16 %v4355_v16, %v4355_v16  ;;  %v3172_v62 = vpop.f32.mrb[5].mxu1  ;;  %v3455_v8 = vmul.f32 %v4355_v16, %v4355_v16  ;;  %v3358_v33 = vsel %vm20_vm0, %v4355_v16, 0.0 }
 0x2c2   :  { %v3354_v50 = vsel %vm20_vm0, %v3172_v62, 0.0  ;;  %v3453_v30 = vmul.f32 %v3172_v62, %v3172_v62  ;;  %v4083_v38 = vpack.c.bf16 %v3172_v62, %v3172_v62  ;;  %v4356_v63 = vpop.f32.mrb[6].mxu1 }
 0x2c3   :  { %3910 = vst.msk [vmem:[%s6177_s4 + $0x98] sm:$0xf] %vm3871_vm12, %v4085_v1  ;;  %v3355_v17 = vadd.f32 %v3354_v50, %v3353_v10  ;;  %v3175_v43 = vpop.f32.mrb[7].mxu1  ;;  %v4086_v28 = vpack.c.bf16 %v4356_v63, %v4356_v63  ;;  %v3456_v32 = vmul.f32 %v4356_v63, %v4356_v63  ;;  %v3556_v11 = vsel %vm20_vm0, %v3455_v8, 0.0 }
 0x2c4   :  { %v3552_v49 = vsel %vm20_vm0, %v3453_v30, 0.0  ;;  %3908 = vst.msk [vmem:[%s6177_s4 + $0x90] sm:$0xf] %vm3871_vm12, %v4083_v38  ;;  %v3356_v5 = vsel %vm20_vm0, %v3175_v43, 0.0  ;;  %v3454_v19 = vmul.f32 %v3175_v43, %v3175_v43  ;;  %v4084_v45 = vpack.c.bf16 %v3175_v43, %v3175_v43 }
 0x2c5   :  { %v3553_v14 = vadd.f32 %v3552_v49, %v3551_v58  ;;  %v3357_v42 = vadd.f32 %v3356_v5, %v3355_v17  ;;  %3911 = vst.msk [vmem:[%s6177_s4 + $0x9c] sm:$0xf] %vm3871_vm12, %v4086_v28  ;;  %v3360_v24 = vsel %vm20_vm0, %v4356_v63, 0.0  ;;  %v3558_v57 = vsel %vm20_vm0, %v3456_v32, 0.0 }
 0x2c6   :  { %v3554_v26 = vsel %vm20_vm0, %v3454_v19, 0.0  ;;  %3909 = vst.msk [vmem:[%s6177_s4 + $0x94] sm:$0xf] %vm3871_vm12, %v4084_v45 }
 0x2c7   :  { %v3359_v34 = vadd.f32 %v3358_v33, %v3357_v42  ;;  %v3555_v36 = vadd.f32 %v3554_v26, %v3553_v14 }
 0x2c9   :  { %v3557_v31 = vadd.f32 %v3556_v11, %v3555_v36  ;;  %v3361_v23 = vadd.f32 %v3360_v24, %v3359_v34 }
 0x2cb   :  { %v3559_v7 = vadd.f32 %v3558_v57, %v3557_v31 }
 0x2e0   :  { %v4359_v41 = vpop.f32.mrb[8].mxu1 }
 0x2e1   :  { %v4089_v3 = vpack.c.bf16 %v4359_v41, %v4359_v41  ;;  %v3188_v60 = vpop.f32.mrb[9].mxu1  ;;  %v3459_v51 = vmul.f32 %v4359_v41, %v4359_v41  ;;  %v3366_v21 = vsel %vm20_vm0, %v4359_v41, 0.0 }
 0x2e2   :  { %v3362_v44 = vsel %vm20_vm0, %v3188_v60, 0.0  ;;  %v3457_v20 = vmul.f32 %v3188_v60, %v3188_v60  ;;  %v4087_v25 = vpack.c.bf16 %v3188_v60, %v3188_v60  ;;  %v4360_v46 = vpop.f32.mrb[10].mxu1 }
 0x2e3   :  { %3914 = vst.msk [vmem:[%s6177_s4 + $0xa8] sm:$0xf] %vm3871_vm12, %v4089_v3  ;;  %v3363_v52 = vadd.f32 %v3362_v44, %v3361_v23  ;;  %v3191_v0 = vpop.f32.mrb[11].mxu1  ;;  %v4090_v22 = vpack.c.bf16 %v4360_v46, %v4360_v46  ;;  %v3460_v37 = vmul.f32 %v4360_v46, %v4360_v46  ;;  %v3564_v6 = vsel %vm20_vm0, %v3459_v51, 0.0 }
 0x2e4   :  { %v3560_v48 = vsel %vm20_vm0, %v3457_v20, 0.0  ;;  %3912 = vst.msk [vmem:[%s6177_s4 + $0xa0] sm:$0xf] %vm3871_vm12, %v4087_v25  ;;  %v3364_v40 = vsel %vm20_vm0, %v3191_v0, 0.0  ;;  %v3458_v56 = vmul.f32 %v3191_v0, %v3191_v0  ;;  %v4088_v55 = vpack.c.bf16 %v3191_v0, %v3191_v0 }
 0x2e5   :  { %v3561_v59 = vadd.f32 %v3560_v48, %v3559_v7  ;;  %v3365_v29 = vadd.f32 %v3364_v40, %v3363_v52  ;;  %3915 = vst.msk [vmem:[%s6177_s4 + $0xac] sm:$0xf] %vm3871_vm12, %v4090_v22  ;;  %v3368_v39 = vsel %vm20_vm0, %v4360_v46, 0.0  ;;  %v3566_v12 = vsel %vm20_vm0, %v3460_v37, 0.0 }
 0x2e6   :  { %v3562_v47 = vsel %vm20_vm0, %v3458_v56, 0.0  ;;  %3913 = vst.msk [vmem:[%s6177_s4 + $0xa4] sm:$0xf] %vm3871_vm12, %v4088_v55 }
 0x2e7   :  { %v3367_v61 = vadd.f32 %v3366_v21, %v3365_v29  ;;  %v3563_v4 = vadd.f32 %v3562_v47, %v3561_v59 }
 0x2e9   :  { %v3565_v18 = vadd.f32 %v3564_v6, %v3563_v4  ;;  %v3369_v9 = vadd.f32 %v3368_v39, %v3367_v61 }
 0x2eb   :  { %v3567_v54 = vadd.f32 %v3566_v12, %v3565_v18 }
 0x300   :  { %v4363_v13 = vpop.f32.mrb[12].mxu1 }
 0x301   :  { %v4093_v53 = vpack.c.bf16 %v4363_v13, %v4363_v13  ;;  %v3204_v15 = vpop.f32.mrb[13].mxu1  ;;  %v3463_v35 = vmul.f32 %v4363_v13, %v4363_v13  ;;  %v3374_v43 = vsel %vm20_vm0, %v4363_v13, 0.0 }
 0x302   :  { %v3370_v2 = vsel %vm20_vm0, %v3204_v15, 0.0  ;;  %v3461_v10 = vmul.f32 %v3204_v15, %v3204_v15  ;;  %v4091_v27 = vpack.c.bf16 %v3204_v15, %v3204_v15  ;;  %v4364_v58 = vpop.f32.mrb[14].mxu1 }
 0x303   :  { %3918 = vst.msk [vmem:[%s6177_s4 + $0xb8] sm:$0xf] %vm3871_vm12, %v4093_v53  ;;  %v3371_v16 = vadd.f32 %v3370_v2, %v3369_v9  ;;  %v3207_v1 = vpop.f32.mrb[15].mxu1  ;;  %v4094_v50 = vpack.c.bf16 %v4364_v58, %v4364_v58  ;;  %v3464_v49 = vmul.f32 %v4364_v58, %v4364_v58  ;;  %v3572_v14 = vsel %vm20_vm0, %v3463_v35, 0.0 }
 0x304   :  { %v3568_v62 = vsel %vm20_vm0, %v3461_v10, 0.0  ;;  %3916 = vst.msk [vmem:[%s6177_s4 + $0xb0] sm:$0xf] %vm3871_vm12, %v4091_v27  ;;  %v3372_v30 = vsel %vm20_vm0, %v3207_v1, 0.0  ;;  %v3462_v38 = vmul.f32 %v3207_v1, %v3207_v1  ;;  %v4092_v17 = vpack.c.bf16 %v3207_v1, %v3207_v1 }
 0x305   :  { %v3569_v63 = vadd.f32 %v3568_v62, %v3567_v54  ;;  %v3373_v8 = vadd.f32 %v3372_v30, %v3371_v16  ;;  %3919 = vst.msk [vmem:[%s6177_s4 + $0xbc] sm:$0xf] %vm3871_vm12, %v4094_v50  ;;  %v3376_v42 = vsel %vm20_vm0, %v4364_v58, 0.0  ;;  %v3574_v32 = vsel %vm20_vm0, %v3464_v49, 0.0 }
 0x306   :  { %v3570_v28 = vsel %vm20_vm0, %v3462_v38, 0.0  ;;  %3917 = vst.msk [vmem:[%s6177_s4 + $0xb4] sm:$0xf] %vm3871_vm12, %v4092_v17 }
 0x307   :  { %v3375_v5 = vadd.f32 %v3374_v43, %v3373_v8  ;;  %v3571_v19 = vadd.f32 %v3570_v28, %v3569_v63 }
 0x309   :  { %v3573_v45 = vadd.f32 %v3572_v14, %v3571_v19  ;;  %v3377_v33 = vadd.f32 %v3376_v42, %v3375_v5 }
 0x30b   :  { %v3575_v26 = vadd.f32 %v3574_v32, %v3573_v45 }
 0x320   :  { %v4367_v34 = vpop.f32.mrb[16].mxu1 }
 0x321   :  { %v4097_v36 = vpack.c.bf16 %v4367_v34, %v4367_v34  ;;  %v3220_v11 = vpop.f32.mrb[17].mxu1  ;;  %v3467_v7 = vmul.f32 %v4367_v34, %v4367_v34  ;;  %v3382_v0 = vsel %vm20_vm0, %v4367_v34, 0.0 }
 0x322   :  { %v3378_v24 = vsel %vm20_vm0, %v3220_v11, 0.0  ;;  %v3465_v31 = vmul.f32 %v3220_v11, %v3220_v11  ;;  %v4095_v23 = vpack.c.bf16 %v3220_v11, %v3220_v11  ;;  %v4368_v57 = vpop.f32.mrb[18].mxu1 }
 0x323   :  { %3922 = vst.msk [vmem:[%s6177_s4 + $0xc8] sm:$0xf] %vm3871_vm12, %v4097_v36  ;;  %v3379_v41 = vadd.f32 %v3378_v24, %v3377_v33  ;;  %v3223_v3 = vpop.f32.mrb[19].mxu1  ;;  %v4098_v44 = vpack.c.bf16 %v4368_v57, %v4368_v57  ;;  %v3468_v48 = vmul.f32 %v4368_v57, %v4368_v57  ;;  %v3580_v59 = vsel %vm20_vm0, %v3467_v7, 0.0 }
 0x324   :  { %v3576_v60 = vsel %vm20_vm0, %v3465_v31, 0.0  ;;  %3920 = vst.msk [vmem:[%s6177_s4 + $0xc0] sm:$0xf] %vm3871_vm12, %v4095_v23  ;;  %v3380_v20 = vsel %vm20_vm0, %v3223_v3, 0.0  ;;  %v3466_v25 = vmul.f32 %v3223_v3, %v3223_v3  ;;  %v4096_v52 = vpack.c.bf16 %v3223_v3, %v3223_v3 }
 0x325   :  { %v3577_v46 = vadd.f32 %v3576_v60, %v3575_v26  ;;  %v3381_v51 = vadd.f32 %v3380_v20, %v3379_v41  ;;  %3923 = vst.msk [vmem:[%s6177_s4 + $0xcc] sm:$0xf] %vm3871_vm12, %v4098_v44  ;;  %v3384_v29 = vsel %vm20_vm0, %v4368_v57, 0.0  ;;  %v3582_v37 = vsel %vm20_vm0, %v3468_v48, 0.0 }
 0x326   :  { %v3578_v22 = vsel %vm20_vm0, %v3466_v25, 0.0  ;;  %3921 = vst.msk [vmem:[%s6177_s4 + $0xc4] sm:$0xf] %vm3871_vm12, %v4096_v52 }
 0x327   :  { %v3383_v40 = vadd.f32 %v3382_v0, %v3381_v51  ;;  %v3579_v56 = vadd.f32 %v3578_v22, %v3577_v46 }
 0x329   :  { %v3581_v55 = vadd.f32 %v3580_v59, %v3579_v56  ;;  %v3385_v21 = vadd.f32 %v3384_v29, %v3383_v40 }
 0x32b   :  { %v3583_v47 = vadd.f32 %v3582_v37, %v3581_v55 }
 0x340   :  { %v4371_v61 = vpop.f32.mrb[20].mxu1 }
 0x341   :  { %v4101_v4 = vpack.c.bf16 %v4371_v61, %v4371_v61  ;;  %v3236_v6 = vpop.f32.mrb[21].mxu1  ;;  %v3471_v54 = vmul.f32 %v4371_v61, %v4371_v61  ;;  %v3390_v1 = vsel %vm20_vm0, %v4371_v61, 0.0 }
 0x342   :  { %v3386_v39 = vsel %vm20_vm0, %v3236_v6, 0.0  ;;  %v3469_v18 = vmul.f32 %v3236_v6, %v3236_v6  ;;  %v4099_v9 = vpack.c.bf16 %v3236_v6, %v3236_v6  ;;  %v4372_v12 = vpop.f32.mrb[22].mxu1 }
 0x343   :  { %3926 = vst.msk [vmem:[%s6177_s4 + $0xd8] sm:$0xf] %vm3871_vm12, %v4101_v4  ;;  %v3387_v13 = vadd.f32 %v3386_v39, %v3385_v21  ;;  %v3239_v53 = vpop.f32.mrb[23].mxu1  ;;  %v4102_v2 = vpack.c.bf16 %v4372_v12, %v4372_v12  ;;  %v3472_v62 = vmul.f32 %v4372_v12, %v4372_v12  ;;  %v3588_v63 = vsel %vm20_vm0, %v3471_v54, 0.0 }
 0x344   :  { %v3584_v15 = vsel %vm20_vm0, %v3469_v18, 0.0  ;;  %3924 = vst.msk [vmem:[%s6177_s4 + $0xd0] sm:$0xf] %vm3871_vm12, %v4099_v9  ;;  %v3388_v10 = vsel %vm20_vm0, %v3239_v53, 0.0  ;;  %v3470_v27 = vmul.f32 %v3239_v53, %v3239_v53  ;;  %v4100_v16 = vpack.c.bf16 %v3239_v53, %v3239_v53 }
 0x345   :  { %v3585_v58 = vadd.f32 %v3584_v15, %v3583_v47  ;;  %v3389_v35 = vadd.f32 %v3388_v10, %v3387_v13  ;;  %3927 = vst.msk [vmem:[%s6177_s4 + $0xdc] sm:$0xf] %vm3871_vm12, %v4102_v2  ;;  %v3392_v8 = vsel %vm20_vm0, %v4372_v12, 0.0  ;;  %v3590_v49 = vsel %vm20_vm0, %v3472_v62, 0.0 }
 0x346   :  { %v3586_v50 = vsel %vm20_vm0, %v3470_v27, 0.0  ;;  %3925 = vst.msk [vmem:[%s6177_s4 + $0xd4] sm:$0xf] %vm3871_vm12, %v4100_v16 }
 0x347   :  { %v3391_v30 = vadd.f32 %v3390_v1, %v3389_v35  ;;  %v3587_v38 = vadd.f32 %v3586_v50, %v3585_v58 }
 0x349   :  { %v3589_v17 = vadd.f32 %v3588_v63, %v3587_v38  ;;  %v3393_v43 = vadd.f32 %v3392_v8, %v3391_v30 }
 0x34b   :  { %v3591_v28 = vadd.f32 %v3590_v49, %v3589_v17 }
 0x360   :  { %v4375_v5 = vpop.f32.mrb[24].mxu1 }
 0x361   :  { %v4105_v19 = vpack.c.bf16 %v4375_v5, %v4375_v5  ;;  %v3252_v14 = vpop.f32.mrb[25].mxu1  ;;  %v3475_v26 = vmul.f32 %v4375_v5, %v4375_v5  ;;  %v3398_v3 = vsel %vm20_vm0, %v4375_v5, 0.0 }
 0x362   :  { %v3394_v42 = vsel %vm20_vm0, %v3252_v14, 0.0  ;;  %v3473_v45 = vmul.f32 %v3252_v14, %v3252_v14  ;;  %v4103_v33 = vpack.c.bf16 %v3252_v14, %v3252_v14  ;;  %v4376_v32 = vpop.f32.mrb[26].mxu1 }
 0x363   :  { %3930 = vst.msk [vmem:[%s6177_s4 + $0xe8] sm:$0xf] %vm3871_vm12, %v4105_v19  ;;  %v3395_v34 = vadd.f32 %v3394_v42, %v3393_v43  ;;  %v3255_v36 = vpop.f32.mrb[27].mxu1  ;;  %v4106_v24 = vpack.c.bf16 %v4376_v32, %v4376_v32  ;;  %v3476_v60 = vmul.f32 %v4376_v32, %v4376_v32  ;;  %v3596_v46 = vsel %vm20_vm0, %v3475_v26, 0.0 }
 0x364   :  { %v3592_v11 = vsel %vm20_vm0, %v3473_v45, 0.0  ;;  %3928 = vst.msk [vmem:[%s6177_s4 + $0xe0] sm:$0xf] %vm3871_vm12, %v4103_v33  ;;  %v3396_v31 = vsel %vm20_vm0, %v3255_v36, 0.0  ;;  %v3474_v23 = vmul.f32 %v3255_v36, %v3255_v36  ;;  %v4104_v41 = vpack.c.bf16 %v3255_v36, %v3255_v36 }
 0x365   :  { %v3593_v57 = vadd.f32 %v3592_v11, %v3591_v28  ;;  %v3397_v7 = vadd.f32 %v3396_v31, %v3395_v34  ;;  %3931 = vst.msk [vmem:[%s6177_s4 + $0xec] sm:$0xf] %vm3871_vm12, %v4106_v24  ;;  %v3400_v51 = vsel %vm20_vm0, %v4376_v32, 0.0  ;;  %v3598_v48 = vsel %vm20_vm0, %v3476_v60, 0.0 }
 0x366   :  { %v3594_v44 = vsel %vm20_vm0, %v3474_v23, 0.0  ;;  %3929 = vst.msk [vmem:[%s6177_s4 + $0xe4] sm:$0xf] %vm3871_vm12, %v4104_v41 }
 0x367   :  { %v3399_v20 = vadd.f32 %v3398_v3, %v3397_v7  ;;  %v3595_v25 = vadd.f32 %v3594_v44, %v3593_v57 }
 0x369   :  { %v3597_v52 = vadd.f32 %v3596_v46, %v3595_v25  ;;  %v3401_v0 = vadd.f32 %v3400_v51, %v3399_v20 }
 0x36b   :  { %v3599_v22 = vadd.f32 %v3598_v48, %v3597_v52 }
 0x382   :  { %v4379_v40 = vpop.f32.mrb[28].mxu1 }
 0x383   :  { %v4109_v56 = vpack.c.bf16 %v4379_v40, %v4379_v40  ;;  %v3268_v59 = vpop.f32.mrb[29].mxu1  ;;  %v3479_v47 = vmul.f32 %v4379_v40, %v4379_v40  ;;  %v3406_v53 = vsel %vm20_vm0, %v4379_v40, 0.0 }
 0x384   :  { %v3402_v29 = vsel %vm20_vm0, %v3268_v59, 0.0  ;;  %v3477_v55 = vmul.f32 %v3268_v59, %v3268_v59  ;;  %v4107_v21 = vpack.c.bf16 %v3268_v59, %v3268_v59  ;;  %v4380_v37 = vpop.f32.mrb[30].mxu1 }
 0x385   :  { %3934 = vst.msk [vmem:[%s6177_s4 + $0xf8] sm:$0xf] %vm3871_vm12, %v4109_v56  ;;  %v3403_v61 = vadd.f32 %v3402_v29, %v3401_v0  ;;  %v3271_v4 = vpop.f32.mrb[31].mxu1  ;;  %v4110_v39 = vpack.c.bf16 %v4380_v37, %v4380_v37  ;;  %v3480_v15 = vmul.f32 %v4380_v37, %v4380_v37  ;;  %v3604_v58 = vsel %vm20_vm0, %v3479_v47, 0.0 }
 0x386   :  { %v3600_v6 = vsel %vm20_vm0, %v3477_v55, 0.0  ;;  %3932 = vst.msk [vmem:[%s6177_s4 + $0xf0] sm:$0xf] %vm3871_vm12, %v4107_v21  ;;  %v3404_v18 = vsel %vm20_vm0, %v3271_v4, 0.0  ;;  %v3478_v9 = vmul.f32 %v3271_v4, %v3271_v4  ;;  %v4108_v13 = vpack.c.bf16 %v3271_v4, %v3271_v4 }
 0x387   :  { %v3601_v12 = vadd.f32 %v3600_v6, %v3599_v22  ;;  %v3405_v54 = vadd.f32 %v3404_v18, %v3403_v61  ;;  %3935 = vst.msk [vmem:[%s6177_s4 + $0xfc] sm:$0xf] %vm3871_vm12, %v4110_v39  ;;  %v3408_v35 = vsel %vm20_vm0, %v4380_v37, 0.0  ;;  %v3606_v62 = vsel %vm20_vm0, %v3480_v15, 0.0 }
 0x388   :  { %v3602_v2 = vsel %vm20_vm0, %v3478_v9, 0.0  ;;  %3933 = vst.msk [vmem:[%s6177_s4 + $0xf4] sm:$0xf] %vm3871_vm12, %v4108_v13 }
 0x389   :  { %v3407_v10 = vadd.f32 %v3406_v53, %v3405_v54  ;;  %v3603_v27 = vadd.f32 %v3602_v2, %v3601_v12 }
 0x38b   :  { %v3409_v16 = vadd.f32 %v3408_v35, %v3407_v10  ;;  %v3605_v1 = vadd.f32 %v3604_v58, %v3603_v27 }
 0x38d   :  { %v3410_v50 = vrot.slane %v3409_v16, 4  ;;  %v3607_v30 = vadd.f32 %v3606_v62, %v3605_v1 }
 0x38f   :  { %v3411_v38 = vadd.f32 %v3410_v50, %v3409_v16  ;;  %v3608_v63 = vrot.slane %v3607_v30, 4 }
 0x391   :  { %v3412_v8 = vrot.slane %v3411_v38, 2  ;;  %v3609_v17 = vadd.f32 %v3608_v63, %v3607_v30 }
 0x393   :  { %v3413_v43 = vadd.f32 %v3412_v8, %v3411_v38  ;;  %v3610_v49 = vrot.slane %v3609_v17, 2 }
 0x395   :  { %v3414_v28 = vrot.slane %v3413_v43, 1  ;;  %v3611_v5 = vadd.f32 %v3610_v49, %v3609_v17 }
 0x397   :  { %v3415_v19 = vadd.f32 %v3414_v28, %v3413_v43  ;;  %v3612_v14 = vrot.slane %v3611_v5, 1 }
 0x399   :  { %3416 = vst.msk [vmem:[%s6178_s5] sm:$0x1] %vm29_vm2, %v3415_v19  ;;  %v3613_v42 = vadd.f32 %v3612_v14, %v3611_v5 }
 0x39b   :  { %3614 = vst.msk [vmem:[%s6178_s5 + $0x1] sm:$0x1] %vm29_vm2, %v3613_v42 }

// kernel: basic_block_forward.3
= control target key start
LH: loop header
LB: loop body
LE: loop exit
PB: predicated region body
PF: predicated region fallthrough
CT: control target
= control target key end

     0   :  { %vm15_vm0 = vcmask 31744   ;;  %vm18_vm1 = vcmask 25600   ;;  %vm24_vm2 = vcmask 24576   ;;  %v4109_v0 = vmov 0.0   ;;  %s4110_s7 = smov 4   ;;  %s4111_s28 = smov 8   ;;  %s6390_s0 = inlined_call_operand.vmem [shape: f32[2,16,16,4], index: 0, kind: input, shape index: {}]   ;;  %s6391_s1 = inlined_call_operand.vmem [shape: bf16[36,16], index: 1, kind: input, shape index: {}]   ;;  %s6392_s2 = inlined_call_operand.vmem [shape: bf16[2,16,16,8], index: 2, kind: output, shape index: {0}]   ;;  %s6393_s3 = inlined_call_operand.vmem [shape: bf16[2,16,16,8], index: 3, kind: output, shape index: {1}]   ;;  %s6394_s4 = inlined_call_operand.vmem [shape: f32[1,2,16], index: 4, kind: output, shape index: {2}]  }
   0x1   :  { %16 = vst.msk [vmem:[#allocation2] sm:$0xff] %vm15_vm0, %v4109_v0  ;;  %17 = vst.msk [vmem:[#allocation2 + $0x8] sm:$0xff] %vm15_vm0, %v4109_v0  ;;  %v107_v1 = vld [vmem:[%s6390_s0 + $0x10] sm:$0xff]  ;;  %v108_v2 = vld [vmem:[%s6390_s0 + $0x18] sm:$0xff]  ;;  %s4112_s29 = smov 12   ;;  %s4113_s30 = smov 16  }
   0x2   :  { %19 = vst.msk [vmem:[#allocation2 + $0x10] sm:$0x3] %vm18_vm1, %v4109_v0  ;;  %23 = vst.msk [vmem:[#allocation2 + $0x1a8] sm:$0x3] %vm18_vm1, %v4109_v0  ;;  %v105_v3 = vld [vmem:[%s6390_s0] sm:$0xff]  ;;  %v106_v4 = vld [vmem:[%s6390_s0 + $0x8] sm:$0xff] }
   0x3   :  { %21 = vst.msk [vmem:[#allocation2 + $0x198] sm:$0xff] %vm15_vm0, %v4109_v0  ;;  %22 = vst.msk [vmem:[#allocation2 + $0x1a0] sm:$0xff] %vm15_vm0, %v4109_v0  ;;  %v109_v5 = vld [vmem:[%s6390_s0 + $0x20] sm:$0xff]  ;;  %v110_v6 = vld [vmem:[%s6390_s0 + $0x28] sm:$0xff]  ;;  %vm412_vm3 = vcmask 64544   ;;  %s4114_s18 = smov 20  }
   0x4   :  { %26 = vst.msk [vmem:[#allocation2 + $0x18] sm:$0x1] %vm24_vm2, %v4109_v0  ;;  %27 = vst.msk [vmem:[#allocation2 + $0x30] sm:$0x1] %vm24_vm2, %v4109_v0  ;;  %v111_v7 = vld [vmem:[%s6390_s0 + $0x30] sm:$0xff]  ;;  %v112_v8 = vld [vmem:[%s6390_s0 + $0x38] sm:$0xff] }
   0x5   :  { %28 = vst.msk [vmem:[#allocation2 + $0x48] sm:$0x1] %vm24_vm2, %v4109_v0  ;;  %29 = vst.msk [vmem:[#allocation2 + $0x60] sm:$0x1] %vm24_vm2, %v4109_v0  ;;  %v113_v9 = vld [vmem:[%s6390_s0 + $0x40] sm:$0xff]  ;;  %v114_v10 = vld [vmem:[%s6390_s0 + $0x48] sm:$0xff] }
   0x6   :  { %30 = vst.msk [vmem:[#allocation2 + $0x78] sm:$0x1] %vm24_vm2, %v4109_v0  ;;  %31 = vst.msk [vmem:[#allocation2 + $0x90] sm:$0x1] %vm24_vm2, %v4109_v0  ;;  %v115_v11 = vld [vmem:[%s6390_s0 + $0x50] sm:$0xff]  ;;  %v116_v12 = vld [vmem:[%s6390_s0 + $0x58] sm:$0xff] }
   0x7   :  { %32 = vst.msk [vmem:[#allocation2 + $0xa8] sm:$0x1] %vm24_vm2, %v4109_v0  ;;  %33 = vst.msk [vmem:[#allocation2 + $0xc0] sm:$0x1] %vm24_vm2, %v4109_v0  ;;  %v117_v13 = vld [vmem:[%s6390_s0 + $0x60] sm:$0xff]  ;;  %v118_v14 = vld [vmem:[%s6390_s0 + $0x68] sm:$0xff] }
   0x8   :  { %34 = vst.msk [vmem:[#allocation2 + $0xd8] sm:$0x1] %vm24_vm2, %v4109_v0  ;;  %35 = vst.msk [vmem:[#allocation2 + $0xf0] sm:$0x1] %vm24_vm2, %v4109_v0  ;;  %v119_v15 = vld [vmem:[%s6390_s0 + $0x70] sm:$0xff]  ;;  %v120_v16 = vld [vmem:[%s6390_s0 + $0x78] sm:$0xff] }
   0x9   :  { %36 = vst.msk [vmem:[#allocation2 + $0x108] sm:$0x1] %vm24_vm2, %v4109_v0  ;;  %37 = vst.msk [vmem:[#allocation2 + $0x120] sm:$0x1] %vm24_vm2, %v4109_v0  ;;  %v121_v17 = vld [vmem:[%s6390_s0 + $0x80] sm:$0xff]  ;;  %v122_v18 = vld [vmem:[%s6390_s0 + $0x88] sm:$0xff] }
   0xa   :  { %38 = vst.msk [vmem:[#allocation2 + $0x138] sm:$0x1] %vm24_vm2, %v4109_v0  ;;  %39 = vst.msk [vmem:[#allocation2 + $0x150] sm:$0x1] %vm24_vm2, %v4109_v0  ;;  %v123_v19 = vld [vmem:[%s6390_s0 + $0x90] sm:$0xff]  ;;  %v124_v20 = vld [vmem:[%s6390_s0 + $0x98] sm:$0xff] }
   0xb   :  { %40 = vst.msk [vmem:[#allocation2 + $0x168] sm:$0x1] %vm24_vm2, %v4109_v0  ;;  %41 = vst.msk [vmem:[#allocation2 + $0x180] sm:$0x1] %vm24_vm2, %v4109_v0  ;;  %v125_v21 = vld [vmem:[%s6390_s0 + $0xa0] sm:$0xff]  ;;  %v301_v23 = vld [vmem:[#allocation2 + $0x9] sm:$0xff] }
   0xc   :  { %44 = vst.msk [vmem:[#allocation2 + $0x29] sm:$0x1] %vm24_vm2, %v4109_v0  ;;  %45 = vst.msk [vmem:[#allocation2 + $0x41] sm:$0x1] %vm24_vm2, %v4109_v0  ;;  %v300_v22 = vld [vmem:[#allocation2 + $0x1] sm:$0xff]  ;;  %v127_v45 = vld [vmem:[%s6390_s0 + $0xb0] sm:$0xff] }
   0xd   :  { %46 = vst.msk [vmem:[#allocation2 + $0x59] sm:$0x1] %vm24_vm2, %v4109_v0  ;;  %47 = vst.msk [vmem:[#allocation2 + $0x71] sm:$0x1] %vm24_vm2, %v4109_v0  ;;  %v126_v24 = vld [vmem:[%s6390_s0 + $0xa8] sm:$0xff]  ;;  %v332_v25 = vpack.c.bf16 %v301_v23, %v300_v22  ;;  %v128_v46 = vld [vmem:[%s6390_s0 + $0xb8] sm:$0xff] }
   0xe   :  { %48 = vst.msk [vmem:[#allocation2 + $0x89] sm:$0x1] %vm24_vm2, %v4109_v0  ;;  %49 = vst.msk [vmem:[#allocation2 + $0xa1] sm:$0x1] %vm24_vm2, %v4109_v0  ;;  %v129_v47 = vld [vmem:[%s6390_s0 + $0xc0] sm:$0xff]  ;;  %v130_v48 = vld [vmem:[%s6390_s0 + $0xc8] sm:$0xff] }
   0xf   :  { %50 = vst.msk [vmem:[#allocation2 + $0xb9] sm:$0x1] %vm24_vm2, %v4109_v0  ;;  %51 = vst.msk [vmem:[#allocation2 + $0xd1] sm:$0x1] %vm24_vm2, %v4109_v0  ;;  %364 = vrot.lane.b32.xlu0 %v332_v25, %s4110_s7  ;;  %v131_v49 = vld [vmem:[%s6390_s0 + $0xd0] sm:$0xff]  ;;  %v132_v50 = vld [vmem:[%s6390_s0 + $0xd8] sm:$0xff] }
  0x10   :  { %52 = vst.msk [vmem:[#allocation2 + $0xe9] sm:$0x1] %vm24_vm2, %v4109_v0  ;;  %53 = vst.msk [vmem:[#allocation2 + $0x101] sm:$0x1] %vm24_vm2, %v4109_v0  ;;  %v133_v51 = vld [vmem:[%s6390_s0 + $0xe0] sm:$0xff]  ;;  %v134_v52 = vld [vmem:[%s6390_s0 + $0xe8] sm:$0xff] }
  0x11   :  { %54 = vst.msk [vmem:[#allocation2 + $0x119] sm:$0x1] %vm24_vm2, %v4109_v0  ;;  %55 = vst.msk [vmem:[#allocation2 + $0x131] sm:$0x1] %vm24_vm2, %v4109_v0  ;;  %vm541_vm4 = vcmask 97344   ;;  %s4115_s27 = smov 24  }
  0x12   :  { %56 = vst.msk [vmem:[#allocation2 + $0x149] sm:$0x1] %vm24_vm2, %v4109_v0  ;;  %57 = vst.msk [vmem:[#allocation2 + $0x161] sm:$0x1] %vm24_vm2, %v4109_v0  ;;  %vm670_vm5 = vcmask 130144   ;;  %s4116_s10 = smov 28  }
  0x13   :  { %58 = vst.msk [vmem:[#allocation2 + $0x179] sm:$0x1] %vm24_vm2, %v4109_v0  ;;  %59 = vst.msk [vmem:[#allocation2 + $0x191] sm:$0x1] %vm24_vm2, %v4109_v0  ;;  %vm799_vm6 = vcmask 162944   ;;  %vm2572_vm7 = vcmask 1041408  }
  0x14   :  { %62 = vst.msk [vmem:[#allocation2 + $0x1b0] sm:$0xff] %vm15_vm0, %v4109_v0  ;;  %63 = vst.msk [vmem:[#allocation2 + $0x1b8] sm:$0xff] %vm15_vm0, %v4109_v0  ;;  %s4117_s25 = smov 32   ;;  %vm928_vm8 = vcmask 195744   ;;  %vm1058_vm9 = vcmask 228544   ;;  %vm1187_vm10 = vcmask 261344  }
  0x15   :  { %64 = vst.msk [vmem:[#allocation2 + $0x1c0] sm:$0x3] %vm18_vm1, %v4109_v0  ;;  %68 = vst.msk [vmem:[#allocation2 + $0x358] sm:$0x3] %vm18_vm1, %v4109_v0  ;;  %vm1316_vm11 = vcmask 294144   ;;  %vm2475_vm12 = vcmask 293888  }
  0x16   :  { %66 = vst.msk [vmem:[#allocation2 + $0x348] sm:$0xff] %vm15_vm0, %v4109_v0  ;;  %67 = vst.msk [vmem:[#allocation2 + $0x350] sm:$0xff] %vm15_vm0, %v4109_v0  ;;  %vm3455_vm13 = vcmask 60416   ;;  %vm2865_vm14 = vcmask 130048   ;;  %vm2999_vm15 = vcmask 122880  }
  0x17   :  { %70 = vst.msk [vmem:[#allocation2 + $0x1c8] sm:$0x1] %vm24_vm2, %v4109_v0  ;;  %71 = vst.msk [vmem:[#allocation2 + $0x1e0] sm:$0x1] %vm24_vm2, %v4109_v0 }
  0x18   :  { %72 = vst.msk [vmem:[#allocation2 + $0x1f8] sm:$0x1] %vm24_vm2, %v4109_v0  ;;  %73 = vst.msk [vmem:[#allocation2 + $0x210] sm:$0x1] %vm24_vm2, %v4109_v0 }
  0x19   :  { %74 = vst.msk [vmem:[#allocation2 + $0x228] sm:$0x1] %vm24_vm2, %v4109_v0  ;;  %75 = vst.msk [vmem:[#allocation2 + $0x240] sm:$0x1] %vm24_vm2, %v4109_v0 }
  0x1a   :  { %76 = vst.msk [vmem:[#allocation2 + $0x258] sm:$0x1] %vm24_vm2, %v4109_v0  ;;  %77 = vst.msk [vmem:[#allocation2 + $0x270] sm:$0x1] %vm24_vm2, %v4109_v0 }
  0x1b   :  { %78 = vst.msk [vmem:[#allocation2 + $0x288] sm:$0x1] %vm24_vm2, %v4109_v0  ;;  %79 = vst.msk [vmem:[#allocation2 + $0x2a0] sm:$0x1] %vm24_vm2, %v4109_v0 }
  0x1c   :  { %80 = vst.msk [vmem:[#allocation2 + $0x2b8] sm:$0x1] %vm24_vm2, %v4109_v0  ;;  %81 = vst.msk [vmem:[#allocation2 + $0x2d0] sm:$0x1] %vm24_vm2, %v4109_v0 }
  0x1d   :  { %82 = vst.msk [vmem:[#allocation2 + $0x2e8] sm:$0x1] %vm24_vm2, %v4109_v0  ;;  %83 = vst.msk [vmem:[#allocation2 + $0x300] sm:$0x1] %vm24_vm2, %v4109_v0 }
  0x1e   :  { %84 = vst.msk [vmem:[#allocation2 + $0x318] sm:$0x1] %vm24_vm2, %v4109_v0  ;;  %85 = vst.msk [vmem:[#allocation2 + $0x330] sm:$0x1] %vm24_vm2, %v4109_v0 }
  0x1f   :  { %88 = vst.msk [vmem:[#allocation2 + $0x1d9] sm:$0x1] %vm24_vm2, %v4109_v0  ;;  %89 = vst.msk [vmem:[#allocation2 + $0x1f1] sm:$0x1] %vm24_vm2, %v4109_v0 }
  0x20   :  { %90 = vst.msk [vmem:[#allocation2 + $0x209] sm:$0x1] %vm24_vm2, %v4109_v0  ;;  %91 = vst.msk [vmem:[#allocation2 + $0x221] sm:$0x1] %vm24_vm2, %v4109_v0 }
  0x21   :  { %92 = vst.msk [vmem:[#allocation2 + $0x239] sm:$0x1] %vm24_vm2, %v4109_v0  ;;  %93 = vst.msk [vmem:[#allocation2 + $0x251] sm:$0x1] %vm24_vm2, %v4109_v0 }
  0x22   :  { %94 = vst.msk [vmem:[#allocation2 + $0x269] sm:$0x1] %vm24_vm2, %v4109_v0  ;;  %95 = vst.msk [vmem:[#allocation2 + $0x281] sm:$0x1] %vm24_vm2, %v4109_v0 }
  0x23   :  { %96 = vst.msk [vmem:[#allocation2 + $0x299] sm:$0x1] %vm24_vm2, %v4109_v0  ;;  %97 = vst.msk [vmem:[#allocation2 + $0x2b1] sm:$0x1] %vm24_vm2, %v4109_v0 }
  0x24   :  { %98 = vst.msk [vmem:[#allocation2 + $0x2c9] sm:$0x1] %vm24_vm2, %v4109_v0  ;;  %99 = vst.msk [vmem:[#allocation2 + $0x2e1] sm:$0x1] %vm24_vm2, %v4109_v0 }
  0x25   :  { %100 = vst.msk [vmem:[#allocation2 + $0x2f9] sm:$0x1] %vm24_vm2, %v4109_v0  ;;  %101 = vst.msk [vmem:[#allocation2 + $0x311] sm:$0x1] %vm24_vm2, %v4109_v0 }
  0x26   :  { %102 = vst.msk [vmem:[#allocation2 + $0x329] sm:$0x1] %vm24_vm2, %v4109_v0  ;;  %103 = vst.msk [vmem:[#allocation2 + $0x341] sm:$0x1] %vm24_vm2, %v4109_v0 }
  0x27   :  { %43 = vst.msk [vmem:[#allocation2 + $0x11] sm:$0x1] %vm24_vm2, %v4109_v0  ;;  %25 = vst.msk [vmem:[#allocation2] sm:$0x1] %vm24_vm2, %v4109_v0 }
  0x28   :  { %140 = vst.msk [vmem:[#allocation2 + $0x31] sm:$0xff] %vm15_vm0, %v107_v1  ;;  %141 = vst.msk [vmem:[#allocation2 + $0x39] sm:$0xff] %vm15_vm0, %v108_v2 }
  0x29   :  { %42 = vst.msk [vmem:[#allocation2 + $0x198] sm:$0x1] %vm24_vm2, %v4109_v0  ;;  %60 = vst.msk [vmem:[#allocation2 + $0x1a9] sm:$0x1] %vm24_vm2, %v4109_v0 }
  0x2a   :  { %69 = vst.msk [vmem:[#allocation2 + $0x1b0] sm:$0x1] %vm24_vm2, %v4109_v0  ;;  %86 = vst.msk [vmem:[#allocation2 + $0x348] sm:$0x1] %vm24_vm2, %v4109_v0 }
  0x2b   :  { %87 = vst.msk [vmem:[#allocation2 + $0x1c1] sm:$0x1] %vm24_vm2, %v4109_v0  ;;  %104 = vst.msk [vmem:[#allocation2 + $0x359] sm:$0x1] %vm24_vm2, %v4109_v0 }
  0x2c   :  { %138 = vst.msk [vmem:[#allocation2 + $0x19] sm:$0xff] %vm15_vm0, %v105_v3  ;;  %139 = vst.msk [vmem:[#allocation2 + $0x21] sm:$0xff] %vm15_vm0, %v106_v4 }
  0x2d   :  { %142 = vst.msk [vmem:[#allocation2 + $0x49] sm:$0xff] %vm15_vm0, %v109_v5  ;;  %143 = vst.msk [vmem:[#allocation2 + $0x51] sm:$0xff] %vm15_vm0, %v110_v6 }
  0x2e   :  { %144 = vst.msk [vmem:[#allocation2 + $0x61] sm:$0xff] %vm15_vm0, %v111_v7  ;;  %145 = vst.msk [vmem:[#allocation2 + $0x69] sm:$0xff] %vm15_vm0, %v112_v8 }
  0x2f   :  { %146 = vst.msk [vmem:[#allocation2 + $0x79] sm:$0xff] %vm15_vm0, %v113_v9  ;;  %147 = vst.msk [vmem:[#allocation2 + $0x81] sm:$0xff] %vm15_vm0, %v114_v10  ;;  %v304_v26 = vld [vmem:[#allocation2 + $0x31] sm:$0xff]  ;;  %v305_v27 = vld [vmem:[#allocation2 + $0x39] sm:$0xff] }
  0x30   :  { %148 = vst.msk [vmem:[#allocation2 + $0x91] sm:$0xff] %vm15_vm0, %v115_v11  ;;  %149 = vst.msk [vmem:[#allocation2 + $0x99] sm:$0xff] %vm15_vm0, %v116_v12  ;;  %v4400_v29 = vpack.c.bf16 %v305_v27, %v304_v26 }
  0x31   :  { %150 = vst.msk [vmem:[#allocation2 + $0xa9] sm:$0xff] %vm15_vm0, %v117_v13  ;;  %151 = vst.msk [vmem:[#allocation2 + $0xb1] sm:$0xff] %vm15_vm0, %v118_v14 }
  0x32   :  { %152 = vst.msk [vmem:[#allocation2 + $0xc1] sm:$0xff] %vm15_vm0, %v119_v15  ;;  %153 = vst.msk [vmem:[#allocation2 + $0xc9] sm:$0xff] %vm15_vm0, %v120_v16  ;;  %368 = vrot.lane.b32.xlu1 %v4400_v29, %s4110_s7  ;;  %v560_v16 = vld [vmem:[#allocation2 + $0x30] sm:$0xff] }
  0x33   :  { %154 = vst.msk [vmem:[#allocation2 + $0xd9] sm:$0xff] %vm15_vm0, %v121_v17  ;;  %155 = vst.msk [vmem:[#allocation2 + $0xe1] sm:$0xff] %vm15_vm0, %v122_v18  ;;  %v302_v28 = vld [vmem:[#allocation2 + $0x19] sm:$0xff]  ;;  %v303_v30 = vld [vmem:[#allocation2 + $0x21] sm:$0xff] }
  0x34   :  { %156 = vst.msk [vmem:[#allocation2 + $0xf1] sm:$0xff] %vm15_vm0, %v123_v19  ;;  %157 = vst.msk [vmem:[#allocation2 + $0xf9] sm:$0xff] %vm15_vm0, %v124_v20  ;;  %v306_v31 = vld [vmem:[#allocation2 + $0x49] sm:$0xff]  ;;  %v307_v32 = vld [vmem:[#allocation2 + $0x51] sm:$0xff]  ;;  %v4403_v33 = vpack.c.bf16 %v303_v30, %v302_v28 }
  0x35   :  { %158 = vst.msk [vmem:[#allocation2 + $0x109] sm:$0xff] %vm15_vm0, %v125_v21  ;;  %159 = vst.msk [vmem:[#allocation2 + $0x111] sm:$0xff] %vm15_vm0, %v126_v24  ;;  %v4407_v34 = vpack.c.bf16 %v307_v32, %v306_v31  ;;  %v308_v35 = vld [vmem:[#allocation2 + $0x61] sm:$0xff]  ;;  %v309_v36 = vld [vmem:[#allocation2 + $0x69] sm:$0xff] }
  0x36   :  { %v310_v37 = vld [vmem:[#allocation2 + $0x79] sm:$0xff]  ;;  %v311_v38 = vld [vmem:[#allocation2 + $0x81] sm:$0xff]  ;;  %366 = vrot.lane.b32.xlu0 %v4403_v33, %s4110_s7  ;;  %v4411_v39 = vpack.c.bf16 %v309_v36, %v308_v35  ;;  %160 = vst.msk [vmem:[#allocation2 + $0x121] sm:$0xff] %vm15_vm0, %v127_v45  ;;  %161 = vst.msk [vmem:[#allocation2 + $0x129] sm:$0xff] %vm15_vm0, %v128_v46 }
  0x37   :  { %v312_v40 = vld [vmem:[#allocation2 + $0x91] sm:$0xff]  ;;  %v313_v41 = vld [vmem:[#allocation2 + $0x99] sm:$0xff]  ;;  %370 = vrot.lane.b32.xlu1 %v4407_v34, %s4110_s7  ;;  %v4415_v43 = vpack.c.bf16 %v311_v38, %v310_v37  ;;  %162 = vst.msk [vmem:[#allocation2 + $0x139] sm:$0xff] %vm15_vm0, %v129_v47  ;;  %163 = vst.msk [vmem:[#allocation2 + $0x141] sm:$0xff] %vm15_vm0, %v130_v48 }
  0x38   :  { %v314_v42 = vld [vmem:[#allocation2 + $0xa9] sm:$0xff]  ;;  %v315_v44 = vld [vmem:[#allocation2 + $0xb1] sm:$0xff]  ;;  %164 = vst.msk [vmem:[#allocation2 + $0x151] sm:$0xff] %vm15_vm0, %v131_v49  ;;  %v4448_v53 = vpack.c.bf16 %v313_v41, %v312_v40  ;;  %165 = vst.msk [vmem:[#allocation2 + $0x159] sm:$0xff] %vm15_vm0, %v132_v50 }
  0x39   :  { %166 = vst.msk [vmem:[#allocation2 + $0x169] sm:$0xff] %vm15_vm0, %v133_v51  ;;  %167 = vst.msk [vmem:[#allocation2 + $0x171] sm:$0xff] %vm15_vm0, %v134_v52  ;;  %v4455_v54 = vpack.c.bf16 %v315_v44, %v314_v42  ;;  %v316_v55 = vld [vmem:[#allocation2 + $0xc1] sm:$0xff]  ;;  %v317_v56 = vld [vmem:[#allocation2 + $0xc9] sm:$0xff] }
  0x3a   :  { %372 = vrot.lane.b32.xlu0 %v4411_v39, %s4110_s7  ;;  %v318_v57 = vld [vmem:[#allocation2 + $0xd9] sm:$0xff]  ;;  %v319_v58 = vld [vmem:[#allocation2 + $0xe1] sm:$0xff]  ;;  %v4459_v59 = vpack.c.bf16 %v317_v56, %v316_v55  ;;  %v4485_v20 = vld [vmem:[#allocation2 + $0xa] sm:$0xff] }
  0x3b   :  { %374 = vrot.lane.b32.xlu1 %v4415_v43, %s4110_s7  ;;  %v4463_v60 = vpack.c.bf16 %v319_v58, %v318_v57  ;;  %v320_v61 = vld [vmem:[#allocation2 + $0xf1] sm:$0xff]  ;;  %v321_v62 = vld [vmem:[#allocation2 + $0xf9] sm:$0xff]  ;;  %v562_v18 = vld [vmem:[#allocation2 + $0x48] sm:$0xff] }
  0x3c   :  { %v322_v63 = vld [vmem:[#allocation2 + $0x109] sm:$0xff]  ;;  %v323_v0 = vld [vmem:[#allocation2 + $0x111] sm:$0xff]  ;;  %v4467_v1 = vpack.c.bf16 %v321_v62, %v320_v61  ;;  %v559_v14 = vld [vmem:[#allocation2 + $0x20] sm:$0xff] }
  0x3d   :  { %v4471_v2 = vpack.c.bf16 %v323_v0, %v322_v63  ;;  %v324_v3 = vld [vmem:[#allocation2 + $0x121] sm:$0xff]  ;;  %v325_v4 = vld [vmem:[#allocation2 + $0x129] sm:$0xff]  ;;  %v558_v13 = vld [vmem:[#allocation2 + $0x18] sm:$0xff] }
  0x3e   :  { %376 = vrot.lane.b32.xlu0 %v4448_v53, %s4110_s7  ;;  %v326_v5 = vld [vmem:[#allocation2 + $0x139] sm:$0xff]  ;;  %v327_v6 = vld [vmem:[#allocation2 + $0x141] sm:$0xff]  ;;  %v4475_v7 = vpack.c.bf16 %v325_v4, %v324_v3  ;;  %v4481_v15 = vpack.c.bf16 %v559_v14, %v558_v13  ;;  %v563_v22 = vld [vmem:[#allocation2 + $0x50] sm:$0xff] }
  0x3f   :  { %378 = vrot.lane.b32.xlu1 %v4455_v54, %s4110_s7  ;;  %v328_v8 = vld [vmem:[#allocation2 + $0x151] sm:$0xff]  ;;  %v329_v9 = vld [vmem:[#allocation2 + $0x159] sm:$0xff]  ;;  %v4479_v11 = vpack.c.bf16 %v327_v6, %v326_v5  ;;  %v4483_v19 = vld [vmem:[#allocation2 + $0x2] sm:$0xff]  ;;  %v4493_v28 = vpack.c.bf16 %v563_v22, %v562_v18 }
  0x40   :  { %v330_v10 = vld [vmem:[#allocation2 + $0x169] sm:$0xff]  ;;  %v331_v12 = vld [vmem:[#allocation2 + $0x171] sm:$0xff]  ;;  %v564_v23 = vld [vmem:[#allocation2 + $0x60] sm:$0xff]  ;;  %v4491_v25 = vpack.c.bf16 %v329_v9, %v328_v8  ;;  %285 = vst.msk [vmem:[#allocation3 + $0x8] sm:$0xff] %vm15_vm0, %v4481_v15  ;;  %v461_v56 = vpack.c.bf16 %v4485_v20, %v4483_v19 }
  0x41   :  { %v561_v17 = vld [vmem:[#allocation2 + $0x38] sm:$0xff]  ;;  %v565_v24 = vld [vmem:[#allocation2 + $0x68] sm:$0xff]  ;;  %v567_v32 = vld [vmem:[#allocation2 + $0x80] sm:$0xff]  ;;  %v4501_v36 = vpack.c.bf16 %v331_v12, %v330_v10  ;;  %287 = vst.msk [vmem:[#allocation3 + $0x18] sm:$0xff] %vm15_vm0, %v4493_v28 }
  0x42   :  { %380 = vrot.lane.b32.xlu0 %v4459_v59, %s4110_s7  ;;  %v4487_v21 = vpack.c.bf16 %v561_v17, %v560_v16  ;;  %v431_v26 = vld [vmem:[#allocation2 + $0x1a] sm:$0xff]  ;;  %v432_v27 = vld [vmem:[#allocation2 + $0x22] sm:$0xff]  ;;  %v4495_v30 = vpack.c.bf16 %v565_v24, %v564_v23  ;;  %v568_v35 = vld [vmem:[#allocation2 + $0x90] sm:$0xff] }
  0x43   :  { %382 = vrot.lane.b32.xlu1 %v4463_v60, %s4110_s7  ;;  %v566_v31 = vld [vmem:[#allocation2 + $0x78] sm:$0xff]  ;;  %v570_v40 = vld [vmem:[#allocation2 + $0xa8] sm:$0xff]  ;;  %v571_v41 = vld [vmem:[#allocation2 + $0xb0] sm:$0xff]  ;;  %v4533_v4 = vpack.c.bf16 %v432_v27, %v431_v26 }
  0x44   :  { %v4503_v37 = vpack.c.bf16 %v567_v32, %v566_v31  ;;  %v569_v38 = vld [vmem:[#allocation2 + $0x98] sm:$0xff]  ;;  %286 = vst.msk [vmem:[#allocation3 + $0x10] sm:$0xff] %vm15_vm0, %v4487_v21  ;;  %v4509_v44 = vpack.c.bf16 %v571_v41, %v570_v40  ;;  %v572_v45 = vld [vmem:[#allocation2 + $0xc0] sm:$0xff]  ;;  %v573_v46 = vld [vmem:[#allocation2 + $0xc8] sm:$0xff] }
  0x45   :  { %v4507_v42 = vpack.c.bf16 %v569_v38, %v568_v35  ;;  %v574_v47 = vld [vmem:[#allocation2 + $0xd8] sm:$0xff]  ;;  %288 = vst.msk [vmem:[#allocation3 + $0x20] sm:$0xff] %vm15_vm0, %v4495_v30  ;;  %v4515_v50 = vpack.c.bf16 %v573_v46, %v572_v45  ;;  %v575_v51 = vld [vmem:[#allocation2 + $0xe0] sm:$0xff]  ;;  %v576_v52 = vld [vmem:[#allocation2 + $0xf0] sm:$0xff] }
  0x46   :  { %384 = vrot.lane.b32.xlu0 %v4467_v1, %s4110_s7  ;;  %v433_v48 = vld [vmem:[#allocation2 + $0x32] sm:$0xff]  ;;  %v434_v49 = vld [vmem:[#allocation2 + $0x3a] sm:$0xff]  ;;  %289 = vst.msk [vmem:[#allocation3 + $0x28] sm:$0xff] %vm15_vm0, %v4503_v37  ;;  %v435_v57 = vld [vmem:[#allocation2 + $0x4a] sm:$0xff]  ;;  %v4523_v61 = vpack.c.bf16 %v575_v51, %v574_v47 }
  0x47   :  { %386 = vrot.lane.b32.xlu1 %v4471_v2, %s4110_s7  ;;  %v577_v55 = vld [vmem:[#allocation2 + $0xf8] sm:$0xff]  ;;  %v578_v63 = vld [vmem:[#allocation2 + $0x108] sm:$0xff]  ;;  %v579_v0 = vld [vmem:[#allocation2 + $0x110] sm:$0xff]  ;;  %290 = vst.msk [vmem:[#allocation3 + $0x30] sm:$0xff] %vm15_vm0, %v4507_v42  ;;  %v4558_v22 = vpack.c.bf16 %v434_v49, %v433_v48 }
  0x48   :  { %v436_v58 = vld [vmem:[#allocation2 + $0x52] sm:$0xff]  ;;  %v4525_v62 = vpack.c.bf16 %v577_v55, %v576_v52  ;;  %v580_v3 = vld [vmem:[#allocation2 + $0x120] sm:$0xff]  ;;  %291 = vst.msk [vmem:[#allocation3 + $0x38] sm:$0xff] %vm15_vm0, %v4509_v44  ;;  %v4535_v5 = vpack.c.bf16 %v579_v0, %v578_v63  ;;  %v581_v6 = vld [vmem:[#allocation2 + $0x128] sm:$0xff] }
  0x49   :  { %v582_v8 = vld [vmem:[#allocation2 + $0x138] sm:$0xff]  ;;  %v583_v9 = vld [vmem:[#allocation2 + $0x140] sm:$0xff]  ;;  %292 = vst.msk [vmem:[#allocation3 + $0x40] sm:$0xff] %vm15_vm0, %v4515_v50  ;;  %v4539_v10 = vpack.c.bf16 %v581_v6, %v580_v3  ;;  %v584_v13 = vld [vmem:[#allocation2 + $0x150] sm:$0xff]  ;;  %v4570_v27 = vpack.c.bf16 %v436_v58, %v435_v57 }
  0x4a   :  { %388 = vrot.lane.b32.xlu0 %v4475_v7, %s4110_s7  ;;  %v4541_v12 = vpack.c.bf16 %v583_v9, %v582_v8  ;;  %v585_v14 = vld [vmem:[#allocation2 + $0x158] sm:$0xff]  ;;  %v586_v16 = vld [vmem:[#allocation2 + $0x168] sm:$0xff]  ;;  %293 = vst.msk [vmem:[#allocation3 + $0x48] sm:$0xff] %vm15_vm0, %v4523_v61  ;;  %294 = vst.msk [vmem:[#allocation3 + $0x50] sm:$0xff] %vm15_vm0, %v4525_v62 }
  0x4b   :  { %390 = vrot.lane.b32.xlu1 %v4479_v11, %s4110_s7  ;;  %v4547_v17 = vpack.c.bf16 %v585_v14, %v584_v13  ;;  %v587_v18 = vld [vmem:[#allocation2 + $0x170] sm:$0xff]  ;;  %v136_v20 = vld [vmem:[%s6390_s0 + $0xf8] sm:$0xff]  ;;  %295 = vst.msk [vmem:[#allocation3 + $0x58] sm:$0xff] %vm15_vm0, %v4535_v5  ;;  %v237_v24 = vld [vmem:[#allocation2 + $0x8] sm:$0xff] }
  0x4c   :  { %v135_v19 = vld [vmem:[%s6390_s0 + $0xf0] sm:$0xff]  ;;  %v4560_v23 = vpack.c.bf16 %v587_v18, %v586_v16  ;;  %169 = vst.msk [vmem:[#allocation2 + $0x189] sm:$0xff] %vm15_vm0, %v136_v20  ;;  %v236_v26 = vld [vmem:[#allocation2] sm:$0xff]  ;;  %296 = vst.msk [vmem:[#allocation3 + $0x60] sm:$0xff] %vm15_vm0, %v4539_v10 }
  0x4d   :  { %168 = vst.msk [vmem:[#allocation2 + $0x181] sm:$0xff] %vm15_vm0, %v135_v19  ;;  %297 = vst.msk [vmem:[#allocation3 + $0x68] sm:$0xff] %vm15_vm0, %v4541_v12  ;;  %v437_v31 = vld [vmem:[#allocation2 + $0x62] sm:$0xff]  ;;  %v438_v32 = vld [vmem:[#allocation2 + $0x6a] sm:$0xff]  ;;  %v268_v35 = vpack.c.bf16 %v237_v24, %v236_v26 }
  0x4e   :  { %392 = vrot.lane.b32.xlu0 %v4491_v25, %s4110_s7  ;;  %298 = vst.msk [vmem:[#allocation3 + $0x70] sm:$0xff] %vm15_vm0, %v4547_v17  ;;  %v439_v38 = vld [vmem:[#allocation2 + $0x7a] sm:$0xff]  ;;  %v440_v40 = vld [vmem:[#allocation2 + $0x82] sm:$0xff]  ;;  %299 = vst.msk [vmem:[#allocation3 + $0x78] sm:$0xff] %vm15_vm0, %v4560_v23  ;;  %v4579_v41 = vpack.c.bf16 %v438_v32, %v437_v31 }
  0x4f   :  { %394 = vrot.lane.b32.xlu1 %v4501_v36, %s4110_s7  ;;  %284 = vst.msk [vmem:[#allocation3] sm:$0xff] %vm15_vm0, %v268_v35  ;;  %v4583_v45 = vpack.c.bf16 %v440_v40, %v439_v38  ;;  %v441_v46 = vld [vmem:[#allocation2 + $0x92] sm:$0xff]  ;;  %v442_v47 = vld [vmem:[#allocation2 + $0x9a] sm:$0xff]  ;;  %v443_v48 = vld [vmem:[#allocation2 + $0xaa] sm:$0xff] }
  0x50   :  { %v444_v49 = vld [vmem:[#allocation2 + $0xb2] sm:$0xff]  ;;  %v4587_v51 = vpack.c.bf16 %v442_v47, %v441_v46  ;;  %v445_v55 = vld [vmem:[#allocation2 + $0xc2] sm:$0xff]  ;;  %v447_v57 = vld [vmem:[#allocation2 + $0xda] sm:$0xff] }
  0x51   :  { %v4591_v52 = vpack.c.bf16 %v444_v49, %v443_v48  ;;  %v448_v58 = vld [vmem:[#allocation2 + $0xe2] sm:$0xff]  ;;  %v449_v3 = vld [vmem:[#allocation2 + $0xf2] sm:$0xff]  ;;  %v450_v6 = vld [vmem:[#allocation2 + $0xfa] sm:$0xff] }
  0x52   :  { %493 = vrot.lane.b32.xlu0 %v461_v56, %s4111_s28  ;;  %v446_v56 = vld [vmem:[#allocation2 + $0xca] sm:$0xff]  ;;  %v4599_v0 = vpack.c.bf16 %v448_v58, %v447_v57  ;;  %v452_v9 = vld [vmem:[#allocation2 + $0x112] sm:$0xff]  ;;  %v4603_v13 = vpack.c.bf16 %v450_v6, %v449_v3  ;;  %v453_v16 = vld [vmem:[#allocation2 + $0x122] sm:$0xff] }
  0x53   :  { %495 = vrot.lane.b32.xlu1 %v4533_v4, %s4111_s28  ;;  %v4595_v63 = vpack.c.bf16 %v446_v56, %v445_v55  ;;  %v451_v8 = vld [vmem:[#allocation2 + $0x10a] sm:$0xff]  ;;  %v455_v19 = vld [vmem:[#allocation2 + $0x13a] sm:$0xff]  ;;  %v456_v20 = vld [vmem:[#allocation2 + $0x142] sm:$0xff] }
  0x54   :  { %v4607_v14 = vpack.c.bf16 %v452_v9, %v451_v8  ;;  %v454_v18 = vld [vmem:[#allocation2 + $0x12a] sm:$0xff]  ;;  %v4615_v26 = vpack.c.bf16 %v456_v20, %v455_v19  ;;  %v457_v31 = vld [vmem:[#allocation2 + $0x152] sm:$0xff]  ;;  %v458_v32 = vld [vmem:[#allocation2 + $0x15a] sm:$0xff] }
  0x55   :  { %v4611_v24 = vpack.c.bf16 %v454_v18, %v453_v16  ;;  %v459_v35 = vld [vmem:[#allocation2 + $0x16a] sm:$0xff]  ;;  %v460_v38 = vld [vmem:[#allocation2 + $0x172] sm:$0xff]  ;;  %v4619_v40 = vpack.c.bf16 %v458_v32, %v457_v31  ;;  %v3788_v49 = vld [vmem:[%s6390_s0 + $0x100] sm:$0xff] }
  0x56   :  { %497 = vrot.lane.b32.xlu0 %v4558_v22, %s4111_s28  ;;  %v4623_v46 = vpack.c.bf16 %v460_v38, %v459_v35  ;;  %v589_v47 = vld [vmem:[#allocation2 + $0x188] sm:$0xff]  ;;  %204 = vst.msk [vmem:[#allocation2 + $0x1c9] sm:$0xff] %vm15_vm0, %v3788_v49 }
  0x57   :  { %499 = vrot.lane.b32.xlu1 %v4570_v27, %s4111_s28  ;;  %v3789_v55 = vld [vmem:[%s6390_s0 + $0x108] sm:$0xff] }
  0x58   :  { %205 = vst.msk [vmem:[#allocation2 + $0x1d1] sm:$0xff] %vm15_vm0, %v3789_v55  ;;  %v3793_v6 = vld [vmem:[%s6390_s0 + $0x128] sm:$0xff] }
  0x59   :  { %209 = vst.msk [vmem:[#allocation2 + $0x201] sm:$0xff] %vm15_vm0, %v3793_v6  ;;  %v846_v35 = vld [vmem:[#allocation2 + $0x182] sm:$0xff] }
  0x5a   :  { %501 = vrot.lane.b32.xlu0 %v4579_v41, %s4111_s28  ;;  %v1077_v6 = vld [vmem:[#allocation2 + $0x49] sm:$0xff] }
  0x5b   :  { %503 = vrot.lane.b32.xlu1 %v4583_v45, %s4111_s28 }
  0x5e   :  { %505 = vrot.lane.b32.xlu0 %v4587_v51, %s4111_s28 }
  0x5f   :  { %507 = vrot.lane.b32.xlu1 %v4591_v52, %s4111_s28 }
  0x62   :  { %509 = vrot.lane.b32.xlu0 %v4595_v63, %s4111_s28 }
  0x63   :  { %511 = vrot.lane.b32.xlu1 %v4599_v0, %s4111_s28 }
  0x66   :  { %513 = vrot.lane.b32.xlu0 %v4603_v13, %s4111_s28 }
  0x67   :  { %515 = vrot.lane.b32.xlu1 %v4607_v14, %s4111_s28 }
  0x6a   :  { %517 = vrot.lane.b32.xlu0 %v4611_v24, %s4111_s28 }
  0x6b   :  { %519 = vrot.lane.b32.xlu1 %v4615_v26, %s4111_s28 }
  0x6e   :  { %521 = vrot.lane.b32.xlu0 %v4619_v40, %s4111_s28 }
  0x6f   :  { %523 = vrot.lane.b32.xlu1 %v4623_v46, %s4111_s28 }
  0x72   :  { %622 = vrot.lane.b32.xlu0 %v4481_v15, %s4112_s29  ;;  %v588_v15 = vld [vmem:[#allocation2 + $0x180] sm:$0xff] }
  0x73   :  { %624 = vrot.lane.b32.xlu1 %v4487_v21, %s4112_s29  ;;  %v4657_v48 = vpack.c.bf16 %v589_v47, %v588_v15  ;;  %v847_v15 = vld [vmem:[#allocation2 + $0x18a] sm:$0xff] }
  0x76   :  { %626 = vrot.lane.b32.xlu0 %v4493_v28, %s4112_s29 }
  0x77   :  { %628 = vrot.lane.b32.xlu1 %v4495_v30, %s4112_s29 }
  0x7a   :  { %630 = vrot.lane.b32.xlu0 %v4503_v37, %s4112_s29 }
  0x7b   :  { %632 = vrot.lane.b32.xlu1 %v4507_v42, %s4112_s29 }
  0x7e   :  { %634 = vrot.lane.b32.xlu0 %v4509_v44, %s4112_s29 }
  0x7f   :  { %636 = vrot.lane.b32.xlu1 %v4515_v50, %s4112_s29 }
  0x82   :  { %638 = vrot.lane.b32.xlu0 %v4523_v61, %s4112_s29 }
  0x83   :  { %640 = vrot.lane.b32.xlu1 %v4525_v62, %s4112_s29 }
  0x86   :  { %642 = vrot.lane.b32.xlu0 %v4535_v5, %s4112_s29 }
  0x87   :  { %644 = vrot.lane.b32.xlu1 %v4539_v10, %s4112_s29 }
  0x8a   :  { %646 = vrot.lane.b32.xlu0 %v4541_v12, %s4112_s29 }
  0x8b   :  { %648 = vrot.lane.b32.xlu1 %v4547_v17, %s4112_s29 }
  0x8e   :  { %650 = vrot.lane.b32.xlu0 %v4560_v23, %s4112_s29 }
  0x8f   :  { %652 = vrot.lane.b32.xlu1 %v4657_v48, %s4112_s29 }
  0x92   :  { %751 = vrot.lane.b32.xlu0 %v4403_v33, %s4113_s30  ;;  %v3791_v33 = vld [vmem:[%s6390_s0 + $0x118] sm:$0xff] }
  0x93   :  { %753 = vrot.lane.b32.xlu1 %v4400_v29, %s4113_s30  ;;  %v3790_v29 = vld [vmem:[%s6390_s0 + $0x110] sm:$0xff]  ;;  %207 = vst.msk [vmem:[#allocation2 + $0x1e9] sm:$0xff] %vm15_vm0, %v3791_v33 }
  0x94   :  { %206 = vst.msk [vmem:[#allocation2 + $0x1e1] sm:$0xff] %vm15_vm0, %v3790_v29 }
  0x96   :  { %755 = vrot.lane.b32.xlu0 %v4407_v34, %s4113_s30  ;;  %v1654_v34 = vld [vmem:[#allocation2 + $0x1c8] sm:$0xff] }
  0x97   :  { %757 = vrot.lane.b32.xlu1 %v4411_v39, %s4113_s30  ;;  %v1655_v39 = vld [vmem:[#allocation2 + $0x1d0] sm:$0xff] }
  0x9a   :  { %759 = vrot.lane.b32.xlu0 %v4415_v43, %s4113_s30  ;;  %v365_v43 = vpop.permute.xlu0 %364 }
  0x9b   :  { %761 = vrot.lane.b32.xlu1 %v4448_v53, %s4113_s30  ;;  %v4699_v53 = vpack.c.bf16 %v1655_v39, %v1654_v34  ;;  %v1656_v56 = vld [vmem:[#allocation2 + $0x1e0] sm:$0xff]  ;;  %v1657_v57 = vld [vmem:[#allocation2 + $0x1e8] sm:$0xff]  ;;  %413 = vst.msk [vmem:[#allocation3] sm:$0xff] %vm412_vm3, %v365_v43 }
  0x9c   :  { %v4702_v58 = vpack.c.bf16 %v1657_v57, %v1656_v56 }
  0x9d   :  { %1383 = vst.msk [vmem:[#allocation3 + $0x88] sm:$0xff] %vm15_vm0, %v4699_v53 }
  0x9e   :  { %763 = vrot.lane.b32.xlu0 %v4455_v54, %s4113_s30  ;;  %1384 = vst.msk [vmem:[#allocation3 + $0x90] sm:$0xff] %vm15_vm0, %v4702_v58 }
  0x9f   :  { %765 = vrot.lane.b32.xlu1 %v4459_v59, %s4113_s30 }
  0xa2   :  { %767 = vrot.lane.b32.xlu0 %v4463_v60, %s4113_s30  ;;  %v717_v60 = vld [vmem:[#allocation2 + $0x181] sm:$0xff] }
  0xa3   :  { %769 = vrot.lane.b32.xlu1 %v4467_v1, %s4113_s30  ;;  %v718_v1 = vld [vmem:[#allocation2 + $0x189] sm:$0xff] }
  0xa4   :  { %v369_v54 = vpop.permute.xlu1 %368 }
  0xa5   :  { %415 = vst.msk [vmem:[#allocation3 + $0x10] sm:$0xff] %vm412_vm3, %v369_v54 }
  0xa6   :  { %771 = vrot.lane.b32.xlu0 %v4471_v2, %s4113_s30  ;;  %v4719_v2 = vpack.c.bf16 %v718_v1, %v717_v60 }
  0xa7   :  { %773 = vrot.lane.b32.xlu1 %v4475_v7, %s4113_s30  ;;  %v3792_v7 = vld [vmem:[%s6390_s0 + $0x120] sm:$0xff] }
  0xa8   :  { %v367_v59 = vpop.permute.xlu0 %366  ;;  %208 = vst.msk [vmem:[#allocation2 + $0x1f9] sm:$0xff] %vm15_vm0, %v3792_v7 }
  0xa9   :  { %414 = vst.msk [vmem:[#allocation3 + $0x8] sm:$0xff] %vm412_vm3, %v367_v59  ;;  %v371_v3 = vpop.permute.xlu1 %370  ;;  %v977_v59 = vld [vmem:[#allocation2 + $0x1a0] sm:$0xff] }
  0xaa   :  { %416 = vst.msk [vmem:[#allocation3 + $0x18] sm:$0xff] %vm412_vm3, %v371_v3  ;;  %775 = vrot.lane.b32.xlu0 %v4479_v11, %s4113_s30  ;;  %v1075_v3 = vld [vmem:[#allocation2 + $0x31] sm:$0xff] }
  0xab   :  { %777 = vrot.lane.b32.xlu1 %v4491_v25, %s4113_s30 }
  0xac   :  { %v373_v8 = vpop.permute.xlu0 %372 }
  0xad   :  { %417 = vst.msk [vmem:[#allocation3 + $0x20] sm:$0xff] %vm412_vm3, %v373_v8  ;;  %v375_v11 = vpop.permute.xlu1 %374 }
  0xae   :  { %418 = vst.msk [vmem:[#allocation3 + $0x28] sm:$0xff] %vm412_vm3, %v375_v11  ;;  %779 = vrot.lane.b32.xlu0 %v4501_v36, %s4113_s30 }
  0xaf   :  { %781 = vrot.lane.b32.xlu1 %v4719_v2, %s4113_s30  ;;  %v2041_v16 = vld [vmem:[#allocation2 + $0x1f8] sm:$0xff]  ;;  %v2042_v18 = vld [vmem:[#allocation2 + $0x200] sm:$0xff] }
  0xb0   :  { %v377_v25 = vpop.permute.xlu0 %376  ;;  %v4741_v36 = vpack.c.bf16 %v2042_v18, %v2041_v16  ;;  %v1081_v16 = vld [vmem:[#allocation2 + $0x79] sm:$0xff]  ;;  %v1082_v18 = vld [vmem:[#allocation2 + $0x81] sm:$0xff] }
  0xb1   :  { %419 = vst.msk [vmem:[#allocation3 + $0x30] sm:$0xff] %vm412_vm3, %v377_v25  ;;  %v379_v9 = vpop.permute.xlu1 %378  ;;  %v1079_v25 = vld [vmem:[#allocation2 + $0x61] sm:$0xff] }
  0xb2   :  { %420 = vst.msk [vmem:[#allocation3 + $0x38] sm:$0xff] %vm412_vm3, %v379_v9  ;;  %880 = vrot.lane.b32.xlu0 %v4533_v4, %s4114_s18 }
  0xb3   :  { %882 = vrot.lane.b32.xlu1 %v4558_v22, %s4114_s18  ;;  %1385 = vst.msk [vmem:[#allocation3 + $0x98] sm:$0xff] %vm15_vm0, %v4741_v36 }
  0xb4   :  { %v381_v19 = vpop.permute.xlu0 %380 }
  0xb5   :  { %421 = vst.msk [vmem:[#allocation3 + $0x40] sm:$0xff] %vm412_vm3, %v381_v19  ;;  %v383_v20 = vpop.permute.xlu1 %382 }
  0xb6   :  { %422 = vst.msk [vmem:[#allocation3 + $0x48] sm:$0xff] %vm412_vm3, %v383_v20  ;;  %884 = vrot.lane.b32.xlu0 %v4570_v27, %s4114_s18 }
  0xb7   :  { %886 = vrot.lane.b32.xlu1 %v4579_v41, %s4114_s18 }
  0xb8   :  { %v385_v4 = vpop.permute.xlu0 %384 }
  0xb9   :  { %423 = vst.msk [vmem:[#allocation3 + $0x50] sm:$0xff] %vm412_vm3, %v385_v4  ;;  %v387_v22 = vpop.permute.xlu1 %386  ;;  %v1083_v4 = vld [vmem:[#allocation2 + $0x91] sm:$0xff] }
  0xba   :  { %424 = vst.msk [vmem:[#allocation3 + $0x58] sm:$0xff] %vm412_vm3, %v387_v22  ;;  %888 = vrot.lane.b32.xlu0 %v4583_v45, %s4114_s18  ;;  %v3794_v45 = vld [vmem:[%s6390_s0 + $0x130] sm:$0xff]  ;;  %v1084_v22 = vld [vmem:[#allocation2 + $0x99] sm:$0xff] }
  0xbb   :  { %890 = vrot.lane.b32.xlu1 %v4587_v51, %s4114_s18  ;;  %v3795_v51 = vld [vmem:[%s6390_s0 + $0x138] sm:$0xff]  ;;  %210 = vst.msk [vmem:[#allocation2 + $0x211] sm:$0xff] %vm15_vm0, %v3794_v45  ;;  %v1085_v45 = vld [vmem:[#allocation2 + $0xa9] sm:$0xff] }
  0xbc   :  { %v389_v31 = vpop.permute.xlu0 %388  ;;  %211 = vst.msk [vmem:[#allocation2 + $0x219] sm:$0xff] %vm15_vm0, %v3795_v51  ;;  %v1086_v51 = vld [vmem:[#allocation2 + $0xb1] sm:$0xff] }
  0xbd   :  { %425 = vst.msk [vmem:[#allocation3 + $0x60] sm:$0xff] %vm412_vm3, %v389_v31  ;;  %v391_v27 = vpop.permute.xlu1 %390  ;;  %v3800_v31 = vld [vmem:[%s6390_s0 + $0x160] sm:$0xff] }
  0xbe   :  { %426 = vst.msk [vmem:[#allocation3 + $0x68] sm:$0xff] %vm412_vm3, %v391_v27  ;;  %892 = vrot.lane.b32.xlu0 %v4591_v52, %s4114_s18  ;;  %v3801_v27 = vld [vmem:[%s6390_s0 + $0x168] sm:$0xff] }
  0xbf   :  { %894 = vrot.lane.b32.xlu1 %v4595_v63, %s4114_s18  ;;  %216 = vst.msk [vmem:[#allocation2 + $0x259] sm:$0xff] %vm15_vm0, %v3800_v31  ;;  %217 = vst.msk [vmem:[#allocation2 + $0x261] sm:$0xff] %vm15_vm0, %v3801_v27  ;;  %v1208_v31 = vld [vmem:[#allocation2 + $0x62] sm:$0xff]  ;;  %v1209_v27 = vld [vmem:[#allocation2 + $0x6a] sm:$0xff] }
  0xc0   :  { %v393_v41 = vpop.permute.xlu0 %392 }
  0xc1   :  { %427 = vst.msk [vmem:[#allocation3 + $0x70] sm:$0xff] %vm412_vm3, %v393_v41  ;;  %v395_v32 = vpop.permute.xlu1 %394 }
  0xc2   :  { %428 = vst.msk [vmem:[#allocation3 + $0x78] sm:$0xff] %vm412_vm3, %v395_v32  ;;  %896 = vrot.lane.b32.xlu0 %v4599_v0, %s4114_s18  ;;  %v1660_v0 = vld [vmem:[#allocation2 + $0x210] sm:$0xff] }
  0xc3   :  { %898 = vrot.lane.b32.xlu1 %v4603_v13, %s4114_s18  ;;  %v1661_v47 = vld [vmem:[#allocation2 + $0x218] sm:$0xff] }
  0xc4   :  { %v494_v52 = vpop.permute.xlu0 %493  ;;  %v4784_v49 = vpack.c.bf16 %v1661_v47, %v1660_v0  ;;  %v1089_v0 = vld [vmem:[#allocation2 + $0xd9] sm:$0xff]  ;;  %v1090_v47 = vld [vmem:[#allocation2 + $0xe1] sm:$0xff] }
  0xc5   :  { %542 = vst.msk [vmem:[#allocation3] sm:$0xff] %vm541_vm4, %v494_v52  ;;  %v496_v63 = vpop.permute.xlu1 %495  ;;  %v1111_v52 = vpack.c.bf16 %v1084_v22, %v1083_v4 }
  0xc6   :  { %543 = vst.msk [vmem:[#allocation3 + $0x8] sm:$0xff] %vm541_vm4, %v496_v63  ;;  %900 = vrot.lane.b32.xlu0 %v4607_v14, %s4114_s18  ;;  %v863_v14 = vpack.c.bf16 %v847_v15, %v846_v35  ;;  %v1112_v63 = vpack.c.bf16 %v1086_v51, %v1085_v45  ;;  %v1087_v35 = vld [vmem:[#allocation2 + $0xc1] sm:$0xff]  ;;  %v1333_v45 = vld [vmem:[#allocation2 + $0x1b0] sm:$0xff]  ;;  %v1334_v51 = vld [vmem:[#allocation2 + $0x1b8] sm:$0xff] }
  0xc7   :  { %902 = vrot.lane.b32.xlu1 %v4611_v24, %s4114_s18  ;;  %1386 = vst.msk [vmem:[#allocation3 + $0xa0] sm:$0xff] %vm15_vm0, %v4784_v49 }
  0xc8   :  { %v498_v38 = vpop.permute.xlu0 %497 }
  0xc9   :  { %544 = vst.msk [vmem:[#allocation3 + $0x10] sm:$0xff] %vm541_vm4, %v498_v38  ;;  %v500_v13 = vpop.permute.xlu1 %499  ;;  %v1088_v38 = vld [vmem:[#allocation2 + $0xc9] sm:$0xff] }
  0xca   :  { %545 = vst.msk [vmem:[#allocation3 + $0x18] sm:$0xff] %vm541_vm4, %v500_v13  ;;  %904 = vrot.lane.b32.xlu0 %v4615_v26, %s4114_s18  ;;  %v3796_v26 = vld [vmem:[%s6390_s0 + $0x140] sm:$0xff] }
  0xcb   :  { %906 = vrot.lane.b32.xlu1 %v4619_v40, %s4114_s18  ;;  %v3797_v40 = vld [vmem:[%s6390_s0 + $0x148] sm:$0xff]  ;;  %212 = vst.msk [vmem:[#allocation2 + $0x229] sm:$0xff] %vm15_vm0, %v3796_v26 }
  0xcc   :  { %v502_v24 = vpop.permute.xlu0 %501  ;;  %213 = vst.msk [vmem:[#allocation2 + $0x231] sm:$0xff] %vm15_vm0, %v3797_v40  ;;  %v1093_v26 = vld [vmem:[#allocation2 + $0x109] sm:$0xff]  ;;  %v1094_v40 = vld [vmem:[#allocation2 + $0x111] sm:$0xff] }
  0xcd   :  { %546 = vst.msk [vmem:[#allocation3 + $0x20] sm:$0xff] %vm541_vm4, %v502_v24  ;;  %v504_v55 = vpop.permute.xlu1 %503  ;;  %v1113_v24 = vpack.c.bf16 %v1088_v38, %v1087_v35  ;;  %v1211_v35 = vld [vmem:[#allocation2 + $0x82] sm:$0xff]  ;;  %v1105_v38 = vld [vmem:[#allocation2 + $0x199] sm:$0xff] }
  0xce   :  { %547 = vst.msk [vmem:[#allocation3 + $0x28] sm:$0xff] %vm541_vm4, %v504_v55  ;;  %908 = vrot.lane.b32.xlu0 %v4623_v46, %s4114_s18  ;;  %v1092_v55 = vld [vmem:[#allocation2 + $0xf9] sm:$0xff] }
  0xcf   :  { %910 = vrot.lane.b32.xlu1 %v863_v14, %s4114_s18  ;;  %v1091_v14 = vld [vmem:[#allocation2 + $0xf1] sm:$0xff] }
  0xd0   :  { %v506_v29 = vpop.permute.xlu0 %505 }
  0xd1   :  { %548 = vst.msk [vmem:[#allocation3 + $0x30] sm:$0xff] %vm541_vm4, %v506_v29  ;;  %v508_v33 = vpop.permute.xlu1 %507  ;;  %v1114_v29 = vpack.c.bf16 %v1090_v47, %v1089_v0  ;;  %v1106_v0 = vld [vmem:[#allocation2 + $0x1a1] sm:$0xff] }
  0xd2   :  { %549 = vst.msk [vmem:[#allocation3 + $0x38] sm:$0xff] %vm541_vm4, %v508_v33  ;;  %1010 = vrot.lane.b32.xlu0 %v4487_v21, %s4115_s27  ;;  %v2045_v39 = vld [vmem:[#allocation2 + $0x228] sm:$0xff]  ;;  %v4106_v33 = vld [vmem:[%s6391_s1] sm:$0xff]  }
  0xd3   :  { %1012 = vrot.lane.b32.xlu1 %v4493_v28, %s4115_s27  ;;  %v2046_v43 = vld [vmem:[#allocation2 + $0x230] sm:$0xff]  ;;  %4018 = vmatprep.subr.bf16.mxu0 %v4106_v33 }
  0xd4   :  { %v510_v46 = vpop.permute.xlu0 %509  ;;  %v4818_v57 = vpack.c.bf16 %v2046_v43, %v2045_v39  ;;  %v2050_v39 = vld [vmem:[#allocation2 + $0x260] sm:$0xff]  ;;  %4088 = vmatprep.subr.bf16.mxu1 %v4106_v33  ;;  %4019 = vmatpush3.bf16.msra.mxu0 %v4106_v33 }
  0xd5   :  { %550 = vst.msk [vmem:[#allocation3 + $0x40] sm:$0xff] %vm541_vm4, %v510_v46  ;;  %v512_v34 = vpop.permute.xlu1 %511  ;;  %4091 = vmatpush3.bf16.msra.mxu1 %v4106_v33 }
  0xd6   :  { %551 = vst.msk [vmem:[#allocation3 + $0x48] sm:$0xff] %vm541_vm4, %v512_v34  ;;  %1014 = vrot.lane.b32.xlu0 %v4495_v30, %s4115_s27  ;;  %v2049_v34 = vld [vmem:[#allocation2 + $0x258] sm:$0xff] }
  0xd7   :  { %1016 = vrot.lane.b32.xlu1 %v4503_v37, %s4115_s27  ;;  %1387 = vst.msk [vmem:[#allocation3 + $0xa8] sm:$0xff] %vm15_vm0, %v4818_v57 }
  0xd8   :  { %v514_v56 = vpop.permute.xlu0 %513 }
  0xd9   :  { %552 = vst.msk [vmem:[#allocation3 + $0x50] sm:$0xff] %vm541_vm4, %v514_v56  ;;  %v516_v21 = vpop.permute.xlu1 %515  ;;  %v4889_v56 = vpack.c.bf16 %v2050_v39, %v2049_v34  ;;  %v1215_v34 = vld [vmem:[#allocation2 + $0xb2] sm:$0xff] }
  0xda   :  { %553 = vst.msk [vmem:[#allocation3 + $0x58] sm:$0xff] %vm541_vm4, %v516_v21  ;;  %1018 = vrot.lane.b32.xlu0 %v4507_v42, %s4115_s27  ;;  %v1115_v21 = vpack.c.bf16 %v1092_v55, %v1091_v14 }
  0xdb   :  { %1020 = vrot.lane.b32.xlu1 %v4509_v44, %s4115_s27  ;;  %1389 = vst.msk [vmem:[#allocation3 + $0xb8] sm:$0xff] %vm15_vm0, %v4889_v56 }
  0xdc   :  { %v518_v28 = vpop.permute.xlu0 %517 }
  0xdd   :  { %554 = vst.msk [vmem:[#allocation3 + $0x60] sm:$0xff] %vm541_vm4, %v518_v28  ;;  %v520_v30 = vpop.permute.xlu1 %519  ;;  %v1116_v28 = vpack.c.bf16 %v1094_v40, %v1093_v26  ;;  %v1122_v26 = vpack.c.bf16 %v1106_v0, %v1105_v38  ;;  %v1212_v40 = vld [vmem:[#allocation2 + $0x92] sm:$0xff]  ;;  %v1218_v38 = vld [vmem:[#allocation2 + $0xda] sm:$0xff] }
  0xde   :  { %555 = vst.msk [vmem:[#allocation3 + $0x68] sm:$0xff] %vm541_vm4, %v520_v30  ;;  %1022 = vrot.lane.b32.xlu0 %v4515_v50, %s4115_s27  ;;  %v3798_v50 = vld [vmem:[%s6390_s0 + $0x150] sm:$0xff]  ;;  %v1095_v30 = vld [vmem:[#allocation2 + $0x121] sm:$0xff]  ;;  %v2169_v0 = vld [vmem:[#allocation2 + $0x1f9] sm:$0xff] }
  0xdf   :  { %1024 = vrot.lane.b32.xlu1 %v4523_v61, %s4115_s27  ;;  %v3799_v61 = vld [vmem:[%s6390_s0 + $0x158] sm:$0xff]  ;;  %214 = vst.msk [vmem:[#allocation2 + $0x241] sm:$0xff] %vm15_vm0, %v3798_v50 }
  0xe0   :  { %v522_v37 = vpop.permute.xlu0 %521  ;;  %215 = vst.msk [vmem:[#allocation2 + $0x249] sm:$0xff] %vm15_vm0, %v3799_v61  ;;  %v1097_v50 = vld [vmem:[#allocation2 + $0x139] sm:$0xff]  ;;  %v1098_v61 = vld [vmem:[#allocation2 + $0x141] sm:$0xff] }
  0xe1   :  { %556 = vst.msk [vmem:[#allocation3 + $0x70] sm:$0xff] %vm541_vm4, %v522_v37  ;;  %v524_v42 = vpop.permute.xlu1 %523  ;;  %v1096_v37 = vld [vmem:[#allocation2 + $0x129] sm:$0xff] }
  0xe2   :  { %557 = vst.msk [vmem:[#allocation3 + $0x78] sm:$0xff] %vm541_vm4, %v524_v42  ;;  %1026 = vrot.lane.b32.xlu0 %v4525_v62, %s4115_s27  ;;  %v4107_v42 = vld [vmem:[%s6391_s1 + $0x8] sm:$0xff]  }
  0xe3   :  { %1028 = vrot.lane.b32.xlu1 %v4535_v5, %s4115_s27  ;;  %v976_v5 = vld [vmem:[#allocation2 + $0x198] sm:$0xff]  ;;  %4020 = vmatprep.subr.bf16.mxu0 %v4107_v42 }
  0xe4   :  { %v623_v44 = vpop.permute.xlu0 %622  ;;  %v993_v1 = vpack.c.bf16 %v977_v59, %v976_v5  ;;  %4089 = vmatprep.subr.bf16.mxu1 %v4107_v42  ;;  %4021 = vmatpush3.bf16.msra.mxu0 %v4107_v42  ;;  %v1118_v5 = vpack.c.bf16 %v1098_v61, %v1097_v50  ;;  %v1099_v59 = vld [vmem:[#allocation2 + $0x151] sm:$0xff] }
  0xe5   :  { %671 = vst.msk [vmem:[#allocation3] sm:$0xff] %vm670_vm5, %v623_v44  ;;  %v625_v54 = vpop.permute.xlu1 %624  ;;  %4092 = vmatpush3.bf16.msra.mxu1 %v4107_v42  ;;  %v1401_v50 = vld [vmem:[#allocation2 + $0x1d1] sm:$0xff] }
  0xe6   :  { %672 = vst.msk [vmem:[#allocation3 + $0x8] sm:$0xff] %vm670_vm5, %v625_v54  ;;  %1030 = vrot.lane.b32.xlu0 %v4539_v10, %s4115_s27  ;;  %v1076_v10 = vld [vmem:[#allocation2 + $0x39] sm:$0xff] }
  0xe7   :  { %1032 = vrot.lane.b32.xlu1 %v4541_v12, %s4115_s27  ;;  %v1078_v12 = vld [vmem:[#allocation2 + $0x51] sm:$0xff]  ;;  %v1107_v11 = vpack.c.bf16 %v1076_v10, %v1075_v3 }
  0xe8   :  { %v627_v62 = vpop.permute.xlu0 %626  ;;  %v1204_v10 = vld [vmem:[#allocation2 + $0x32] sm:$0xff] }
  0xe9   :  { %673 = vst.msk [vmem:[#allocation3 + $0x10] sm:$0xff] %vm670_vm5, %v627_v62  ;;  %v629_v60 = vpop.permute.xlu1 %628  ;;  %v1117_v62 = vpack.c.bf16 %v1096_v37, %v1095_v30  ;;  %v3804_v30 = vld [vmem:[%s6390_s0 + $0x180] sm:$0xff]  ;;  %v3805_v37 = vld [vmem:[%s6390_s0 + $0x188] sm:$0xff] }
  0xea   :  { %674 = vst.msk [vmem:[#allocation3 + $0x18] sm:$0xff] %vm670_vm5, %v629_v60  ;;  %1034 = vrot.lane.b32.xlu0 %v4547_v17, %s4115_s27  ;;  %v1108_v17 = vpack.c.bf16 %v1078_v12, %v1077_v6  ;;  %v1100_v60 = vld [vmem:[#allocation2 + $0x159] sm:$0xff] }
  0xeb   :  { %1036 = vrot.lane.b32.xlu1 %v4560_v23, %s4115_s27  ;;  %v1080_v23 = vld [vmem:[#allocation2 + $0x69] sm:$0xff]  ;;  %220 = vst.msk [vmem:[#allocation2 + $0x289] sm:$0xff] %vm15_vm0, %v3804_v30  ;;  %221 = vst.msk [vmem:[#allocation2 + $0x291] sm:$0xff] %vm15_vm0, %v3805_v37 }
  0xec   :  { %v631_v7 = vpop.permute.xlu0 %630  ;;  %v1109_v20 = vpack.c.bf16 %v1080_v23, %v1079_v25  ;;  %v1207_v25 = vld [vmem:[#allocation2 + $0x52] sm:$0xff]  ;;  %v1101_v23 = vld [vmem:[#allocation2 + $0x169] sm:$0xff] }
  0xed   :  { %675 = vst.msk [vmem:[#allocation3 + $0x20] sm:$0xff] %vm670_vm5, %v631_v7  ;;  %v633_v8 = vpop.permute.xlu1 %632  ;;  %v1205_v7 = vld [vmem:[#allocation2 + $0x3a] sm:$0xff] }
  0xee   :  { %676 = vst.msk [vmem:[#allocation3 + $0x28] sm:$0xff] %vm670_vm5, %v633_v8  ;;  %1038 = vrot.lane.b32.xlu0 %v4657_v48, %s4115_s27  ;;  %v1110_v48 = vpack.c.bf16 %v1082_v18, %v1081_v16  ;;  %v1119_v8 = vpack.c.bf16 %v1100_v60, %v1099_v59  ;;  %v1102_v16 = vld [vmem:[#allocation2 + $0x171] sm:$0xff]  ;;  %v1527_v59 = vld [vmem:[#allocation2 + $0x1ba] sm:$0xff] }
  0xef   :  { %1040 = vrot.lane.b32.xlu1 %v993_v1, %s4115_s27  ;;  %v4108_v1 = vld [vmem:[%s6391_s1 + $0x10] ss:$0 sps:$4 sm:$0x33]  }
  0xf0   :  { %v635_v9 = vpop.permute.xlu0 %634  ;;  %4094 = vmatprep.subr.msk.bf16.mxu0 %vm2572_vm7, %v4108_v1  ;;  %v2574_v12 = vsel %vm2572_vm7, %v4108_v1, 0  ;;  %4095 = vmatprep.subr.msk.bf16.mxu1 %vm2572_vm7, %v4108_v1  ;;  %v3802_v18 = vld [vmem:[%s6390_s0 + $0x170] sm:$0xff] }
  0xf1   :  { %677 = vst.msk [vmem:[#allocation3 + $0x30] sm:$0xff] %vm670_vm5, %v635_v9  ;;  %v637_v19 = vpop.permute.xlu1 %636  ;;  %4023 = vmatpush3.bf16.msra.mxu0 %v2574_v12  ;;  %4093 = vmatpush3.bf16.msra.mxu1 %v2574_v12  ;;  %v1528_v1 = vld [vmem:[#allocation2 + $0x1ca] sm:$0xff] }
  0xf2   :  { %678 = vst.msk [vmem:[#allocation3 + $0x38] sm:$0xff] %vm670_vm5, %v637_v19  ;;  %1139 = vrot.lane.b32.xlu0 %v1107_v11, %s4116_s10  ;;  %v1236_v11 = vpack.c.bf16 %v1205_v7, %v1204_v10  ;;  %v3803_v19 = vld [vmem:[%s6390_s0 + $0x178] sm:$0xff]  ;;  %v2053_v12 = vld [vmem:[#allocation2 + $0x288] sm:$0xff] }
  0xf3   :  { %1141 = vrot.lane.b32.xlu1 %v1108_v17, %s4116_s10  ;;  %v1206_v17 = vld [vmem:[#allocation2 + $0x4a] sm:$0xff]  ;;  %218 = vst.msk [vmem:[#allocation2 + $0x271] sm:$0xff] %vm15_vm0, %v3802_v18  ;;  %219 = vst.msk [vmem:[#allocation2 + $0x279] sm:$0xff] %vm15_vm0, %v3803_v19 }
  0xf4   :  { %v639_v41 = vpop.permute.xlu0 %638  ;;  %v1237_v4 = vpack.c.bf16 %v1207_v25, %v1206_v17 }
  0xf5   :  { %679 = vst.msk [vmem:[#allocation3 + $0x40] sm:$0xff] %vm670_vm5, %v639_v41  ;;  %v641_v32 = vpop.permute.xlu1 %640 }
  0xf6   :  { %680 = vst.msk [vmem:[#allocation3 + $0x48] sm:$0xff] %vm670_vm5, %v641_v32  ;;  %1143 = vrot.lane.b32.xlu0 %v1109_v20, %s4116_s10  ;;  %v1365_v32 = vpack.c.bf16 %v1334_v51, %v1333_v45  ;;  %v3806_v45 = vld [vmem:[%s6390_s0 + $0x190] sm:$0xff]  ;;  %v3807_v51 = vld [vmem:[%s6390_s0 + $0x198] sm:$0xff] }
  0xf7   :  { %1145 = vrot.lane.b32.xlu1 %v1110_v48, %s4116_s10  ;;  %v1120_v48 = vpack.c.bf16 %v1102_v16, %v1101_v23  ;;  %v1785_v16 = vld [vmem:[#allocation2 + $0x1e9] sm:$0xff]  ;;  %222 = vst.msk [vmem:[#allocation2 + $0x2a1] sm:$0xff] %vm15_vm0, %v3806_v45  ;;  %223 = vst.msk [vmem:[#allocation2 + $0x2a9] sm:$0xff] %vm15_vm0, %v3807_v51 }
  0xf8   :  { %v643_v15 = vpop.permute.xlu0 %642  ;;  %1382 = vst.msk [vmem:[#allocation3 + $0x80] sm:$0xff] %vm15_vm0, %v1365_v32 }
  0xf9   :  { %681 = vst.msk [vmem:[#allocation3 + $0x50] sm:$0xff] %vm670_vm5, %v643_v15  ;;  %v645_v13 = vpop.permute.xlu1 %644 }
  0xfa   :  { %682 = vst.msk [vmem:[#allocation3 + $0x58] sm:$0xff] %vm670_vm5, %v645_v13  ;;  %1147 = vrot.lane.b32.xlu0 %v1111_v52, %s4116_s10  ;;  %v1238_v52 = vpack.c.bf16 %v1209_v27, %v1208_v31  ;;  %v1668_v47 = vld [vmem:[#allocation2 + $0x270] sm:$0xff]  ;;  %v1669_v13 = vld [vmem:[#allocation2 + $0x278] sm:$0xff] }
  0xfb   :  { %1149 = vrot.lane.b32.xlu1 %v1112_v63, %s4116_s10  ;;  %v1210_v63 = vld [vmem:[#allocation2 + $0x7a] sm:$0xff] }
  0xfc   :  { %v647_v46 = vpop.permute.xlu0 %646  ;;  %v1239_v55 = vpack.c.bf16 %v1211_v35, %v1210_v63 }
  0xfd   :  { %683 = vst.msk [vmem:[#allocation3 + $0x60] sm:$0xff] %vm670_vm5, %v647_v46  ;;  %v649_v43 = vpop.permute.xlu1 %648  ;;  %v1214_v46 = vld [vmem:[#allocation2 + $0xaa] sm:$0xff] }
  0xfe   :  { %684 = vst.msk [vmem:[#allocation3 + $0x68] sm:$0xff] %vm670_vm5, %v649_v43  ;;  %1151 = vrot.lane.b32.xlu0 %v1113_v24, %s4116_s10  ;;  %v4928_v24 = vpack.c.bf16 %v1669_v13, %v1668_v47  ;;  %v1398_v43 = vld [vmem:[#allocation2 + $0x1b1] sm:$0xff]  ;;  %v2170_v13 = vld [vmem:[#allocation2 + $0x201] sm:$0xff] }
  0xff   :  { %1153 = vrot.lane.b32.xlu1 %v1114_v29, %s4116_s10  ;;  %v1213_v29 = vld [vmem:[#allocation2 + $0x9a] sm:$0xff] }
 0x100   :  { %v651_v44 = vpop.permute.xlu0 %650  ;;  %1390 = vst.msk [vmem:[#allocation3 + $0xc0] sm:$0xff] %vm15_vm0, %v4928_v24 }
 0x101   :  { %685 = vst.msk [vmem:[#allocation3 + $0x70] sm:$0xff] %vm670_vm5, %v651_v44  ;;  %v653_v54 = vpop.permute.xlu1 %652  ;;  %v1400_v44 = vld [vmem:[#allocation2 + $0x1c9] sm:$0xff] }
 0x102   :  { %686 = vst.msk [vmem:[#allocation3 + $0x78] sm:$0xff] %vm670_vm5, %v653_v54  ;;  %1155 = vrot.lane.b32.xlu0 %v1115_v21, %s4116_s10  ;;  %v1241_v21 = vpack.c.bf16 %v1215_v34, %v1214_v46  ;;  %v2297_v34 = vld [vmem:[#allocation2 + $0x1fa] sm:$0xff] }
 0x103   :  { %1157 = vrot.lane.b32.xlu1 %v1116_v28, %s4116_s10  ;;  %v1399_v28 = vld [vmem:[#allocation2 + $0x1b9] sm:$0xff] }
 0x104   :  { %v752_v3 = vpop.permute.xlu0 %751  ;;  %v1430_v54 = vpack.c.bf16 %v1399_v28, %v1398_v43  ;;  %v3809_v43 = vld [vmem:[%s6390_s0 + $0x1a8] sm:$0xff] }
 0x105   :  { %800 = vst.msk [vmem:[#allocation3] sm:$0xff] %vm799_vm6, %v752_v3  ;;  %v754_v6 = vpop.permute.xlu1 %753  ;;  %v1529_v3 = vld [vmem:[#allocation2 + $0x1d2] sm:$0xff] }
 0x106   :  { %801 = vst.msk [vmem:[#allocation3 + $0x8] sm:$0xff] %vm799_vm6, %v754_v6  ;;  %1159 = vrot.lane.b32.xlu0 %v1117_v62, %s4116_s10  ;;  %v1431_v62 = vpack.c.bf16 %v1401_v50, %v1400_v44  ;;  %v1559_v6 = vpack.c.bf16 %v1529_v3, %v1528_v1 }
 0x107   :  { %1161 = vrot.lane.b32.xlu1 %v1118_v5, %s4116_s10  ;;  %v1526_v5 = vld [vmem:[#allocation2 + $0x1b2] sm:$0xff]  ;;  %225 = vst.msk [vmem:[#allocation2 + $0x2c1] sm:$0xff] %vm15_vm0, %v3809_v43 }
 0x108   :  { %v756_v9 = vpop.permute.xlu0 %755  ;;  %v1558_v7 = vpack.c.bf16 %v1527_v59, %v1526_v5  ;;  %v1788_v59 = vld [vmem:[#allocation2 + $0x211] sm:$0xff] }
 0x109   :  { %802 = vst.msk [vmem:[#allocation3 + $0x10] sm:$0xff] %vm799_vm6, %v756_v9  ;;  %v758_v20 = vpop.permute.xlu1 %757  ;;  %v1784_v9 = vld [vmem:[#allocation2 + $0x1e1] sm:$0xff] }
 0x10a   :  { %803 = vst.msk [vmem:[#allocation3 + $0x18] sm:$0xff] %vm799_vm6, %v758_v20  ;;  %1163 = vrot.lane.b32.xlu0 %v1119_v8, %s4116_s10  ;;  %v2054_v8 = vld [vmem:[#allocation2 + $0x290] sm:$0xff]  ;;  %v4970_v19 = vpack.c.bf16 %v1785_v16, %v1784_v9  ;;  %v3811_v9 = vld [vmem:[%s6390_s0 + $0x1b8] sm:$0xff] }
 0x10b   :  { %1268 = vrot.lane.b32.xlu1 %v1236_v11, %s4117_s25  ;;  %v4956_v17 = vpack.c.bf16 %v2054_v8, %v2053_v12  ;;  %227 = vst.msk [vmem:[#allocation2 + $0x2d9] sm:$0xff] %vm15_vm0, %v3811_v9 }
 0x10c   :  { %v760_v22 = vpop.permute.xlu0 %759 }
 0x10d   :  { %804 = vst.msk [vmem:[#allocation3 + $0x20] sm:$0xff] %vm799_vm6, %v760_v22  ;;  %v762_v41 = vpop.permute.xlu1 %761 }
 0x10e   :  { %805 = vst.msk [vmem:[#allocation3 + $0x28] sm:$0xff] %vm799_vm6, %v762_v41  ;;  %1270 = vrot.lane.b32.xlu0 %v1237_v4, %s4117_s25  ;;  %v1912_v4 = vld [vmem:[#allocation2 + $0x1e2] sm:$0xff]  ;;  %v1217_v41 = vld [vmem:[#allocation2 + $0xca] sm:$0xff] }
 0x10f   :  { %1165 = vrot.lane.b32.xlu1 %v1120_v48, %s4116_s10  ;;  %1391 = vst.msk [vmem:[#allocation3 + $0xc8] sm:$0xff] %vm15_vm0, %v4956_v17  ;;  %v1913_v48 = vld [vmem:[#allocation2 + $0x1ea] sm:$0xff] }
 0x110   :  { %v764_v15 = vpop.permute.xlu0 %763  ;;  %v4977_v31 = vpack.c.bf16 %v1913_v48, %v1912_v4  ;;  %v1222_v4 = vld [vmem:[#allocation2 + $0x10a] sm:$0xff]  ;;  %v1223_v48 = vld [vmem:[#allocation2 + $0x112] sm:$0xff] }
 0x111   :  { %806 = vst.msk [vmem:[#allocation3 + $0x30] sm:$0xff] %vm799_vm6, %v764_v15  ;;  %v766_v14 = vpop.permute.xlu1 %765  ;;  %v1219_v15 = vld [vmem:[#allocation2 + $0xe2] sm:$0xff] }
 0x112   :  { %807 = vst.msk [vmem:[#allocation3 + $0x38] sm:$0xff] %vm799_vm6, %v766_v14  ;;  %1167 = vrot.lane.b32.xlu0 %v4719_v2, %s4116_s10  ;;  %v1240_v2 = vpack.c.bf16 %v1213_v29, %v1212_v40  ;;  %v1672_v14 = vld [vmem:[#allocation2 + $0x2a0] sm:$0xff]  ;;  %v2200_v29 = vpack.c.bf16 %v2170_v13, %v2169_v0  ;;  %v2302_v0 = vld [vmem:[#allocation2 + $0x232] sm:$0xff] }
 0x113   :  { %1272 = vrot.lane.b32.xlu1 %v1238_v52, %s4117_s25 }
 0x114   :  { %v768_v33 = vpop.permute.xlu0 %767 }
 0x115   :  { %808 = vst.msk [vmem:[#allocation3 + $0x40] sm:$0xff] %vm799_vm6, %v768_v33  ;;  %v770_v39 = vpop.permute.xlu1 %769 }
 0x116   :  { %809 = vst.msk [vmem:[#allocation3 + $0x48] sm:$0xff] %vm799_vm6, %v770_v39  ;;  %1274 = vrot.lane.b32.xlu0 %v1239_v55, %s4117_s25  ;;  %v1673_v55 = vld [vmem:[#allocation2 + $0x2a8] sm:$0xff] }
 0x117   :  { %1169 = vrot.lane.b32.xlu1 %v1122_v26, %s4116_s10  ;;  %v4998_v40 = vpack.c.bf16 %v1673_v55, %v1672_v14  ;;  %v2298_v39 = vld [vmem:[#allocation2 + $0x202] sm:$0xff] }
 0x118   :  { %v772_v42 = vpop.permute.xlu0 %771  ;;  %v2328_v30 = vpack.c.bf16 %v2298_v39, %v2297_v34  ;;  %v1664_v34 = vld [vmem:[#allocation2 + $0x240] sm:$0xff]  ;;  %v1665_v39 = vld [vmem:[#allocation2 + $0x248] sm:$0xff] }
 0x119   :  { %810 = vst.msk [vmem:[#allocation3 + $0x50] sm:$0xff] %vm799_vm6, %v772_v42  ;;  %v774_v61 = vpop.permute.xlu1 %773  ;;  %v1691_v43 = vpack.c.bf16 %v1665_v39, %v1664_v34  ;;  %v1797_v34 = vld [vmem:[#allocation2 + $0x279] sm:$0xff] }
 0x11a   :  { %811 = vst.msk [vmem:[#allocation3 + $0x58] sm:$0xff] %vm799_vm6, %v774_v61  ;;  %1276 = vrot.lane.b32.xlu0 %v1240_v2, %s4117_s25  ;;  %v3808_v2 = vld [vmem:[%s6390_s0 + $0x1a0] sm:$0xff] }
 0x11b   :  { %1278 = vrot.lane.b32.xlu1 %v1241_v21, %s4117_s25  ;;  %1392 = vst.msk [vmem:[#allocation3 + $0xd0] sm:$0xff] %vm15_vm0, %v4998_v40  ;;  %224 = vst.msk [vmem:[#allocation2 + $0x2b9] sm:$0xff] %vm15_vm0, %v3808_v2 }
 0x11c   :  { %v776_v60 = vpop.permute.xlu0 %775 }
 0x11d   :  { %812 = vst.msk [vmem:[#allocation3 + $0x60] sm:$0xff] %vm799_vm6, %v776_v60  ;;  %v778_v10 = vpop.permute.xlu1 %777  ;;  %v1789_v60 = vld [vmem:[#allocation2 + $0x219] sm:$0xff] }
 0x11e   :  { %813 = vst.msk [vmem:[#allocation3 + $0x68] sm:$0xff] %vm799_vm6, %v778_v10  ;;  %1462 = vrot.lane.b32.xlu0 %v1430_v54, %s4110_s7  ;;  %v5044_v3 = vpack.c.bf16 %v1789_v60, %v1788_v59 }
 0x11f   :  { %1464 = vrot.lane.b32.xlu1 %v1431_v62, %s4110_s7 }
 0x120   :  { %v780_v11 = vpop.permute.xlu0 %779 }
 0x121   :  { %814 = vst.msk [vmem:[#allocation3 + $0x70] sm:$0xff] %vm799_vm6, %v780_v11  ;;  %v782_v25 = vpop.permute.xlu1 %781 }
 0x122   :  { %815 = vst.msk [vmem:[#allocation3 + $0x78] sm:$0xff] %vm799_vm6, %v782_v25  ;;  %1590 = vrot.lane.b32.xlu0 %v1558_v7, %s4111_s28  ;;  %v2057_v44 = vld [vmem:[#allocation2 + $0x2b8] sm:$0xff]  ;;  %v2058_v50 = vld [vmem:[#allocation2 + $0x2c0] sm:$0xff] }
 0x123   :  { %1592 = vrot.lane.b32.xlu1 %v1559_v6, %s4111_s28  ;;  %v5029_v54 = vpack.c.bf16 %v2058_v50, %v2057_v44  ;;  %v1916_v7 = vld [vmem:[#allocation2 + $0x212] sm:$0xff]  ;;  %v1221_v25 = vld [vmem:[#allocation2 + $0xfa] sm:$0xff]  ;;  %v1920_v44 = vld [vmem:[#allocation2 + $0x242] sm:$0xff] }
 0x124   :  { %v881_v23 = vpop.permute.xlu0 %880 }
 0x125   :  { %929 = vst.msk [vmem:[#allocation3] sm:$0xff] %vm928_vm8, %v881_v23  ;;  %v883_v18 = vpop.permute.xlu1 %882  ;;  %v3810_v23 = vld [vmem:[%s6390_s0 + $0x1b0] sm:$0xff] }
 0x126   :  { %930 = vst.msk [vmem:[#allocation3 + $0x8] sm:$0xff] %vm928_vm8, %v883_v18  ;;  %1718 = vrot.lane.b32.xlu0 %v4699_v53, %s4112_s29  ;;  %v1216_v53 = vld [vmem:[#allocation2 + $0xc2] sm:$0xff] }
 0x127   :  { %1720 = vrot.lane.b32.xlu1 %v4702_v58, %s4112_s29  ;;  %v1242_v52 = vpack.c.bf16 %v1217_v41, %v1216_v53  ;;  %1393 = vst.msk [vmem:[#allocation3 + $0xd8] sm:$0xff] %vm15_vm0, %v5029_v54  ;;  %226 = vst.msk [vmem:[#allocation2 + $0x2d1] sm:$0xff] %vm15_vm0, %v3810_v23  ;;  %v2174_v53 = vld [vmem:[#allocation2 + $0x231] sm:$0xff] }
 0x128   :  { %v885_v20 = vpop.permute.xlu0 %884 }
 0x129   :  { %931 = vst.msk [vmem:[#allocation3 + $0x10] sm:$0xff] %vm928_vm8, %v885_v20  ;;  %v887_v22 = vpop.permute.xlu1 %886 }
 0x12a   :  { %932 = vst.msk [vmem:[#allocation3 + $0x18] sm:$0xff] %vm928_vm8, %v887_v22  ;;  %1846 = vrot.lane.b32.xlu0 %v1431_v62, %s4113_s30  ;;  %v2173_v22 = vld [vmem:[#allocation2 + $0x229] sm:$0xff] }
 0x12b   :  { %1848 = vrot.lane.b32.xlu1 %v4970_v19, %s4113_s30 }
 0x12c   :  { %v889_v27 = vpop.permute.xlu0 %888 }
 0x12d   :  { %933 = vst.msk [vmem:[#allocation3 + $0x20] sm:$0xff] %vm928_vm8, %v889_v27  ;;  %v891_v32 = vpop.permute.xlu1 %890 }
 0x12e   :  { %934 = vst.msk [vmem:[#allocation3 + $0x28] sm:$0xff] %vm928_vm8, %v891_v32  ;;  %1974 = vrot.lane.b32.xlu0 %v1559_v6, %s4114_s18  ;;  %v1917_v6 = vld [vmem:[#allocation2 + $0x21a] sm:$0xff]  ;;  %v1676_v27 = vld [vmem:[#allocation2 + $0x2d0] sm:$0xff]  ;;  %v2202_v32 = vpack.c.bf16 %v2174_v53, %v2173_v22 }
 0x12f   :  { %1976 = vrot.lane.b32.xlu1 %v4977_v31, %s4114_s18  ;;  %v5051_v8 = vpack.c.bf16 %v1917_v6, %v1916_v7  ;;  %v1677_v41 = vld [vmem:[#allocation2 + $0x2d8] sm:$0xff]  ;;  %v1345_v7 = vld [vmem:[#allocation2 + $0x240] sm:$0xff]  ;;  %v1346_v6 = vld [vmem:[#allocation2 + $0x248] sm:$0xff] }
 0x130   :  { %v893_v63 = vpop.permute.xlu0 %892  ;;  %v5072_v51 = vpack.c.bf16 %v1677_v41, %v1676_v27 }
 0x131   :  { %935 = vst.msk [vmem:[#allocation3 + $0x30] sm:$0xff] %vm928_vm8, %v893_v63  ;;  %v895_v35 = vpop.permute.xlu1 %894  ;;  %v3812_v63 = vld [vmem:[%s6390_s0 + $0x1c0] sm:$0xff] }
 0x132   :  { %936 = vst.msk [vmem:[#allocation3 + $0x38] sm:$0xff] %vm928_vm8, %v895_v35  ;;  %2103 = vrot.lane.b32.xlu0 %v4702_v58, %s4115_s27  ;;  %v1243_v58 = vpack.c.bf16 %v1219_v15, %v1218_v38  ;;  %v3813_v38 = vld [vmem:[%s6390_s0 + $0x1c8] sm:$0xff] }
 0x133   :  { %1280 = vrot.lane.b32.xlu1 %v1242_v52, %s4117_s25  ;;  %1394 = vst.msk [vmem:[#allocation3 + $0xe0] sm:$0xff] %vm15_vm0, %v5072_v51  ;;  %228 = vst.msk [vmem:[#allocation2 + $0x2e9] sm:$0xff] %vm15_vm0, %v3812_v63  ;;  %v2301_v15 = vld [vmem:[#allocation2 + $0x22a] sm:$0xff] }
 0x134   :  { %v897_v47 = vpop.permute.xlu0 %896  ;;  %229 = vst.msk [vmem:[#allocation2 + $0x2f1] sm:$0xff] %vm15_vm0, %v3813_v38  ;;  %v2330_v14 = vpack.c.bf16 %v2302_v0, %v2301_v15 }
 0x135   :  { %937 = vst.msk [vmem:[#allocation3 + $0x40] sm:$0xff] %vm928_vm8, %v897_v47  ;;  %v899_v26 = vpop.permute.xlu1 %898 }
 0x136   :  { %938 = vst.msk [vmem:[#allocation3 + $0x48] sm:$0xff] %vm928_vm8, %v899_v26  ;;  %2105 = vrot.lane.b32.xlu0 %v4741_v36, %s4115_s27 }
 0x137   :  { %2231 = vrot.lane.b32.xlu1 %v4970_v19, %s4116_s10 }
 0x138   :  { %v901_v33 = vpop.permute.xlu0 %900 }
 0x139   :  { %939 = vst.msk [vmem:[#allocation3 + $0x50] sm:$0xff] %vm928_vm8, %v901_v33  ;;  %v903_v46 = vpop.permute.xlu1 %902 }
 0x13a   :  { %940 = vst.msk [vmem:[#allocation3 + $0x58] sm:$0xff] %vm928_vm8, %v903_v46  ;;  %1282 = vrot.lane.b32.xlu0 %v1243_v58, %s4117_s25  ;;  %v2061_v26 = vld [vmem:[#allocation2 + $0x2e8] sm:$0xff] }
 0x13b   :  { %2233 = vrot.lane.b32.xlu1 %v2200_v29, %s4116_s10 }
 0x13c   :  { %v905_v21 = vpop.permute.xlu0 %904 }
 0x13d   :  { %941 = vst.msk [vmem:[#allocation3 + $0x60] sm:$0xff] %vm928_vm8, %v905_v21  ;;  %v907_v28 = vpop.permute.xlu1 %906 }
 0x13e   :  { %942 = vst.msk [vmem:[#allocation3 + $0x68] sm:$0xff] %vm928_vm8, %v907_v28  ;;  %2359 = vrot.lane.b32.xlu0 %v4977_v31, %s4117_s25  ;;  %v1792_v28 = vld [vmem:[#allocation2 + $0x241] sm:$0xff] }
 0x13f   :  { %1466 = vrot.lane.b32.xlu1 %v4970_v19, %s4110_s7 }
 0x140   :  { %v909_v37 = vpop.permute.xlu0 %908 }
 0x141   :  { %943 = vst.msk [vmem:[#allocation3 + $0x70] sm:$0xff] %vm928_vm8, %v909_v37  ;;  %v911_v42 = vpop.permute.xlu1 %910 }
 0x142   :  { %944 = vst.msk [vmem:[#allocation3 + $0x78] sm:$0xff] %vm928_vm8, %v911_v42  ;;  %2361 = vrot.lane.b32.xlu0 %v2328_v30, %s4117_s25 }
 0x143   :  { %1468 = vrot.lane.b32.xlu1 %v2200_v29, %s4110_s7 }
 0x144   :  { %v1011_v61 = vpop.permute.xlu0 %1010 }
 0x145   :  { %1059 = vst.msk [vmem:[#allocation3] sm:$0xff] %vm1058_vm9, %v1011_v61  ;;  %v1013_v62 = vpop.permute.xlu1 %1012  ;;  %v1921_v61 = vld [vmem:[#allocation2 + $0x24a] sm:$0xff] }
 0x146   :  { %1060 = vst.msk [vmem:[#allocation3 + $0x8] sm:$0xff] %vm1058_vm9, %v1013_v62  ;;  %1594 = vrot.lane.b32.xlu0 %v4977_v31, %s4111_s28  ;;  %v3814_v62 = vld [vmem:[%s6390_s0 + $0x1d0] sm:$0xff] }
 0x147   :  { %1596 = vrot.lane.b32.xlu1 %v2328_v30, %s4111_s28  ;;  %230 = vst.msk [vmem:[#allocation2 + $0x301] sm:$0xff] %vm15_vm0, %v3814_v62 }
 0x148   :  { %v1015_v5 = vpop.permute.xlu0 %1014 }
 0x149   :  { %1061 = vst.msk [vmem:[#allocation3 + $0x10] sm:$0xff] %vm1058_vm9, %v1015_v5  ;;  %v1017_v1 = vpop.permute.xlu1 %1016  ;;  %v3815_v5 = vld [vmem:[%s6390_s0 + $0x1d8] sm:$0xff] }
 0x14a   :  { %1062 = vst.msk [vmem:[#allocation3 + $0x18] sm:$0xff] %vm1058_vm9, %v1017_v1  ;;  %1722 = vrot.lane.b32.xlu0 %v4741_v36, %s4112_s29  ;;  %v1220_v36 = vld [vmem:[#allocation2 + $0xf2] sm:$0xff]  ;;  %v1224_v1 = vld [vmem:[#allocation2 + $0x122] sm:$0xff] }
 0x14b   :  { %1724 = vrot.lane.b32.xlu1 %v4784_v49, %s4112_s29  ;;  %v1244_v18 = vpack.c.bf16 %v1221_v25, %v1220_v36  ;;  %231 = vst.msk [vmem:[#allocation2 + $0x309] sm:$0xff] %vm15_vm0, %v3815_v5 }
 0x14c   :  { %v1019_v10 = vpop.permute.xlu0 %1018 }
 0x14d   :  { %1063 = vst.msk [vmem:[#allocation3 + $0x20] sm:$0xff] %vm1058_vm9, %v1019_v10  ;;  %v1021_v12 = vpop.permute.xlu1 %1020 }
 0x14e   :  { %1064 = vst.msk [vmem:[#allocation3 + $0x28] sm:$0xff] %vm1058_vm9, %v1021_v12  ;;  %1850 = vrot.lane.b32.xlu0 %v2200_v29, %s4113_s30  ;;  %v2062_v29 = vld [vmem:[#allocation2 + $0x2f0] sm:$0xff] }
 0x14f   :  { %1852 = vrot.lane.b32.xlu1 %v5044_v3, %s4113_s30  ;;  %v5102_v33 = vpack.c.bf16 %v2062_v29, %v2061_v26 }
 0x150   :  { %v1023_v11 = vpop.permute.xlu0 %1022 }
 0x151   :  { %1065 = vst.msk [vmem:[#allocation3 + $0x30] sm:$0xff] %vm1058_vm9, %v1023_v11  ;;  %v1025_v16 = vpop.permute.xlu1 %1024  ;;  %v1680_v11 = vld [vmem:[#allocation2 + $0x300] sm:$0xff] }
 0x152   :  { %1066 = vst.msk [vmem:[#allocation3 + $0x38] sm:$0xff] %vm1058_vm9, %v1025_v16  ;;  %1978 = vrot.lane.b32.xlu0 %v2328_v30, %s4114_s18  ;;  %v1793_v30 = vld [vmem:[#allocation2 + $0x249] sm:$0xff]  ;;  %v1226_v16 = vld [vmem:[#allocation2 + $0x13a] sm:$0xff] }
 0x153   :  { %1980 = vrot.lane.b32.xlu1 %v5051_v8, %s4114_s18  ;;  %1395 = vst.msk [vmem:[#allocation3 + $0xe8] sm:$0xff] %vm15_vm0, %v5102_v33  ;;  %v5117_v42 = vpack.c.bf16 %v1793_v30, %v1792_v28  ;;  %v1681_v25 = vld [vmem:[#allocation2 + $0x308] sm:$0xff] }
 0x154   :  { %v1027_v19 = vpop.permute.xlu0 %1026  ;;  %v5141_v9 = vpack.c.bf16 %v1681_v25, %v1680_v11 }
 0x155   :  { %1067 = vst.msk [vmem:[#allocation3 + $0x40] sm:$0xff] %vm1058_vm9, %v1027_v19  ;;  %v1029_v20 = vpop.permute.xlu1 %1028 }
 0x156   :  { %1068 = vst.msk [vmem:[#allocation3 + $0x48] sm:$0xff] %vm1058_vm9, %v1029_v20  ;;  %2107 = vrot.lane.b32.xlu0 %v4784_v49, %s4115_s27  ;;  %v1245_v49 = vpack.c.bf16 %v1223_v48, %v1222_v4  ;;  %v2177_v20 = vld [vmem:[#allocation2 + $0x259] sm:$0xff]  ;;  %v2178_v4 = vld [vmem:[#allocation2 + $0x261] sm:$0xff] }
 0x157   :  { %1284 = vrot.lane.b32.xlu1 %v1244_v18, %s4117_s25  ;;  %v1227_v18 = vld [vmem:[#allocation2 + $0x142] sm:$0xff]  ;;  %1396 = vst.msk [vmem:[#allocation3 + $0xf0] sm:$0xff] %vm15_vm0, %v5141_v9  ;;  %v2204_v27 = vpack.c.bf16 %v2178_v4, %v2177_v20 }
 0x158   :  { %v1031_v31 = vpop.permute.xlu0 %1030  ;;  %v3816_v48 = vld [vmem:[%s6390_s0 + $0x1e0] sm:$0xff]  ;;  %v1247_v53 = vpack.c.bf16 %v1227_v18, %v1226_v16  ;;  %v2309_v18 = vld [vmem:[#allocation2 + $0x28a] sm:$0xff] }
 0x159   :  { %1069 = vst.msk [vmem:[#allocation3 + $0x50] sm:$0xff] %vm1058_vm9, %v1031_v31  ;;  %v1033_v45 = vpop.permute.xlu1 %1032  ;;  %v3817_v31 = vld [vmem:[%s6390_s0 + $0x1e8] sm:$0xff] }
 0x15a   :  { %1070 = vst.msk [vmem:[#allocation3 + $0x58] sm:$0xff] %vm1058_vm9, %v1033_v45  ;;  %2109 = vrot.lane.b32.xlu0 %v4818_v57, %s4115_s27 }
 0x15b   :  { %2235 = vrot.lane.b32.xlu1 %v5044_v3, %s4116_s10  ;;  %232 = vst.msk [vmem:[#allocation2 + $0x319] sm:$0xff] %vm15_vm0, %v3816_v48  ;;  %233 = vst.msk [vmem:[#allocation2 + $0x321] sm:$0xff] %vm15_vm0, %v3817_v31 }
 0x15c   :  { %v1035_v52 = vpop.permute.xlu0 %1034 }
 0x15d   :  { %1071 = vst.msk [vmem:[#allocation3 + $0x60] sm:$0xff] %vm1058_vm9, %v1035_v52  ;;  %v1037_v35 = vpop.permute.xlu1 %1036 }
 0x15e   :  { %1072 = vst.msk [vmem:[#allocation3 + $0x68] sm:$0xff] %vm1058_vm9, %v1037_v35  ;;  %1286 = vrot.lane.b32.xlu0 %v1245_v49, %s4117_s25  ;;  %v2305_v49 = vld [vmem:[#allocation2 + $0x25a] sm:$0xff] }
 0x15f   :  { %2237 = vrot.lane.b32.xlu1 %v2202_v32, %s4116_s10 }
 0x160   :  { %v1039_v47 = vpop.permute.xlu0 %1038 }
 0x161   :  { %1073 = vst.msk [vmem:[#allocation3 + $0x70] sm:$0xff] %vm1058_vm9, %v1039_v47  ;;  %v1041_v13 = vpop.permute.xlu1 %1040 }
 0x162   :  { %1074 = vst.msk [vmem:[#allocation3 + $0x78] sm:$0xff] %vm1058_vm9, %v1041_v13  ;;  %2363 = vrot.lane.b32.xlu0 %v5051_v8, %s4117_s25  ;;  %v2065_v63 = vld [vmem:[#allocation2 + $0x318] sm:$0xff]  ;;  %v2066_v15 = vld [vmem:[#allocation2 + $0x320] sm:$0xff] }
 0x163   :  { %1470 = vrot.lane.b32.xlu1 %v5044_v3, %s4110_s7  ;;  %v1225_v3 = vld [vmem:[#allocation2 + $0x12a] sm:$0xff]  ;;  %v5171_v47 = vpack.c.bf16 %v2066_v15, %v2065_v63 }
 0x164   :  { %v1140_v55 = vpop.permute.xlu0 %1139  ;;  %v1246_v12 = vpack.c.bf16 %v1225_v3, %v1224_v1 }
 0x165   :  { %1188 = vst.msk [vmem:[#allocation3] sm:$0xff] %vm1187_vm10, %v1140_v55  ;;  %v1142_v58 = vpop.permute.xlu1 %1141 }
 0x166   :  { %1189 = vst.msk [vmem:[#allocation3 + $0x8] sm:$0xff] %vm1187_vm10, %v1142_v58  ;;  %2365 = vrot.lane.b32.xlu0 %v2330_v14, %s4117_s25 }
 0x167   :  { %1472 = vrot.lane.b32.xlu1 %v2202_v32, %s4110_s7  ;;  %1397 = vst.msk [vmem:[#allocation3 + $0xf8] sm:$0xff] %vm15_vm0, %v5171_v47 }
 0x168   :  { %v1144_v46 = vpop.permute.xlu0 %1143 }
 0x169   :  { %1190 = vst.msk [vmem:[#allocation3 + $0x10] sm:$0xff] %vm1187_vm10, %v1144_v46  ;;  %v1146_v2 = vpop.permute.xlu1 %1145  ;;  %v1796_v46 = vld [vmem:[#allocation2 + $0x271] sm:$0xff] }
 0x16a   :  { %1191 = vst.msk [vmem:[#allocation3 + $0x18] sm:$0xff] %vm1187_vm10, %v1146_v2  ;;  %1598 = vrot.lane.b32.xlu0 %v5051_v8, %s4111_s28  ;;  %v1371_v8 = vpack.c.bf16 %v1346_v6, %v1345_v7  ;;  %v1821_v30 = vpack.c.bf16 %v1797_v34, %v1796_v46  ;;  %v1230_v7 = vld [vmem:[#allocation2 + $0x16a] sm:$0xff]  ;;  %v1231_v6 = vld [vmem:[#allocation2 + $0x172] sm:$0xff] }
 0x16b   :  { %1600 = vrot.lane.b32.xlu1 %v2330_v14, %s4111_s28  ;;  %v1249_v25 = vpack.c.bf16 %v1231_v6, %v1230_v7 }
 0x16c   :  { %v1148_v21 = vpop.permute.xlu0 %1147  ;;  %1388 = vst.msk [vmem:[#allocation3 + $0xb0] sm:$0xff] %vm15_vm0, %v1371_v8  ;;  %v2181_v8 = vld [vmem:[#allocation2 + $0x289] sm:$0xff] }
 0x16d   :  { %1192 = vst.msk [vmem:[#allocation3 + $0x20] sm:$0xff] %vm1187_vm10, %v1148_v21  ;;  %v1150_v37 = vpop.permute.xlu1 %1149  ;;  %v3819_v21 = vld [vmem:[%s6390_s0 + $0x1f8] sm:$0xff] }
 0x16e   :  { %1193 = vst.msk [vmem:[#allocation3 + $0x28] sm:$0xff] %vm1187_vm10, %v1150_v37  ;;  %1726 = vrot.lane.b32.xlu0 %v4818_v57, %s4112_s29  ;;  %v5132_v57 = vpack.c.bf16 %v1921_v61, %v1920_v44  ;;  %v1924_v44 = vld [vmem:[#allocation2 + $0x272] sm:$0xff] }
 0x16f   :  { %1728 = vrot.lane.b32.xlu1 %v1691_v43, %s4112_s29  ;;  %235 = vst.msk [vmem:[#allocation2 + $0x339] sm:$0xff] %vm15_vm0, %v3819_v21  ;;  %v1235_v21 = vld [vmem:[#allocation2 + $0x1a2] sm:$0xff] }
 0x170   :  { %v1152_v50 = vpop.permute.xlu0 %1151 }
 0x171   :  { %1194 = vst.msk [vmem:[#allocation3 + $0x30] sm:$0xff] %vm1187_vm10, %v1152_v50  ;;  %v1154_v59 = vpop.permute.xlu1 %1153  ;;  %v1925_v50 = vld [vmem:[#allocation2 + $0x27a] sm:$0xff] }
 0x172   :  { %1195 = vst.msk [vmem:[#allocation3 + $0x38] sm:$0xff] %vm1187_vm10, %v1154_v59  ;;  %1854 = vrot.lane.b32.xlu0 %v2202_v32, %s4113_s30  ;;  %v2306_v32 = vld [vmem:[#allocation2 + $0x262] sm:$0xff]  ;;  %v1228_v59 = vld [vmem:[#allocation2 + $0x152] sm:$0xff] }
 0x173   :  { %1856 = vrot.lane.b32.xlu1 %v5117_v42, %s4113_s30  ;;  %v2332_v0 = vpack.c.bf16 %v2306_v32, %v2305_v49  ;;  %v1800_v32 = vld [vmem:[#allocation2 + $0x2a1] sm:$0xff] }
 0x174   :  { %v1156_v60 = vpop.permute.xlu0 %1155 }
 0x175   :  { %1196 = vst.msk [vmem:[#allocation3 + $0x40] sm:$0xff] %vm1187_vm10, %v1156_v60  ;;  %v1158_v10 = vpop.permute.xlu1 %1157 }
 0x176   :  { %1197 = vst.msk [vmem:[#allocation3 + $0x48] sm:$0xff] %vm1187_vm10, %v1158_v10  ;;  %1982 = vrot.lane.b32.xlu0 %v2330_v14, %s4114_s18 }
 0x177   :  { %1984 = vrot.lane.b32.xlu1 %v5132_v57, %s4114_s18 }
 0x178   :  { %v1160_v36 = vpop.permute.xlu0 %1159 }
 0x179   :  { %1198 = vst.msk [vmem:[#allocation3 + $0x50] sm:$0xff] %vm1187_vm10, %v1160_v36  ;;  %v1162_v23 = vpop.permute.xlu1 %1161  ;;  %v2182_v36 = vld [vmem:[#allocation2 + $0x291] sm:$0xff] }
 0x17a   :  { %1199 = vst.msk [vmem:[#allocation3 + $0x58] sm:$0xff] %vm1187_vm10, %v1162_v23  ;;  %2111 = vrot.lane.b32.xlu0 %v1691_v43, %s4115_s27  ;;  %v3818_v43 = vld [vmem:[%s6390_s0 + $0x1f0] sm:$0xff]  ;;  %v2206_v23 = vpack.c.bf16 %v2182_v36, %v2181_v8  ;;  %v1805_v36 = vld [vmem:[#allocation2 + $0x2d9] sm:$0xff] }
 0x17b   :  { %1288 = vrot.lane.b32.xlu1 %v1246_v12, %s4117_s25  ;;  %234 = vst.msk [vmem:[#allocation2 + $0x331] sm:$0xff] %vm15_vm0, %v3818_v43  ;;  %v1234_v43 = vld [vmem:[#allocation2 + $0x19a] sm:$0xff]  ;;  %v1804_v8 = vld [vmem:[#allocation2 + $0x2d1] sm:$0xff] }
 0x17c   :  { %v1164_v19 = vpop.permute.xlu0 %1163 }
 0x17d   :  { %1200 = vst.msk [vmem:[#allocation3 + $0x60] sm:$0xff] %vm1187_vm10, %v1164_v19  ;;  %v1269_v22 = vpop.permute.xlu1 %1268  ;;  %v2310_v19 = vld [vmem:[#allocation2 + $0x292] sm:$0xff] }
 0x17e   :  { %1317 = vst.msk [vmem:[#allocation3] sm:$0xff] %vm1316_vm11, %v1269_v22  ;;  %2113 = vrot.lane.b32.xlu0 %v4889_v56, %s4115_s27  ;;  %v2334_v48 = vpack.c.bf16 %v2310_v19, %v2309_v18  ;;  %v1933_v18 = vld [vmem:[#allocation2 + $0x2da] sm:$0xff] }
 0x17f   :  { %2239 = vrot.lane.b32.xlu1 %v5117_v42, %s4116_s10 }
 0x180   :  { %v1271_v41 = vpop.permute.xlu0 %1270 }
 0x181   :  { %1318 = vst.msk [vmem:[#allocation3 + $0x8] sm:$0xff] %vm1316_vm11, %v1271_v41  ;;  %v1166_v45 = vpop.permute.xlu1 %1165 }
 0x182   :  { %1201 = vst.msk [vmem:[#allocation3 + $0x68] sm:$0xff] %vm1187_vm10, %v1166_v45  ;;  %1290 = vrot.lane.b32.xlu0 %v1247_v53, %s4117_s25 }
 0x183   :  { %2241 = vrot.lane.b32.xlu1 %v2204_v27, %s4116_s10 }
 0x184   :  { %v1168_v52 = vpop.permute.xlu0 %1167 }
 0x185   :  { %1202 = vst.msk [vmem:[#allocation3 + $0x70] sm:$0xff] %vm1187_vm10, %v1168_v52  ;;  %v1273_v35 = vpop.permute.xlu1 %1272  ;;  %v2423_v38 = vld [vmem:[#allocation3] sm:$0xff]  ;;  %v1801_v52 = vld [vmem:[#allocation2 + $0x2a9] sm:$0xff] }
 0x186   :  { %1319 = vst.msk [vmem:[#allocation3 + $0x10] sm:$0xff] %vm1316_vm11, %v1273_v35  ;;  %2367 = vrot.lane.b32.xlu0 %v5132_v57, %s4117_s25  ;;  %4024 = vmatprep.mubr.msk.bf16.mxu0 %vm2475_vm12, %v2423_v38  ;;  %v1823_v35 = vpack.c.bf16 %v1801_v52, %v1800_v32  ;;  %v2317_v32 = vld [vmem:[#allocation2 + $0x2ea] sm:$0xff]  ;;  %v2318_v52 = vld [vmem:[#allocation2 + $0x2f2] sm:$0xff] }
 0x187   :  { %1474 = vrot.lane.b32.xlu1 %v5117_v42, %s4110_s7 }
 0x188   :  { %v1275_v13 = vpop.permute.xlu0 %1274  ;;  %v2424_v14 = vld [vmem:[#allocation3 + $0x8] sm:$0xff] }
 0x189   :  { %1320 = vst.msk [vmem:[#allocation3 + $0x18] sm:$0xff] %vm1316_vm11, %v1275_v13  ;;  %v1170_v55 = vpop.permute.xlu1 %1169  ;;  %4025 = vmatmul.mubr.msk.bf16.vlgmr.msra.gmra.mrb[0].mxu0 %vm2475_vm12, %v2424_v14  ;;  %v1929_v13 = vld [vmem:[#allocation2 + $0x2aa] sm:$0xff] }
 0x18a   :  { %1203 = vst.msk [vmem:[#allocation3 + $0x78] sm:$0xff] %vm1187_vm10, %v1170_v55  ;;  %2369 = vrot.lane.b32.xlu0 %v2332_v0, %s4117_s25 }
 0x18b   :  { %1476 = vrot.lane.b32.xlu1 %v2204_v27, %s4110_s7 }
 0x18c   :  { %v1277_v26 = vpop.permute.xlu0 %1276 }
 0x18d   :  { %1321 = vst.msk [vmem:[#allocation3 + $0x20] sm:$0xff] %vm1316_vm11, %v1277_v26  ;;  %v1279_v58 = vpop.permute.xlu1 %1278  ;;  %v2425_v29 = vld [vmem:[#allocation3 + $0x10] sm:$0xff] }
 0x18e   :  { %1322 = vst.msk [vmem:[#allocation3 + $0x28] sm:$0xff] %vm1316_vm11, %v1279_v58  ;;  %1602 = vrot.lane.b32.xlu0 %v5132_v57, %s4111_s28  ;;  %4028 = vmatprep.mubr.msk.bf16.mxu0 %vm2475_vm12, %v2425_v29  ;;  %v1229_v57 = vld [vmem:[#allocation2 + $0x15a] sm:$0xff]  ;;  %v1232_v58 = vld [vmem:[#allocation2 + $0x182] sm:$0xff]  ;;  %v1233_v29 = vld [vmem:[#allocation2 + $0x18a] sm:$0xff] }
 0x18f   :  { %1604 = vrot.lane.b32.xlu1 %v2332_v0, %s4111_s28  ;;  %v1248_v1 = vpack.c.bf16 %v1229_v57, %v1228_v59  ;;  %v1250_v34 = vpack.c.bf16 %v1233_v29, %v1232_v58 }
 0x190   :  { %v1463_v39 = vpop.permute.xlu0 %1462  ;;  %v2426_v2 = vld [vmem:[#allocation3 + $0x18] sm:$0xff] }
 0x191   :  { %1510 = vst.msk [vmem:[#allocation3 + $0x80] sm:$0xff] %vm412_vm3, %v1463_v39  ;;  %v1465_v28 = vpop.permute.xlu1 %1464  ;;  %4029 = vmatmul.mubr.msk.bf16.gmra.mrb[4].mxu0 %vm2475_vm12, %v2426_v2 }
 0x192   :  { %1511 = vst.msk [vmem:[#allocation3 + $0x88] sm:$0xff] %vm412_vm3, %v1465_v28  ;;  %1730 = vrot.lane.b32.xlu0 %v4889_v56, %s4112_s29  ;;  %v1949_v56 = vpack.c.bf16 %v1925_v50, %v1924_v44  ;;  %v1251_v44 = vpack.c.bf16 %v1235_v21, %v1234_v43 }
 0x193   :  { %1732 = vrot.lane.b32.xlu1 %v4928_v24, %s4112_s29 }
 0x194   :  { %v1591_v37 = vpop.permute.xlu0 %1590  ;;  %v2427_v42 = vld [vmem:[#allocation3 + $0x20] sm:$0xff] }
 0x195   :  { %1638 = vst.msk [vmem:[#allocation3 + $0x80] sm:$0xff] %vm541_vm4, %v1591_v37  ;;  %v1593_v61 = vpop.permute.xlu1 %1592  ;;  %4032 = vmatprep.mubr.msk.bf16.mxu0 %vm2475_vm12, %v2427_v42  ;;  %v2428_v5 = vld [vmem:[#allocation3 + $0x28] sm:$0xff] }
 0x196   :  { %1639 = vst.msk [vmem:[#allocation3 + $0x88] sm:$0xff] %vm541_vm4, %v1593_v61  ;;  %1858 = vrot.lane.b32.xlu0 %v2204_v27, %s4113_s30  ;;  %v2186_v37 = vld [vmem:[#allocation2 + $0x2c1] sm:$0xff] }
 0x197   :  { %1860 = vrot.lane.b32.xlu1 %v1821_v30, %s4113_s30 }
 0x198   :  { %v1719_v62 = vpop.permute.xlu0 %1718 }
 0x199   :  { %1766 = vst.msk [vmem:[#allocation3 + $0x80] sm:$0xff] %vm670_vm5, %v1719_v62  ;;  %v1721_v60 = vpop.permute.xlu1 %1720  ;;  %4033 = vmatmul.mubr.msk.bf16.gmra.mrb[8].mxu0 %vm2475_vm12, %v2428_v5  ;;  %v2314_v62 = vld [vmem:[#allocation2 + $0x2c2] sm:$0xff] }
 0x19a   :  { %1767 = vst.msk [vmem:[#allocation3 + $0x88] sm:$0xff] %vm670_vm5, %v1721_v60  ;;  %1986 = vrot.lane.b32.xlu0 %v2332_v0, %s4114_s18  ;;  %v1928_v0 = vld [vmem:[#allocation2 + $0x2a2] sm:$0xff] }
 0x19b   :  { %1988 = vrot.lane.b32.xlu1 %v1949_v56, %s4114_s18 }
 0x19c   :  { %v1847_v3 = vpop.permute.xlu0 %1846 }
 0x19d   :  { %1894 = vst.msk [vmem:[#allocation3 + $0x80] sm:$0xff] %vm799_vm6, %v1847_v3  ;;  %v1849_v10 = vpop.permute.xlu1 %1848 }
 0x19e   :  { %1895 = vst.msk [vmem:[#allocation3 + $0x88] sm:$0xff] %vm799_vm6, %v1849_v10  ;;  %2115 = vrot.lane.b32.xlu0 %v4928_v24, %s4115_s27 }
 0x19f   :  { %1292 = vrot.lane.b32.xlu1 %v1248_v1, %s4117_s25 }
 0x1a0   :  { %v1975_v12 = vpop.permute.xlu0 %1974 }
 0x1a1   :  { %2022 = vst.msk [vmem:[#allocation3 + $0x80] sm:$0xff] %vm928_vm8, %v1975_v12  ;;  %v1977_v11 = vpop.permute.xlu1 %1976 }
 0x1a2   :  { %2023 = vst.msk [vmem:[#allocation3 + $0x88] sm:$0xff] %vm928_vm8, %v1977_v11  ;;  %2117 = vrot.lane.b32.xlu0 %v4956_v17, %s4115_s27 }
 0x1a3   :  { %2243 = vrot.lane.b32.xlu1 %v1821_v30, %s4116_s10 }
 0x1a4   :  { %v2104_v24 = vpop.permute.xlu0 %2103 }
 0x1a5   :  { %2151 = vst.msk [vmem:[#allocation3 + $0x80] sm:$0xff] %vm1058_vm9, %v2104_v24  ;;  %v1281_v16 = vpop.permute.xlu1 %1280 }
 0x1a6   :  { %1323 = vst.msk [vmem:[#allocation3 + $0x30] sm:$0xff] %vm1316_vm11, %v1281_v16  ;;  %1294 = vrot.lane.b32.xlu0 %v1249_v25, %s4117_s25  ;;  %v1825_v25 = vpack.c.bf16 %v1805_v36, %v1804_v8  ;;  %v1932_v16 = vld [vmem:[#allocation2 + $0x2d2] sm:$0xff] }
 0x1a7   :  { %2245 = vrot.lane.b32.xlu1 %v2206_v23, %s4116_s10 }
 0x1a8   :  { %v2106_v20 = vpop.permute.xlu0 %2105 }
 0x1a9   :  { %2152 = vst.msk [vmem:[#allocation3 + $0x88] sm:$0xff] %vm1058_vm9, %v2106_v20  ;;  %v2232_v4 = vpop.permute.xlu1 %2231 }
 0x1aa   :  { %2279 = vst.msk [vmem:[#allocation3 + $0x80] sm:$0xff] %vm1187_vm10, %v2232_v4  ;;  %2371 = vrot.lane.b32.xlu0 %v1949_v56, %s4117_s25 }
 0x1ab   :  { %1478 = vrot.lane.b32.xlu1 %v1821_v30, %s4110_s7  ;;  %v2185_v30 = vld [vmem:[#allocation2 + $0x2b9] sm:$0xff] }
 0x1ac   :  { %v1283_v22 = vpop.permute.xlu0 %1282  ;;  %v2208_v50 = vpack.c.bf16 %v2186_v37, %v2185_v30 }
 0x1ad   :  { %1324 = vst.msk [vmem:[#allocation3 + $0x38] sm:$0xff] %vm1316_vm11, %v1283_v22  ;;  %v2234_v31 = vpop.permute.xlu1 %2233  ;;  %v2429_v53 = vld [vmem:[#allocation3 + $0x30] sm:$0xff] }
 0x1ae   :  { %2280 = vst.msk [vmem:[#allocation3 + $0x88] sm:$0xff] %vm1187_vm10, %v2234_v31  ;;  %2373 = vrot.lane.b32.xlu0 %v2334_v48, %s4117_s25  ;;  %4036 = vmatprep.mubr.msk.bf16.mxu0 %vm2475_vm12, %v2429_v53  ;;  %v2189_v31 = vld [vmem:[#allocation2 + $0x2e9] sm:$0xff]  ;;  %v2190_v53 = vld [vmem:[#allocation2 + $0x2f1] sm:$0xff] }
 0x1af   :  { %1480 = vrot.lane.b32.xlu1 %v2206_v23, %s4110_s7 }
 0x1b0   :  { %v2360_v27 = vpop.permute.xlu0 %2359 }
 0x1b1   :  { %2407 = vst.msk [vmem:[#allocation3 + $0x80] sm:$0xff] %vm1316_vm11, %v2360_v27  ;;  %v1467_v41 = vpop.permute.xlu1 %1466 }
 0x1b2   :  { %1512 = vst.msk [vmem:[#allocation3 + $0x90] sm:$0xff] %vm412_vm3, %v1467_v41  ;;  %1606 = vrot.lane.b32.xlu0 %v1949_v56, %s4111_s28  ;;  %v2313_v56 = vld [vmem:[#allocation2 + $0x2ba] sm:$0xff]  ;;  %v2210_v41 = vpack.c.bf16 %v2190_v53, %v2189_v31  ;;  %v2070_v31 = vld [vmem:[#allocation2 + $0x350] sm:$0xff] }
 0x1b3   :  { %1608 = vrot.lane.b32.xlu1 %v2334_v48, %s4111_s28  ;;  %v2336_v57 = vpack.c.bf16 %v2314_v62, %v2313_v56 }
 0x1b4   :  { %v2362_v45 = vpop.permute.xlu0 %2361  ;;  %v2430_v49 = vld [vmem:[#allocation3 + $0x38] sm:$0xff] }
 0x1b5   :  { %2408 = vst.msk [vmem:[#allocation3 + $0x88] sm:$0xff] %vm1316_vm11, %v2362_v45  ;;  %v1469_v63 = vpop.permute.xlu1 %1468  ;;  %4037 = vmatmul.mubr.msk.bf16.gmra.mrb[12].mxu0 %vm2475_vm12, %v2430_v49 }
 0x1b6   :  { %1513 = vst.msk [vmem:[#allocation3 + $0x98] sm:$0xff] %vm412_vm3, %v1469_v63  ;;  %1734 = vrot.lane.b32.xlu0 %v4956_v17, %s4112_s29  ;;  %v1951_v17 = vpack.c.bf16 %v1929_v13, %v1928_v0 }
 0x1b7   :  { %1736 = vrot.lane.b32.xlu1 %v4998_v40, %s4112_s29 }
 0x1b8   :  { %v1595_v38 = vpop.permute.xlu0 %1594  ;;  %v2439_v15 = vld [vmem:[#allocation3 + $0x80] sm:$0xff] }
 0x1b9   :  { %1640 = vst.msk [vmem:[#allocation3 + $0x90] sm:$0xff] %vm541_vm4, %v1595_v38  ;;  %v1597_v14 = vpop.permute.xlu1 %1596  ;;  %4056 = vmatprep.mubr.msk.bf16.mxu1 %vm2475_vm12, %v2439_v15 }
 0x1ba   :  { %1641 = vst.msk [vmem:[#allocation3 + $0x98] sm:$0xff] %vm541_vm4, %v1597_v14  ;;  %1862 = vrot.lane.b32.xlu0 %v2206_v23, %s4113_s30 }
 0x1bb   :  { %1864 = vrot.lane.b32.xlu1 %v1823_v35, %s4113_s30 }
 0x1bc   :  { %v1723_v55 = vpop.permute.xlu0 %1722  ;;  %v2440_v26 = vld [vmem:[#allocation3 + $0x88] sm:$0xff] }
 0x1bd   :  { %1768 = vst.msk [vmem:[#allocation3 + $0x90] sm:$0xff] %vm670_vm5, %v1723_v55  ;;  %v1725_v46 = vpop.permute.xlu1 %1724  ;;  %4057 = vmatmul.mubr.msk.bf16.vlgmr.msra.gmra.mrb[0].mxu1 %vm2475_vm12, %v2440_v26  ;;  %v1808_v55 = vld [vmem:[#allocation2 + $0x301] sm:$0xff]  ;;  %v1809_v26 = vld [vmem:[#allocation2 + $0x309] sm:$0xff] }
 0x1be   :  { %1769 = vst.msk [vmem:[#allocation3 + $0x98] sm:$0xff] %vm670_vm5, %v1725_v46  ;;  %1990 = vrot.lane.b32.xlu0 %v2334_v48, %s4114_s18  ;;  %v1827_v29 = vpack.c.bf16 %v1809_v26, %v1808_v55 }
 0x1bf   :  { %1992 = vrot.lane.b32.xlu1 %v1951_v17, %s4114_s18 }
 0x1c0   :  { %v1851_v39 = vpop.permute.xlu0 %1850 }
 0x1c1   :  { %1896 = vst.msk [vmem:[#allocation3 + $0x90] sm:$0xff] %vm799_vm6, %v1851_v39  ;;  %v1853_v2 = vpop.permute.xlu1 %1852  ;;  %v1936_v39 = vld [vmem:[#allocation2 + $0x302] sm:$0xff] }
 0x1c2   :  { %1897 = vst.msk [vmem:[#allocation3 + $0x98] sm:$0xff] %vm799_vm6, %v1853_v2  ;;  %2119 = vrot.lane.b32.xlu0 %v4998_v40, %s4115_s27  ;;  %v1937_v2 = vld [vmem:[#allocation2 + $0x30a] sm:$0xff] }
 0x1c3   :  { %1296 = vrot.lane.b32.xlu1 %v1250_v34, %s4117_s25 }
 0x1c4   :  { %v1979_v28 = vpop.permute.xlu0 %1978 }
 0x1c5   :  { %2024 = vst.msk [vmem:[#allocation3 + $0x90] sm:$0xff] %vm928_vm8, %v1979_v28  ;;  %v1981_v42 = vpop.permute.xlu1 %1980 }
 0x1c6   :  { %2025 = vst.msk [vmem:[#allocation3 + $0x98] sm:$0xff] %vm928_vm8, %v1981_v42  ;;  %2121 = vrot.lane.b32.xlu0 %v5029_v54, %s4115_s27 }
 0x1c7   :  { %2247 = vrot.lane.b32.xlu1 %v1823_v35, %s4116_s10 }
 0x1c8   :  { %v2108_v40 = vpop.permute.xlu0 %2107 }
 0x1c9   :  { %2153 = vst.msk [vmem:[#allocation3 + $0x90] sm:$0xff] %vm1058_vm9, %v2108_v40  ;;  %v1285_v61 = vpop.permute.xlu1 %1284 }
 0x1ca   :  { %1325 = vst.msk [vmem:[#allocation3 + $0x40] sm:$0xff] %vm1316_vm11, %v1285_v61  ;;  %1298 = vrot.lane.b32.xlu0 %v1251_v44, %s4117_s25  ;;  %v2193_v44 = vld [vmem:[#allocation2 + $0x319] sm:$0xff] }
 0x1cb   :  { %2249 = vrot.lane.b32.xlu1 %v2208_v50, %s4116_s10 }
 0x1cc   :  { %v2110_v5 = vpop.permute.xlu0 %2109 }
 0x1cd   :  { %2154 = vst.msk [vmem:[#allocation3 + $0x98] sm:$0xff] %vm1058_vm9, %v2110_v5  ;;  %v2236_v59 = vpop.permute.xlu1 %2235  ;;  %v2321_v5 = vld [vmem:[#allocation2 + $0x31a] sm:$0xff] }
 0x1ce   :  { %2281 = vst.msk [vmem:[#allocation3 + $0x90] sm:$0xff] %vm1187_vm10, %v2236_v59  ;;  %2375 = vrot.lane.b32.xlu0 %v1951_v17, %s4117_s25  ;;  %v2322_v59 = vld [vmem:[#allocation2 + $0x322] sm:$0xff] }
 0x1cf   :  { %1482 = vrot.lane.b32.xlu1 %v1823_v35, %s4110_s7  ;;  %v2338_v35 = vpack.c.bf16 %v2318_v52, %v2317_v32  ;;  %v2198_v32 = vld [vmem:[#allocation2 + $0x351] sm:$0xff] }
 0x1d0   :  { %v1287_v60 = vpop.permute.xlu0 %1286 }
 0x1d1   :  { %1326 = vst.msk [vmem:[#allocation3 + $0x48] sm:$0xff] %vm1316_vm11, %v1287_v60  ;;  %v2238_v1 = vpop.permute.xlu1 %2237  ;;  %v2431_v3 = vld [vmem:[#allocation3 + $0x40] sm:$0xff]  ;;  %v2340_v60 = vpack.c.bf16 %v2322_v59, %v2321_v5 }
 0x1d2   :  { %2282 = vst.msk [vmem:[#allocation3 + $0x98] sm:$0xff] %vm1187_vm10, %v2238_v1  ;;  %2377 = vrot.lane.b32.xlu0 %v2336_v57, %s4117_s25  ;;  %4040 = vmatprep.mubr.msk.bf16.mxu0 %vm2475_vm12, %v2431_v3 }
 0x1d3   :  { %1484 = vrot.lane.b32.xlu1 %v2208_v50, %s4110_s7 }
 0x1d4   :  { %v2364_v10 = vpop.permute.xlu0 %2363 }
 0x1d5   :  { %2409 = vst.msk [vmem:[#allocation3 + $0x90] sm:$0xff] %vm1316_vm11, %v2364_v10  ;;  %v1471_v7 = vpop.permute.xlu1 %1470 }
 0x1d6   :  { %1514 = vst.msk [vmem:[#allocation3 + $0xa0] sm:$0xff] %vm412_vm3, %v1471_v7  ;;  %1610 = vrot.lane.b32.xlu0 %v1951_v17, %s4111_s28  ;;  %v1684_v7 = vld [vmem:[#allocation2 + $0x330] sm:$0xff] }
 0x1d7   :  { %1612 = vrot.lane.b32.xlu1 %v2336_v57, %s4111_s28 }
 0x1d8   :  { %v2366_v6 = vpop.permute.xlu0 %2365  ;;  %v2432_v12 = vld [vmem:[#allocation3 + $0x48] sm:$0xff] }
 0x1d9   :  { %2410 = vst.msk [vmem:[#allocation3 + $0x98] sm:$0xff] %vm1316_vm11, %v2366_v6  ;;  %v1473_v11 = vpop.permute.xlu1 %1472  ;;  %4041 = vmatmul.mubr.msk.bf16.gmra.mrb[16].mxu0 %vm2475_vm12, %v2432_v12  ;;  %v1685_v6 = vld [vmem:[#allocation2 + $0x338] sm:$0xff] }
 0x1da   :  { %1515 = vst.msk [vmem:[#allocation3 + $0xa8] sm:$0xff] %vm412_vm3, %v1473_v11  ;;  %1738 = vrot.lane.b32.xlu0 %v5029_v54, %s4112_s29  ;;  %v1953_v54 = vpack.c.bf16 %v1933_v18, %v1932_v16  ;;  %v1701_v8 = vpack.c.bf16 %v1685_v6, %v1684_v7  ;;  %v1812_v11 = vld [vmem:[#allocation2 + $0x331] sm:$0xff] }
 0x1db   :  { %1740 = vrot.lane.b32.xlu1 %v5072_v51, %s4112_s29 }
 0x1dc   :  { %v1599_v23 = vpop.permute.xlu0 %1598  ;;  %v2441_v24 = vld [vmem:[#allocation3 + $0x90] sm:$0xff] }
 0x1dd   :  { %1642 = vst.msk [vmem:[#allocation3 + $0xa0] sm:$0xff] %vm541_vm4, %v1599_v23  ;;  %v1601_v19 = vpop.permute.xlu1 %1600  ;;  %4060 = vmatprep.mubr.msk.bf16.mxu1 %vm2475_vm12, %v2441_v24 }
 0x1de   :  { %1643 = vst.msk [vmem:[#allocation3 + $0xa8] sm:$0xff] %vm541_vm4, %v1601_v19  ;;  %1866 = vrot.lane.b32.xlu0 %v2208_v50, %s4113_s30  ;;  %v2194_v50 = vld [vmem:[#allocation2 + $0x321] sm:$0xff]  ;;  %v1940_v19 = vld [vmem:[#allocation2 + $0x332] sm:$0xff] }
 0x1df   :  { %1868 = vrot.lane.b32.xlu1 %v1825_v25, %s4113_s30  ;;  %v2212_v61 = vpack.c.bf16 %v2194_v50, %v2193_v44 }
 0x1e0   :  { %v1727_v20 = vpop.permute.xlu0 %1726  ;;  %v2442_v4 = vld [vmem:[#allocation3 + $0x98] sm:$0xff] }
 0x1e1   :  { %1770 = vst.msk [vmem:[#allocation3 + $0xa0] sm:$0xff] %vm670_vm5, %v1727_v20  ;;  %v1729_v48 = vpop.permute.xlu1 %1728  ;;  %4061 = vmatmul.mubr.msk.bf16.gmra.mrb[4].mxu1 %vm2475_vm12, %v2442_v4 }
 0x1e2   :  { %1771 = vst.msk [vmem:[#allocation3 + $0xa8] sm:$0xff] %vm670_vm5, %v1729_v48  ;;  %1994 = vrot.lane.b32.xlu0 %v2336_v57, %s4114_s18 }
 0x1e3   :  { %1996 = vrot.lane.b32.xlu1 %v1953_v54, %s4114_s18 }
 0x1e4   :  { %v1855_v22 = vpop.permute.xlu0 %1854 }
 0x1e5   :  { %1898 = vst.msk [vmem:[#allocation3 + $0xa0] sm:$0xff] %vm799_vm6, %v1855_v22  ;;  %v1857_v27 = vpop.permute.xlu1 %1856  ;;  %v2069_v22 = vld [vmem:[#allocation2 + $0x348] sm:$0xff] }
 0x1e6   :  { %1899 = vst.msk [vmem:[#allocation3 + $0xa8] sm:$0xff] %vm799_vm6, %v1857_v27  ;;  %2123 = vrot.lane.b32.xlu0 %v5072_v51, %s4115_s27  ;;  %v2086_v27 = vpack.c.bf16 %v2070_v31, %v2069_v22 }
 0x1e7   :  { %2125 = vrot.lane.b32.xlu1 %v5102_v33, %s4115_s27 }
 0x1e8   :  { %v1983_v45 = vpop.permute.xlu0 %1982 }
 0x1e9   :  { %2026 = vst.msk [vmem:[#allocation3 + $0xa0] sm:$0xff] %vm928_vm8, %v1983_v45  ;;  %v1985_v49 = vpop.permute.xlu1 %1984 }
 0x1ea   :  { %2027 = vst.msk [vmem:[#allocation3 + $0xa8] sm:$0xff] %vm928_vm8, %v1985_v49  ;;  %2251 = vrot.lane.b32.xlu0 %v1825_v25, %s4116_s10  ;;  %v2197_v49 = vld [vmem:[#allocation2 + $0x349] sm:$0xff] }
 0x1eb   :  { %2253 = vrot.lane.b32.xlu1 %v2210_v41, %s4116_s10 }
 0x1ec   :  { %v2112_v63 = vpop.permute.xlu0 %2111 }
 0x1ed   :  { %2155 = vst.msk [vmem:[#allocation3 + $0xa0] sm:$0xff] %vm1058_vm9, %v2112_v63  ;;  %v1289_v51 = vpop.permute.xlu1 %1288  ;;  %v2214_v63 = vpack.c.bf16 %v2198_v32, %v2197_v49 }
 0x1ee   :  { %1327 = vst.msk [vmem:[#allocation3 + $0x50] sm:$0xff] %vm1316_vm11, %v1289_v51  ;;  %2379 = vrot.lane.b32.xlu0 %v1953_v54, %s4117_s25 }
 0x1ef   :  { %1486 = vrot.lane.b32.xlu1 %v1825_v25, %s4110_s7  ;;  %v1813_v25 = vld [vmem:[#allocation2 + $0x339] sm:$0xff] }
 0x1f0   :  { %v2114_v38 = vpop.permute.xlu0 %2113  ;;  %v1829_v16 = vpack.c.bf16 %v1813_v25, %v1812_v11 }
 0x1f1   :  { %2156 = vst.msk [vmem:[#allocation3 + $0xa8] sm:$0xff] %vm1058_vm9, %v2114_v38  ;;  %v2240_v15 = vpop.permute.xlu1 %2239  ;;  %v2325_v38 = vld [vmem:[#allocation2 + $0x34a] sm:$0xff] }
 0x1f2   :  { %2283 = vst.msk [vmem:[#allocation3 + $0xa0] sm:$0xff] %vm1187_vm10, %v2240_v15  ;;  %2381 = vrot.lane.b32.xlu0 %v2338_v35, %s4117_s25  ;;  %v2326_v15 = vld [vmem:[#allocation2 + $0x352] sm:$0xff] }
 0x1f3   :  { %1488 = vrot.lane.b32.xlu1 %v2210_v41, %s4110_s7 }
 0x1f4   :  { %v1291_v0 = vpop.permute.xlu0 %1290 }
 0x1f5   :  { %1328 = vst.msk [vmem:[#allocation3 + $0x58] sm:$0xff] %vm1316_vm11, %v1291_v0  ;;  %v2242_v13 = vpop.permute.xlu1 %2241  ;;  %v2433_v14 = vld [vmem:[#allocation3 + $0x50] sm:$0xff] }
 0x1f6   :  { %2284 = vst.msk [vmem:[#allocation3 + $0xa8] sm:$0xff] %vm1187_vm10, %v2242_v13  ;;  %1614 = vrot.lane.b32.xlu0 %v1953_v54, %s4111_s28  ;;  %4044 = vmatprep.mubr.msk.bf16.mxu0 %vm2475_vm12, %v2433_v14  ;;  %v1941_v54 = vld [vmem:[#allocation2 + $0x33a] sm:$0xff]  ;;  %v2342_v13 = vpack.c.bf16 %v2326_v15, %v2325_v38 }
 0x1f7   :  { %1616 = vrot.lane.b32.xlu1 %v2338_v35, %s4111_s28  ;;  %v1957_v4 = vpack.c.bf16 %v1941_v54, %v1940_v19 }
 0x1f8   :  { %v2368_v17 = vpop.permute.xlu0 %2367 }
 0x1f9   :  { %2411 = vst.msk [vmem:[#allocation3 + $0xa0] sm:$0xff] %vm1316_vm11, %v2368_v17  ;;  %v1475_v58 = vpop.permute.xlu1 %1474 }
 0x1fa   :  { %1516 = vst.msk [vmem:[#allocation3 + $0xb0] sm:$0xff] %vm412_vm3, %v1475_v58  ;;  %1742 = vrot.lane.b32.xlu0 %v5102_v33, %s4112_s29  ;;  %v1955_v33 = vpack.c.bf16 %v1937_v2, %v1936_v39 }
 0x1fb   :  { %1744 = vrot.lane.b32.xlu1 %v5141_v9, %s4112_s29 }
 0x1fc   :  { %v2370_v46 = vpop.permute.xlu0 %2369  ;;  %v2434_v34 = vld [vmem:[#allocation3 + $0x58] sm:$0xff] }
 0x1fd   :  { %2412 = vst.msk [vmem:[#allocation3 + $0xa8] sm:$0xff] %vm1316_vm11, %v2370_v46  ;;  %v1477_v43 = vpop.permute.xlu1 %1476  ;;  %4045 = vmatmul.mubr.msk.bf16.gmra.mrb[20].mxu0 %vm2475_vm12, %v2434_v34 }
 0x1fe   :  { %1517 = vst.msk [vmem:[#allocation3 + $0xb8] sm:$0xff] %vm412_vm3, %v1477_v43  ;;  %1870 = vrot.lane.b32.xlu0 %v2210_v41, %s4113_s30 }
 0x1ff   :  { %1872 = vrot.lane.b32.xlu1 %v1827_v29, %s4113_s30 }
 0x200   :  { %v1603_v21 = vpop.permute.xlu0 %1602  ;;  %v2443_v28 = vld [vmem:[#allocation3 + $0xa0] sm:$0xff] }
 0x201   :  { %1644 = vst.msk [vmem:[#allocation3 + $0xb0] sm:$0xff] %vm541_vm4, %v1603_v21  ;;  %v1605_v30 = vpop.permute.xlu1 %1604  ;;  %4064 = vmatprep.mubr.msk.bf16.mxu1 %vm2475_vm12, %v2443_v28 }
 0x202   :  { %1645 = vst.msk [vmem:[#allocation3 + $0xb8] sm:$0xff] %vm541_vm4, %v1605_v30  ;;  %1998 = vrot.lane.b32.xlu0 %v2338_v35, %s4114_s18 }
 0x203   :  { %2000 = vrot.lane.b32.xlu1 %v1955_v33, %s4114_s18 }
 0x204   :  { %v1731_v37 = vpop.permute.xlu0 %1730  ;;  %v2444_v42 = vld [vmem:[#allocation3 + $0xa8] sm:$0xff] }
 0x205   :  { %1772 = vst.msk [vmem:[#allocation3 + $0xb0] sm:$0xff] %vm670_vm5, %v1731_v37  ;;  %v1733_v40 = vpop.permute.xlu1 %1732  ;;  %4065 = vmatmul.mubr.msk.bf16.gmra.mrb[8].mxu1 %vm2475_vm12, %v2444_v42 }
 0x206   :  { %1773 = vst.msk [vmem:[#allocation3 + $0xb8] sm:$0xff] %vm670_vm5, %v1733_v40  ;;  %2127 = vrot.lane.b32.xlu0 %v5141_v9, %s4115_s27 }
 0x207   :  { %2129 = vrot.lane.b32.xlu1 %v5171_v47, %s4115_s27 }
 0x208   :  { %v1859_v56 = vpop.permute.xlu0 %1858 }
 0x209   :  { %1900 = vst.msk [vmem:[#allocation3 + $0xb0] sm:$0xff] %vm799_vm6, %v1859_v56  ;;  %v1861_v62 = vpop.permute.xlu1 %1860 }
 0x20a   :  { %1901 = vst.msk [vmem:[#allocation3 + $0xb8] sm:$0xff] %vm799_vm6, %v1861_v62  ;;  %2255 = vrot.lane.b32.xlu0 %v1827_v29, %s4116_s10 }
 0x20b   :  { %2257 = vrot.lane.b32.xlu1 %v2212_v61, %s4116_s10 }
 0x20c   :  { %v1987_v57 = vpop.permute.xlu0 %1986 }
 0x20d   :  { %2028 = vst.msk [vmem:[#allocation3 + $0xb0] sm:$0xff] %vm928_vm8, %v1987_v57  ;;  %v1989_v9 = vpop.permute.xlu1 %1988 }
 0x20e   :  { %2029 = vst.msk [vmem:[#allocation3 + $0xb8] sm:$0xff] %vm928_vm8, %v1989_v9  ;;  %2383 = vrot.lane.b32.xlu0 %v1955_v33, %s4117_s25 }
 0x20f   :  { %1490 = vrot.lane.b32.xlu1 %v1827_v29, %s4110_s7 }
 0x210   :  { %v2116_v1 = vpop.permute.xlu0 %2115 }
 0x211   :  { %2157 = vst.msk [vmem:[#allocation3 + $0xb0] sm:$0xff] %vm1058_vm9, %v2116_v1  ;;  %v1293_v3 = vpop.permute.xlu1 %1292 }
 0x212   :  { %1329 = vst.msk [vmem:[#allocation3 + $0x60] sm:$0xff] %vm1316_vm11, %v1293_v3  ;;  %2385 = vrot.lane.b32.xlu0 %v2340_v60, %s4117_s25 }
 0x213   :  { %1492 = vrot.lane.b32.xlu1 %v2212_v61, %s4110_s7 }
 0x214   :  { %v2118_v10 = vpop.permute.xlu0 %2117 }
 0x215   :  { %2158 = vst.msk [vmem:[#allocation3 + $0xb8] sm:$0xff] %vm1058_vm9, %v2118_v10  ;;  %v2244_v12 = vpop.permute.xlu1 %2243 }
 0x216   :  { %2285 = vst.msk [vmem:[#allocation3 + $0xb0] sm:$0xff] %vm1187_vm10, %v2244_v12  ;;  %1618 = vrot.lane.b32.xlu0 %v1955_v33, %s4111_s28 }
 0x217   :  { %1620 = vrot.lane.b32.xlu1 %v2340_v60, %s4111_s28 }
 0x218   :  { %v1295_v36 = vpop.permute.xlu0 %1294 }
 0x219   :  { %1330 = vst.msk [vmem:[#allocation3 + $0x68] sm:$0xff] %vm1316_vm11, %v1295_v36  ;;  %v2246_v23 = vpop.permute.xlu1 %2245  ;;  %v2435_v24 = vld [vmem:[#allocation3 + $0x60] sm:$0xff] }
 0x21a   :  { %2286 = vst.msk [vmem:[#allocation3 + $0xb8] sm:$0xff] %vm1187_vm10, %v2246_v23  ;;  %1746 = vrot.lane.b32.xlu0 %v5171_v47, %s4112_s29  ;;  %4048 = vmatprep.mubr.msk.bf16.mxu0 %vm2475_vm12, %v2435_v24 }
 0x21b   :  { %1748 = vrot.lane.b32.xlu1 %v1701_v8, %s4112_s29 }
 0x21c   :  { %v2372_v18 = vpop.permute.xlu0 %2371 }
 0x21d   :  { %2413 = vst.msk [vmem:[#allocation3 + $0xb0] sm:$0xff] %vm1316_vm11, %v2372_v18  ;;  %v1479_v20 = vpop.permute.xlu1 %1478 }
 0x21e   :  { %1518 = vst.msk [vmem:[#allocation3 + $0xc0] sm:$0xff] %vm412_vm3, %v1479_v20  ;;  %1874 = vrot.lane.b32.xlu0 %v2212_v61, %s4113_s30 }
 0x21f   :  { %1876 = vrot.lane.b32.xlu1 %v1829_v16, %s4113_s30  ;;  %s4118_s30 = smov 120  }
 0x220   :  { %v2374_v48 = vpop.permute.xlu0 %2373  ;;  %v2436_v47 = vld [vmem:[#allocation3 + $0x68] sm:$0xff] }
 0x221   :  { %2414 = vst.msk [vmem:[#allocation3 + $0xb8] sm:$0xff] %vm1316_vm11, %v2374_v48  ;;  %v1481_v53 = vpop.permute.xlu1 %1480  ;;  %4049 = vmatmul.mubr.msk.bf16.gmra.mrb[24].mxu0 %vm2475_vm12, %v2436_v47 }
 0x222   :  { %1519 = vst.msk [vmem:[#allocation3 + $0xc8] sm:$0xff] %vm412_vm3, %v1481_v53  ;;  %2002 = vrot.lane.b32.xlu0 %v2340_v60, %s4114_s18 }
 0x223   :  { %2004 = vrot.lane.b32.xlu1 %v1957_v4, %s4114_s18 }
 0x224   :  { %v1607_v41 = vpop.permute.xlu0 %1606  ;;  %v2445_v45 = vld [vmem:[#allocation3 + $0xb0] sm:$0xff] }
 0x225   :  { %1646 = vst.msk [vmem:[#allocation3 + $0xc0] sm:$0xff] %vm541_vm4, %v1607_v41  ;;  %v1609_v52 = vpop.permute.xlu1 %1608  ;;  %4068 = vmatprep.mubr.msk.bf16.mxu1 %vm2475_vm12, %v2445_v45 }
 0x226   :  { %1647 = vst.msk [vmem:[#allocation3 + $0xc8] sm:$0xff] %vm541_vm4, %v1609_v52  ;;  %2131 = vrot.lane.b32.xlu0 %v1701_v8, %s4115_s27 }
 0x227   :  { %2133 = vrot.lane.b32.xlu1 %v2086_v27, %s4115_s27 }
 0x228   :  { %v1735_v51 = vpop.permute.xlu0 %1734  ;;  %v2446_v35 = vld [vmem:[#allocation3 + $0xb8] sm:$0xff] }
 0x229   :  { %1774 = vst.msk [vmem:[#allocation3 + $0xc0] sm:$0xff] %vm670_vm5, %v1735_v51  ;;  %v1737_v0 = vpop.permute.xlu1 %1736  ;;  %4069 = vmatmul.mubr.msk.bf16.gmra.mrb[12].mxu1 %vm2475_vm12, %v2446_v35 }
 0x22a   :  { %1775 = vst.msk [vmem:[#allocation3 + $0xc8] sm:$0xff] %vm670_vm5, %v1737_v0  ;;  %2259 = vrot.lane.b32.xlu0 %v1829_v16, %s4116_s10 }
 0x22b   :  { %2261 = vrot.lane.b32.xlu1 %v2214_v63, %s4116_s10 }
 0x22c   :  { %v1863_v14 = vpop.permute.xlu0 %1862 }
 0x22d   :  { %1902 = vst.msk [vmem:[#allocation3 + $0xc0] sm:$0xff] %vm799_vm6, %v1863_v14  ;;  %v1865_v17 = vpop.permute.xlu1 %1864 }
 0x22e   :  { %1903 = vst.msk [vmem:[#allocation3 + $0xc8] sm:$0xff] %vm799_vm6, %v1865_v17  ;;  %2387 = vrot.lane.b32.xlu0 %v1957_v4, %s4117_s25 }
 0x22f   :  { %2389 = vrot.lane.b32.xlu1 %v2342_v13, %s4117_s25 }
 0x230   :  { %v1991_v55 = vpop.permute.xlu0 %1990 }
 0x231   :  { %2030 = vst.msk [vmem:[#allocation3 + $0xc0] sm:$0xff] %vm928_vm8, %v1991_v55  ;;  %v1993_v26 = vpop.permute.xlu1 %1992 }
 0x232   :  { %2031 = vst.msk [vmem:[#allocation3 + $0xc8] sm:$0xff] %vm928_vm8, %v1993_v26 }
 0x234   :  { %v2120_v58 = vpop.permute.xlu0 %2119 }
 0x235   :  { %2159 = vst.msk [vmem:[#allocation3 + $0xc0] sm:$0xff] %vm1058_vm9, %v2120_v58  ;;  %v1297_v29 = vpop.permute.xlu1 %1296 }
 0x236   :  { %1331 = vst.msk [vmem:[#allocation3 + $0x70] sm:$0xff] %vm1316_vm11, %v1297_v29 }
 0x238   :  { %v2122_v46 = vpop.permute.xlu0 %2121 }
 0x239   :  { %2160 = vst.msk [vmem:[#allocation3 + $0xc8] sm:$0xff] %vm1058_vm9, %v2122_v46  ;;  %v2248_v34 = vpop.permute.xlu1 %2247 }
 0x23a   :  { %2287 = vst.msk [vmem:[#allocation3 + $0xc0] sm:$0xff] %vm1187_vm10, %v2248_v34 }
 0x23c   :  { %v1299_v39 = vpop.permute.xlu0 %1298 }
 0x23d   :  { %1332 = vst.msk [vmem:[#allocation3 + $0x78] sm:$0xff] %vm1316_vm11, %v1299_v39  ;;  %v2250_v2 = vpop.permute.xlu1 %2249  ;;  %v2437_v43 = vld [vmem:[#allocation3 + $0x70] sm:$0xff] }
 0x23e   :  { %2288 = vst.msk [vmem:[#allocation3 + $0xc8] sm:$0xff] %vm1187_vm10, %v2250_v2  ;;  %4052 = vmatprep.mubr.msk.bf16.mxu0 %vm2475_vm12, %v2437_v43 }
 0x240   :  { %v2376_v33 = vpop.permute.xlu0 %2375 }
 0x241   :  { %2415 = vst.msk [vmem:[#allocation3 + $0xc0] sm:$0xff] %vm1316_vm11, %v2376_v33  ;;  %v1483_v21 = vpop.permute.xlu1 %1482 }
 0x242   :  { %1520 = vst.msk [vmem:[#allocation3 + $0xd0] sm:$0xff] %vm412_vm3, %v1483_v21 }
 0x244   :  { %v2378_v28 = vpop.permute.xlu0 %2377  ;;  %v2438_v30 = vld [vmem:[#allocation3 + $0x78] sm:$0xff] }
 0x245   :  { %2416 = vst.msk [vmem:[#allocation3 + $0xc8] sm:$0xff] %vm1316_vm11, %v2378_v28  ;;  %v1485_v37 = vpop.permute.xlu1 %1484  ;;  %4053 = vmatmul.mubr.msk.bf16.gmra.mrb[28].mxu0 %vm2475_vm12, %v2438_v30 }
 0x246   :  { %1521 = vst.msk [vmem:[#allocation3 + $0xd8] sm:$0xff] %vm412_vm3, %v1485_v37 }
 0x248   :  { %v1611_v42 = vpop.permute.xlu0 %1610  ;;  %v2447_v44 = vld [vmem:[#allocation3 + $0xc0] sm:$0xff] }
 0x249   :  { %1648 = vst.msk [vmem:[#allocation3 + $0xd0] sm:$0xff] %vm541_vm4, %v1611_v42  ;;  %v1613_v50 = vpop.permute.xlu1 %1612  ;;  %4072 = vmatprep.mubr.msk.bf16.mxu1 %vm2475_vm12, %v2447_v44 }
 0x24a   :  { %1649 = vst.msk [vmem:[#allocation3 + $0xd8] sm:$0xff] %vm541_vm4, %v1613_v50 }
 0x24c   :  { %v1739_v40 = vpop.permute.xlu0 %1738  ;;  %v2448_v61 = vld [vmem:[#allocation3 + $0xc8] sm:$0xff] }
 0x24d   :  { %1776 = vst.msk [vmem:[#allocation3 + $0xd0] sm:$0xff] %vm670_vm5, %v1739_v40  ;;  %v1741_v56 = vpop.permute.xlu1 %1740  ;;  %4073 = vmatmul.mubr.msk.bf16.gmra.mrb[16].mxu1 %vm2475_vm12, %v2448_v61 }
 0x24e   :  { %1777 = vst.msk [vmem:[#allocation3 + $0xd8] sm:$0xff] %vm670_vm5, %v1741_v56 }
 0x250   :  { %v1867_v62 = vpop.permute.xlu0 %1866 }
 0x251   :  { %1904 = vst.msk [vmem:[#allocation3 + $0xd0] sm:$0xff] %vm799_vm6, %v1867_v62  ;;  %v1869_v5 = vpop.permute.xlu1 %1868 }
 0x252   :  { %1905 = vst.msk [vmem:[#allocation3 + $0xd8] sm:$0xff] %vm799_vm6, %v1869_v5 }
 0x254   :  { %v1995_v59 = vpop.permute.xlu0 %1994 }
 0x255   :  { %2032 = vst.msk [vmem:[#allocation3 + $0xd0] sm:$0xff] %vm928_vm8, %v1995_v59  ;;  %v1997_v57 = vpop.permute.xlu1 %1996 }
 0x256   :  { %2033 = vst.msk [vmem:[#allocation3 + $0xd8] sm:$0xff] %vm928_vm8, %v1997_v57 }
 0x258   :  { %v2124_v9 = vpop.permute.xlu0 %2123 }
 0x259   :  { %2161 = vst.msk [vmem:[#allocation3 + $0xd0] sm:$0xff] %vm1058_vm9, %v2124_v9  ;;  %v2126_v60 = vpop.permute.xlu1 %2125 }
 0x25a   :  { %2162 = vst.msk [vmem:[#allocation3 + $0xd8] sm:$0xff] %vm1058_vm9, %v2126_v60 }
 0x25c   :  { %v2252_v1 = vpop.permute.xlu0 %2251  ;;  %v4026_v3 = vpop.f32.mrb[0].mxu0 }
 0x25d   :  { %2289 = vst.msk [vmem:[#allocation3 + $0xd0] sm:$0xff] %vm1187_vm10, %v2252_v1  ;;  %v3921_v10 = vpack.c.bf16 %v4026_v3, %v4026_v3  ;;  %v2254_v7 = vpop.permute.xlu1 %2253  ;;  %v2610_v6 = vpop.f32.mrb[1].mxu0  ;;  %v3003_v11 = vmul.f32 %v4026_v3, %v4026_v3  ;;  %v2869_v47 = vsel %vm2865_vm14, %v4026_v3, 0.0 }
 0x25e   :  { %2290 = vst.msk [vmem:[#allocation3 + $0xd8] sm:$0xff] %vm1187_vm10, %v2254_v7  ;;  %v3001_v12 = vmul.f32 %v2610_v6, %v2610_v6  ;;  %v3919_v8 = vpack.c.bf16 %v2610_v6, %v2610_v6  ;;  %v4027_v36 = vpop.f32.mrb[2].mxu0  ;;  %v2866_v24 = vsel %vm2865_vm14, %v2610_v6, 0.0 }
 0x25f   :  { %3458 = vst.msk [vmem:[%s6392_s2 + $0x8] sm:$0xf] %vm3455_vm13, %v3921_v10  ;;  %v3922_v25 = vpack.c.bf16 %v4027_v36, %v4027_v36  ;;  %v2613_v23 = vpop.f32.mrb[3].mxu0  ;;  %v3004_v20 = vmul.f32 %v4027_v36, %v4027_v36  ;;  %v3068_v41 = vsel %vm2865_vm14, %v3003_v11, 0.0  ;;  %v2871_v32 = vsel %vm2865_vm14, %v4027_v36, 0.0 }
 0x260   :  { %3456 = vst.msk [vmem:[%s6392_s2] sm:$0xf] %vm3455_vm13, %v3919_v8  ;;  %v2867_v16 = vsel %vm2865_vm14, %v2613_v23, 0.0  ;;  %v3002_v18 = vmul.f32 %v2613_v23, %v2613_v23  ;;  %v3920_v19 = vpack.c.bf16 %v2613_v23, %v2613_v23  ;;  %v2380_v54 = vpop.permute.xlu0 %2379  ;;  %3520 = vrot.lane.b32.xlu0 %v3919_v8, %s4118_s30  ;;  %v3065_v22 = vsel %vm2865_vm14, %v3001_v12, 0.0 }
 0x261   :  { %3459 = vst.msk [vmem:[%s6392_s2 + $0xc] sm:$0xf] %vm3455_vm13, %v3922_v25  ;;  %v2868_v4 = vadd.f32 %v2867_v16, %v2866_v24  ;;  %v1487_v48 = vpop.permute.xlu1 %1486  ;;  %v3070_v52 = vsel %vm2865_vm14, %v3004_v20, 0.0 }
 0x262   :  { %2417 = vst.msk [vmem:[#allocation3 + $0xd0] sm:$0xff] %vm1316_vm11, %v2380_v54  ;;  %v3066_v31 = vsel %vm2865_vm14, %v3002_v18, 0.0  ;;  %3522 = vrot.lane.b32.xlu1 %v3920_v19, %s4118_s30 }
 0x263   :  { %3457 = vst.msk [vmem:[%s6392_s2 + $0x4] sm:$0xf] %vm3455_vm13, %v3920_v19  ;;  %v2870_v53 = vadd.f32 %v2869_v47, %v2868_v4  ;;  %v3067_v27 = vadd.f32 %v3066_v31, %v3065_v22 }
 0x264   :  { %1522 = vst.msk [vmem:[#allocation3 + $0xe0] sm:$0xff] %vm412_vm3, %v1487_v48  ;;  %v2382_v45 = vpop.permute.xlu0 %2381  ;;  %3524 = vrot.lane.b32.xlu0 %v3921_v10, %s4118_s30  ;;  %v4030_v49 = vpop.f32.mrb[4].mxu0 }
 0x265   :  { %v3069_v63 = vadd.f32 %v3068_v41, %v3067_v27  ;;  %2418 = vst.msk [vmem:[#allocation3 + $0xd8] sm:$0xff] %vm1316_vm11, %v2382_v45  ;;  %v3925_v51 = vpack.c.bf16 %v4030_v49, %v4030_v49  ;;  %v1489_v35 = vpop.permute.xlu1 %1488  ;;  %v2626_v38 = vpop.f32.mrb[5].mxu0  ;;  %v2872_v15 = vadd.f32 %v2871_v32, %v2870_v53  ;;  %v3007_v43 = vmul.f32 %v4030_v49, %v4030_v49 }
 0x266   :  { %1523 = vst.msk [vmem:[#allocation3 + $0xe8] sm:$0xff] %vm412_vm3, %v1489_v35  ;;  %v2873_v0 = vsel %vm2865_vm14, %v2626_v38, 0.0  ;;  %v3005_v13 = vmul.f32 %v2626_v38, %v2626_v38  ;;  %v3923_v14 = vpack.c.bf16 %v2626_v38, %v2626_v38  ;;  %3526 = vrot.lane.b32.xlu1 %v3922_v25, %s4118_s30  ;;  %v4031_v17 = vpop.f32.mrb[6].mxu0  ;;  %v2877_v42 = vsel %vm2865_vm14, %v4030_v49, 0.0 }
 0x267   :  { %3462 = vst.msk [vmem:[%s6392_s2 + $0x18] sm:$0xf] %vm3455_vm13, %v3925_v51  ;;  %v3071_v55 = vadd.f32 %v3070_v52, %v3069_v63  ;;  %v2629_v26 = vpop.f32.mrb[7].mxu0  ;;  %v2874_v58 = vadd.f32 %v2873_v0, %v2872_v15  ;;  %v3926_v46 = vpack.c.bf16 %v4031_v17, %v4031_v17  ;;  %v3008_v44 = vmul.f32 %v4031_v17, %v4031_v17 }
 0x268   :  { %v3072_v29 = vsel %vm2865_vm14, %v3005_v13, 0.0  ;;  %3460 = vst.msk [vmem:[%s6392_s2 + $0x10] sm:$0xf] %vm3455_vm13, %v3923_v14  ;;  %v2875_v34 = vsel %vm2865_vm14, %v2629_v26, 0.0  ;;  %v1615_v39 = vpop.permute.xlu0 %1614  ;;  %3528 = vrot.lane.b32.xlu0 %v3923_v14, %s4118_s30  ;;  %v3006_v21 = vmul.f32 %v2629_v26, %v2629_v26  ;;  %v3924_v28 = vpack.c.bf16 %v2629_v26, %v2629_v26 }
 0x269   :  { %v2449_v2 = vld [vmem:[#allocation3 + $0xd0] sm:$0xff]  ;;  %v3073_v33 = vadd.f32 %v3072_v29, %v3071_v55  ;;  %1650 = vst.msk [vmem:[#allocation3 + $0xe0] sm:$0xff] %vm541_vm4, %v1615_v39  ;;  %v1617_v30 = vpop.permute.xlu1 %1616  ;;  %v2876_v37 = vadd.f32 %v2875_v34, %v2874_v58  ;;  %v3076_v59 = vsel %vm2865_vm14, %v3007_v43, 0.0  ;;  %v2879_v57 = vsel %vm2865_vm14, %v4031_v17, 0.0 }
 0x26a   :  { %4076 = vmatprep.mubr.msk.bf16.mxu1 %vm2475_vm12, %v2449_v2  ;;  %3463 = vst.msk [vmem:[%s6392_s2 + $0x1c] sm:$0xf] %vm3455_vm13, %v3926_v46  ;;  %v3074_v50 = vsel %vm2865_vm14, %v3006_v21, 0.0  ;;  %3461 = vst.msk [vmem:[%s6392_s2 + $0x14] sm:$0xf] %vm3455_vm13, %v3924_v28  ;;  %3530 = vrot.lane.b32.xlu1 %v3924_v28, %s4118_s30  ;;  %v3078_v8 = vsel %vm2865_vm14, %v3008_v44, 0.0 }
 0x26b   :  { %1651 = vst.msk [vmem:[#allocation3 + $0xe8] sm:$0xff] %vm541_vm4, %v1617_v30  ;;  %v2878_v40 = vadd.f32 %v2877_v42, %v2876_v37  ;;  %v3075_v61 = vadd.f32 %v3074_v50, %v3073_v33 }
 0x26c   :  { %v1743_v56 = vpop.permute.xlu0 %1742  ;;  %3532 = vrot.lane.b32.xlu0 %v3925_v51, %s4118_s30  ;;  %v4034_v62 = vpop.f32.mrb[8].mxu0  ;;  %v2450_v5 = vld [vmem:[#allocation3 + $0xd8] sm:$0xff] }
 0x26d   :  { %1778 = vst.msk [vmem:[#allocation3 + $0xe0] sm:$0xff] %vm670_vm5, %v1743_v56  ;;  %v3929_v9 = vpack.c.bf16 %v4034_v62, %v4034_v62  ;;  %v1745_v60 = vpop.permute.xlu1 %1744  ;;  %v2642_v1 = vpop.f32.mrb[9].mxu0  ;;  %4077 = vmatmul.mubr.msk.bf16.gmra.mrb[20].mxu1 %vm2475_vm12, %v2450_v5  ;;  %v3077_v3 = vadd.f32 %v3076_v59, %v3075_v61  ;;  %v2880_v10 = vadd.f32 %v2879_v57, %v2878_v40  ;;  %v2885_v31 = vsel %vm2865_vm14, %v4034_v62, 0.0 }
 0x26e   :  { %1779 = vst.msk [vmem:[#allocation3 + $0xe8] sm:$0xff] %vm670_vm5, %v1745_v60  ;;  %v2881_v7 = vsel %vm2865_vm14, %v2642_v1, 0.0  ;;  %v3009_v6 = vmul.f32 %v2642_v1, %v2642_v1  ;;  %v4035_v12 = vpop.f32.mrb[10].mxu0  ;;  %v3927_v36 = vpack.c.bf16 %v2642_v1, %v2642_v1  ;;  %3534 = vrot.lane.b32.xlu1 %v3926_v46, %s4118_s30  ;;  %v3011_v19 = vmul.f32 %v4034_v62, %v4034_v62 }
 0x26f   :  { %3466 = vst.msk [vmem:[%s6392_s2 + $0x28] sm:$0xf] %vm3455_vm13, %v3929_v9  ;;  %v2645_v11 = vpop.f32.mrb[11].mxu0  ;;  %v2882_v25 = vadd.f32 %v2881_v7, %v2880_v10  ;;  %v3079_v23 = vadd.f32 %v3078_v8, %v3077_v3  ;;  %v3930_v16 = vpack.c.bf16 %v4035_v12, %v4035_v12  ;;  %v3012_v53 = vmul.f32 %v4035_v12, %v4035_v12 }
 0x270   :  { %v3080_v24 = vsel %vm2865_vm14, %v3009_v6, 0.0  ;;  %v1871_v18 = vpop.permute.xlu0 %1870  ;;  %3464 = vst.msk [vmem:[%s6392_s2 + $0x20] sm:$0xf] %vm3455_vm13, %v3927_v36  ;;  %v2883_v54 = vsel %vm2865_vm14, %v2645_v11, 0.0  ;;  %v3010_v20 = vmul.f32 %v2645_v11, %v2645_v11  ;;  %v3928_v4 = vpack.c.bf16 %v2645_v11, %v2645_v11  ;;  %3536 = vrot.lane.b32.xlu0 %v3927_v36, %s4118_s30 }
 0x271   :  { %1906 = vst.msk [vmem:[#allocation3 + $0xe0] sm:$0xff] %vm799_vm6, %v1871_v18  ;;  %v1873_v48 = vpop.permute.xlu1 %1872  ;;  %v3081_v47 = vadd.f32 %v3080_v24, %v3079_v23  ;;  %v2884_v22 = vadd.f32 %v2883_v54, %v2882_v25  ;;  %v3084_v32 = vsel %vm2865_vm14, %v3011_v19, 0.0  ;;  %v2887_v52 = vsel %vm2865_vm14, %v4035_v12, 0.0 }
 0x272   :  { %3467 = vst.msk [vmem:[%s6392_s2 + $0x2c] sm:$0xf] %vm3455_vm13, %v3930_v16  ;;  %v3082_v27 = vsel %vm2865_vm14, %v3010_v20, 0.0  ;;  %3465 = vst.msk [vmem:[%s6392_s2 + $0x24] sm:$0xf] %vm3455_vm13, %v3928_v4  ;;  %3538 = vrot.lane.b32.xlu1 %v3928_v4, %s4118_s30  ;;  %v3086_v38 = vsel %vm2865_vm14, %v3012_v53, 0.0 }
 0x273   :  { %1907 = vst.msk [vmem:[#allocation3 + $0xe8] sm:$0xff] %vm799_vm6, %v1873_v48  ;;  %v2886_v41 = vadd.f32 %v2885_v31, %v2884_v22  ;;  %v3083_v45 = vadd.f32 %v3082_v27, %v3081_v47 }
 0x274   :  { %v1999_v49 = vpop.permute.xlu0 %1998  ;;  %3540 = vrot.lane.b32.xlu0 %v3929_v9, %s4118_s30 }
 0x275   :  { %2034 = vst.msk [vmem:[#allocation3 + $0xe0] sm:$0xff] %vm928_vm8, %v1999_v49  ;;  %v2001_v63 = vpop.permute.xlu1 %2000  ;;  %v3085_v51 = vadd.f32 %v3084_v32, %v3083_v45  ;;  %v2888_v35 = vadd.f32 %v2887_v52, %v2886_v41 }
 0x276   :  { %2035 = vst.msk [vmem:[#allocation3 + $0xe8] sm:$0xff] %vm928_vm8, %v2001_v63  ;;  %3542 = vrot.lane.b32.xlu1 %v3930_v16, %s4118_s30 }
 0x277   :  { %v3087_v0 = vadd.f32 %v3086_v38, %v3085_v51 }
 0x278   :  { %v2128_v15 = vpop.permute.xlu0 %2127 }
 0x279   :  { %2163 = vst.msk [vmem:[#allocation3 + $0xe0] sm:$0xff] %vm1058_vm9, %v2128_v15  ;;  %v2130_v13 = vpop.permute.xlu1 %2129 }
 0x27a   :  { %2164 = vst.msk [vmem:[#allocation3 + $0xe8] sm:$0xff] %vm1058_vm9, %v2130_v13 }
 0x27c   :  { %v2256_v14 = vpop.permute.xlu0 %2255 }
 0x27d   :  { %2291 = vst.msk [vmem:[#allocation3 + $0xe0] sm:$0xff] %vm1187_vm10, %v2256_v14  ;;  %v2258_v17 = vpop.permute.xlu1 %2257 }
 0x27e   :  { %2292 = vst.msk [vmem:[#allocation3 + $0xe8] sm:$0xff] %vm1187_vm10, %v2258_v17 }
 0x280   :  { %v2384_v55 = vpop.permute.xlu0 %2383 }
 0x281   :  { %2419 = vst.msk [vmem:[#allocation3 + $0xe0] sm:$0xff] %vm1316_vm11, %v2384_v55  ;;  %v1491_v26 = vpop.permute.xlu1 %1490 }
 0x282   :  { %1524 = vst.msk [vmem:[#allocation3 + $0xf0] sm:$0xff] %vm412_vm3, %v1491_v26 }
 0x284   :  { %v2386_v58 = vpop.permute.xlu0 %2385 }
 0x285   :  { %2420 = vst.msk [vmem:[#allocation3 + $0xe8] sm:$0xff] %vm1316_vm11, %v2386_v58  ;;  %v1493_v29 = vpop.permute.xlu1 %1492 }
 0x286   :  { %1525 = vst.msk [vmem:[#allocation3 + $0xf8] sm:$0xff] %vm412_vm3, %v1493_v29 }
 0x288   :  { %v1619_v46 = vpop.permute.xlu0 %1618  ;;  %v4038_v34 = vpop.f32.mrb[12].mxu0  ;;  %v2451_v39 = vld [vmem:[#allocation3 + $0xe0] sm:$0xff] }
 0x289   :  { %1652 = vst.msk [vmem:[#allocation3 + $0xf0] sm:$0xff] %vm541_vm4, %v1619_v46  ;;  %v3933_v2 = vpack.c.bf16 %v4038_v34, %v4038_v34  ;;  %v1621_v43 = vpop.permute.xlu1 %1620  ;;  %v2658_v33 = vpop.f32.mrb[13].mxu0  ;;  %4080 = vmatprep.mubr.msk.bf16.mxu1 %vm2475_vm12, %v2451_v39  ;;  %v3015_v42 = vmul.f32 %v4038_v34, %v4038_v34  ;;  %v2893_v3 = vsel %vm2865_vm14, %v4038_v34, 0.0 }
 0x28a   :  { %1653 = vst.msk [vmem:[#allocation3 + $0xf8] sm:$0xff] %vm541_vm4, %v1621_v43  ;;  %v2889_v21 = vsel %vm2865_vm14, %v2658_v33, 0.0  ;;  %v3013_v28 = vmul.f32 %v2658_v33, %v2658_v33  ;;  %v3931_v30 = vpack.c.bf16 %v2658_v33, %v2658_v33  ;;  %v4039_v37 = vpop.f32.mrb[14].mxu0 }
 0x28b   :  { %3470 = vst.msk [vmem:[%s6392_s2 + $0x38] sm:$0xf] %vm3455_vm13, %v3933_v2  ;;  %v2890_v44 = vadd.f32 %v2889_v21, %v2888_v35  ;;  %v2661_v50 = vpop.f32.mrb[15].mxu0  ;;  %v3934_v61 = vpack.c.bf16 %v4039_v37, %v4039_v37  ;;  %v3092_v12 = vsel %vm2865_vm14, %v3015_v42, 0.0  ;;  %v3016_v8 = vmul.f32 %v4039_v37, %v4039_v37 }
 0x28c   :  { %v3088_v40 = vsel %vm2865_vm14, %v3013_v28, 0.0  ;;  %3468 = vst.msk [vmem:[%s6392_s2 + $0x30] sm:$0xf] %vm3455_vm13, %v3931_v30  ;;  %v2891_v56 = vsel %vm2865_vm14, %v2661_v50, 0.0  ;;  %v3014_v62 = vmul.f32 %v2661_v50, %v2661_v50  ;;  %v1747_v5 = vpop.permute.xlu0 %1746  ;;  %3544 = vrot.lane.b32.xlu0 %v3931_v30, %s4118_s30  ;;  %v2452_v59 = vld [vmem:[#allocation3 + $0xe8] sm:$0xff]  ;;  %v3932_v60 = vpack.c.bf16 %v2661_v50, %v2661_v50 }
 0x28d   :  { %v3089_v57 = vadd.f32 %v3088_v40, %v3087_v0  ;;  %v2892_v9 = vadd.f32 %v2891_v56, %v2890_v44  ;;  %1780 = vst.msk [vmem:[#allocation3 + $0xf0] sm:$0xff] %vm670_vm5, %v1747_v5  ;;  %v1749_v1 = vpop.permute.xlu1 %1748  ;;  %4081 = vmatmul.mubr.msk.bf16.gmra.mrb[24].mxu1 %vm2475_vm12, %v2452_v59  ;;  %v2895_v25 = vsel %vm2865_vm14, %v4039_v37, 0.0  ;;  %v3094_v47 = vsel %vm2865_vm14, %v3016_v8, 0.0 }
 0x28e   :  { %3471 = vst.msk [vmem:[%s6392_s2 + $0x3c] sm:$0xf] %vm3455_vm13, %v3934_v61  ;;  %v3090_v10 = vsel %vm2865_vm14, %v3014_v62, 0.0  ;;  %3469 = vst.msk [vmem:[%s6392_s2 + $0x34] sm:$0xf] %vm3455_vm13, %v3932_v60  ;;  %3546 = vrot.lane.b32.xlu1 %v3932_v60, %s4118_s30 }
 0x28f   :  { %1781 = vst.msk [vmem:[#allocation3 + $0xf8] sm:$0xff] %vm670_vm5, %v1749_v1  ;;  %v2894_v7 = vadd.f32 %v2893_v3, %v2892_v9  ;;  %v3091_v6 = vadd.f32 %v3090_v10, %v3089_v57 }
 0x290   :  { %v5556_v36 = vpop.f32.mrb[0].mxu1  ;;  %v1875_v11 = vpop.permute.xlu0 %1874  ;;  %3548 = vrot.lane.b32.xlu0 %v3933_v2, %s4118_s30 }
 0x291   :  { %v3093_v23 = vadd.f32 %v3092_v12, %v3091_v6  ;;  %v5562_v24 = vpack.c.bf16 %v5556_v36, %v5556_v36  ;;  %1908 = vst.msk [vmem:[#allocation3 + $0xf0] sm:$0xff] %vm799_vm6, %v1875_v11  ;;  %v1877_v16 = vpop.permute.xlu1 %1876  ;;  %v5565_v18 = vpop.f32.mrb[1].mxu1  ;;  %v2896_v20 = vadd.f32 %v2895_v25, %v2894_v7 }
 0x292   :  { %1909 = vst.msk [vmem:[#allocation3 + $0xf8] sm:$0xff] %vm799_vm6, %v1877_v16  ;;  %v5570_v19 = vpack.c.bf16 %v5565_v18, %v5565_v18  ;;  %v5572_v54 = vpop.f32.mrb[2].mxu1  ;;  %3550 = vrot.lane.b32.xlu1 %v3934_v61, %s4118_s30 }
 0x293   :  { %3490 = vst.msk [vmem:[%s6392_s2 + $0x88] sm:$0xf] %vm3455_vm13, %v5562_v24  ;;  %v5581_v4 = vpack.c.bf16 %v5572_v54, %v5572_v54  ;;  %v5584_v48 = vpop.f32.mrb[3].mxu1  ;;  %v3095_v27 = vadd.f32 %v3094_v47, %v3093_v23 }
 0x294   :  { %3488 = vst.msk [vmem:[%s6392_s2 + $0x80] sm:$0xf] %vm3455_vm13, %v5570_v19  ;;  %v5594_v22 = vpack.c.bf16 %v5584_v48, %v5584_v48  ;;  %v2003_v31 = vpop.permute.xlu0 %2002 }
 0x295   :  { %3491 = vst.msk [vmem:[%s6392_s2 + $0x8c] sm:$0xf] %vm3455_vm13, %v5581_v4  ;;  %v2005_v53 = vpop.permute.xlu1 %2004 }
 0x296   :  { %2036 = vst.msk [vmem:[#allocation3 + $0xf0] sm:$0xff] %vm928_vm8, %v2003_v31  ;;  %2037 = vst.msk [vmem:[#allocation3 + $0xf8] sm:$0xff] %vm928_vm8, %v2005_v53 }
 0x297   :  { %3489 = vst.msk [vmem:[%s6392_s2 + $0x84] sm:$0xf] %vm3455_vm13, %v5594_v22 }
 0x298   :  { %v2132_v41 = vpop.permute.xlu0 %2131 }
 0x299   :  { %2165 = vst.msk [vmem:[#allocation3 + $0xf0] sm:$0xff] %vm1058_vm9, %v2132_v41  ;;  %v2134_v45 = vpop.permute.xlu1 %2133 }
 0x29a   :  { %2166 = vst.msk [vmem:[#allocation3 + $0xf8] sm:$0xff] %vm1058_vm9, %v2134_v45 }
 0x29c   :  { %v2260_v49 = vpop.permute.xlu0 %2259 }
 0x29d   :  { %2293 = vst.msk [vmem:[#allocation3 + $0xf0] sm:$0xff] %vm1187_vm10, %v2260_v49  ;;  %v2262_v32 = vpop.permute.xlu1 %2261 }
 0x29e   :  { %2294 = vst.msk [vmem:[#allocation3 + $0xf8] sm:$0xff] %vm1187_vm10, %v2262_v32 }
 0x2a0   :  { %v2388_v52 = vpop.permute.xlu0 %2387 }
 0x2a1   :  { %2421 = vst.msk [vmem:[#allocation3 + $0xf0] sm:$0xff] %vm1316_vm11, %v2388_v52  ;;  %v2390_v63 = vpop.permute.xlu1 %2389 }
 0x2a2   :  { %2422 = vst.msk [vmem:[#allocation3 + $0xf8] sm:$0xff] %vm1316_vm11, %v2390_v63 }
 0x2a8   :  { %v2453_v51 = vld [vmem:[#allocation3 + $0xf0] sm:$0xff] }
 0x2a9   :  { %4084 = vmatprep.mubr.msk.bf16.mxu1 %vm2475_vm12, %v2453_v51  ;;  %v2454_v35 = vld [vmem:[#allocation3 + $0xf8] sm:$0xff] }
 0x2aa   :  { %4085 = vmatmul.mubr.msk.bf16.gmra.mrb[28].mxu1 %vm2475_vm12, %v2454_v35 }
 0x2ac   :  { %v4042_v38 = vpop.f32.mrb[16].mxu0 }
 0x2ad   :  { %v3937_v15 = vpack.c.bf16 %v4042_v38, %v4042_v38  ;;  %v2674_v0 = vpop.f32.mrb[17].mxu0  ;;  %v3019_v26 = vmul.f32 %v4042_v38, %v4042_v38  ;;  %v2901_v28 = vsel %vm2865_vm14, %v4042_v38, 0.0 }
 0x2ae   :  { %v2897_v13 = vsel %vm2865_vm14, %v2674_v0, 0.0  ;;  %v3017_v14 = vmul.f32 %v2674_v0, %v2674_v0  ;;  %v3935_v17 = vpack.c.bf16 %v2674_v0, %v2674_v0  ;;  %v4043_v55 = vpop.f32.mrb[18].mxu0 }
 0x2af   :  { %3474 = vst.msk [vmem:[%s6392_s2 + $0x48] sm:$0xf] %vm3455_vm13, %v3937_v15  ;;  %v2898_v58 = vadd.f32 %v2897_v13, %v2896_v20  ;;  %v2677_v29 = vpop.f32.mrb[19].mxu0  ;;  %v3938_v34 = vpack.c.bf16 %v4043_v55, %v4043_v55  ;;  %v3100_v44 = vsel %vm2865_vm14, %v3019_v26, 0.0  ;;  %v3020_v50 = vmul.f32 %v4043_v55, %v4043_v55 }
 0x2b0   :  { %v3096_v46 = vsel %vm2865_vm14, %v3017_v14, 0.0  ;;  %3472 = vst.msk [vmem:[%s6392_s2 + $0x40] sm:$0xf] %vm3455_vm13, %v3935_v17  ;;  %v2899_v39 = vsel %vm2865_vm14, %v2677_v29, 0.0  ;;  %v3018_v2 = vmul.f32 %v2677_v29, %v2677_v29  ;;  %3552 = vrot.lane.b32.xlu0 %v3935_v17, %s4118_s30  ;;  %v3936_v21 = vpack.c.bf16 %v2677_v29, %v2677_v29 }
 0x2b1   :  { %v3097_v43 = vadd.f32 %v3096_v46, %v3095_v27  ;;  %v2900_v33 = vadd.f32 %v2899_v39, %v2898_v58  ;;  %3475 = vst.msk [vmem:[%s6392_s2 + $0x4c] sm:$0xf] %vm3455_vm13, %v3938_v34  ;;  %v2903_v61 = vsel %vm2865_vm14, %v4043_v55, 0.0  ;;  %v3102_v3 = vsel %vm2865_vm14, %v3020_v50, 0.0 }
 0x2b2   :  { %v3098_v30 = vsel %vm2865_vm14, %v3018_v2, 0.0  ;;  %3473 = vst.msk [vmem:[%s6392_s2 + $0x44] sm:$0xf] %vm3455_vm13, %v3936_v21  ;;  %3554 = vrot.lane.b32.xlu1 %v3936_v21, %s4118_s30 }
 0x2b3   :  { %v2902_v37 = vadd.f32 %v2901_v28, %v2900_v33  ;;  %v3099_v42 = vadd.f32 %v3098_v30, %v3097_v43 }
 0x2b4   :  { %v5640_v40 = vpop.f32.mrb[4].mxu1  ;;  %3556 = vrot.lane.b32.xlu0 %v3937_v15, %s4118_s30 }
 0x2b5   :  { %v3101_v56 = vadd.f32 %v3100_v44, %v3099_v42  ;;  %v5646_v62 = vpack.c.bf16 %v5640_v40, %v5640_v40  ;;  %v5648_v5 = vpop.f32.mrb[5].mxu1  ;;  %v2904_v9 = vadd.f32 %v2903_v61, %v2902_v37 }
 0x2b6   :  { %v5652_v59 = vpack.c.bf16 %v5648_v5, %v5648_v5  ;;  %v5654_v57 = vpop.f32.mrb[6].mxu1  ;;  %3558 = vrot.lane.b32.xlu1 %v3938_v34, %s4118_s30 }
 0x2b7   :  { %3494 = vst.msk [vmem:[%s6392_s2 + $0x98] sm:$0xf] %vm3455_vm13, %v5646_v62  ;;  %v5663_v60 = vpack.c.bf16 %v5654_v57, %v5654_v57  ;;  %v5666_v1 = vpop.f32.mrb[7].mxu1  ;;  %v3103_v7 = vadd.f32 %v3102_v3, %v3101_v56 }
 0x2b8   :  { %3492 = vst.msk [vmem:[%s6392_s2 + $0x90] sm:$0xf] %vm3455_vm13, %v5652_v59  ;;  %v5676_v10 = vpack.c.bf16 %v5666_v1, %v5666_v1 }
 0x2b9   :  { %3495 = vst.msk [vmem:[%s6392_s2 + $0x9c] sm:$0xf] %vm3455_vm13, %v5663_v60 }
 0x2ba   :  { %3493 = vst.msk [vmem:[%s6392_s2 + $0x94] sm:$0xf] %vm3455_vm13, %v5676_v10 }
 0x2d0   :  { %v4046_v6 = vpop.f32.mrb[20].mxu0 }
 0x2d1   :  { %v3941_v12 = vpack.c.bf16 %v4046_v6, %v4046_v6  ;;  %v2690_v8 = vpop.f32.mrb[21].mxu0  ;;  %v3023_v47 = vmul.f32 %v4046_v6, %v4046_v6  ;;  %v2909_v35 = vsel %vm2865_vm14, %v4046_v6, 0.0 }
 0x2d2   :  { %v2905_v11 = vsel %vm2865_vm14, %v2690_v8, 0.0  ;;  %v3021_v25 = vmul.f32 %v2690_v8, %v2690_v8  ;;  %v3939_v23 = vpack.c.bf16 %v2690_v8, %v2690_v8  ;;  %v3521_v16 = vpop.permute.xlu0 %3520  ;;  %v4047_v20 = vpop.f32.mrb[22].mxu0 }
 0x2d3   :  { %3478 = vst.msk [vmem:[%s6392_s2 + $0x58] sm:$0xf] %vm3455_vm13, %v3941_v12  ;;  %v2906_v31 = vadd.f32 %v2905_v11, %v2904_v9  ;;  %3712 = vst.msk [vmem:[%s6393_s3] sm:$0xf] %vm3455_vm13, %v3521_v16  ;;  %v2693_v53 = vpop.f32.mrb[23].mxu0  ;;  %v3942_v41 = vpack.c.bf16 %v4047_v20, %v4047_v20  ;;  %v3108_v14 = vsel %vm2865_vm14, %v3023_v47, 0.0  ;;  %v3024_v17 = vmul.f32 %v4047_v20, %v4047_v20 }
 0x2d4   :  { %v3104_v27 = vsel %vm2865_vm14, %v3021_v25, 0.0  ;;  %3476 = vst.msk [vmem:[%s6392_s2 + $0x50] sm:$0xf] %vm3455_vm13, %v3939_v23  ;;  %v2907_v45 = vsel %vm2865_vm14, %v2693_v53, 0.0  ;;  %v3022_v49 = vmul.f32 %v2693_v53, %v2693_v53  ;;  %v3523_v32 = vpop.permute.xlu1 %3522  ;;  %3560 = vrot.lane.b32.xlu0 %v3939_v23, %s4118_s30  ;;  %v3940_v51 = vpack.c.bf16 %v2693_v53, %v2693_v53 }
 0x2d5   :  { %v3105_v52 = vadd.f32 %v3104_v27, %v3103_v7  ;;  %v2908_v63 = vadd.f32 %v2907_v45, %v2906_v31  ;;  %3713 = vst.msk [vmem:[%s6393_s3 + $0x4] sm:$0xf] %vm3455_vm13, %v3523_v32  ;;  %3479 = vst.msk [vmem:[%s6392_s2 + $0x5c] sm:$0xf] %vm3455_vm13, %v3942_v41  ;;  %v2911_v58 = vsel %vm2865_vm14, %v4047_v20, 0.0  ;;  %v3110_v30 = vsel %vm2865_vm14, %v3024_v17, 0.0 }
 0x2d6   :  { %v3106_v38 = vsel %vm2865_vm14, %v3022_v49, 0.0  ;;  %v3525_v15 = vpop.permute.xlu0 %3524  ;;  %3477 = vst.msk [vmem:[%s6392_s2 + $0x54] sm:$0xf] %vm3455_vm13, %v3940_v51  ;;  %3562 = vrot.lane.b32.xlu1 %v3940_v51, %s4118_s30 }
 0x2d7   :  { %v2910_v0 = vadd.f32 %v2909_v35, %v2908_v63  ;;  %v3107_v13 = vadd.f32 %v3106_v38, %v3105_v52  ;;  %3714 = vst.msk [vmem:[%s6393_s3 + $0x8] sm:$0xf] %vm3455_vm13, %v3525_v15 }
 0x2d8   :  { %v5724_v55 = vpop.f32.mrb[8].mxu1  ;;  %v3527_v26 = vpop.permute.xlu1 %3526  ;;  %3564 = vrot.lane.b32.xlu0 %v3941_v12, %s4118_s30 }
 0x2d9   :  { %v3109_v29 = vadd.f32 %v3108_v14, %v3107_v13  ;;  %v5730_v46 = vpack.c.bf16 %v5724_v55, %v5724_v55  ;;  %3715 = vst.msk [vmem:[%s6393_s3 + $0xc] sm:$0xf] %vm3455_vm13, %v3527_v26  ;;  %v5736_v34 = vpop.f32.mrb[9].mxu1  ;;  %v2912_v33 = vadd.f32 %v2911_v58, %v2910_v0 }
 0x2da   :  { %v5740_v39 = vpack.c.bf16 %v5736_v34, %v5736_v34  ;;  %v5742_v2 = vpop.f32.mrb[10].mxu1  ;;  %v3529_v43 = vpop.permute.xlu0 %3528  ;;  %3566 = vrot.lane.b32.xlu1 %v3942_v41, %s4118_s30 }
 0x2db   :  { %3498 = vst.msk [vmem:[%s6392_s2 + $0xa8] sm:$0xf] %vm3455_vm13, %v5730_v46  ;;  %v5751_v21 = vpack.c.bf16 %v5742_v2, %v5742_v2  ;;  %3716 = vst.msk [vmem:[%s6393_s3 + $0x10] sm:$0xf] %vm3455_vm13, %v3529_v43  ;;  %v5758_v28 = vpop.f32.mrb[11].mxu1  ;;  %v3111_v44 = vadd.f32 %v3110_v30, %v3109_v29 }
 0x2dc   :  { %3496 = vst.msk [vmem:[%s6392_s2 + $0xa0] sm:$0xf] %vm3455_vm13, %v5740_v39  ;;  %v5768_v37 = vpack.c.bf16 %v5758_v28, %v5758_v28  ;;  %v3531_v42 = vpop.permute.xlu1 %3530 }
 0x2dd   :  { %3499 = vst.msk [vmem:[%s6392_s2 + $0xac] sm:$0xf] %vm3455_vm13, %v5751_v21  ;;  %3717 = vst.msk [vmem:[%s6393_s3 + $0x14] sm:$0xf] %vm3455_vm13, %v3531_v42 }
 0x2de   :  { %3497 = vst.msk [vmem:[%s6392_s2 + $0xa4] sm:$0xf] %vm3455_vm13, %v5768_v37  ;;  %v3533_v50 = vpop.permute.xlu0 %3532 }
 0x2df   :  { %3718 = vst.msk [vmem:[%s6393_s3 + $0x18] sm:$0xf] %vm3455_vm13, %v3533_v50 }
 0x2e0   :  { %v3535_v61 = vpop.permute.xlu1 %3534 }
 0x2e1   :  { %3719 = vst.msk [vmem:[%s6393_s3 + $0x1c] sm:$0xf] %vm3455_vm13, %v3535_v61 }
 0x2e2   :  { %v3537_v56 = vpop.permute.xlu0 %3536 }
 0x2e3   :  { %3720 = vst.msk [vmem:[%s6393_s3 + $0x20] sm:$0xf] %vm3455_vm13, %v3537_v56 }
 0x2e4   :  { %v3539_v9 = vpop.permute.xlu1 %3538 }
 0x2e5   :  { %3721 = vst.msk [vmem:[%s6393_s3 + $0x24] sm:$0xf] %vm3455_vm13, %v3539_v9 }
 0x2e6   :  { %v3541_v3 = vpop.permute.xlu0 %3540 }
 0x2e7   :  { %3722 = vst.msk [vmem:[%s6393_s3 + $0x28] sm:$0xf] %vm3455_vm13, %v3541_v3 }
 0x2e8   :  { %v3543_v7 = vpop.permute.xlu1 %3542 }
 0x2e9   :  { %3723 = vst.msk [vmem:[%s6393_s3 + $0x2c] sm:$0xf] %vm3455_vm13, %v3543_v7 }
 0x2f4   :  { %v4050_v6 = vpop.f32.mrb[24].mxu0 }
 0x2f5   :  { %v3945_v12 = vpack.c.bf16 %v4050_v6, %v4050_v6  ;;  %v2706_v8 = vpop.f32.mrb[25].mxu0  ;;  %v3027_v20 = vmul.f32 %v4050_v6, %v4050_v6  ;;  %v2917_v63 = vsel %vm2865_vm14, %v4050_v6, 0.0 }
 0x2f6   :  { %v2913_v11 = vsel %vm2865_vm14, %v2706_v8, 0.0  ;;  %v3025_v25 = vmul.f32 %v2706_v8, %v2706_v8  ;;  %v3943_v23 = vpack.c.bf16 %v2706_v8, %v2706_v8  ;;  %v4051_v16 = vpop.f32.mrb[26].mxu0 }
 0x2f7   :  { %3482 = vst.msk [vmem:[%s6392_s2 + $0x68] sm:$0xf] %vm3455_vm13, %v3945_v12  ;;  %v2914_v47 = vadd.f32 %v2913_v11, %v2912_v33  ;;  %v2709_v31 = vpop.f32.mrb[27].mxu0  ;;  %v3946_v27 = vpack.c.bf16 %v4051_v16, %v4051_v16  ;;  %v3116_v15 = vsel %vm2865_vm14, %v3027_v20, 0.0  ;;  %v3028_v0 = vmul.f32 %v4051_v16, %v4051_v16 }
 0x2f8   :  { %v3112_v53 = vsel %vm2865_vm14, %v3025_v25, 0.0  ;;  %3480 = vst.msk [vmem:[%s6392_s2 + $0x60] sm:$0xf] %vm3455_vm13, %v3943_v23  ;;  %v2915_v41 = vsel %vm2865_vm14, %v2709_v31, 0.0  ;;  %v3026_v45 = vmul.f32 %v2709_v31, %v2709_v31  ;;  %3568 = vrot.lane.b32.xlu0 %v3943_v23, %s4118_s30  ;;  %v3944_v52 = vpack.c.bf16 %v2709_v31, %v2709_v31 }
 0x2f9   :  { %v3113_v49 = vadd.f32 %v3112_v53, %v3111_v44  ;;  %v2916_v32 = vadd.f32 %v2915_v41, %v2914_v47  ;;  %3483 = vst.msk [vmem:[%s6392_s2 + $0x6c] sm:$0xf] %vm3455_vm13, %v3946_v27  ;;  %v2919_v14 = vsel %vm2865_vm14, %v4051_v16, 0.0  ;;  %v3118_v50 = vsel %vm2865_vm14, %v3028_v0, 0.0 }
 0x2fa   :  { %v3114_v51 = vsel %vm2865_vm14, %v3026_v45, 0.0  ;;  %3481 = vst.msk [vmem:[%s6392_s2 + $0x64] sm:$0xf] %vm3455_vm13, %v3944_v52  ;;  %3570 = vrot.lane.b32.xlu1 %v3944_v52, %s4118_s30  ;;  %v3033_v0 = vmul.f32 %v5565_v18, %v5565_v18 }
 0x2fb   :  { %v2918_v35 = vadd.f32 %v2917_v63, %v2916_v32  ;;  %v3115_v38 = vadd.f32 %v3114_v51, %v3113_v49 }
 0x2fc   :  { %v5832_v13 = vpop.f32.mrb[12].mxu1  ;;  %3572 = vrot.lane.b32.xlu0 %v3945_v12, %s4118_s30 }
 0x2fd   :  { %v3117_v17 = vadd.f32 %v3116_v15, %v3115_v38  ;;  %v5838_v26 = vpack.c.bf16 %v5832_v13, %v5832_v13  ;;  %v5840_v58 = vpop.f32.mrb[13].mxu1  ;;  %v2920_v30 = vadd.f32 %v2919_v14, %v2918_v35 }
 0x2fe   :  { %v5844_v29 = vpack.c.bf16 %v5840_v58, %v5840_v58  ;;  %v5846_v43 = vpop.f32.mrb[14].mxu1  ;;  %v3545_v33 = vpop.permute.xlu0 %3544  ;;  %3574 = vrot.lane.b32.xlu1 %v3946_v27, %s4118_s30 }
 0x2ff   :  { %3502 = vst.msk [vmem:[%s6392_s2 + $0xb8] sm:$0xf] %vm3455_vm13, %v5838_v26  ;;  %v5855_v42 = vpack.c.bf16 %v5846_v43, %v5846_v43  ;;  %3724 = vst.msk [vmem:[%s6393_s3 + $0x30] sm:$0xf] %vm3455_vm13, %v3545_v33  ;;  %v5862_v44 = vpop.f32.mrb[15].mxu1  ;;  %v3119_v9 = vadd.f32 %v3118_v50, %v3117_v17 }
 0x300   :  { %3500 = vst.msk [vmem:[%s6392_s2 + $0xb0] sm:$0xf] %vm3455_vm13, %v5844_v29  ;;  %v5872_v61 = vpack.c.bf16 %v5862_v44, %v5862_v44  ;;  %v3547_v56 = vpop.permute.xlu1 %3546 }
 0x301   :  { %3503 = vst.msk [vmem:[%s6392_s2 + $0xbc] sm:$0xf] %vm3455_vm13, %v5855_v42  ;;  %3725 = vst.msk [vmem:[%s6393_s3 + $0x34] sm:$0xf] %vm3455_vm13, %v3547_v56 }
 0x302   :  { %3501 = vst.msk [vmem:[%s6392_s2 + $0xb4] sm:$0xf] %vm3455_vm13, %v5872_v61  ;;  %v3549_v3 = vpop.permute.xlu0 %3548 }
 0x303   :  { %3726 = vst.msk [vmem:[%s6393_s3 + $0x38] sm:$0xf] %vm3455_vm13, %v3549_v3  ;;  %v3034_v3 = vmul.f32 %v5584_v48, %v5584_v48 }
 0x304   :  { %v3551_v7 = vpop.permute.xlu1 %3550 }
 0x305   :  { %3727 = vst.msk [vmem:[%s6393_s3 + $0x3c] sm:$0xf] %vm3455_vm13, %v3551_v7 }
 0x318   :  { %v4054_v6 = vpop.f32.mrb[28].mxu0 }
 0x319   :  { %v3949_v12 = vpack.c.bf16 %v4054_v6, %v4054_v6  ;;  %v2722_v8 = vpop.f32.mrb[29].mxu0  ;;  %v3031_v20 = vmul.f32 %v4054_v6, %v4054_v6  ;;  %v2925_v63 = vsel %vm2865_vm14, %v4054_v6, 0.0 }
 0x31a   :  { %v2921_v11 = vsel %vm2865_vm14, %v2722_v8, 0.0  ;;  %v3029_v25 = vmul.f32 %v2722_v8, %v2722_v8  ;;  %v3947_v23 = vpack.c.bf16 %v2722_v8, %v2722_v8  ;;  %v4055_v16 = vpop.f32.mrb[30].mxu0 }
 0x31b   :  { %3486 = vst.msk [vmem:[%s6392_s2 + $0x78] sm:$0xf] %vm3455_vm13, %v3949_v12  ;;  %v2922_v47 = vadd.f32 %v2921_v11, %v2920_v30  ;;  %v2725_v31 = vpop.f32.mrb[31].mxu0  ;;  %v3950_v27 = vpack.c.bf16 %v4055_v16, %v4055_v16  ;;  %v3032_v51 = vmul.f32 %v4055_v16, %v4055_v16  ;;  %v3124_v14 = vsel %vm2865_vm14, %v3031_v20, 0.0 }
 0x31c   :  { %v3120_v53 = vsel %vm2865_vm14, %v3029_v25, 0.0  ;;  %3484 = vst.msk [vmem:[%s6392_s2 + $0x70] sm:$0xf] %vm3455_vm13, %v3947_v23  ;;  %v2923_v41 = vsel %vm2865_vm14, %v2725_v31, 0.0  ;;  %v3030_v45 = vmul.f32 %v2725_v31, %v2725_v31  ;;  %3576 = vrot.lane.b32.xlu0 %v3947_v23, %s4118_s30  ;;  %v3948_v52 = vpack.c.bf16 %v2725_v31, %v2725_v31 }
 0x31d   :  { %v3121_v49 = vadd.f32 %v3120_v53, %v3119_v9  ;;  %v2924_v32 = vadd.f32 %v2923_v41, %v2922_v47  ;;  %3487 = vst.msk [vmem:[%s6392_s2 + $0x7c] sm:$0xf] %vm3455_vm13, %v3950_v27  ;;  %v2927_v17 = vsel %vm2865_vm14, %v4055_v16, 0.0  ;;  %v2929_v30 = vsel %vm2865_vm14, %v5565_v18, 0.0 }
 0x31e   :  { %v3122_v35 = vsel %vm2865_vm14, %v3030_v45, 0.0  ;;  %3485 = vst.msk [vmem:[%s6392_s2 + $0x74] sm:$0xf] %vm3455_vm13, %v3948_v52  ;;  %3578 = vrot.lane.b32.xlu1 %v3948_v52, %s4118_s30  ;;  %v3126_v7 = vsel %vm2865_vm14, %v3032_v51, 0.0  ;;  %v3035_v16 = vmul.f32 %v5556_v36, %v5556_v36  ;;  %v3128_v20 = vsel %vm2865_vm14, %v3033_v0, 0.0 }
 0x31f   :  { %v2926_v38 = vadd.f32 %v2925_v63, %v2924_v32  ;;  %v3123_v15 = vadd.f32 %v3122_v35, %v3121_v49  ;;  %v2931_v47 = vsel %vm2865_vm14, %v5584_v48, 0.0  ;;  %v2933_v45 = vsel %vm2865_vm14, %v5556_v36, 0.0 }
 0x320   :  { %v5923_v33 = vpop.f32.mrb[16].mxu1  ;;  %3580 = vrot.lane.b32.xlu0 %v3949_v12, %s4118_s30  ;;  %v3036_v49 = vmul.f32 %v5572_v54, %v5572_v54  ;;  %v3130_v32 = vsel %vm2865_vm14, %v3034_v3, 0.0  ;;  %v3132_v36 = vsel %vm2865_vm14, %v3035_v16, 0.0  ;;  %v2935_v51 = vsel %vm2865_vm14, %v5572_v54, 0.0 }
 0x321   :  { %v2928_v50 = vadd.f32 %v2927_v17, %v2926_v38  ;;  %v3125_v56 = vadd.f32 %v3124_v14, %v3123_v15  ;;  %v5928_v9 = vpop.f32.mrb[17].mxu1  ;;  %v5935_v6 = vpack.c.bf16 %v5923_v33, %v5923_v33  ;;  %v3037_v35 = vmul.f32 %v5648_v5, %v5648_v5 }
 0x322   :  { %v5939_v8 = vpack.c.bf16 %v5928_v9, %v5928_v9  ;;  %v5941_v12 = vpop.f32.mrb[18].mxu1  ;;  %v3553_v18 = vpop.permute.xlu0 %3552  ;;  %3582 = vrot.lane.b32.xlu1 %v3950_v27, %s4118_s30  ;;  %v3134_v14 = vsel %vm2865_vm14, %v3036_v49, 0.0  ;;  %v2937_v17 = vsel %vm2865_vm14, %v5648_v5, 0.0  ;;  %v2939_v5 = vsel %vm2865_vm14, %v5666_v1, 0.0 }
 0x323   :  { %v2930_v11 = vadd.f32 %v2929_v30, %v2928_v50  ;;  %v3127_v25 = vadd.f32 %v3126_v7, %v3125_v56  ;;  %3728 = vst.msk [vmem:[%s6393_s3 + $0x40] sm:$0xf] %vm3455_vm13, %v3553_v18  ;;  %v5948_v23 = vpop.f32.mrb[19].mxu1  ;;  %3506 = vst.msk [vmem:[%s6392_s2 + $0xc8] sm:$0xf] %vm3455_vm13, %v5935_v6  ;;  %v5967_v31 = vpack.c.bf16 %v5941_v12, %v5941_v12  ;;  %v3136_v50 = vsel %vm2865_vm14, %v3037_v35, 0.0 }
 0x324   :  { %3504 = vst.msk [vmem:[%s6392_s2 + $0xc0] sm:$0xf] %vm3455_vm13, %v5939_v8  ;;  %3584 = vrot.lane.b32.xlu0 %v5570_v19, %s4118_s30  ;;  %v5973_v27 = vpack.c.bf16 %v5948_v23, %v5948_v23  ;;  %v3555_v41 = vpop.permute.xlu1 %3554  ;;  %v2941_v7 = vsel %vm2865_vm14, %v5640_v40, 0.0  ;;  %v3040_v18 = vmul.f32 %v5654_v57, %v5654_v57  ;;  %v3041_v16 = vmul.f32 %v5736_v34, %v5736_v34 }
 0x325   :  { %v2932_v48 = vadd.f32 %v2931_v47, %v2930_v11  ;;  %v3129_v53 = vadd.f32 %v3128_v20, %v3127_v25  ;;  %3507 = vst.msk [vmem:[%s6392_s2 + $0xcc] sm:$0xf] %vm3455_vm13, %v5967_v31  ;;  %3729 = vst.msk [vmem:[%s6393_s3 + $0x44] sm:$0xf] %vm3455_vm13, %v3555_v41 }
 0x326   :  { %v3557_v19 = vpop.permute.xlu0 %3556  ;;  %3505 = vst.msk [vmem:[%s6392_s2 + $0xc4] sm:$0xf] %vm3455_vm13, %v5973_v27  ;;  %3586 = vrot.lane.b32.xlu1 %v5594_v22, %s4118_s30  ;;  %v3038_v22 = vmul.f32 %v5666_v1, %v5666_v1  ;;  %v3142_v47 = vsel %vm2865_vm14, %v3040_v18, 0.0  ;;  %v3050_v18 = vmul.f32 %v5948_v23, %v5948_v23 }
 0x327   :  { %v2934_v52 = vadd.f32 %v2933_v45, %v2932_v48  ;;  %v3131_v63 = vadd.f32 %v3130_v32, %v3129_v53  ;;  %3730 = vst.msk [vmem:[%s6393_s3 + $0x48] sm:$0xf] %vm3455_vm13, %v3557_v19  ;;  %v2945_v48 = vsel %vm2865_vm14, %v5736_v34, 0.0  ;;  %v2947_v45 = vsel %vm2865_vm14, %v5758_v28, 0.0 }
 0x328   :  { %3588 = vrot.lane.b32.xlu0 %v5562_v24, %s4118_s30  ;;  %v3559_v0 = vpop.permute.xlu1 %3558  ;;  %v3039_v24 = vmul.f32 %v5640_v40, %v5640_v40  ;;  %v2949_v32 = vsel %vm2865_vm14, %v5724_v55, 0.0  ;;  %v3044_v19 = vmul.f32 %v5742_v2, %v5742_v2 }
 0x329   :  { %v2936_v38 = vadd.f32 %v2935_v51, %v2934_v52  ;;  %v3133_v15 = vadd.f32 %v3132_v36, %v3131_v63  ;;  %3731 = vst.msk [vmem:[%s6393_s3 + $0x4c] sm:$0xf] %vm3455_vm13, %v3559_v0  ;;  %v3045_v36 = vmul.f32 %v5840_v58, %v5840_v58 }
 0x32a   :  { %3590 = vrot.lane.b32.xlu1 %v5581_v4, %s4118_s30  ;;  %v3138_v4 = vsel %vm2865_vm14, %v3038_v22, 0.0  ;;  %v3140_v1 = vsel %vm2865_vm14, %v3039_v24, 0.0  ;;  %v3150_v35 = vsel %vm2865_vm14, %v3044_v19, 0.0 }
 0x32b   :  { %v2938_v54 = vadd.f32 %v2937_v17, %v2936_v38  ;;  %v3135_v30 = vadd.f32 %v3134_v14, %v3133_v15  ;;  %v2953_v38 = vsel %vm2865_vm14, %v5840_v58, 0.0  ;;  %v2955_v14 = vsel %vm2865_vm14, %v5862_v44, 0.0 }
 0x32c   :  { %3592 = vrot.lane.b32.xlu0 %v5652_v59, %s4118_s30  ;;  %v2943_v59 = vsel %vm2865_vm14, %v5654_v57, 0.0  ;;  %v3043_v57 = vmul.f32 %v5724_v55, %v5724_v55  ;;  %v3048_v58 = vmul.f32 %v5846_v43, %v5846_v43 }
 0x32d   :  { %v2940_v56 = vadd.f32 %v2939_v5, %v2938_v54  ;;  %v3137_v3 = vadd.f32 %v3136_v50, %v3135_v30  ;;  %v2957_v54 = vsel %vm2865_vm14, %v5832_v13, 0.0  ;;  %v3049_v50 = vmul.f32 %v5928_v9, %v5928_v9 }
 0x32e   :  { %3594 = vrot.lane.b32.xlu1 %v5676_v10, %s4118_s30  ;;  %v3042_v10 = vmul.f32 %v5758_v28, %v5758_v28  ;;  %v3148_v28 = vsel %vm2865_vm14, %v3043_v57, 0.0 }
 0x32f   :  { %v2942_v11 = vadd.f32 %v2941_v7, %v2940_v56  ;;  %v3139_v25 = vadd.f32 %v3138_v4, %v3137_v3 }
 0x330   :  { %3596 = vrot.lane.b32.xlu0 %v5646_v62, %s4118_s30  ;;  %v3144_v62 = vsel %vm2865_vm14, %v3041_v16, 0.0  ;;  %v3160_v16 = vsel %vm2865_vm14, %v3049_v50, 0.0 }
 0x331   :  { %v3141_v40 = vadd.f32 %v3140_v1, %v3139_v25  ;;  %v2944_v20 = vadd.f32 %v2943_v59, %v2942_v11  ;;  %v3051_v59 = vmul.f32 %v5923_v33, %v5923_v33 }
 0x332   :  { %3598 = vrot.lane.b32.xlu1 %v5663_v60, %s4118_s30  ;;  %v3146_v60 = vsel %vm2865_vm14, %v3042_v10, 0.0  ;;  %v3162_v10 = vsel %vm2865_vm14, %v3050_v18, 0.0 }
 0x333   :  { %v2946_v53 = vadd.f32 %v2945_v48, %v2944_v20  ;;  %v3143_v41 = vadd.f32 %v3142_v47, %v3141_v40  ;;  %v3052_v48 = vmul.f32 %v5941_v12, %v5941_v12 }
 0x334   :  { %3600 = vrot.lane.b32.xlu0 %v5740_v39, %s4118_s30  ;;  %v2951_v39 = vsel %vm2865_vm14, %v5742_v2, 0.0  ;;  %v3047_v2 = vmul.f32 %v5832_v13, %v5832_v13  ;;  %v3158_v13 = vsel %vm2865_vm14, %v3048_v58, 0.0 }
 0x335   :  { %v2948_v34 = vadd.f32 %v2947_v45, %v2946_v53  ;;  %v3145_v49 = vadd.f32 %v3144_v62, %v3143_v41 }
 0x336   :  { %3602 = vrot.lane.b32.xlu1 %v5768_v37, %s4118_s30  ;;  %v3046_v37 = vmul.f32 %v5862_v44, %v5862_v44  ;;  %v3156_v44 = vsel %vm2865_vm14, %v3047_v2, 0.0 }
 0x337   :  { %v2950_v52 = vadd.f32 %v2949_v32, %v2948_v34  ;;  %v3147_v63 = vadd.f32 %v3146_v60, %v3145_v49  ;;  %v3166_v32 = vsel %vm2865_vm14, %v3052_v48, 0.0 }
 0x338   :  { %3604 = vrot.lane.b32.xlu0 %v5730_v46, %s4118_s30  ;;  %v3152_v46 = vsel %vm2865_vm14, %v3045_v36, 0.0 }
 0x339   :  { %v2952_v55 = vadd.f32 %v2951_v39, %v2950_v52  ;;  %v3149_v51 = vadd.f32 %v3148_v28, %v3147_v63 }
 0x33a   :  { %3606 = vrot.lane.b32.xlu1 %v5751_v21, %s4118_s30  ;;  %v3154_v21 = vsel %vm2865_vm14, %v3046_v37, 0.0 }
 0x33b   :  { %v2954_v15 = vadd.f32 %v2953_v38, %v2952_v55  ;;  %v3151_v0 = vadd.f32 %v3150_v35, %v3149_v51 }
 0x33c   :  { %3608 = vrot.lane.b32.xlu0 %v5844_v29, %s4118_s30  ;;  %v2959_v29 = vsel %vm2865_vm14, %v5846_v43, 0.0 }
 0x33d   :  { %v2956_v17 = vadd.f32 %v2955_v14, %v2954_v15  ;;  %v3153_v22 = vadd.f32 %v3152_v46, %v3151_v0 }
 0x33e   :  { %3610 = vrot.lane.b32.xlu1 %v5872_v61, %s4118_s30  ;;  %v2961_v61 = vsel %vm2865_vm14, %v5928_v9, 0.0  ;;  %v2963_v9 = vsel %vm2865_vm14, %v5948_v23, 0.0  ;;  %v2965_v23 = vsel %vm2865_vm14, %v5923_v33, 0.0  ;;  %v3164_v33 = vsel %vm2865_vm14, %v3051_v59, 0.0 }
 0x33f   :  { %v2958_v30 = vadd.f32 %v2957_v54, %v2956_v17  ;;  %v3155_v24 = vadd.f32 %v3154_v21, %v3153_v22 }
 0x340   :  { %v4078_v5 = vpop.f32.mrb[20].mxu1  ;;  %3612 = vrot.lane.b32.xlu0 %v5838_v26, %s4118_s30 }
 0x341   :  { %v2960_v56 = vadd.f32 %v2959_v29, %v2958_v30  ;;  %v3157_v3 = vadd.f32 %v3156_v44, %v3155_v24  ;;  %v2818_v7 = vpop.f32.mrb[21].mxu1  ;;  %v3973_v4 = vpack.c.bf16 %v4078_v5, %v4078_v5  ;;  %v2973_v51 = vsel %vm2865_vm14, %v4078_v5, 0.0 }
 0x342   :  { %v3971_v43 = vpack.c.bf16 %v2818_v7, %v2818_v7  ;;  %v4079_v11 = vpop.f32.mrb[22].mxu1  ;;  %3614 = vrot.lane.b32.xlu1 %v5855_v42, %s4118_s30  ;;  %v3053_v62 = vmul.f32 %v2818_v7, %v2818_v7  ;;  %v2969_v19 = vsel %vm2865_vm14, %v2818_v7, 0.0 }
 0x343   :  { %v2962_v25 = vadd.f32 %v2961_v61, %v2960_v56  ;;  %v3159_v1 = vadd.f32 %v3158_v13, %v3157_v3  ;;  %v2821_v26 = vpop.f32.mrb[23].mxu1  ;;  %3510 = vst.msk [vmem:[%s6392_s2 + $0xd8] sm:$0xf] %vm3455_vm13, %v3973_v4  ;;  %v3974_v42 = vpack.c.bf16 %v4079_v11, %v4079_v11  ;;  %v3056_v35 = vmul.f32 %v4079_v11, %v4079_v11 }
 0x344   :  { %3508 = vst.msk [vmem:[%s6392_s2 + $0xd0] sm:$0xf] %vm3455_vm13, %v3971_v43  ;;  %3616 = vrot.lane.b32.xlu0 %v5939_v8, %s4118_s30  ;;  %v3972_v47 = vpack.c.bf16 %v2821_v26, %v2821_v26  ;;  %v2967_v8 = vsel %vm2865_vm14, %v5941_v12, 0.0  ;;  %v3054_v60 = vmul.f32 %v2821_v26, %v2821_v26  ;;  %v3168_v63 = vsel %vm2865_vm14, %v3053_v62, 0.0 }
 0x345   :  { %v3161_v40 = vadd.f32 %v3160_v16, %v3159_v1  ;;  %v2964_v20 = vadd.f32 %v2963_v9, %v2962_v25  ;;  %3511 = vst.msk [vmem:[%s6392_s2 + $0xdc] sm:$0xf] %vm3455_vm13, %v3974_v42  ;;  %v2971_v28 = vsel %vm2865_vm14, %v2821_v26, 0.0  ;;  %v2975_v0 = vsel %vm2865_vm14, %v4079_v11, 0.0 }
 0x346   :  { %v3561_v53 = vpop.permute.xlu0 %3560  ;;  %3509 = vst.msk [vmem:[%s6392_s2 + $0xd4] sm:$0xf] %vm3455_vm13, %v3972_v47  ;;  %3618 = vrot.lane.b32.xlu1 %v5973_v27, %s4118_s30  ;;  %v3170_v38 = vsel %vm2865_vm14, %v3054_v60, 0.0  ;;  %v3174_v14 = vsel %vm2865_vm14, %v3056_v35, 0.0 }
 0x347   :  { %v2966_v41 = vadd.f32 %v2965_v23, %v2964_v20  ;;  %v3163_v57 = vadd.f32 %v3162_v10, %v3161_v40  ;;  %3732 = vst.msk [vmem:[%s6393_s3 + $0x50] sm:$0xf] %vm3455_vm13, %v3561_v53 }
 0x348   :  { %3620 = vrot.lane.b32.xlu0 %v5935_v6, %s4118_s30  ;;  %v3563_v49 = vpop.permute.xlu1 %3562  ;;  %v3055_v6 = vmul.f32 %v4078_v5, %v4078_v5 }
 0x349   :  { %v3165_v45 = vadd.f32 %v3164_v33, %v3163_v57  ;;  %v2968_v34 = vadd.f32 %v2967_v8, %v2966_v41  ;;  %3733 = vst.msk [vmem:[%s6393_s3 + $0x54] sm:$0xf] %vm3455_vm13, %v3563_v49 }
 0x34a   :  { %v3565_v27 = vpop.permute.xlu0 %3564  ;;  %3622 = vrot.lane.b32.xlu1 %v5967_v31, %s4118_s30  ;;  %v3172_v15 = vsel %vm2865_vm14, %v3055_v6, 0.0 }
 0x34b   :  { %v2970_v52 = vadd.f32 %v2969_v19, %v2968_v34  ;;  %v3167_v12 = vadd.f32 %v3166_v32, %v3165_v45  ;;  %3734 = vst.msk [vmem:[%s6393_s3 + $0x58] sm:$0xf] %vm3455_vm13, %v3565_v27 }
 0x34c   :  { %3624 = vrot.lane.b32.xlu0 %v3971_v43, %s4118_s30  ;;  %v3567_v55 = vpop.permute.xlu1 %3566 }
 0x34d   :  { %v3169_v39 = vadd.f32 %v3168_v63, %v3167_v12  ;;  %v2972_v36 = vadd.f32 %v2971_v28, %v2970_v52  ;;  %3735 = vst.msk [vmem:[%s6393_s3 + $0x5c] sm:$0xf] %vm3455_vm13, %v3567_v55 }
 0x34e   :  { %3626 = vrot.lane.b32.xlu1 %v3972_v47, %s4118_s30 }
 0x34f   :  { %v2974_v31 = vadd.f32 %v2973_v51, %v2972_v36  ;;  %v3171_v37 = vadd.f32 %v3170_v38, %v3169_v39 }
 0x350   :  { %3628 = vrot.lane.b32.xlu0 %v3973_v4, %s4118_s30 }
 0x351   :  { %v3173_v2 = vadd.f32 %v3172_v15, %v3171_v37  ;;  %v2976_v46 = vadd.f32 %v2975_v0, %v2974_v31 }
 0x352   :  { %3630 = vrot.lane.b32.xlu1 %v3974_v42, %s4118_s30 }
 0x353   :  { %v3175_v58 = vadd.f32 %v3174_v14, %v3173_v2 }
 0x360   :  { %v4082_v17 = vpop.f32.mrb[24].mxu1 }
 0x361   :  { %v3977_v22 = vpack.c.bf16 %v4082_v17, %v4082_v17  ;;  %v2834_v54 = vpop.f32.mrb[25].mxu1  ;;  %v3059_v29 = vmul.f32 %v4082_v17, %v4082_v17  ;;  %v2981_v43 = vsel %vm2865_vm14, %v4082_v17, 0.0 }
 0x362   :  { %v2977_v21 = vsel %vm2865_vm14, %v2834_v54, 0.0  ;;  %v3057_v30 = vmul.f32 %v2834_v54, %v2834_v54  ;;  %v3975_v24 = vpack.c.bf16 %v2834_v54, %v2834_v54  ;;  %v4083_v44 = vpop.f32.mrb[26].mxu1 }
 0x363   :  { %3514 = vst.msk [vmem:[%s6392_s2 + $0xe8] sm:$0xf] %vm3455_vm13, %v3977_v22  ;;  %v2978_v50 = vadd.f32 %v2977_v21, %v2976_v46  ;;  %v2837_v5 = vpop.f32.mrb[27].mxu1  ;;  %v3978_v56 = vpack.c.bf16 %v4083_v44, %v4083_v44  ;;  %v3060_v11 = vmul.f32 %v4083_v44, %v4083_v44  ;;  %v3180_v59 = vsel %vm2865_vm14, %v3059_v29, 0.0 }
 0x364   :  { %v3176_v13 = vsel %vm2865_vm14, %v3057_v30, 0.0  ;;  %3512 = vst.msk [vmem:[%s6392_s2 + $0xe0] sm:$0xf] %vm3455_vm13, %v3975_v24  ;;  %v2979_v3 = vsel %vm2865_vm14, %v2837_v5, 0.0  ;;  %v3058_v7 = vmul.f32 %v2837_v5, %v2837_v5  ;;  %3632 = vrot.lane.b32.xlu0 %v3975_v24, %s4118_s30  ;;  %v3976_v4 = vpack.c.bf16 %v2837_v5, %v2837_v5 }
 0x365   :  { %v3177_v61 = vadd.f32 %v3176_v13, %v3175_v58  ;;  %v2980_v18 = vadd.f32 %v2979_v3, %v2978_v50  ;;  %3515 = vst.msk [vmem:[%s6392_s2 + $0xec] sm:$0xf] %vm3455_vm13, %v3978_v56  ;;  %v2983_v16 = vsel %vm2865_vm14, %v4083_v44, 0.0  ;;  %v3182_v40 = vsel %vm2865_vm14, %v3060_v11, 0.0 }
 0x366   :  { %v3178_v25 = vsel %vm2865_vm14, %v3058_v7, 0.0  ;;  %3513 = vst.msk [vmem:[%s6392_s2 + $0xe4] sm:$0xf] %vm3455_vm13, %v3976_v4  ;;  %3634 = vrot.lane.b32.xlu1 %v3976_v4, %s4118_s30 }
 0x367   :  { %v2982_v1 = vadd.f32 %v2981_v43, %v2980_v18  ;;  %v3179_v26 = vadd.f32 %v3178_v25, %v3177_v61 }
 0x368   :  { %3636 = vrot.lane.b32.xlu0 %v3977_v22, %s4118_s30 }
 0x369   :  { %v3181_v9 = vadd.f32 %v3180_v59, %v3179_v26  ;;  %v2984_v42 = vadd.f32 %v2983_v16, %v2982_v1 }
 0x36a   :  { %v3569_v20 = vpop.permute.xlu0 %3568  ;;  %3638 = vrot.lane.b32.xlu1 %v3978_v56, %s4118_s30 }
 0x36b   :  { %3736 = vst.msk [vmem:[%s6393_s3 + $0x60] sm:$0xf] %vm3455_vm13, %v3569_v20  ;;  %v3183_v47 = vadd.f32 %v3182_v40, %v3181_v9 }
 0x36c   :  { %v3571_v23 = vpop.permute.xlu1 %3570 }
 0x36d   :  { %3737 = vst.msk [vmem:[%s6393_s3 + $0x64] sm:$0xf] %vm3455_vm13, %v3571_v23 }
 0x36e   :  { %v3573_v48 = vpop.permute.xlu0 %3572 }
 0x36f   :  { %3738 = vst.msk [vmem:[%s6393_s3 + $0x68] sm:$0xf] %vm3455_vm13, %v3573_v48 }
 0x370   :  { %v3575_v10 = vpop.permute.xlu1 %3574 }
 0x371   :  { %3739 = vst.msk [vmem:[%s6393_s3 + $0x6c] sm:$0xf] %vm3455_vm13, %v3575_v10 }
 0x37d   :  { %v4086_v53 = vpop.f32.mrb[28].mxu1 }
 0x37e   :  { %v3981_v41 = vpack.c.bf16 %v4086_v53, %v4086_v53  ;;  %v2850_v57 = vpop.f32.mrb[29].mxu1  ;;  %v3063_v34 = vmul.f32 %v4086_v53, %v4086_v53  ;;  %v2989_v28 = vsel %vm2865_vm14, %v4086_v53, 0.0 }
 0x37f   :  { %v2985_v33 = vsel %vm2865_vm14, %v2850_v57, 0.0  ;;  %v3061_v8 = vmul.f32 %v2850_v57, %v2850_v57  ;;  %v3979_v62 = vpack.c.bf16 %v2850_v57, %v2850_v57  ;;  %v4087_v45 = vpop.f32.mrb[30].mxu1 }
 0x380   :  { %3518 = vst.msk [vmem:[%s6392_s2 + $0xf8] sm:$0xf] %vm3455_vm13, %v3981_v41  ;;  %v2986_v49 = vadd.f32 %v2985_v33, %v2984_v42  ;;  %v2853_v32 = vpop.f32.mrb[31].mxu1  ;;  %v3982_v60 = vpack.c.bf16 %v4087_v45, %v4087_v45  ;;  %v3064_v39 = vmul.f32 %v4087_v45, %v4087_v45  ;;  %v3188_v35 = vsel %vm2865_vm14, %v3063_v34, 0.0 }
 0x381   :  { %v3184_v19 = vsel %vm2865_vm14, %v3061_v8, 0.0  ;;  %3516 = vst.msk [vmem:[%s6392_s2 + $0xf0] sm:$0xf] %vm3455_vm13, %v3979_v62  ;;  %v2987_v27 = vsel %vm2865_vm14, %v2853_v32, 0.0  ;;  %v3062_v52 = vmul.f32 %v2853_v32, %v2853_v32  ;;  %3640 = vrot.lane.b32.xlu0 %v3979_v62, %s4118_s30  ;;  %v3980_v63 = vpack.c.bf16 %v2853_v32, %v2853_v32 }
 0x382   :  { %v3185_v12 = vadd.f32 %v3184_v19, %v3183_v47  ;;  %v2988_v6 = vadd.f32 %v2987_v27, %v2986_v49  ;;  %3519 = vst.msk [vmem:[%s6392_s2 + $0xfc] sm:$0xf] %vm3455_vm13, %v3982_v60  ;;  %v2991_v38 = vsel %vm2865_vm14, %v4087_v45, 0.0  ;;  %v3190_v15 = vsel %vm2865_vm14, %v3064_v39, 0.0 }
 0x383   :  { %v3186_v36 = vsel %vm2865_vm14, %v3062_v52, 0.0  ;;  %3517 = vst.msk [vmem:[%s6392_s2 + $0xf4] sm:$0xf] %vm3455_vm13, %v3980_v63  ;;  %3642 = vrot.lane.b32.xlu1 %v3980_v63, %s4118_s30 }
 0x384   :  { %v2990_v55 = vadd.f32 %v2989_v28, %v2988_v6  ;;  %v3187_v51 = vadd.f32 %v3186_v36, %v3185_v12 }
 0x385   :  { %3644 = vrot.lane.b32.xlu0 %v3981_v41, %s4118_s30 }
 0x386   :  { %v2992_v31 = vadd.f32 %v2991_v38, %v2990_v55  ;;  %v3189_v37 = vadd.f32 %v3188_v35, %v3187_v51 }
 0x387   :  { %3646 = vrot.lane.b32.xlu1 %v3982_v60, %s4118_s30 }
 0x388   :  { %v2993_v0 = vrot.slane %v2992_v31, 4  ;;  %v3191_v2 = vadd.f32 %v3190_v15, %v3189_v37 }
 0x38a   :  { %v2994_v46 = vadd.f32 %v2993_v0, %v2992_v31  ;;  %v3192_v14 = vrot.slane %v3191_v2, 4 }
 0x38c   :  { %v2995_v58 = vrot.slane %v2994_v46, 2  ;;  %v3193_v17 = vadd.f32 %v3192_v14, %v3191_v2 }
 0x38e   :  { %v2996_v22 = vadd.f32 %v2995_v58, %v2994_v46  ;;  %v3194_v54 = vrot.slane %v3193_v17, 2  ;;  %v3577_v21 = vpop.permute.xlu0 %3576 }
 0x38f   :  { %3740 = vst.msk [vmem:[%s6393_s3 + $0x70] sm:$0xf] %vm3455_vm13, %v3577_v21 }
 0x390   :  { %v2997_v30 = vrot.slane %v2996_v22, 1  ;;  %v3195_v24 = vadd.f32 %v3194_v54, %v3193_v17  ;;  %v3579_v44 = vpop.permute.xlu1 %3578 }
 0x391   :  { %3741 = vst.msk [vmem:[%s6393_s3 + $0x74] sm:$0xf] %vm3455_vm13, %v3579_v44 }
 0x392   :  { %v2998_v29 = vadd.f32 %v2997_v30, %v2996_v22  ;;  %v3196_v50 = vrot.slane %v3195_v24, 1  ;;  %v3581_v5 = vpop.permute.xlu0 %3580 }
 0x393   :  { %3742 = vst.msk [vmem:[%s6393_s3 + $0x78] sm:$0xf] %vm3455_vm13, %v3581_v5 }
 0x394   :  { %3000 = vst.msk [vmem:[%s6394_s4] sm:$0x1] %vm2999_vm15, %v2998_v29  ;;  %v3197_v13 = vadd.f32 %v3196_v50, %v3195_v24  ;;  %v3583_v56 = vpop.permute.xlu1 %3582 }
 0x395   :  { %3743 = vst.msk [vmem:[%s6393_s3 + $0x7c] sm:$0xf] %vm3455_vm13, %v3583_v56 }
 0x396   :  { %3198 = vst.msk [vmem:[%s6394_s4 + $0x1] sm:$0x1] %vm2999_vm15, %v3197_v13  ;;  %v3585_v3 = vpop.permute.xlu0 %3584 }
 0x397   :  { %3744 = vst.msk [vmem:[%s6393_s3 + $0x80] sm:$0xf] %vm3455_vm13, %v3585_v3 }
 0x398   :  { %v3587_v7 = vpop.permute.xlu1 %3586 }
 0x399   :  { %3745 = vst.msk [vmem:[%s6393_s3 + $0x84] sm:$0xf] %vm3455_vm13, %v3587_v7 }
 0x39a   :  { %v3589_v61 = vpop.permute.xlu0 %3588 }
 0x39b   :  { %3746 = vst.msk [vmem:[%s6393_s3 + $0x88] sm:$0xf] %vm3455_vm13, %v3589_v61 }
 0x39c   :  { %v3591_v18 = vpop.permute.xlu1 %3590 }
 0x39d   :  { %3747 = vst.msk [vmem:[%s6393_s3 + $0x8c] sm:$0xf] %vm3455_vm13, %v3591_v18 }
 0x39e   :  { %v3593_v4 = vpop.permute.xlu0 %3592 }
 0x39f   :  { %3748 = vst.msk [vmem:[%s6393_s3 + $0x90] sm:$0xf] %vm3455_vm13, %v3593_v4 }
 0x3a0   :  { %v3595_v43 = vpop.permute.xlu1 %3594 }
 0x3a1   :  { %3749 = vst.msk [vmem:[%s6393_s3 + $0x94] sm:$0xf] %vm3455_vm13, %v3595_v43 }
 0x3a2   :  { %v3597_v11 = vpop.permute.xlu0 %3596 }
 0x3a3   :  { %3750 = vst.msk [vmem:[%s6393_s3 + $0x98] sm:$0xf] %vm3455_vm13, %v3597_v11 }
 0x3a4   :  { %v3599_v25 = vpop.permute.xlu1 %3598 }
 0x3a5   :  { %3751 = vst.msk [vmem:[%s6393_s3 + $0x9c] sm:$0xf] %vm3455_vm13, %v3599_v25 }
 0x3a6   :  { %v3601_v1 = vpop.permute.xlu0 %3600 }
 0x3a7   :  { %3752 = vst.msk [vmem:[%s6393_s3 + $0xa0] sm:$0xf] %vm3455_vm13, %v3601_v1 }
 0x3a8   :  { %v3603_v26 = vpop.permute.xlu1 %3602 }
 0x3a9   :  { %3753 = vst.msk [vmem:[%s6393_s3 + $0xa4] sm:$0xf] %vm3455_vm13, %v3603_v26 }
 0x3aa   :  { %v3605_v59 = vpop.permute.xlu0 %3604 }
 0x3ab   :  { %3754 = vst.msk [vmem:[%s6393_s3 + $0xa8] sm:$0xf] %vm3455_vm13, %v3605_v59 }
 0x3ac   :  { %v3607_v16 = vpop.permute.xlu1 %3606 }
 0x3ad   :  { %3755 = vst.msk [vmem:[%s6393_s3 + $0xac] sm:$0xf] %vm3455_vm13, %v3607_v16 }
 0x3ae   :  { %v3609_v9 = vpop.permute.xlu0 %3608 }
 0x3af   :  { %3756 = vst.msk [vmem:[%s6393_s3 + $0xb0] sm:$0xf] %vm3455_vm13, %v3609_v9 }
 0x3b0   :  { %v3611_v42 = vpop.permute.xlu1 %3610 }
 0x3b1   :  { %3757 = vst.msk [vmem:[%s6393_s3 + $0xb4] sm:$0xf] %vm3455_vm13, %v3611_v42 }
 0x3b2   :  { %v3613_v40 = vpop.permute.xlu0 %3612 }
 0x3b3   :  { %3758 = vst.msk [vmem:[%s6393_s3 + $0xb8] sm:$0xf] %vm3455_vm13, %v3613_v40 }
 0x3b4   :  { %v3615_v20 = vpop.permute.xlu1 %3614 }
 0x3b5   :  { %3759 = vst.msk [vmem:[%s6393_s3 + $0xbc] sm:$0xf] %vm3455_vm13, %v3615_v20 }
 0x3b6   :  { %v3617_v47 = vpop.permute.xlu0 %3616 }
 0x3b7   :  { %3760 = vst.msk [vmem:[%s6393_s3 + $0xc0] sm:$0xf] %vm3455_vm13, %v3617_v47 }
 0x3b8   :  { %v3619_v23 = vpop.permute.xlu1 %3618 }
 0x3b9   :  { %3761 = vst.msk [vmem:[%s6393_s3 + $0xc4] sm:$0xf] %vm3455_vm13, %v3619_v23 }
 0x3ba   :  { %v3621_v48 = vpop.permute.xlu0 %3620 }
 0x3bb   :  { %3762 = vst.msk [vmem:[%s6393_s3 + $0xc8] sm:$0xf] %vm3455_vm13, %v3621_v48 }
 0x3bc   :  { %v3623_v10 = vpop.permute.xlu1 %3622 }
 0x3bd   :  { %3763 = vst.msk [vmem:[%s6393_s3 + $0xcc] sm:$0xf] %vm3455_vm13, %v3623_v10 }
 0x3be   :  { %v3625_v53 = vpop.permute.xlu0 %3624 }
 0x3bf   :  { %3764 = vst.msk [vmem:[%s6393_s3 + $0xd0] sm:$0xf] %vm3455_vm13, %v3625_v53 }
 0x3c0   :  { %v3627_v41 = vpop.permute.xlu1 %3626 }
 0x3c1   :  { %3765 = vst.msk [vmem:[%s6393_s3 + $0xd4] sm:$0xf] %vm3455_vm13, %v3627_v41 }
 0x3c2   :  { %v3629_v57 = vpop.permute.xlu0 %3628 }
 0x3c3   :  { %3766 = vst.msk [vmem:[%s6393_s3 + $0xd8] sm:$0xf] %vm3455_vm13, %v3629_v57 }
 0x3c4   :  { %v3631_v33 = vpop.permute.xlu1 %3630 }
 0x3c5   :  { %3767 = vst.msk [vmem:[%s6393_s3 + $0xdc] sm:$0xf] %vm3455_vm13, %v3631_v33 }
 0x3d6   :  { %v3633_v8 = vpop.permute.xlu0 %3632 }
 0x3d7   :  { %3768 = vst.msk [vmem:[%s6393_s3 + $0xe0] sm:$0xf] %vm3455_vm13, %v3633_v8 }
 0x3d8   :  { %v3635_v62 = vpop.permute.xlu1 %3634 }
 0x3d9   :  { %3769 = vst.msk [vmem:[%s6393_s3 + $0xe4] sm:$0xf] %vm3455_vm13, %v3635_v62 }
 0x3da   :  { %v3637_v45 = vpop.permute.xlu0 %3636 }
 0x3db   :  { %3770 = vst.msk [vmem:[%s6393_s3 + $0xe8] sm:$0xf] %vm3455_vm13, %v3637_v45 }
 0x3dc   :  { %v3639_v34 = vpop.permute.xlu1 %3638 }
 0x3dd   :  { %3771 = vst.msk [vmem:[%s6393_s3 + $0xec] sm:$0xf] %vm3455_vm13, %v3639_v34 }
 0x3f3   :  { %v3641_v49 = vpop.permute.xlu0 %3640 }
 0x3f4   :  { %3772 = vst.msk [vmem:[%s6393_s3 + $0xf0] sm:$0xf] %vm3455_vm13, %v3641_v49 }
 0x3f5   :  { %v3643_v32 = vpop.permute.xlu1 %3642 }
 0x3f6   :  { %3773 = vst.msk [vmem:[%s6393_s3 + $0xf4] sm:$0xf] %vm3455_vm13, %v3643_v32 }
 0x3f7   :  { %v3645_v19 = vpop.permute.xlu0 %3644 }
 0x3f8   :  { %3774 = vst.msk [vmem:[%s6393_s3 + $0xf8] sm:$0xf] %vm3455_vm13, %v3645_v19 }
 0x3f9   :  { %v3647_v60 = vpop.permute.xlu1 %3646 }
 0x3fa   :  { %3775 = vst.msk [vmem:[%s6393_s3 + $0xfc] sm:$0xf] %vm3455_vm13, %v3647_v60 }

</bundles_post_ra>
